<compile_context>
chip_gen: v7x
topology: tpu7x:2x2x1
jax: 0.10.0
libtpu: 0.0.40
codegen_flags: <defaults>
</compile_context>

<pallas_src>
import jax
import jax.numpy as jnp
from jax import lax
from jax.experimental import pallas as pl
from jax.experimental.pallas import tpu as pltpu

B_TILE = 16  # images per grid step (VMEM/step ~15 MiB incl. double buffers)


# -----------------------------------------------------------------------------
# Kernel 1: conv (im2col matmul) + bias + ReLU + 2x2 max-pool for a batch tile.
# -----------------------------------------------------------------------------
def _conv_relu_pool_kernel(patches_ref, wc_ref, bc_ref, out_ref):
    # patches_ref: (B, 576, 25) bf16   rows(within image) = e*144 + pool_pos
    # wc_ref:      (25, 32)    bf16    [tap, out_channel]
    # bc_ref:      (1, 32)     f32
    # out_ref:     (B, 144, 32) bf16   [pool_pos, out_channel]
    b = patches_ref.shape[0]
    p = patches_ref[...].reshape(b * 576, 25)          # leading-dim collapse
    conv = jnp.dot(p, wc_ref[...], preferred_element_type=jnp.float32)
    conv = jnp.maximum(conv + bc_ref[...], 0.0)        # bias + ReLU in f32
    c = conv.reshape(b, 576, 32)                       # leading-dim split
    pooled = jnp.maximum(jnp.maximum(c[:, 0:144], c[:, 144:288]),
                         jnp.maximum(c[:, 288:432], c[:, 432:576]))
    out_ref[...] = pooled.astype(out_ref.dtype)


# -----------------------------------------------------------------------------
# Kernel 2: Linear(4608,32) + ReLU -> Linear(32,2) -> sigmoid for a batch tile.
# -----------------------------------------------------------------------------
def _mlp_kernel(feat_ref, w1_ref, b1_ref, w2_ref, b2_ref, out_ref):
    # feat_ref: (B, 4608) bf16, w1_ref: (4608, 32) bf16 (columns pre-permuted)
    h = jnp.dot(feat_ref[...], w1_ref[...], preferred_element_type=jnp.float32)
    h = jnp.maximum(h + b1_ref[...], 0.0)
    logits = jnp.dot(h, w2_ref[...], preferred_element_type=jnp.float32)
    out_ref[...] = jax.nn.sigmoid(logits + b2_ref[...])


# -----------------------------------------------------------------------------
# Glue (plain JAX): im2col with pool-window-major row ordering.
# -----------------------------------------------------------------------------
def _im2col_pool_ordered(x):
    # x: (N, 28, 28) -> (N, 576, 25); row = (dyp*2+dxp)*144 + ph*12 + pw
    n = x.shape[0]
    patches = jnp.stack(
        [x[:, dy:dy + 24, dx:dx + 24] for dy in range(5) for dx in range(5)],
        axis=-1)                                       # (N, 24, 24, 25)
    patches = patches.reshape(n, 12, 2, 12, 2, 25)     # h=2ph+dyp, w=2pw+dxp
    patches = patches.transpose(0, 2, 4, 1, 3, 5)      # (N, dyp, dxp, ph, pw, 25)
    return patches.reshape(n, 576, 25)


def infix_classifier_forward(x, params):
    """Forward pass.  x: (N, 1, 28, 28) float32 (NCHW, like PyTorch)."""
    wc, bc = params["wc"], params["bc"]          # (32,1,5,5), (32,)
    w1, b1 = params["w1"], params["b1"]          # (32,4608), (32,)
    w2, b2 = params["w2"], params["b2"]          # (2,32),   (2,)
    n = x.shape[0]
    n_pad = ((n + B_TILE - 1) // B_TILE) * B_TILE
    tiles = n_pad // B_TILE

    # ---- glue: im2col in bf16 (K=25, no tap padding), batch padded to tile ----
    patches = _im2col_pool_ordered(x[:, 0, :, :].astype(jnp.bfloat16))
    if n_pad != n:
        patches = jnp.pad(patches, ((0, n_pad - n), (0, 0), (0, 0)))

    wc_mat = wc.reshape(32, 25).T.astype(jnp.bfloat16)            # (25, 32)
    bc_row = bc.reshape(1, 32).astype(jnp.float32)
    # One-time column permutation of w1: PyTorch flatten index is c*144 + pos,
    # our pooled layout flattens as pos*32 + c.
    w1p = (w1.reshape(32, 32, 144).transpose(0, 2, 1)
             .reshape(32, 4608).T.astype(jnp.bfloat16))           # (4608, 32)
    b1_row = b1.reshape(1, 32).astype(jnp.float32)
    w2_mat = w2.T.astype(jnp.float32)                             # (32, 2)
    b2_row = b2.reshape(1, 2).astype(jnp.float32)

    # ---- kernel 1: conv + ReLU + max-pool, batch-tiled ----
    pooled = pl.pallas_call(
        _conv_relu_pool_kernel,
        out_shape=jax.ShapeDtypeStruct((n_pad, 144, 32), jnp.bfloat16),
        grid_spec=pltpu.PrefetchScalarGridSpec(
            num_scalar_prefetch=0,
            grid=(tiles,),
            in_specs=[
                pl.BlockSpec((B_TILE, 576, 25), lambda i: (i, 0, 0)),
                pl.BlockSpec((25, 32), lambda i: (0, 0)),
                pl.BlockSpec((1, 32), lambda i: (0, 0)),
            ],
            out_specs=pl.BlockSpec((B_TILE, 144, 32), lambda i: (i, 0, 0)),
        ),
        compiler_params=pltpu.CompilerParams(
            dimension_semantics=("parallel",)),
    )(patches, wc_mat, bc_row)

    # ---- glue: FREE row-major flatten (w1 columns already permuted) ----
    feat = pooled.reshape(n_pad, 144 * 32)                        # (N_pad, 4608)

    # ---- kernel 2: MLP head + sigmoid, batch-tiled, weights resident ----
    out = pl.pallas_call(
        _mlp_kernel,
        out_shape=jax.ShapeDtypeStruct((n_pad, 2), jnp.float32),
        grid_spec=pltpu.PrefetchScalarGridSpec(
            num_scalar_prefetch=0,
            grid=(tiles,),
            in_specs=[
                pl.BlockSpec((B_TILE, 4608), lambda i: (i, 0)),
                pl.BlockSpec((4608, 32), lambda i: (0, 0)),
                pl.BlockSpec((1, 32), lambda i: (0, 0)),
                pl.BlockSpec((32, 2), lambda i: (0, 0)),
                pl.BlockSpec((1, 2), lambda i: (0, 0)),
            ],
            out_specs=pl.BlockSpec((B_TILE, 2), lambda i: (i, 0)),
        ),
        compiler_params=pltpu.CompilerParams(
            dimension_semantics=("parallel",)),
    )(feat, w1p, b1_row, w2_mat, b2_row)

    return out[:n]


# -----------------------------------------------------------------------------
# Pure-JAX reference mirroring the PyTorch forward exactly (f32).
# -----------------------------------------------------------------------------
def reference_forward(x, params):
    wc, bc = params["wc"], params["bc"]
    w1, b1 = params["w1"], params["b1"]
    w2, b2 = params["w2"], params["b2"]
    y = lax.conv_general_dilated(x, wc, window_strides=(1, 1), padding="VALID",
                                 dimension_numbers=("NCHW", "OIHW", "NCHW"))
    y = jnp.maximum(y + bc[None, :, None, None], 0.0)
    y = lax.reduce_window(y, -jnp.inf, lax.max, (1, 1, 2, 2), (1, 1, 2, 2), "VALID")
    y = y.reshape(y.shape[0], 32 * 12 * 12)                       # NCHW flatten
    y = jnp.maximum(y @ w1.T + b1, 0.0)
    return jax.nn.sigmoid(y @ w2.T + b2)


def init_params(key):
    ks = jax.random.split(key, 6)

    def u(k, shape, fan_in):
        bound = 1.0 / jnp.sqrt(fan_in)
        return jax.random.uniform(k, shape, jnp.float32, -bound, bound)

    return {
        "wc": u(ks[0], (32, 1, 5, 5), 25.0),
        "bc": u(ks[1], (32,), 25.0),
        "w1": u(ks[2], (32, 12 * 12 * 32), 4608.0),
        "b1": u(ks[3], (32,), 4608.0),
        "w2": u(ks[4], (2, 32), 32.0),
        "b2": u(ks[5], (2,), 32.0),
    }


if __name__ == "__main__":
    key = jax.random.PRNGKey(0)
    k_param, k_x = jax.random.split(key)
    params = init_params(k_param)
    # Input implied by the module: view(-1, 12*12*32) after pool => 28x28 input.
    x = jax.random.normal(k_x, (2, 1, 28, 28), jnp.float32)

    out = jax.jit(infix_classifier_forward)(x, params)
    out = jax.block_until_ready(out)

    ref = reference_forward(x, params)
    assert out.shape == (2, 2), out.shape
    assert bool(jnp.allclose(out, ref, atol=1e-2, rtol=1e-2)), (out, ref)
    print("KERNEL_OK")
</pallas_src>

<mosaic_0001>
module attributes {stable_mosaic.version = 11 : i64} {
  func.func @_conv_relu_pool_kernel(%arg0: i32, %arg1: memref<16x576x25xbf16, #tpu.memory_space<vmem>>, %arg2: memref<25x32xbf16, #tpu.memory_space<vmem>>, %arg3: memref<1x32xf32, #tpu.memory_space<vmem>>, %arg4: memref<16x144x32xbf16, #tpu.memory_space<vmem>>) attributes {dimension_semantics = [#tpu.dimension_semantics<parallel>], iteration_bounds = array<i64: 1>, scalar_prefetch = 0 : i64, scratch_operands = 0 : i64, tpu.core_type = #tpu.core_type<tc>, window_params = [{transform_indices = @transform_0, window_bounds = array<i64: 16, 576, 25>}, {pipeline_mode = #tpu.pipeline_mode<synchronous>, transform_indices = @transform_1, window_bounds = array<i64: 25, 32>}, {pipeline_mode = #tpu.pipeline_mode<synchronous>, transform_indices = @transform_2, window_bounds = array<i64: 1, 32>}, {transform_indices = @transform_3, window_bounds = array<i64: 16, 144, 32>}]} {
    %c0 = arith.constant 0 : index
    %c0_0 = arith.constant 0 : index
    %c0_1 = arith.constant 0 : index
    %0 = vector.load %arg1[%c0, %c0_0, %c0_1] : memref<16x576x25xbf16, #tpu.memory_space<vmem>>, vector<16x576x25xbf16>
    %1 = vector.shape_cast %0 : vector<16x576x25xbf16> to vector<9216x25xbf16>
    %c0_2 = arith.constant 0 : index
    %c0_3 = arith.constant 0 : index
    %2 = vector.load %arg2[%c0_2, %c0_3] : memref<25x32xbf16, #tpu.memory_space<vmem>>, vector<25x32xbf16>
    %cst = arith.constant dense<0.000000e+00> : vector<9216x32xf32>
    %3 = tpu.matmul %1, %2, %cst {dimension_numbers = #tpu.dot_dimension_numbers<[1], [0], [0], [1], [0, 0, 1, 1], [], []>} : vector<9216x25xbf16>, vector<25x32xbf16>, vector<9216x32xf32> -> vector<9216x32xf32>
    %c0_4 = arith.constant 0 : index
    %c0_5 = arith.constant 0 : index
    %4 = vector.load %arg3[%c0_4, %c0_5] : memref<1x32xf32, #tpu.memory_space<vmem>>, vector<1x32xf32>
    %5 = vector.broadcast %4 : vector<1x32xf32> to vector<9216x32xf32>
    %6 = arith.addf %3, %5 : vector<9216x32xf32>
    %cst_6 = arith.constant 0.000000e+00 : f32
    %7 = vector.broadcast %cst_6 : f32 to vector<9216x32xf32>
    %8 = arith.maximumf %6, %7 : vector<9216x32xf32>
    %9 = vector.shape_cast %8 : vector<9216x32xf32> to vector<16x576x32xf32>
    %10 = vector.extract_strided_slice %9 {offsets = [0, 0, 0], sizes = [16, 144, 32], strides = [1, 1, 1]} : vector<16x576x32xf32> to vector<16x144x32xf32>
    %11 = vector.extract_strided_slice %9 {offsets = [0, 144, 0], sizes = [16, 144, 32], strides = [1, 1, 1]} : vector<16x576x32xf32> to vector<16x144x32xf32>
    %12 = arith.maximumf %10, %11 : vector<16x144x32xf32>
    %13 = vector.extract_strided_slice %9 {offsets = [0, 288, 0], sizes = [16, 144, 32], strides = [1, 1, 1]} : vector<16x576x32xf32> to vector<16x144x32xf32>
    %14 = vector.extract_strided_slice %9 {offsets = [0, 432, 0], sizes = [16, 144, 32], strides = [1, 1, 1]} : vector<16x576x32xf32> to vector<16x144x32xf32>
    %15 = arith.maximumf %13, %14 : vector<16x144x32xf32>
    %16 = arith.maximumf %12, %15 : vector<16x144x32xf32>
    %17 = arith.truncf %16 : vector<16x144x32xf32> to vector<16x144x32xbf16>
    %c0_7 = arith.constant 0 : index
    %c0_8 = arith.constant 0 : index
    %c0_9 = arith.constant 0 : index
    %18 = vector.load %arg4[%c0_7, %c0_8, %c0_9] : memref<16x144x32xbf16, #tpu.memory_space<vmem>>, vector<16x144x32xbf16>
    tpu.vector_store %arg4[%c0_7, %c0_8, %c0_9], %17 {strides = array<i32>} : memref<16x144x32xbf16, #tpu.memory_space<vmem>>, vector<16x144x32xbf16>,
    return
  }
  func.func @transform_0(%arg0: i32) -> (i32, i32, i32) {
    %c0_i32 = arith.constant 0 : i32
    %c0_i32_0 = arith.constant 0 : i32
    %c0_i32_1 = arith.constant 0 : i32
    return %arg0, %c0_i32, %c0_i32_0 : i32, i32, i32
  }
  func.func @transform_1(%arg0: i32) -> (i32, i32) {
    %c0_i32 = arith.constant 0 : i32
    %c0_i32_0 = arith.constant 0 : i32
    %c0_i32_1 = arith.constant 0 : i32
    return %c0_i32, %c0_i32_0 : i32, i32
  }
  func.func @transform_2(%arg0: i32) -> (i32, i32) {
    %c0_i32 = arith.constant 0 : i32
    %c0_i32_0 = arith.constant 0 : i32
    %c0_i32_1 = arith.constant 0 : i32
    return %c0_i32, %c0_i32_0 : i32, i32
  }
  func.func @transform_3(%arg0: i32) -> (i32, i32, i32) {
    %c0_i32 = arith.constant 0 : i32
    %c0_i32_0 = arith.constant 0 : i32
    %c0_i32_1 = arith.constant 0 : i32
    return %arg0, %c0_i32, %c0_i32_0 : i32, i32, i32
  }
}

module attributes {stable_mosaic.version = 11 : i64} {
  func.func @_mlp_kernel(%arg0: i32, %arg1: memref<16x4608xbf16, #tpu.memory_space<vmem>>, %arg2: memref<4608x32xbf16, #tpu.memory_space<vmem>>, %arg3: memref<1x32xf32, #tpu.memory_space<vmem>>, %arg4: memref<32x2xf32, #tpu.memory_space<vmem>>, %arg5: memref<1x2xf32, #tpu.memory_space<vmem>>, %arg6: memref<16x2xf32, #tpu.memory_space<vmem>>) attributes {dimension_semantics = [#tpu.dimension_semantics<parallel>], iteration_bounds = array<i64: 1>, scalar_prefetch = 0 : i64, scratch_operands = 0 : i64, tpu.core_type = #tpu.core_type<tc>, window_params = [{transform_indices = @transform_0, window_bounds = array<i64: 16, 4608>}, {pipeline_mode = #tpu.pipeline_mode<synchronous>, transform_indices = @transform_1, window_bounds = array<i64: 4608, 32>}, {pipeline_mode = #tpu.pipeline_mode<synchronous>, transform_indices = @transform_2, window_bounds = array<i64: 1, 32>}, {pipeline_mode = #tpu.pipeline_mode<synchronous>, transform_indices = @transform_3, window_bounds = array<i64: 32, 2>}, {pipeline_mode = #tpu.pipeline_mode<synchronous>, transform_indices = @transform_4, window_bounds = array<i64: 1, 2>}, {transform_indices = @transform_5, window_bounds = array<i64: 16, 2>}]} {
    %c0 = arith.constant 0 : index
    %c0_0 = arith.constant 0 : index
    %0 = vector.load %arg1[%c0, %c0_0] : memref<16x4608xbf16, #tpu.memory_space<vmem>>, vector<16x4608xbf16>
    %c0_1 = arith.constant 0 : index
    %c0_2 = arith.constant 0 : index
    %1 = vector.load %arg2[%c0_1, %c0_2] : memref<4608x32xbf16, #tpu.memory_space<vmem>>, vector<4608x32xbf16>
    %cst = arith.constant dense<0.000000e+00> : vector<16x32xf32>
    %2 = tpu.matmul %0, %1, %cst {dimension_numbers = #tpu.dot_dimension_numbers<[1], [0], [0], [1], [0, 0, 1, 1], [], []>} : vector<16x4608xbf16>, vector<4608x32xbf16>, vector<16x32xf32> -> vector<16x32xf32>
    %c0_3 = arith.constant 0 : index
    %c0_4 = arith.constant 0 : index
    %3 = vector.load %arg3[%c0_3, %c0_4] : memref<1x32xf32, #tpu.memory_space<vmem>>, vector<1x32xf32>
    %4 = vector.broadcast %3 : vector<1x32xf32> to vector<16x32xf32>
    %5 = arith.addf %2, %4 : vector<16x32xf32>
    %cst_5 = arith.constant 0.000000e+00 : f32
    %6 = vector.broadcast %cst_5 : f32 to vector<16x32xf32>
    %7 = arith.maximumf %5, %6 : vector<16x32xf32>
    %c0_6 = arith.constant 0 : index
    %c0_7 = arith.constant 0 : index
    %8 = vector.load %arg4[%c0_6, %c0_7] : memref<32x2xf32, #tpu.memory_space<vmem>>, vector<32x2xf32>
    %cst_8 = arith.constant dense<0.000000e+00> : vector<16x2xf32>
    %9 = tpu.matmul %7, %8, %cst_8 {dimension_numbers = #tpu.dot_dimension_numbers<[1], [0], [0], [1], [0, 0, 1, 1], [], []>} : vector<16x32xf32>, vector<32x2xf32>, vector<16x2xf32> -> vector<16x2xf32>
    %c0_9 = arith.constant 0 : index
    %c0_10 = arith.constant 0 : index
    %10 = vector.load %arg5[%c0_9, %c0_10] : memref<1x2xf32, #tpu.memory_space<vmem>>, vector<1x2xf32>
    %11 = vector.broadcast %10 : vector<1x2xf32> to vector<16x2xf32>
    %12 = arith.addf %9, %11 : vector<16x2xf32>
    %13 = arith.negf %12 : vector<16x2xf32>
    %14 = math.exp %13 : vector<16x2xf32>
    %cst_11 = arith.constant 1.000000e+00 : f32
    %15 = vector.broadcast %cst_11 : f32 to vector<16x2xf32>
    %16 = arith.addf %15, %14 : vector<16x2xf32>
    %17 = arith.divf %15, %16 : vector<16x2xf32>
    %c0_12 = arith.constant 0 : index
    %c0_13 = arith.constant 0 : index
    %18 = vector.load %arg6[%c0_12, %c0_13] : memref<16x2xf32, #tpu.memory_space<vmem>>, vector<16x2xf32>
    tpu.vector_store %arg6[%c0_12, %c0_13], %17 {strides = array<i32>} : memref<16x2xf32, #tpu.memory_space<vmem>>, vector<16x2xf32>,
    return
  }
  func.func @transform_0(%arg0: i32) -> (i32, i32) {
    %c0_i32 = arith.constant 0 : i32
    %c0_i32_0 = arith.constant 0 : i32
    return %arg0, %c0_i32 : i32, i32
  }
  func.func @transform_1(%arg0: i32) -> (i32, i32) {
    %c0_i32 = arith.constant 0 : i32
    %c0_i32_0 = arith.constant 0 : i32
    %c0_i32_1 = arith.constant 0 : i32
    return %c0_i32, %c0_i32_0 : i32, i32
  }
  func.func @transform_2(%arg0: i32) -> (i32, i32) {
    %c0_i32 = arith.constant 0 : i32
    %c0_i32_0 = arith.constant 0 : i32
    %c0_i32_1 = arith.constant 0 : i32
    return %c0_i32, %c0_i32_0 : i32, i32
  }
  func.func @transform_3(%arg0: i32) -> (i32, i32) {
    %c0_i32 = arith.constant 0 : i32
    %c0_i32_0 = arith.constant 0 : i32
    %c0_i32_1 = arith.constant 0 : i32
    return %c0_i32, %c0_i32_0 : i32, i32
  }
  func.func @transform_4(%arg0: i32) -> (i32, i32) {
    %c0_i32 = arith.constant 0 : i32
    %c0_i32_0 = arith.constant 0 : i32
    %c0_i32_1 = arith.constant 0 : i32
    return %c0_i32, %c0_i32_0 : i32, i32
  }
  func.func @transform_5(%arg0: i32) -> (i32, i32) {
    %c0_i32 = arith.constant 0 : i32
    %c0_i32_0 = arith.constant 0 : i32
    return %arg0, %c0_i32 : i32, i32
  }
}

</mosaic_0001>

<bundles_post_ra>
// kernel: infix_classifier_forward.2
= control target key start
LH: loop header
LB: loop body
LE: loop exit
PB: predicated region body
PF: predicated region fallthrough
CT: control target
= control target key end

     0   :  { %vm5798_vm0 = vcmask 1043456   ;;  %vm5799_vm1 = vcmask 1044480   ;;  %vm4069_vm2 = vcmask 203776   ;;  %v17967_v1 = vmov 65535   ;;  %s26753_s1 = inlined_call_operand.vmem [shape: bf16[25,32], index: 1, kind: input, shape index: {}]   ;;  %s26754_s0 = inlined_call_operand.vmem [shape: bf16[16,576,25], index: 0, kind: input, shape index: {}]   ;;  %s26755_s2 = inlined_call_operand.vmem [shape: f32[1,32], index: 2, kind: input, shape index: {}]   ;;  %s26756_s3 = inlined_call_operand.vmem [shape: bf16[16,144,32], index: 3, kind: output, shape index: {}]  }
   0x1   :  { %v17377_v0 = vld [vmem:[%s26753_s1] sm:$0xff]   ;;  %v5800_v2 = vsel %vm5798_vm0, 4294967295, %v17967_v1  ;;  %v17378_v3 = vld [vmem:[%s26753_s1 + $0x8] sm:$0x1f]   ;;  %v17383_v10 = vld [vmem:[%s26754_s0 + $0x10] sm:$0xff]   ;;  %vm13614_vm3 = vcmask 257024  }
   0x2   :  { %16216 = vmatprep.subr.bf16.mxu0 %v17377_v0  ;;  %17372 = vmatprep.subr.bf16.mxu1 %v17377_v0  ;;  %v5801_v4 = vsel %vm5799_vm1, %v5800_v2, 0  ;;  %v17379_v5 = vld [vmem:[%s26754_s0] sm:$0xff]   ;;  %v17381_v8 = vld [vmem:[%s26754_s0 + $0x8] sm:$0xff]   ;;  %v17384_v11 = vld [vmem:[%s26754_s0 + $0x910] sm:$0xff]  }
   0x3   :  { %16217 = vmatpush3.bf16.msra.mxu0 %v17377_v0  ;;  %17374 = vmatpush3.bf16.msra.mxu1 %v17377_v0  ;;  %v5803_v6 = vand.u32 %v17378_v3, %v5801_v4  ;;  %v17380_v7 = vld [vmem:[%s26754_s0 + $0x900] sm:$0xff]   ;;  %v17382_v9 = vld [vmem:[%s26754_s0 + $0x908] sm:$0xff]   ;;  %v17385_v12 = vld [vmem:[%s26754_s0 + $0x18] sm:$0xff]  }
   0x4   :  { %16220 = vmatprep.mubr.msk.bf16.mxu0 %vm4069_vm2, %v17379_v5  ;;  %16796 = vmatprep.mubr.msk.bf16.mxu1 %vm4069_vm2, %v17380_v7  ;;  %v17386_v13 = vld [vmem:[%s26754_s0 + $0x918] sm:$0xff]   ;;  %v17387_v14 = vld [vmem:[%s26754_s0 + $0x20] sm:$0xff]   ;;  %v17389_v16 = vld [vmem:[%s26754_s0 + $0x28] sm:$0xff]  }
   0x5   :  { %16218 = vmatprep.subr.bf16.mxu0 %v5803_v6  ;;  %17373 = vmatprep.subr.bf16.mxu1 %v5803_v6  ;;  %v17388_v15 = vld [vmem:[%s26754_s0 + $0x920] sm:$0xff]   ;;  %v17390_v17 = vld [vmem:[%s26754_s0 + $0x928] sm:$0xff]   ;;  %v17391_v18 = vld [vmem:[%s26754_s0 + $0x30] sm:$0xff]  }
   0x6   :  { %v17392_v19 = vld [vmem:[%s26754_s0 + $0x930] sm:$0xff]   ;;  %v17393_v20 = vld [vmem:[%s26754_s0 + $0x38] sm:$0xff]   ;;  %v17395_v22 = vld [vmem:[%s26754_s0 + $0x40] sm:$0xff]  }
   0x7   :  { %16219 = vmatpush3.bf16.msra.mxu0 %v5803_v6  ;;  %17375 = vmatpush3.bf16.msra.mxu1 %v5803_v6  ;;  %v17394_v21 = vld [vmem:[%s26754_s0 + $0x938] sm:$0xff]   ;;  %v17396_v23 = vld [vmem:[%s26754_s0 + $0x940] sm:$0xff]   ;;  %v17397_v24 = vld [vmem:[%s26754_s0 + $0x48] sm:$0xff]  }
   0x8   :  { %v17398_v25 = vld [vmem:[%s26754_s0 + $0x948] sm:$0xff]   ;;  %v17399_v26 = vld [vmem:[%s26754_s0 + $0x50] sm:$0xff]   ;;  %v17401_v28 = vld [vmem:[%s26754_s0 + $0x58] sm:$0xff]  }
   0x9   :  { %v17400_v27 = vld [vmem:[%s26754_s0 + $0x950] sm:$0xff]   ;;  %v17402_v29 = vld [vmem:[%s26754_s0 + $0x958] sm:$0xff]   ;;  %v17403_v30 = vld [vmem:[%s26754_s0 + $0x60] sm:$0xff]  }
   0xa   :  { %16221 = vmatmul.mubr.msk.bf16.vlgmr.msra.gmra.mrb[0].mxu0 %vm4069_vm2, %v17381_v8  ;;  %16797 = vmatmul.mubr.msk.bf16.vlgmr.msra.gmra.mrb[0].mxu1 %vm4069_vm2, %v17382_v9  ;;  %v17404_v31 = vld [vmem:[%s26754_s0 + $0x960] sm:$0xff]   ;;  %v17405_v32 = vld [vmem:[%s26754_s0 + $0x68] sm:$0xff]   ;;  %v17407_v34 = vld [vmem:[%s26754_s0 + $0x70] sm:$0xff]  }
   0xb   :  { %16224 = vmatprep.mubr.msk.bf16.mxu0 %vm4069_vm2, %v17383_v10  ;;  %16800 = vmatprep.mubr.msk.bf16.mxu1 %vm4069_vm2, %v17384_v11  ;;  %v17406_v33 = vld [vmem:[%s26754_s0 + $0x968] sm:$0xff]   ;;  %v17408_v35 = vld [vmem:[%s26754_s0 + $0x970] sm:$0xff]   ;;  %v17409_v36 = vld [vmem:[%s26754_s0 + $0x78] sm:$0xff]  }
   0xc   :  { %v17410_v37 = vld [vmem:[%s26754_s0 + $0x978] sm:$0xff]   ;;  %v17411_v38 = vld [vmem:[%s26754_s0 + $0x80] sm:$0xff]   ;;  %v17413_v40 = vld [vmem:[%s26754_s0 + $0x88] sm:$0xff]  }
   0xd   :  { %v17412_v39 = vld [vmem:[%s26754_s0 + $0x980] sm:$0xff]   ;;  %v17414_v41 = vld [vmem:[%s26754_s0 + $0x988] sm:$0xff]   ;;  %v17415_v42 = vld [vmem:[%s26754_s0 + $0x90] sm:$0xff]  }
   0xe   :  { %v17416_v43 = vld [vmem:[%s26754_s0 + $0x990] sm:$0xff]   ;;  %v17417_v44 = vld [vmem:[%s26754_s0 + $0x98] sm:$0xff]   ;;  %v17419_v46 = vld [vmem:[%s26754_s0 + $0xa0] sm:$0xff]  }
   0xf   :  { %v17418_v45 = vld [vmem:[%s26754_s0 + $0x998] sm:$0xff]   ;;  %v17420_v47 = vld [vmem:[%s26754_s0 + $0x9a0] sm:$0xff]   ;;  %v17421_v48 = vld [vmem:[%s26754_s0 + $0xa8] sm:$0xff]  }
  0x10   :  { %v17422_v49 = vld [vmem:[%s26754_s0 + $0x9a8] sm:$0xff]   ;;  %v17423_v50 = vld [vmem:[%s26754_s0 + $0xb0] sm:$0xff]   ;;  %v17425_v52 = vld [vmem:[%s26754_s0 + $0xb8] sm:$0xff]  }
  0x11   :  { %v17424_v51 = vld [vmem:[%s26754_s0 + $0x9b0] sm:$0xff]   ;;  %v17426_v53 = vld [vmem:[%s26754_s0 + $0x9b8] sm:$0xff]   ;;  %v17427_v54 = vld [vmem:[%s26754_s0 + $0xc0] sm:$0xff]  }
  0x12   :  { %16225 = vmatmul.mubr.msk.bf16.gmra.mrb[4].mxu0 %vm4069_vm2, %v17385_v12  ;;  %16801 = vmatmul.mubr.msk.bf16.gmra.mrb[4].mxu1 %vm4069_vm2, %v17386_v13  ;;  %v17428_v55 = vld [vmem:[%s26754_s0 + $0x9c0] sm:$0xff]   ;;  %v17429_v56 = vld [vmem:[%s26754_s0 + $0xc8] sm:$0xff]   ;;  %v17431_v58 = vld [vmem:[%s26754_s0 + $0xd0] sm:$0xff]  }
  0x13   :  { %16228 = vmatprep.mubr.msk.bf16.mxu0 %vm4069_vm2, %v17387_v14  ;;  %16804 = vmatprep.mubr.msk.bf16.mxu1 %vm4069_vm2, %v17388_v15  ;;  %v17430_v57 = vld [vmem:[%s26754_s0 + $0x9c8] sm:$0xff]   ;;  %v17432_v59 = vld [vmem:[%s26754_s0 + $0x9d0] sm:$0xff]   ;;  %v17433_v60 = vld [vmem:[%s26754_s0 + $0xd8] sm:$0xff]  }
  0x14   :  { %v17434_v61 = vld [vmem:[%s26754_s0 + $0x9d8] sm:$0xff]   ;;  %v17435_v62 = vld [vmem:[%s26754_s0 + $0xe0] sm:$0xff]   ;;  %v17437_v0 = vld [vmem:[%s26754_s0 + $0xe8] sm:$0xff]  }
  0x15   :  { %v17436_v63 = vld [vmem:[%s26754_s0 + $0x9e0] sm:$0xff]   ;;  %v17438_v1 = vld [vmem:[%s26754_s0 + $0x9e8] sm:$0xff]   ;;  %v17439_v2 = vld [vmem:[%s26754_s0 + $0xf0] sm:$0xff]  }
  0x16   :  { %v17440_v3 = vld [vmem:[%s26754_s0 + $0x9f0] sm:$0xff]   ;;  %v17441_v4 = vld [vmem:[%s26754_s0 + $0xf8] sm:$0xff]   ;;  %v17443_v6 = vld [vmem:[%s26754_s0 + $0x100] sm:$0xff]  }
  0x17   :  { %v17442_v5 = vld [vmem:[%s26754_s0 + $0x9f8] sm:$0xff]   ;;  %v17444_v7 = vld [vmem:[%s26754_s0 + $0xa00] sm:$0xff]   ;;  %v17445_v8 = vld [vmem:[%s26754_s0 + $0x108] sm:$0xff]  }
  0x18   :  { %v17446_v9 = vld [vmem:[%s26754_s0 + $0xa08] sm:$0xff]   ;;  %v17447_v10 = vld [vmem:[%s26754_s0 + $0x110] sm:$0xff]   ;;  %v17449_v12 = vld [vmem:[%s26754_s0 + $0x118] sm:$0xff]  }
  0x19   :  { %v17448_v11 = vld [vmem:[%s26754_s0 + $0xa10] sm:$0xff]   ;;  %v17450_v13 = vld [vmem:[%s26754_s0 + $0xa18] sm:$0xff]   ;;  %v17451_v14 = vld [vmem:[%s26754_s0 + $0x120] sm:$0xff]  }
  0x1a   :  { %16229 = vmatmul.mubr.msk.bf16.gmra.mrb[8].mxu0 %vm4069_vm2, %v17389_v16  ;;  %16805 = vmatmul.mubr.msk.bf16.gmra.mrb[8].mxu1 %vm4069_vm2, %v17390_v17  ;;  %v17452_v15 = vld [vmem:[%s26754_s0 + $0xa20] sm:$0xff]   ;;  %v17453_v16 = vld [vmem:[%s26754_s0 + $0x128] sm:$0xff]  }
  0x1b   :  { %16232 = vmatprep.mubr.msk.bf16.mxu0 %vm4069_vm2, %v17391_v18  ;;  %16808 = vmatprep.mubr.msk.bf16.mxu1 %vm4069_vm2, %v17392_v19  ;;  %v17454_v17 = vld [vmem:[%s26754_s0 + $0xa28] sm:$0xff]   ;;  %v17455_v18 = vld [vmem:[%s26754_s0 + $0x130] sm:$0xff]  }
  0x1c   :  { %v17456_v19 = vld [vmem:[%s26754_s0 + $0xa30] sm:$0xff]  }
  0x22   :  { %16233 = vmatmul.mubr.msk.bf16.gmra.mrb[12].mxu0 %vm4069_vm2, %v17393_v20  ;;  %16809 = vmatmul.mubr.msk.bf16.gmra.mrb[12].mxu1 %vm4069_vm2, %v17394_v21  ;;  %v17457_v20 = vld [vmem:[%s26754_s0 + $0x138] sm:$0xff]  }
  0x23   :  { %16236 = vmatprep.mubr.msk.bf16.mxu0 %vm4069_vm2, %v17395_v22  ;;  %16812 = vmatprep.mubr.msk.bf16.mxu1 %vm4069_vm2, %v17396_v23  ;;  %v17458_v21 = vld [vmem:[%s26754_s0 + $0xa38] sm:$0xff]   ;;  %v17459_v22 = vld [vmem:[%s26754_s0 + $0x140] sm:$0xff]  }
  0x24   :  { %v17460_v23 = vld [vmem:[%s26754_s0 + $0xa40] sm:$0xff]  }
  0x2a   :  { %16237 = vmatmul.mubr.msk.bf16.gmra.mrb[16].mxu0 %vm4069_vm2, %v17397_v24  ;;  %16813 = vmatmul.mubr.msk.bf16.gmra.mrb[16].mxu1 %vm4069_vm2, %v17398_v25  ;;  %v17461_v24 = vld [vmem:[%s26754_s0 + $0x148] sm:$0xff]  }
  0x2b   :  { %16240 = vmatprep.mubr.msk.bf16.mxu0 %vm4069_vm2, %v17399_v26  ;;  %16816 = vmatprep.mubr.msk.bf16.mxu1 %vm4069_vm2, %v17400_v27  ;;  %v17462_v25 = vld [vmem:[%s26754_s0 + $0xa48] sm:$0xff]   ;;  %v17463_v26 = vld [vmem:[%s26754_s0 + $0x150] sm:$0xff]  }
  0x2c   :  { %v17464_v27 = vld [vmem:[%s26754_s0 + $0xa50] sm:$0xff]  }
  0x32   :  { %16241 = vmatmul.mubr.msk.bf16.gmra.mrb[20].mxu0 %vm4069_vm2, %v17401_v28  ;;  %16817 = vmatmul.mubr.msk.bf16.gmra.mrb[20].mxu1 %vm4069_vm2, %v17402_v29  ;;  %v17465_v28 = vld [vmem:[%s26754_s0 + $0x158] sm:$0xff]  }
  0x33   :  { %16244 = vmatprep.mubr.msk.bf16.mxu0 %vm4069_vm2, %v17403_v30  ;;  %16820 = vmatprep.mubr.msk.bf16.mxu1 %vm4069_vm2, %v17404_v31  ;;  %v17466_v29 = vld [vmem:[%s26754_s0 + $0xa58] sm:$0xff]   ;;  %v17467_v30 = vld [vmem:[%s26754_s0 + $0x160] sm:$0xff]  }
  0x34   :  { %v17468_v31 = vld [vmem:[%s26754_s0 + $0xa60] sm:$0xff]  }
  0x3a   :  { %16245 = vmatmul.mubr.msk.bf16.gmra.mrb[24].mxu0 %vm4069_vm2, %v17405_v32  ;;  %16821 = vmatmul.mubr.msk.bf16.gmra.mrb[24].mxu1 %vm4069_vm2, %v17406_v33  ;;  %v17469_v32 = vld [vmem:[%s26754_s0 + $0x168] sm:$0xff]  }
  0x3b   :  { %16248 = vmatprep.mubr.msk.bf16.mxu0 %vm4069_vm2, %v17407_v34  ;;  %16824 = vmatprep.mubr.msk.bf16.mxu1 %vm4069_vm2, %v17408_v35  ;;  %v17470_v33 = vld [vmem:[%s26754_s0 + $0xa68] sm:$0xff]   ;;  %v17471_v34 = vld [vmem:[%s26754_s0 + $0x170] sm:$0xff]  }
  0x3c   :  { %v17472_v35 = vld [vmem:[%s26754_s0 + $0xa70] sm:$0xff]  }
  0x42   :  { %16249 = vmatmul.mubr.msk.bf16.gmra.mrb[28].mxu0 %vm4069_vm2, %v17409_v36  ;;  %16825 = vmatmul.mubr.msk.bf16.gmra.mrb[28].mxu1 %vm4069_vm2, %v17410_v37  ;;  %v17473_v36 = vld [vmem:[%s26754_s0 + $0x178] sm:$0xff]  }
  0x43   :  { %16252 = vmatprep.mubr.msk.bf16.mxu0 %vm4069_vm2, %v17411_v38  ;;  %16828 = vmatprep.mubr.msk.bf16.mxu1 %vm4069_vm2, %v17412_v39  ;;  %v17474_v37 = vld [vmem:[%s26754_s0 + $0xa78] sm:$0xff]   ;;  %v17475_v38 = vld [vmem:[%s26754_s0 + $0x180] sm:$0xff]  }
  0x44   :  { %v17476_v39 = vld [vmem:[%s26754_s0 + $0xa80] sm:$0xff]  }
  0x4a   :  { %16253 = vmatmul.mubr.msk.bf16.gmra.mrb[32].mxu0 %vm4069_vm2, %v17413_v40  ;;  %16829 = vmatmul.mubr.msk.bf16.gmra.mrb[32].mxu1 %vm4069_vm2, %v17414_v41  ;;  %v17477_v40 = vld [vmem:[%s26754_s0 + $0x188] sm:$0xff]  }
  0x4b   :  { %16256 = vmatprep.mubr.msk.bf16.mxu0 %vm4069_vm2, %v17415_v42  ;;  %16832 = vmatprep.mubr.msk.bf16.mxu1 %vm4069_vm2, %v17416_v43  ;;  %v17478_v41 = vld [vmem:[%s26754_s0 + $0xa88] sm:$0xff]   ;;  %v17479_v42 = vld [vmem:[%s26754_s0 + $0x190] sm:$0xff]  }
  0x4c   :  { %v17480_v43 = vld [vmem:[%s26754_s0 + $0xa90] sm:$0xff]  }
  0x52   :  { %16257 = vmatmul.mubr.msk.bf16.gmra.mrb[36].mxu0 %vm4069_vm2, %v17417_v44  ;;  %16833 = vmatmul.mubr.msk.bf16.gmra.mrb[36].mxu1 %vm4069_vm2, %v17418_v45  ;;  %v17481_v44 = vld [vmem:[%s26754_s0 + $0x198] sm:$0xff]  }
  0x53   :  { %16260 = vmatprep.mubr.msk.bf16.mxu0 %vm4069_vm2, %v17419_v46  ;;  %16836 = vmatprep.mubr.msk.bf16.mxu1 %vm4069_vm2, %v17420_v47  ;;  %v17482_v45 = vld [vmem:[%s26754_s0 + $0xa98] sm:$0xff]   ;;  %v17483_v46 = vld [vmem:[%s26754_s0 + $0x1a0] sm:$0xff]  }
  0x54   :  { %v17484_v47 = vld [vmem:[%s26754_s0 + $0xaa0] sm:$0xff]  }
  0x5a   :  { %16261 = vmatmul.mubr.msk.bf16.gmra.mrb[40].mxu0 %vm4069_vm2, %v17421_v48  ;;  %16837 = vmatmul.mubr.msk.bf16.gmra.mrb[40].mxu1 %vm4069_vm2, %v17422_v49  ;;  %v17485_v48 = vld [vmem:[%s26754_s0 + $0x1a8] sm:$0xff]  }
  0x5b   :  { %16264 = vmatprep.mubr.msk.bf16.mxu0 %vm4069_vm2, %v17423_v50  ;;  %16840 = vmatprep.mubr.msk.bf16.mxu1 %vm4069_vm2, %v17424_v51  ;;  %v17486_v49 = vld [vmem:[%s26754_s0 + $0xaa8] sm:$0xff]   ;;  %v17487_v50 = vld [vmem:[%s26754_s0 + $0x1b0] sm:$0xff]  }
  0x5c   :  { %v17488_v51 = vld [vmem:[%s26754_s0 + $0xab0] sm:$0xff]  }
  0x62   :  { %16265 = vmatmul.mubr.msk.bf16.gmra.mrb[44].mxu0 %vm4069_vm2, %v17425_v52  ;;  %16841 = vmatmul.mubr.msk.bf16.gmra.mrb[44].mxu1 %vm4069_vm2, %v17426_v53  ;;  %v17489_v52 = vld [vmem:[%s26754_s0 + $0x1b8] sm:$0xff]  }
  0x63   :  { %16268 = vmatprep.mubr.msk.bf16.mxu0 %vm4069_vm2, %v17427_v54  ;;  %16844 = vmatprep.mubr.msk.bf16.mxu1 %vm4069_vm2, %v17428_v55  ;;  %v17490_v53 = vld [vmem:[%s26754_s0 + $0xab8] sm:$0xff]  }
  0x6a   :  { %16269 = vmatmul.mubr.msk.bf16.gmra.mrb[48].mxu0 %vm4069_vm2, %v17429_v56  ;;  %16845 = vmatmul.mubr.msk.bf16.gmra.mrb[48].mxu1 %vm4069_vm2, %v17430_v57  ;;  %v17491_v56 = vld [vmem:[%s26754_s0 + $0x1c0] sm:$0xff]  }
  0x6b   :  { %16272 = vmatprep.mubr.msk.bf16.mxu0 %vm4069_vm2, %v17431_v58  ;;  %16848 = vmatprep.mubr.msk.bf16.mxu1 %vm4069_vm2, %v17432_v59  ;;  %v17492_v57 = vld [vmem:[%s26754_s0 + $0xac0] sm:$0xff]  }
  0x72   :  { %16273 = vmatmul.mubr.msk.bf16.gmra.mrb[52].mxu0 %vm4069_vm2, %v17433_v60  ;;  %16849 = vmatmul.mubr.msk.bf16.gmra.mrb[52].mxu1 %vm4069_vm2, %v17434_v61 }
  0x73   :  { %16276 = vmatprep.mubr.msk.bf16.mxu0 %vm4069_vm2, %v17435_v62  ;;  %16852 = vmatprep.mubr.msk.bf16.mxu1 %vm4069_vm2, %v17436_v63 }
  0x7a   :  { %16277 = vmatmul.mubr.msk.bf16.gmra.mrb[56].mxu0 %vm4069_vm2, %v17437_v0  ;;  %16853 = vmatmul.mubr.msk.bf16.gmra.mrb[56].mxu1 %vm4069_vm2, %v17438_v1  ;;  %v17493_v0 = vld [vmem:[%s26754_s0 + $0x1c8] sm:$0xff]  }
  0x7b   :  { %16280 = vmatprep.mubr.msk.bf16.mxu0 %vm4069_vm2, %v17439_v2  ;;  %16856 = vmatprep.mubr.msk.bf16.mxu1 %vm4069_vm2, %v17440_v3  ;;  %v17494_v1 = vld [vmem:[%s26754_s0 + $0xac8] sm:$0xff]  }
  0x82   :  { %16281 = vmatmul.mubr.msk.bf16.gmra.mrb[60].mxu0 %vm4069_vm2, %v17441_v4  ;;  %16857 = vmatmul.mubr.msk.bf16.gmra.mrb[60].mxu1 %vm4069_vm2, %v17442_v5  ;;  %v17495_v4 = vld [vmem:[%s26754_s0 + $0x1d0] sm:$0xff]  }
  0x83   :  { %16284 = vmatprep.mubr.msk.bf16.mxu0 %vm4069_vm2, %v17443_v6  ;;  %16860 = vmatprep.mubr.msk.bf16.mxu1 %vm4069_vm2, %v17444_v7  ;;  %v17496_v5 = vld [vmem:[%s26754_s0 + $0xad0] sm:$0xff]  }
  0x8a   :  { %16285 = vmatmul.mubr.msk.bf16.gmra.mrb[64].mxu0 %vm4069_vm2, %v17445_v8  ;;  %16861 = vmatmul.mubr.msk.bf16.gmra.mrb[64].mxu1 %vm4069_vm2, %v17446_v9 }
  0x8b   :  { %16288 = vmatprep.mubr.msk.bf16.mxu0 %vm4069_vm2, %v17447_v10  ;;  %16864 = vmatprep.mubr.msk.bf16.mxu1 %vm4069_vm2, %v17448_v11 }
  0x92   :  { %16289 = vmatmul.mubr.msk.bf16.gmra.mrb[68].mxu0 %vm4069_vm2, %v17449_v12  ;;  %16865 = vmatmul.mubr.msk.bf16.gmra.mrb[68].mxu1 %vm4069_vm2, %v17450_v13  ;;  %v18465_v12 = vld [vmem:[%s26755_s2] ss:$0 sm:$0xff] }
  0x93   :  { %16292 = vmatprep.mubr.msk.bf16.mxu0 %vm4069_vm2, %v17451_v14  ;;  %16868 = vmatprep.mubr.msk.bf16.mxu1 %vm4069_vm2, %v17452_v15 }
  0x9a   :  { %16293 = vmatmul.mubr.msk.bf16.gmra.mrb[72].mxu0 %vm4069_vm2, %v17453_v16  ;;  %16869 = vmatmul.mubr.msk.bf16.gmra.mrb[72].mxu1 %vm4069_vm2, %v17454_v17 }
  0x9b   :  { %16296 = vmatprep.mubr.msk.bf16.mxu0 %vm4069_vm2, %v17455_v18  ;;  %16872 = vmatprep.mubr.msk.bf16.mxu1 %vm4069_vm2, %v17456_v19 }
  0xa2   :  { %16297 = vmatmul.mubr.msk.bf16.gmra.mrb[76].mxu0 %vm4069_vm2, %v17457_v20  ;;  %16873 = vmatmul.mubr.msk.bf16.gmra.mrb[76].mxu1 %vm4069_vm2, %v17458_v21  ;;  %v17497_v21 = vld [vmem:[%s26754_s0 + $0x1d8] sm:$0xff]  }
  0xa3   :  { %16300 = vmatprep.mubr.msk.bf16.mxu0 %vm4069_vm2, %v17459_v22  ;;  %16876 = vmatprep.mubr.msk.bf16.mxu1 %vm4069_vm2, %v17460_v23  ;;  %v17498_v22 = vld [vmem:[%s26754_s0 + $0xad8] sm:$0xff]  }
  0xaa   :  { %16301 = vmatmul.mubr.msk.bf16.gmra.mrb[80].mxu0 %vm4069_vm2, %v17461_v24  ;;  %16877 = vmatmul.mubr.msk.bf16.gmra.mrb[80].mxu1 %vm4069_vm2, %v17462_v25 }
  0xab   :  { %16304 = vmatprep.mubr.msk.bf16.mxu0 %vm4069_vm2, %v17463_v26  ;;  %16880 = vmatprep.mubr.msk.bf16.mxu1 %vm4069_vm2, %v17464_v27  ;;  %v17499_v27 = vld [vmem:[%s26754_s0 + $0x1e0] sm:$0xff]  }
  0xb2   :  { %16305 = vmatmul.mubr.msk.bf16.gmra.mrb[84].mxu0 %vm4069_vm2, %v17465_v28  ;;  %16881 = vmatmul.mubr.msk.bf16.gmra.mrb[84].mxu1 %vm4069_vm2, %v17466_v29  ;;  %v17500_v28 = vld [vmem:[%s26754_s0 + $0xae0] sm:$0xff]  }
  0xb3   :  { %16308 = vmatprep.mubr.msk.bf16.mxu0 %vm4069_vm2, %v17467_v30  ;;  %16884 = vmatprep.mubr.msk.bf16.mxu1 %vm4069_vm2, %v17468_v31 }
  0xba   :  { %16309 = vmatmul.mubr.msk.bf16.gmra.mrb[88].mxu0 %vm4069_vm2, %v17469_v32  ;;  %16885 = vmatmul.mubr.msk.bf16.gmra.mrb[88].mxu1 %vm4069_vm2, %v17470_v33 }
  0xbb   :  { %16312 = vmatprep.mubr.msk.bf16.mxu0 %vm4069_vm2, %v17471_v34  ;;  %16888 = vmatprep.mubr.msk.bf16.mxu1 %vm4069_vm2, %v17472_v35 }
  0xc2   :  { %16313 = vmatmul.mubr.msk.bf16.gmra.mrb[92].mxu0 %vm4069_vm2, %v17473_v36  ;;  %16889 = vmatmul.mubr.msk.bf16.gmra.mrb[92].mxu1 %vm4069_vm2, %v17474_v37 }
  0xc3   :  { %16316 = vmatprep.mubr.msk.bf16.mxu0 %vm4069_vm2, %v17475_v38  ;;  %16892 = vmatprep.mubr.msk.bf16.mxu1 %vm4069_vm2, %v17476_v39 }
  0xca   :  { %16317 = vmatmul.mubr.msk.bf16.gmra.mrb[96].mxu0 %vm4069_vm2, %v17477_v40  ;;  %16893 = vmatmul.mubr.msk.bf16.gmra.mrb[96].mxu1 %vm4069_vm2, %v17478_v41  ;;  %v17501_v41 = vld [vmem:[%s26754_s0 + $0x1e8] sm:$0xff]  }
  0xcb   :  { %16320 = vmatprep.mubr.msk.bf16.mxu0 %vm4069_vm2, %v17479_v42  ;;  %16896 = vmatprep.mubr.msk.bf16.mxu1 %vm4069_vm2, %v17480_v43  ;;  %v17502_v42 = vld [vmem:[%s26754_s0 + $0xae8] sm:$0xff]  }
  0xd2   :  { %16321 = vmatmul.mubr.msk.bf16.gmra.mrb[100].mxu0 %vm4069_vm2, %v17481_v44  ;;  %16897 = vmatmul.mubr.msk.bf16.gmra.mrb[100].mxu1 %vm4069_vm2, %v17482_v45 }
  0xd3   :  { %16324 = vmatprep.mubr.msk.bf16.mxu0 %vm4069_vm2, %v17483_v46  ;;  %16900 = vmatprep.mubr.msk.bf16.mxu1 %vm4069_vm2, %v17484_v47 }
  0xda   :  { %16325 = vmatmul.mubr.msk.bf16.gmra.mrb[104].mxu0 %vm4069_vm2, %v17485_v48  ;;  %16901 = vmatmul.mubr.msk.bf16.gmra.mrb[104].mxu1 %vm4069_vm2, %v17486_v49  ;;  %v17503_v49 = vld [vmem:[%s26754_s0 + $0x1f0] sm:$0xff]  }
  0xdb   :  { %16328 = vmatprep.mubr.msk.bf16.mxu0 %vm4069_vm2, %v17487_v50  ;;  %16904 = vmatprep.mubr.msk.bf16.mxu1 %vm4069_vm2, %v17488_v51  ;;  %v17504_v50 = vld [vmem:[%s26754_s0 + $0xaf0] sm:$0xff]  }
  0xdd   :  { %v16222_v54 = vpop.f32.mrb[0].mxu0  ;;  %v16798_v55 = vpop.f32.mrb[0].mxu1 }
  0xde   :  { %v5839_v58 = vpop.f32.mrb[1].mxu0  ;;  %v8143_v59 = vpop.f32.mrb[1].mxu1  ;;  %v18472_v13 = vadd.f32 %v16222_v54, %v18465_v12  ;;  %v18475_v14 = vadd.f32 %v16798_v55, %v18465_v12 }
  0xdf   :  { %v16223_v60 = vpop.f32.mrb[2].mxu0  ;;  %v16799_v61 = vpop.f32.mrb[2].mxu1  ;;  %v18478_v17 = vadd.f32 %v18465_v12, %v5839_v58  ;;  %v18481_v18 = vadd.f32 %v18465_v12, %v8143_v59 }
  0xe0   :  { %v5842_v62 = vpop.f32.mrb[3].mxu0  ;;  %v8146_v63 = vpop.f32.mrb[3].mxu1  ;;  %v18494_v23 = vadd.f32 %v16223_v60, %v18465_v12  ;;  %v18497_v24 = vadd.f32 %v16799_v61, %v18465_v12  ;;  %v10448_v31 = vmax.f32 %v18472_v13, 0.0  ;;  %v11024_v32 = vmax.f32 %v18475_v14, 0.0  ;;  %v17513_v14 = vld [vmem:[%s26754_s0 + $0x218] sm:$0xff]  }
  0xe1   :  { %v10446_v33 = vmax.f32 %v18478_v17, 0.0  ;;  %v11022_v34 = vmax.f32 %v18481_v18, 0.0  ;;  %v18524_v37 = vadd.f32 %v18465_v12, %v5842_v62  ;;  %v18527_v38 = vadd.f32 %v18465_v12, %v8146_v63 }
  0xe2   :  { %16329 = vmatmul.mubr.msk.bf16.gmra.mrb[108].mxu0 %vm4069_vm2, %v17489_v52  ;;  %16905 = vmatmul.mubr.msk.bf16.gmra.mrb[108].mxu1 %vm4069_vm2, %v17490_v53 }
  0xe3   :  { %16332 = vmatprep.mubr.msk.bf16.mxu0 %vm4069_vm2, %v17491_v56  ;;  %16908 = vmatprep.mubr.msk.bf16.mxu1 %vm4069_vm2, %v17492_v57  ;;  %v10447_v59 = vmax.f32 %v18524_v37, 0.0  ;;  %v11023_v60 = vmax.f32 %v18527_v38, 0.0 }
  0xe5   :  { %v16226_v2 = vpop.f32.mrb[4].mxu0  ;;  %v16802_v3 = vpop.f32.mrb[4].mxu1 }
  0xe6   :  { %v5855_v6 = vpop.f32.mrb[5].mxu0  ;;  %v8159_v7 = vpop.f32.mrb[5].mxu1  ;;  %v18530_v39 = vadd.f32 %v16226_v2, %v18465_v12  ;;  %v18533_v40 = vadd.f32 %v16802_v3, %v18465_v12 }
  0xe7   :  { %v16227_v8 = vpop.f32.mrb[6].mxu0  ;;  %v16803_v9 = vpop.f32.mrb[6].mxu1  ;;  %v18542_v43 = vadd.f32 %v18465_v12, %v5855_v6  ;;  %v18545_v44 = vadd.f32 %v18465_v12, %v8159_v7 }
  0xe8   :  { %v5858_v10 = vpop.f32.mrb[7].mxu0  ;;  %v8162_v11 = vpop.f32.mrb[7].mxu1  ;;  %v18548_v45 = vadd.f32 %v16227_v8, %v18465_v12  ;;  %v18551_v46 = vadd.f32 %v16803_v9, %v18465_v12  ;;  %v17505_v9 = vld [vmem:[%s26754_s0 + $0x1f8] sm:$0xff]  }
  0xe9   :  { %v18560_v51 = vadd.f32 %v18465_v12, %v5858_v10  ;;  %v18563_v52 = vadd.f32 %v18465_v12, %v8162_v11  ;;  %v11026_v2 = vmax.f32 %v18545_v44, 0.0  ;;  %v17506_v10 = vld [vmem:[%s26754_s0 + $0xaf8] sm:$0xff]  }
  0xea   :  { %16333 = vmatmul.mubr.msk.bf16.gmra.mrb[112].mxu0 %vm4069_vm2, %v17493_v0  ;;  %16909 = vmatmul.mubr.msk.bf16.gmra.mrb[112].mxu1 %vm4069_vm2, %v17494_v1  ;;  %v10450_v1 = vmax.f32 %v18542_v43, 0.0 }
  0xeb   :  { %16336 = vmatprep.mubr.msk.bf16.mxu0 %vm4069_vm2, %v17495_v4  ;;  %16912 = vmatprep.mubr.msk.bf16.mxu1 %vm4069_vm2, %v17496_v5  ;;  %v10451_v5 = vmax.f32 %v18560_v51, 0.0  ;;  %v26830_v13 = vmax.f32 %v18563_v52, 0.0  ;;  %v26832_v51 = vmax.f32 %v18497_v24, 0.0 }
  0xed   :  { %v16230_v15 = vpop.f32.mrb[8].mxu0  ;;  %v16806_v16 = vpop.f32.mrb[8].mxu1 }
  0xee   :  { %v18483_v19 = vpop.f32.mrb[9].mxu0  ;;  %v18485_v20 = vpop.f32.mrb[9].mxu1  ;;  %v18570_v55 = vadd.f32 %v16230_v15, %v18465_v12  ;;  %v18573_v56 = vadd.f32 %v16806_v16, %v18465_v12 }
  0xef   :  { %v18499_v25 = vpop.f32.mrb[10].mxu0  ;;  %v18501_v26 = vpop.f32.mrb[10].mxu1  ;;  %v18607_v11 = vadd.f32 %v18465_v12, %v18483_v19  ;;  %v18611_v15 = vadd.f32 %v18465_v12, %v18485_v20 }
  0xf0   :  { %v18509_v29 = vpop.f32.mrb[11].mxu0  ;;  %v18511_v30 = vpop.f32.mrb[11].mxu1  ;;  %v18627_v20 = vadd.f32 %v18499_v25, %v18465_v12 }
  0xf2   :  { %16337 = vmatmul.mubr.msk.bf16.gmra.mrb[116].mxu0 %vm4069_vm2, %v17497_v21  ;;  %16913 = vmatmul.mubr.msk.bf16.gmra.mrb[116].mxu1 %vm4069_vm2, %v17498_v22  ;;  %v17507_v22 = vld [vmem:[%s26754_s0 + $0x200] sm:$0xff]  }
  0xf3   :  { %16340 = vmatprep.mubr.msk.bf16.mxu0 %vm4069_vm2, %v17499_v27  ;;  %16916 = vmatprep.mubr.msk.bf16.mxu1 %vm4069_vm2, %v17500_v28  ;;  %v17508_v27 = vld [vmem:[%s26754_s0 + $0xb00] sm:$0xff]  }
  0xf5   :  { %v16234_v47 = vpop.f32.mrb[12].mxu0  ;;  %v16810_v48 = vpop.f32.mrb[12].mxu1 }
  0xf6   :  { %v18565_v53 = vpop.f32.mrb[13].mxu0  ;;  %v18567_v54 = vpop.f32.mrb[13].mxu1  ;;  %v18650_v62 = vadd.f32 %v16234_v47, %v18465_v12 }
  0xf7   :  { %v18575_v57 = vpop.f32.mrb[14].mxu0  ;;  %v18577_v58 = vpop.f32.mrb[14].mxu1 }
  0xf8   :  { %v18583_v63 = vpop.f32.mrb[15].mxu0  ;;  %v18585_v0 = vpop.f32.mrb[15].mxu1 }
  0xfa   :  { %16341 = vmatmul.mubr.msk.bf16.gmra.mrb[120].mxu0 %vm4069_vm2, %v17501_v41  ;;  %16917 = vmatmul.mubr.msk.bf16.gmra.mrb[120].mxu1 %vm4069_vm2, %v17502_v42  ;;  %v18631_v41 = vadd.f32 %v18501_v26, %v18465_v12  ;;  %v18635_v42 = vadd.f32 %v18465_v12, %v18509_v29 }
  0xfb   :  { %16344 = vmatprep.mubr.msk.bf16.mxu0 %vm4069_vm2, %v17503_v49  ;;  %16920 = vmatprep.mubr.msk.bf16.mxu1 %vm4069_vm2, %v17504_v50  ;;  %v18639_v49 = vadd.f32 %v18465_v12, %v18511_v30  ;;  %v18653_v30 = vadd.f32 %v16810_v48, %v18465_v12  ;;  %v17509_v48 = vld [vmem:[%s26754_s0 + $0x208] sm:$0xff]  }
  0xfd   :  { %v16238_v16 = vpop.f32.mrb[16].mxu0  ;;  %v16814_v21 = vpop.f32.mrb[16].mxu1 }
  0xfe   :  { %v5912_v28 = vadd.f32 %v16238_v16, %v18465_v12  ;;  %v8216_v37 = vadd.f32 %v16814_v21, %v18465_v12  ;;  %v18621_v19 = vpop.f32.mrb[17].mxu0  ;;  %v18623_v38 = vpop.f32.mrb[17].mxu1 }
  0xff   :  { %v16239_v50 = vpop.f32.mrb[18].mxu0  ;;  %v16815_v16 = vpop.f32.mrb[18].mxu1 }
 0x100   :  { %v10464_v21 = vmax.f32 %v5912_v28, 0.0  ;;  %v11040_v8 = vmax.f32 %v8216_v37, 0.0  ;;  %v5915_v7 = vadd.f32 %v16239_v50, %v18465_v12  ;;  %v8219_v25 = vadd.f32 %v16815_v16, %v18465_v12  ;;  %v18643_v4 = vpop.f32.mrb[19].mxu0  ;;  %v18645_v26 = vpop.f32.mrb[19].mxu1 }
 0x102   :  { %v18657_v28 = vmax.f32 %v10446_v33, %v10464_v21  ;;  %v18661_v37 = vmax.f32 %v11022_v34, %v11040_v8  ;;  %v10465_v50 = vmax.f32 %v5915_v7, 0.0  ;;  %v11041_v16 = vmax.f32 %v8219_v25, 0.0  ;;  %16345 = vmatmul.mubr.msk.bf16.gmra.mrb[124].mxu0 %vm4069_vm2, %v17505_v9  ;;  %16921 = vmatmul.mubr.msk.bf16.gmra.mrb[124].mxu1 %vm4069_vm2, %v17506_v10  ;;  %v17510_v7 = vld [vmem:[%s26754_s0 + $0xb08] sm:$0xff]  }
 0x103   :  { %16348 = vmatprep.mubr.msk.bf16.mxu0 %vm4069_vm2, %v17507_v22  ;;  %16924 = vmatprep.mubr.msk.bf16.mxu1 %vm4069_vm2, %v17508_v27  ;;  %v18697_v9 = vadd.f32 %v18465_v12, %v18567_v54 }
 0x104   :  { %v18671_v33 = vmax.f32 %v10447_v59, %v10465_v50  ;;  %v18673_v34 = vmax.f32 %v11023_v60, %v11041_v16  ;;  %v17511_v59 = vld [vmem:[%s26754_s0 + $0x210] sm:$0xff]   ;;  %v18693_v16 = vadd.f32 %v18465_v12, %v18565_v53 }
 0x105   :  { %v16242_v10 = vpop.f32.mrb[20].mxu0  ;;  %v16818_v22 = vpop.f32.mrb[20].mxu1  ;;  %v17512_v60 = vld [vmem:[%s26754_s0 + $0xb10] sm:$0xff]  }
 0x106   :  { %v5928_v27 = vadd.f32 %v16242_v10, %v18465_v12  ;;  %v8232_v21 = vadd.f32 %v16818_v22, %v18465_v12  ;;  %v5919_v25 = vpop.f32.mrb[21].mxu0  ;;  %v8223_v50 = vpop.f32.mrb[21].mxu1  ;;  %v10458_v44 = vmax.f32 %v18693_v16, 0.0 }
 0x107   :  { %v5920_v8 = vadd.f32 %v18465_v12, %v5919_v25  ;;  %v8224_v61 = vadd.f32 %v18465_v12, %v8223_v50  ;;  %v16243_v47 = vpop.f32.mrb[22].mxu0  ;;  %v16819_v18 = vpop.f32.mrb[22].mxu1  ;;  %v18771_v50 = vadd.f32 %v18465_v12, %v18585_v0 }
 0x108   :  { %v10468_v17 = vmax.f32 %v5928_v27, 0.0  ;;  %v11044_v10 = vmax.f32 %v8232_v21, 0.0  ;;  %v5931_v22 = vadd.f32 %v16243_v47, %v18465_v12  ;;  %v8235_v29 = vadd.f32 %v16819_v18, %v18465_v12  ;;  %v5922_v3 = vpop.f32.mrb[23].mxu0  ;;  %v8226_v36 = vpop.f32.mrb[23].mxu1  ;;  %v17516_v18 = vld [vmem:[%s26754_s0 + $0xb20] sm:$0xff]  }
 0x109   :  { %v10466_v53 = vmax.f32 %v5920_v8, 0.0  ;;  %v11042_v35 = vmax.f32 %v8224_v61, 0.0  ;;  %v5923_v6 = vadd.f32 %v18465_v12, %v5922_v3  ;;  %v8227_v54 = vadd.f32 %v18465_v12, %v8226_v36 }
 0x10a   :  { %v18707_v25 = vmax.f32 %v10450_v1, %v10468_v17  ;;  %v18711_v27 = vmax.f32 %v11026_v2, %v11044_v10  ;;  %v10469_v21 = vmax.f32 %v5931_v22, 0.0  ;;  %v11045_v47 = vmax.f32 %v8235_v29, 0.0  ;;  %16349 = vmatmul.mubr.msk.bf16.gmra.mrb[128].mxu0 %vm4069_vm2, %v17509_v48  ;;  %16925 = vmatmul.mubr.msk.bf16.gmra.mrb[128].mxu1 %vm4069_vm2, %v17510_v7  ;;  %v17515_v17 = vld [vmem:[%s26754_s0 + $0x220] sm:$0xff]  }
 0x10b   :  { %v18717_v61 = vmax.f32 %v10448_v31, %v10466_v53  ;;  %v18721_v36 = vmax.f32 %v11024_v32, %v11042_v35  ;;  %v10467_v43 = vmax.f32 %v5923_v6, 0.0  ;;  %v11043_v1 = vmax.f32 %v8227_v54, 0.0  ;;  %16352 = vmatprep.mubr.msk.bf16.mxu0 %vm4069_vm2, %v17511_v59  ;;  %16928 = vmatprep.mubr.msk.bf16.mxu1 %vm4069_vm2, %v17512_v60  ;;  %v17514_v32 = vld [vmem:[%s26754_s0 + $0xb18] sm:$0xff]  }
 0x10c   :  { %v11034_v2 = vmax.f32 %v18697_v9, 0.0  ;;  %v18729_v3 = vmax.f32 %v10451_v5, %v10469_v21  ;;  %v18733_v31 = vmax.f32 %v26830_v13, %v11045_v47  ;;  %v26831_v35 = vmax.f32 %v18494_v23, 0.0 }
 0x10d   :  { %v18747_v5 = vmax.f32 %v26832_v51, %v11043_v1  ;;  %v16246_v29 = vpop.f32.mrb[24].mxu0  ;;  %v16822_v52 = vpop.f32.mrb[24].mxu1  ;;  %v18757_v48 = vadd.f32 %v18575_v57, %v18465_v12  ;;  %v18761_v23 = vadd.f32 %v18577_v58, %v18465_v12  ;;  %v18767_v60 = vadd.f32 %v18465_v12, %v18583_v63 }
 0x10e   :  { %v18743_v6 = vmax.f32 %v26831_v35, %v10467_v43  ;;  %v5944_v24 = vadd.f32 %v16246_v29, %v18465_v12  ;;  %v8248_v7 = vadd.f32 %v16822_v52, %v18465_v12  ;;  %v5935_v8 = vpop.f32.mrb[25].mxu0  ;;  %v8239_v59 = vpop.f32.mrb[25].mxu1  ;;  %v26833_v51 = vmax.f32 %v18607_v11, 0.0 }
 0x10f   :  { %v5936_v57 = vadd.f32 %v18465_v12, %v5935_v8  ;;  %v8240_v10 = vadd.f32 %v18465_v12, %v8239_v59  ;;  %v16247_v58 = vpop.f32.mrb[26].mxu0  ;;  %v16823_v22 = vpop.f32.mrb[26].mxu1  ;;  %v26834_v52 = vmax.f32 %v18611_v15, 0.0  ;;  %v26835_v59 = vmax.f32 %v18530_v39, 0.0 }
 0x110   :  { %v10472_v53 = vmax.f32 %v5944_v24, 0.0  ;;  %v11048_v54 = vmax.f32 %v8248_v7, 0.0  ;;  %v5947_v21 = vadd.f32 %v16247_v58, %v18465_v12  ;;  %v8251_v47 = vadd.f32 %v16823_v22, %v18465_v12  ;;  %v5938_v43 = vpop.f32.mrb[27].mxu0  ;;  %v8242_v1 = vpop.f32.mrb[27].mxu1 }
 0x111   :  { %v10470_v63 = vmax.f32 %v5936_v57, 0.0  ;;  %v11046_v13 = vmax.f32 %v8240_v10, 0.0  ;;  %v5939_v35 = vadd.f32 %v18465_v12, %v5938_v43  ;;  %v8243_v0 = vadd.f32 %v18465_v12, %v8242_v1 }
 0x112   :  { %v18781_v29 = vmax.f32 %v26833_v51, %v10472_v53  ;;  %v18785_v24 = vmax.f32 %v26834_v52, %v11048_v54  ;;  %v10473_v7 = vmax.f32 %v5947_v21, 0.0  ;;  %v11049_v8 = vmax.f32 %v8251_v47, 0.0  ;;  %16353 = vmatmul.mubr.msk.bf16.gmra.mrb[132].mxu0 %vm4069_vm2, %v17513_v14  ;;  %16929 = vmatmul.mubr.msk.bf16.gmra.mrb[132].mxu1 %vm4069_vm2, %v17514_v32 }
 0x113   :  { %v18791_v57 = vmax.f32 %v26835_v59, %v10470_v63  ;;  %v26836_v10 = vmax.f32 %v18533_v40, 0.0  ;;  %v10471_v11 = vmax.f32 %v5939_v35, 0.0  ;;  %v11047_v22 = vmax.f32 %v8243_v0, 0.0  ;;  %16356 = vmatprep.mubr.msk.bf16.mxu0 %vm4069_vm2, %v17515_v17  ;;  %16932 = vmatprep.mubr.msk.bf16.mxu1 %vm4069_vm2, %v17516_v18  ;;  %v17517_v40 = vld [vmem:[%s26754_s0 + $0x228] sm:$0xff]  }
 0x114   :  { %v10461_v15 = vmax.f32 %v18757_v48, 0.0  ;;  %v11037_v14 = vmax.f32 %v18761_v23, 0.0  ;;  %v26837_v32 = vmax.f32 %v18635_v42, 0.0  ;;  %v26838_v39 = vmax.f32 %v18639_v49, 0.0  ;;  %v17518_v17 = vld [vmem:[%s26754_s0 + $0xb28] sm:$0xff]   ;;  %v17527_v48 = vld [vmem:[%s26754_s0 + $0x250] sm:$0xff]  }
 0x115   :  { %v18795_v58 = vmax.f32 %v26836_v10, %v11046_v13  ;;  %v10459_v18 = vmax.f32 %v18767_v60, 0.0  ;;  %v11035_v21 = vmax.f32 %v18771_v50, 0.0  ;;  %v26839_v42 = vmax.f32 %v18548_v45, 0.0  ;;  %v16250_v1 = vpop.f32.mrb[28].mxu0  ;;  %v16826_v63 = vpop.f32.mrb[28].mxu1  ;;  %v17519_v13 = vld [vmem:[%s26754_s0 + $0x230] sm:$0xff]  }
 0x116   :  { %v18803_v53 = vmax.f32 %v26837_v32, %v10473_v7  ;;  %v18807_v54 = vmax.f32 %v26838_v39, %v11049_v8  ;;  %v26840_v49 = vmax.f32 %v18551_v46, 0.0  ;;  %v17520_v60 = vld [vmem:[%s26754_s0 + $0xb30] sm:$0xff]   ;;  %v18833_v50 = vadd.f32 %v18465_v12, %v18621_v19  ;;  %v5951_v0 = vpop.f32.mrb[29].mxu0  ;;  %v8255_v51 = vpop.f32.mrb[29].mxu1 }
 0x117   :  { %v18819_v47 = vmax.f32 %v26839_v42, %v10471_v11  ;;  %v18837_v45 = vadd.f32 %v18465_v12, %v18623_v38  ;;  %v5960_v46 = vadd.f32 %v16250_v1, %v18465_v12  ;;  %v8264_v35 = vadd.f32 %v16826_v63, %v18465_v12  ;;  %v16251_v38 = vpop.f32.mrb[30].mxu0  ;;  %v16827_v59 = vpop.f32.mrb[30].mxu1  ;;  %v17528_v23 = vld [vmem:[%s26754_s0 + $0xb50] sm:$0xff]  }
 0x118   :  { %v18823_v43 = vmax.f32 %v26840_v49, %v11047_v22  ;;  %v18843_v52 = vadd.f32 %v18465_v12, %v18643_v4  ;;  %v18847_v7 = vadd.f32 %v18465_v12, %v18645_v26  ;;  %v5952_v19 = vadd.f32 %v18465_v12, %v5951_v0  ;;  %v5954_v39 = vpop.f32.mrb[31].mxu0  ;;  %v8258_v42 = vpop.f32.mrb[31].mxu1 }
 0x119   :  { %v8256_v8 = vadd.f32 %v18465_v12, %v8255_v51  ;;  %v10476_v10 = vmax.f32 %v5960_v46, 0.0  ;;  %v11052_v11 = vmax.f32 %v8264_v35, 0.0  ;;  %v5963_v22 = vadd.f32 %v16251_v38, %v18465_v12 }
 0x11a   :  { %26841 = vst [vmem:[#allocation2_spill] sm:$0xff] %v18823_v43  ;;  %v8267_v32 = vadd.f32 %v16827_v59, %v18465_v12  ;;  %v10474_v4 = vmax.f32 %v5952_v19, 0.0  ;;  %v5955_v1 = vadd.f32 %v18465_v12, %v5954_v39  ;;  %v8259_v26 = vadd.f32 %v18465_v12, %v8258_v42  ;;  %16357 = vmatmul.mubr.msk.bf16.gmra.mrb[136].mxu0 %vm4069_vm2, %v17517_v40 }
 0x11b   :  { %v11050_v49 = vmax.f32 %v8256_v8, 0.0  ;;  %v18857_v63 = vmax.f32 %v10458_v44, %v10476_v10  ;;  %v18861_v46 = vmax.f32 %v11034_v2, %v11052_v11  ;;  %v10477_v35 = vmax.f32 %v5963_v22, 0.0  ;;  %16933 = vmatmul.mubr.msk.bf16.gmra.mrb[136].mxu1 %vm4069_vm2, %v17518_v17  ;;  %16360 = vmatprep.mubr.msk.bf16.mxu0 %vm4069_vm2, %v17519_v13  ;;  %v17523_v11 = vld [vmem:[%s26754_s0 + $0x240] sm:$0xff]  }
 0x11c   :  { %v11053_v0 = vmax.f32 %v8267_v32, 0.0  ;;  %v26844_v51 = vmax.f32 %v18570_v55, 0.0  ;;  %v26846_v8 = vmax.f32 %v18573_v56, 0.0  ;;  %v10475_v16 = vmax.f32 %v5955_v1, 0.0  ;;  %16936 = vmatprep.mubr.msk.bf16.mxu1 %vm4069_vm2, %v17520_v60  ;;  %v17521_v55 = vld [vmem:[%s26754_s0 + $0x238] sm:$0xff]  }
 0x11d   :  { %26842 = vst [vmem:[#allocation3_spill] sm:$0xff] %v18857_v63  ;;  %26843 = vst [vmem:[#allocation4_spill] sm:$0xff] %v18861_v46  ;;  %v11051_v44 = vmax.f32 %v8259_v26, 0.0  ;;  %v18875_v9 = vmax.f32 %v10459_v18, %v10477_v35  ;;  %v17522_v56 = vld [vmem:[%s26754_s0 + $0xb38] sm:$0xff]   ;;  %v10462_v40 = vmax.f32 %v18833_v50, 0.0  ;;  %v11038_v17 = vmax.f32 %v18837_v45, 0.0 }
 0x11e   :  { %v18867_v19 = vmax.f32 %v26844_v51, %v10474_v4  ;;  %v18871_v38 = vmax.f32 %v26846_v8, %v11050_v49  ;;  %v18877_v2 = vmax.f32 %v11035_v21, %v11053_v0  ;;  %v26850_v13 = vmax.f32 %v18627_v20, 0.0  ;;  %v16254_v60 = vpop.f32.mrb[32].mxu0  ;;  %v16830_v10 = vpop.f32.mrb[32].mxu1  ;;  %v17524_v50 = vld [vmem:[%s26754_s0 + $0xb40] sm:$0xff]   ;;  %v17544_v63 = vld [vmem:[%s26754_s0 + $0xb90] sm:$0xff]  }
 0x11f   :  { %26848 = vst [vmem:[#allocation7_spill] sm:$0xff] %v18875_v9  ;;  %v26852_v18 = vmax.f32 %v18631_v41, 0.0  ;;  %v10463_v45 = vmax.f32 %v18843_v52, 0.0  ;;  %v11039_v20 = vmax.f32 %v18847_v7, 0.0  ;;  %v5976_v22 = vadd.f32 %v16254_v60, %v18465_v12  ;;  %v5967_v32 = vpop.f32.mrb[33].mxu0  ;;  %v8271_v39 = vpop.f32.mrb[33].mxu1 }
 0x120   :  { %26845 = vst [vmem:[#allocation5_spill] sm:$0xff] %v18867_v19  ;;  %26847 = vst [vmem:[#allocation6_spill] sm:$0xff] %v18871_v38  ;;  %v18889_v59 = vmax.f32 %v26850_v13, %v10475_v16  ;;  %v8280_v41 = vadd.f32 %v16830_v10, %v18465_v12  ;;  %v5968_v42 = vadd.f32 %v18465_v12, %v5967_v32  ;;  %v16255_v49 = vpop.f32.mrb[34].mxu0  ;;  %v16831_v1 = vpop.f32.mrb[34].mxu1 }
 0x121   :  { %26849 = vst [vmem:[#allocation8_spill] sm:$0xff] %v18877_v2  ;;  %v18893_v21 = vmax.f32 %v26852_v18, %v11051_v44  ;;  %v8272_v4 = vadd.f32 %v18465_v12, %v8271_v39  ;;  %v10480_v26 = vmax.f32 %v5976_v22, 0.0  ;;  %v5979_v0 = vadd.f32 %v16255_v49, %v18465_v12  ;;  %v5970_v51 = vpop.f32.mrb[35].mxu0  ;;  %v8274_v7 = vpop.f32.mrb[35].mxu1 }
 0x122   :  { %26851 = vst [vmem:[#allocation9_spill] sm:$0xff] %v18889_v59  ;;  %v11056_v35 = vmax.f32 %v8280_v41, 0.0  ;;  %v8283_v52 = vadd.f32 %v16831_v1, %v18465_v12  ;;  %v10478_v8 = vmax.f32 %v5968_v42, 0.0  ;;  %v5971_v44 = vadd.f32 %v18465_v12, %v5970_v51  ;;  %16361 = vmatmul.mubr.msk.bf16.gmra.mrb[140].mxu0 %vm4069_vm2, %v17521_v55  ;;  %v17530_v51 = vld [vmem:[%s26754_s0 + $0xb58] sm:$0xff]  }
 0x123   :  { %26853 = vst [vmem:[#allocation10_spill] sm:$0xff] %v18893_v21  ;;  %v11054_v16 = vmax.f32 %v8272_v4, 0.0  ;;  %v8275_v13 = vadd.f32 %v18465_v12, %v8274_v7  ;;  %v18911_v18 = vmax.f32 %v10462_v40, %v10480_v26  ;;  %v10481_v10 = vmax.f32 %v5979_v0, 0.0  ;;  %16937 = vmatmul.mubr.msk.bf16.gmra.mrb[140].mxu1 %vm4069_vm2, %v17522_v56  ;;  %16364 = vmatprep.mubr.msk.bf16.mxu0 %vm4069_vm2, %v17523_v11  ;;  %v17525_v11 = vld [vmem:[%s26754_s0 + $0x248] sm:$0xff]  }
 0x124   :  { %v18913_v60 = vmax.f32 %v11038_v17, %v11056_v35  ;;  %v11057_v32 = vmax.f32 %v8283_v52, 0.0  ;;  %v26856_v22 = vmax.f32 %v18650_v62, 0.0  ;;  %v26858_v39 = vmax.f32 %v18653_v30, 0.0  ;;  %16940 = vmatprep.mubr.msk.bf16.mxu1 %vm4069_vm2, %v17524_v50  ;;  %v17526_v50 = vld [vmem:[%s26754_s0 + $0xb48] sm:$0xff]   ;;  %v17529_v52 = vld [vmem:[%s26754_s0 + $0x258] sm:$0xff]  }
 0x125   :  { %26854 = vst [vmem:[#allocation11_spill] sm:$0xff] %v18911_v18  ;;  %v10479_v4 = vmax.f32 %v5971_v44, 0.0  ;;  %v11055_v49 = vmax.f32 %v8275_v13, 0.0  ;;  %v18927_v40 = vmax.f32 %v10463_v45, %v10481_v10  ;;  %v16258_v30 = vpop.f32.mrb[36].mxu0  ;;  %v16834_v56 = vpop.f32.mrb[36].mxu1  ;;  %v17532_v44 = vld [vmem:[%s26754_s0 + $0xb60] sm:$0xff]  }
 0x126   :  { %26855 = vst [vmem:[#allocation12_spill] sm:$0xff] %v18913_v60  ;;  %v18919_v41 = vmax.f32 %v26856_v22, %v10478_v8  ;;  %v18923_v42 = vmax.f32 %v26858_v39, %v11054_v16  ;;  %v18929_v17 = vmax.f32 %v11039_v20, %v11057_v32  ;;  %v5983_v45 = vpop.f32.mrb[37].mxu0  ;;  %v8287_v20 = vpop.f32.mrb[37].mxu1  ;;  %v17531_v16 = vld [vmem:[%s26754_s0 + $0x260] sm:$0xff]   ;;  %v18968_v13 = vadd.f32 %v16258_v30, %v18465_v12 }
 0x127   :  { %26860 = vst [vmem:[#allocation15_spill] sm:$0xff] %v18927_v40  ;;  %v18933_v55 = vmax.f32 %v10461_v15, %v10479_v4  ;;  %v18937_v62 = vmax.f32 %v11037_v14, %v11055_v49  ;;  %v16259_v15 = vpop.f32.mrb[38].mxu0  ;;  %v16835_v14 = vpop.f32.mrb[38].mxu1  ;;  %v18971_v10 = vadd.f32 %v16834_v56, %v18465_v12  ;;  %v18974_v49 = vadd.f32 %v18465_v12, %v5983_v45  ;;  %v17536_v56 = vld [vmem:[%s26754_s0 + $0xb70] sm:$0xff]  }
 0x128   :  { %26857 = vst [vmem:[#allocation13_spill] sm:$0xff] %v18919_v41  ;;  %26859 = vst [vmem:[#allocation14_spill] sm:$0xff] %v18923_v42  ;;  %v5986_v1 = vpop.f32.mrb[39].mxu0  ;;  %v8290_v26 = vpop.f32.mrb[39].mxu1 }
 0x129   :  { %26861 = vst [vmem:[#allocation16_spill] sm:$0xff] %v18929_v17  ;;  %26862 = vst [vmem:[#allocation17_spill] sm:$0xff] %v18933_v55  ;;  %v18992_v45 = vadd.f32 %v18465_v12, %v5986_v1 }
 0x12a   :  { %26863 = vst [vmem:[#allocation18_spill] sm:$0xff] %v18937_v62  ;;  %16365 = vmatmul.mubr.msk.bf16.gmra.mrb[144].mxu0 %vm4069_vm2, %v17525_v11  ;;  %v18977_v11 = vadd.f32 %v18465_v12, %v8287_v20  ;;  %v18995_v20 = vadd.f32 %v18465_v12, %v8290_v26 }
 0x12b   :  { %16941 = vmatmul.mubr.msk.bf16.gmra.mrb[144].mxu1 %vm4069_vm2, %v17526_v50  ;;  %16368 = vmatprep.mubr.msk.bf16.mxu0 %vm4069_vm2, %v17527_v48  ;;  %v18980_v50 = vadd.f32 %v16259_v15, %v18465_v12  ;;  %v18983_v48 = vadd.f32 %v16835_v14, %v18465_v12  ;;  %v17534_v15 = vld [vmem:[%s26754_s0 + $0xb68] sm:$0xff]  }
 0x12c   :  { %16944 = vmatprep.mubr.msk.bf16.mxu1 %vm4069_vm2, %v17528_v23  ;;  %v17533_v23 = vld [vmem:[%s26754_s0 + $0x268] sm:$0xff]  }
 0x12d   :  { %v16262_v35 = vpop.f32.mrb[40].mxu0  ;;  %v16838_v0 = vpop.f32.mrb[40].mxu1 }
 0x12e   :  { %v5999_v7 = vpop.f32.mrb[41].mxu0  ;;  %v8303_v8 = vpop.f32.mrb[41].mxu1  ;;  %v19009_v1 = vadd.f32 %v16838_v0, %v18465_v12 }
 0x12f   :  { %v16263_v32 = vpop.f32.mrb[42].mxu0  ;;  %v16839_v22 = vpop.f32.mrb[42].mxu1  ;;  %v19023_v0 = vadd.f32 %v18465_v12, %v8303_v8 }
 0x130   :  { %v6002_v39 = vpop.f32.mrb[43].mxu0  ;;  %v8306_v4 = vpop.f32.mrb[43].mxu1  ;;  %v19026_v55 = vadd.f32 %v16263_v32, %v18465_v12  ;;  %v19029_v17 = vadd.f32 %v16839_v22, %v18465_v12 }
 0x131   :  { %v19032_v40 = vadd.f32 %v18465_v12, %v6002_v39  ;;  %v19035_v30 = vadd.f32 %v18465_v12, %v8306_v4 }
 0x132   :  { %16369 = vmatmul.mubr.msk.bf16.gmra.mrb[148].mxu0 %vm4069_vm2, %v17529_v52 }
 0x133   :  { %16945 = vmatmul.mubr.msk.bf16.gmra.mrb[148].mxu1 %vm4069_vm2, %v17530_v51  ;;  %16372 = vmatprep.mubr.msk.bf16.mxu0 %vm4069_vm2, %v17531_v16  ;;  %v19006_v51 = vadd.f32 %v16262_v35, %v18465_v12  ;;  %v19020_v35 = vadd.f32 %v18465_v12, %v5999_v7 }
 0x134   :  { %16948 = vmatprep.mubr.msk.bf16.mxu1 %vm4069_vm2, %v17532_v44  ;;  %v17535_v44 = vld [vmem:[%s26754_s0 + $0x270] sm:$0xff]  }
 0x135   :  { %v16266_v26 = vpop.f32.mrb[44].mxu0  ;;  %v16842_v16 = vpop.f32.mrb[44].mxu1 }
 0x136   :  { %v6015_v14 = vpop.f32.mrb[45].mxu0  ;;  %v8319_v62 = vpop.f32.mrb[45].mxu1  ;;  %v19040_v41 = vadd.f32 %v16266_v26, %v18465_v12  ;;  %v19043_v32 = vadd.f32 %v16842_v16, %v18465_v12  ;;  %v17540_v16 = vld [vmem:[%s26754_s0 + $0xb80] sm:$0xff]  }
 0x137   :  { %v16267_v52 = vpop.f32.mrb[46].mxu0  ;;  %v16843_v7 = vpop.f32.mrb[46].mxu1 }
 0x138   :  { %26864 = vst [vmem:[#allocation19_spill] sm:$0xff] %v19040_v41  ;;  %26865 = vst [vmem:[#allocation20_spill] sm:$0xff] %v19043_v32  ;;  %v6018_v22 = vpop.f32.mrb[47].mxu0  ;;  %v8322_v60 = vpop.f32.mrb[47].mxu1 }
 0x13a   :  { %16373 = vmatmul.mubr.msk.bf16.gmra.mrb[152].mxu0 %vm4069_vm2, %v17533_v23  ;;  %v19062_v23 = vld [vmem:[%s26755_s2] ss:$0 sm:$0xff] }
 0x13b   :  { %16949 = vmatmul.mubr.msk.bf16.gmra.mrb[152].mxu1 %vm4069_vm2, %v17534_v15  ;;  %16376 = vmatprep.mubr.msk.bf16.mxu0 %vm4069_vm2, %v17535_v44  ;;  %v19065_v15 = vadd.f32 %v19062_v23, %v6015_v14  ;;  %v19068_v8 = vadd.f32 %v19062_v23, %v8319_v62  ;;  %v17537_v44 = vld [vmem:[%s26754_s0 + $0x278] sm:$0xff]   ;;  %v19077_v39 = vadd.f32 %v19062_v23, %v16267_v52  ;;  %v17539_v62 = vld [vmem:[%s26754_s0 + $0x280] sm:$0xff]  }
 0x13c   :  { %16952 = vmatprep.mubr.msk.bf16.mxu1 %vm4069_vm2, %v17536_v56  ;;  %v17538_v56 = vld [vmem:[%s26754_s0 + $0xb78] sm:$0xff]   ;;  %v19080_v18 = vadd.f32 %v19062_v23, %v16843_v7  ;;  %v19089_v12 = vadd.f32 %v19062_v23, %v6018_v22  ;;  %v19092_v21 = vadd.f32 %v19062_v23, %v8322_v60 }
 0x13d   :  { %26866 = vst [vmem:[#allocation21_spill] sm:$0xff] %v19077_v39  ;;  %v16270_v26 = vpop.f32.mrb[48].mxu0  ;;  %v16846_v14 = vpop.f32.mrb[48].mxu1 }
 0x13e   :  { %26867 = vst [vmem:[#allocation22_spill] sm:$0xff] %v19080_v18  ;;  %v6031_v52 = vpop.f32.mrb[49].mxu0  ;;  %v8335_v4 = vpop.f32.mrb[49].mxu1  ;;  %v19095_v7 = vadd.f32 %v19062_v23, %v16270_v26  ;;  %v19098_v42 = vadd.f32 %v19062_v23, %v16846_v14 }
 0x13f   :  { %v19101_v59 = vadd.f32 %v19062_v23, %v6031_v52  ;;  %v19104_v2 = vadd.f32 %v19062_v23, %v8335_v4  ;;  %v16271_v9 = vpop.f32.mrb[50].mxu0  ;;  %v16847_v22 = vpop.f32.mrb[50].mxu1  ;;  %v17543_v52 = vld [vmem:[%s26754_s0 + $0x290] sm:$0xff]  }
 0x140   :  { %26868 = vst [vmem:[#allocation23_spill] sm:$0xff] %v19095_v7  ;;  %26869 = vst [vmem:[#allocation24_spill] sm:$0xff] %v19098_v42  ;;  %v19109_v19 = vadd.f32 %v19062_v23, %v16271_v9  ;;  %v19112_v26 = vadd.f32 %v19062_v23, %v16847_v22  ;;  %v6034_v14 = vpop.f32.mrb[51].mxu0  ;;  %v8338_v46 = vpop.f32.mrb[51].mxu1 }
 0x141   :  { %26870 = vst [vmem:[#allocation25_spill] sm:$0xff] %v19101_v59  ;;  %26871 = vst [vmem:[#allocation26_spill] sm:$0xff] %v19104_v2  ;;  %v19135_v60 = vadd.f32 %v19062_v23, %v6034_v14  ;;  %v19138_v9 = vadd.f32 %v19062_v23, %v8338_v46  ;;  %v26874_v59 = vmax.f32 %v18974_v49, 0.0 }
 0x142   :  { %26872 = vst [vmem:[#allocation27_spill] sm:$0xff] %v19109_v19  ;;  %26873 = vst [vmem:[#allocation28_spill] sm:$0xff] %v19112_v26  ;;  %16377 = vmatmul.mubr.msk.bf16.gmra.mrb[156].mxu0 %vm4069_vm2, %v17537_v44  ;;  %v17541_v44 = vld [vmem:[%s26754_s0 + $0x288] sm:$0xff]  }
 0x143   :  { %16953 = vmatmul.mubr.msk.bf16.gmra.mrb[156].mxu1 %vm4069_vm2, %v17538_v56  ;;  %16380 = vmatprep.mubr.msk.bf16.mxu0 %vm4069_vm2, %v17539_v62  ;;  %v17542_v56 = vld [vmem:[%s26754_s0 + $0xb88] sm:$0xff]  }
 0x144   :  { %16956 = vmatprep.mubr.msk.bf16.mxu1 %vm4069_vm2, %v17540_v16 }
 0x145   :  { %v16274_v62 = vpop.f32.mrb[52].mxu0  ;;  %v16850_v16 = vpop.f32.mrb[52].mxu1 }
 0x146   :  { %v6056_v38 = vadd.f32 %v19062_v23, %v16274_v62  ;;  %v8360_v22 = vadd.f32 %v19062_v23, %v16850_v16  ;;  %v6047_v14 = vpop.f32.mrb[53].mxu0  ;;  %v8351_v32 = vpop.f32.mrb[53].mxu1 }
 0x147   :  { %v19149_v46 = vadd.f32 %v19062_v23, %v6047_v14  ;;  %v19152_v4 = vadd.f32 %v19062_v23, %v8351_v32  ;;  %v16275_v26 = vpop.f32.mrb[54].mxu0  ;;  %v16851_v19 = vpop.f32.mrb[54].mxu1 }
 0x148   :  { %v10500_v42 = vmax.f32 %v6056_v38, 0.0  ;;  %v11076_v7 = vmax.f32 %v8360_v22, 0.0  ;;  %v6059_v18 = vadd.f32 %v19062_v23, %v16275_v26  ;;  %v8363_v39 = vadd.f32 %v19062_v23, %v16851_v19  ;;  %v6050_v41 = vpop.f32.mrb[55].mxu0  ;;  %v8354_v62 = vpop.f32.mrb[55].mxu1 }
 0x149   :  { %v19159_v14 = vadd.f32 %v19062_v23, %v6050_v41  ;;  %v19162_v32 = vadd.f32 %v19062_v23, %v8354_v62  ;;  %v26875_v22 = vmax.f32 %v18977_v11, 0.0  ;;  %v10498_v2 = vmax.f32 %v19149_v46, 0.0 }
 0x14a   :  { %v11886_v38 = vmax.f32 %v26874_v59, %v10500_v42  ;;  %v10501_v43 = vmax.f32 %v6059_v18, 0.0  ;;  %v11077_v19 = vmax.f32 %v8363_v39, 0.0  ;;  %16381 = vmatmul.mubr.msk.bf16.gmra.mrb[160].mxu0 %vm4069_vm2, %v17541_v44  ;;  %v11074_v41 = vmax.f32 %v19152_v4, 0.0  ;;  %v26923_v4 = vld [vmem:[#allocation11_spill] sm:$0xff] }
 0x14b   :  { %v12030_v26 = vmax.f32 %v26875_v22, %v11076_v7  ;;  %16957 = vmatmul.mubr.msk.bf16.gmra.mrb[160].mxu1 %vm4069_vm2, %v17542_v56  ;;  %16384 = vmatprep.mubr.msk.bf16.mxu0 %vm4069_vm2, %v17543_v52  ;;  %v26876_v42 = vmax.f32 %v18992_v45, 0.0  ;;  %v26877_v11 = vmax.f32 %v18995_v20, 0.0  ;;  %v17545_v7 = vld [vmem:[%s26754_s0 + $0x298] sm:$0xff]   ;;  %v17548_v22 = vld [vmem:[%s26754_s0 + $0xba0] sm:$0xff]  }
 0x14c   :  { %16960 = vmatprep.mubr.msk.bf16.mxu1 %vm4069_vm2, %v17544_v63  ;;  %v12174_v59 = vmax.f32 %v18657_v28, %v11886_v38  ;;  %v17546_v52 = vld [vmem:[%s26754_s0 + $0xb98] sm:$0xff]   ;;  %v17547_v28 = vld [vmem:[%s26754_s0 + $0x2a0] sm:$0xff]  }
 0x14d   :  { %v12318_v18 = vmax.f32 %v18661_v37, %v12030_v26  ;;  %v11887_v49 = vmax.f32 %v26876_v42, %v10501_v43  ;;  %v12031_v39 = vmax.f32 %v26877_v11, %v11077_v19  ;;  %v16278_v44 = vpop.f32.mrb[56].mxu0  ;;  %v16854_v63 = vpop.f32.mrb[56].mxu1 }
 0x14e   :  { %v15350_v37 = vpack.c.bf16 %v12174_v59, %v12174_v59  ;;  %v6063_v56 = vpop.f32.mrb[57].mxu0  ;;  %v8367_v38 = vpop.f32.mrb[57].mxu1  ;;  %v6072_v26 = vadd.f32 %v19062_v23, %v16278_v44  ;;  %v8376_v19 = vadd.f32 %v19062_v23, %v16854_v63 }
 0x14f   :  { %v15494_v45 = vpack.c.bf16 %v12318_v18, %v12318_v18  ;;  %v12175_v43 = vmax.f32 %v18671_v33, %v11887_v49  ;;  %v12319_v20 = vmax.f32 %v18673_v34, %v12031_v39  ;;  %v6064_v42 = vadd.f32 %v19062_v23, %v6063_v56  ;;  %v16279_v59 = vpop.f32.mrb[58].mxu0  ;;  %v16855_v18 = vpop.f32.mrb[58].mxu1 }
 0x150   :  { %v8368_v11 = vadd.f32 %v19062_v23, %v8367_v38  ;;  %13615 = vst.msk [vmem:[%s26756_s3] sm:$0xf] %vm13614_vm3, %v15350_v37  ;;  %v6075_v49 = vadd.f32 %v19062_v23, %v16279_v59  ;;  %v8379_v39 = vadd.f32 %v19062_v23, %v16855_v18  ;;  %v6066_v44 = vpop.f32.mrb[59].mxu0  ;;  %v8370_v63 = vpop.f32.mrb[59].mxu1  ;;  %v10504_v56 = vmax.f32 %v6072_v26, 0.0 }
 0x151   :  { %13759 = vst.msk [vmem:[%s26756_s3 + $0x240] sm:$0xf] %vm13614_vm3, %v15494_v45  ;;  %v15351_v33 = vpack.c.bf16 %v12175_v43, %v12175_v43  ;;  %v15495_v34 = vpack.c.bf16 %v12319_v20, %v12319_v20  ;;  %v11080_v38 = vmax.f32 %v8376_v19, 0.0  ;;  %v10502_v62 = vmax.f32 %v6064_v42, 0.0 }
 0x152   :  { %v11078_v16 = vmax.f32 %v8368_v11, 0.0  ;;  %v10505_v37 = vmax.f32 %v6075_v49, 0.0  ;;  %v11081_v45 = vmax.f32 %v8379_v39, 0.0  ;;  %v6067_v43 = vadd.f32 %v19062_v23, %v6066_v44  ;;  %16385 = vmatmul.mubr.msk.bf16.gmra.mrb[164].mxu0 %vm4069_vm2, %v17545_v7 }
 0x153   :  { %13616 = vst.msk [vmem:[%s26756_s3 + $0x4] sm:$0xf] %vm13614_vm3, %v15351_v33  ;;  %13760 = vst.msk [vmem:[%s26756_s3 + $0x244] sm:$0xf] %vm13614_vm3, %v15495_v34  ;;  %v8371_v20 = vadd.f32 %v19062_v23, %v8370_v63  ;;  %16961 = vmatmul.mubr.msk.bf16.gmra.mrb[164].mxu1 %vm4069_vm2, %v17546_v52  ;;  %v26878_v26 = vmax.f32 %v19020_v35, 0.0  ;;  %v26879_v42 = vmax.f32 %v19023_v0, 0.0  ;;  %16388 = vmatprep.mubr.msk.bf16.mxu0 %vm4069_vm2, %v17547_v28 }
 0x154   :  { %v26880_v59 = vmax.f32 %v18968_v13, 0.0  ;;  %v26881_v33 = vmax.f32 %v18971_v10, 0.0  ;;  %v26882_v49 = vmax.f32 %v19032_v40, 0.0  ;;  %v26883_v7 = vmax.f32 %v19035_v30, 0.0  ;;  %16964 = vmatprep.mubr.msk.bf16.mxu1 %vm4069_vm2, %v17548_v22  ;;  %v17549_v13 = vld [vmem:[%s26754_s0 + $0x2a8] sm:$0xff]   ;;  %v17551_v22 = vld [vmem:[%s26754_s0 + $0x2b0] sm:$0xff]  }
 0x155   :  { %v11890_v19 = vmax.f32 %v26878_v26, %v10504_v56  ;;  %v12034_v11 = vmax.f32 %v26879_v42, %v11080_v38  ;;  %v10503_v44 = vmax.f32 %v6067_v43, 0.0  ;;  %v11079_v35 = vmax.f32 %v8371_v20, 0.0  ;;  %v16858_v28 = vpop.f32.mrb[60].mxu1  ;;  %v17550_v30 = vld [vmem:[%s26754_s0 + $0xba8] sm:$0xff]  }
 0x156   :  { %v11888_v18 = vmax.f32 %v26880_v59, %v10502_v62  ;;  %v12032_v34 = vmax.f32 %v26881_v33, %v11078_v16  ;;  %v11891_v39 = vmax.f32 %v26882_v49, %v10505_v37  ;;  %v12035_v52 = vmax.f32 %v26883_v7, %v11081_v45  ;;  %v16282_v62 = vpop.f32.mrb[60].mxu0  ;;  %v8383_v37 = vpop.f32.mrb[61].mxu1  ;;  %v17552_v45 = vld [vmem:[%s26754_s0 + $0xbb0] sm:$0xff]  }
 0x157   :  { %v12178_v0 = vmax.f32 %v18707_v25, %v11890_v19  ;;  %v12322_v10 = vmax.f32 %v18711_v27, %v12034_v11  ;;  %v26884_v27 = vmax.f32 %v18980_v50, 0.0  ;;  %v6079_v38 = vpop.f32.mrb[61].mxu0 }
 0x158   :  { %v12176_v16 = vmax.f32 %v18717_v61, %v11888_v18  ;;  %v12320_v40 = vmax.f32 %v18721_v36, %v12032_v34  ;;  %v12179_v63 = vmax.f32 %v18729_v3, %v11891_v39  ;;  %v12323_v25 = vmax.f32 %v18733_v31, %v12035_v52  ;;  %v16283_v42 = vpop.f32.mrb[62].mxu0  ;;  %v16859_v3 = vpop.f32.mrb[62].mxu1 }
 0x159   :  { %v11889_v56 = vmax.f32 %v26884_v27, %v10503_v44  ;;  %v26885_v61 = vmax.f32 %v18983_v48, 0.0  ;;  %v15354_v43 = vpack.c.bf16 %v12178_v0, %v12178_v0  ;;  %v15498_v20 = vpack.c.bf16 %v12322_v10, %v12322_v10  ;;  %v6082_v48 = vpop.f32.mrb[63].mxu0  ;;  %v8386_v18 = vpop.f32.mrb[63].mxu1 }
 0x15a   :  { %v15352_v26 = vpack.c.bf16 %v12176_v16, %v12176_v16  ;;  %v15496_v19 = vpack.c.bf16 %v12320_v40, %v12320_v40  ;;  %v15355_v11 = vpack.c.bf16 %v12179_v63, %v12179_v63  ;;  %v15499_v31 = vpack.c.bf16 %v12323_v25, %v12323_v25  ;;  %16389 = vmatmul.mubr.msk.bf16.gmra.mrb[168].mxu0 %vm4069_vm2, %v17549_v13 }
 0x15b   :  { %v12033_v36 = vmax.f32 %v26885_v61, %v11079_v35  ;;  %v12177_v50 = vmax.f32 %v18743_v6, %v11889_v56  ;;  %13619 = vst.msk [vmem:[%s26756_s3 + $0x10] sm:$0xf] %vm13614_vm3, %v15354_v43  ;;  %13763 = vst.msk [vmem:[%s26756_s3 + $0x250] sm:$0xf] %vm13614_vm3, %v15498_v20  ;;  %v6088_v6 = vadd.f32 %v19062_v23, %v16282_v62  ;;  %16965 = vmatmul.mubr.msk.bf16.gmra.mrb[168].mxu1 %vm4069_vm2, %v17550_v30 }
 0x15c   :  { %13617 = vst.msk [vmem:[%s26756_s3 + $0x8] sm:$0xf] %vm13614_vm3, %v15352_v26  ;;  %13761 = vst.msk [vmem:[%s26756_s3 + $0x248] sm:$0xf] %vm13614_vm3, %v15496_v19  ;;  %v6080_v33 = vadd.f32 %v19062_v23, %v6079_v38  ;;  %v8384_v34 = vadd.f32 %v19062_v23, %v8383_v37  ;;  %v6091_v7 = vadd.f32 %v19062_v23, %v16283_v42  ;;  %16392 = vmatprep.mubr.msk.bf16.mxu0 %vm4069_vm2, %v17551_v22 }
 0x15d   :  { %v12321_v59 = vmax.f32 %v18747_v5, %v12033_v36  ;;  %v8392_v5 = vadd.f32 %v19062_v23, %v16858_v28  ;;  %13620 = vst.msk [vmem:[%s26756_s3 + $0x14] sm:$0xf] %vm13614_vm3, %v15355_v11  ;;  %13764 = vst.msk [vmem:[%s26756_s3 + $0x254] sm:$0xf] %vm13614_vm3, %v15499_v31  ;;  %v15353_v49 = vpack.c.bf16 %v12177_v50, %v12177_v50  ;;  %v10508_v44 = vmax.f32 %v6088_v6, 0.0  ;;  %v17553_v28 = vld [vmem:[%s26754_s0 + $0x2b8] sm:$0xff]  }
 0x15e   :  { %v8395_v52 = vadd.f32 %v19062_v23, %v16859_v3  ;;  %v10506_v0 = vmax.f32 %v6080_v33, 0.0  ;;  %v11082_v10 = vmax.f32 %v8384_v34, 0.0  ;;  %v10509_v16 = vmax.f32 %v6091_v7, 0.0  ;;  %16968 = vmatprep.mubr.msk.bf16.mxu1 %vm4069_vm2, %v17552_v45  ;;  %v16286_v38 = vpop.f32.mrb[64].mxu0  ;;  %v16862_v37 = vpop.f32.mrb[64].mxu1  ;;  %v17554_v45 = vld [vmem:[%s26754_s0 + $0xbb8] sm:$0xff]  }
 0x15f   :  { %v15497_v39 = vpack.c.bf16 %v12321_v59, %v12321_v59  ;;  %v11084_v35 = vmax.f32 %v8392_v5, 0.0  ;;  %13618 = vst.msk [vmem:[%s26756_s3 + $0xc] sm:$0xf] %vm13614_vm3, %v15353_v49  ;;  %v6083_v40 = vadd.f32 %v19062_v23, %v6082_v48  ;;  %v8387_v62 = vadd.f32 %v19062_v23, %v8386_v18  ;;  %v6095_v42 = vpop.f32.mrb[65].mxu0 }
 0x160   :  { %v11085_v13 = vmax.f32 %v8395_v52, 0.0  ;;  %v26886_v30 = vmax.f32 %v19065_v15, 0.0  ;;  %v26887_v63 = vmax.f32 %v19068_v8, 0.0  ;;  %v26888_v27 = vmax.f32 %v19006_v51, 0.0  ;;  %v8399_v51 = vpop.f32.mrb[65].mxu1  ;;  %v16287_v50 = vpop.f32.mrb[66].mxu0 }
 0x161   :  { %13762 = vst.msk [vmem:[%s26756_s3 + $0x24c] sm:$0xf] %vm13614_vm3, %v15497_v39  ;;  %v26889_v61 = vmax.f32 %v19009_v1, 0.0  ;;  %v26890_v43 = vmax.f32 %v19089_v12, 0.0  ;;  %v26891_v15 = vmax.f32 %v19092_v21, 0.0  ;;  %v10507_v8 = vmax.f32 %v6083_v40, 0.0 }
 0x162   :  { %v11894_v22 = vmax.f32 %v26886_v30, %v10508_v44  ;;  %v12038_v25 = vmax.f32 %v26887_v63, %v11084_v35  ;;  %v11892_v56 = vmax.f32 %v26888_v27, %v10506_v0  ;;  %v11083_v19 = vmax.f32 %v8387_v62, 0.0  ;;  %v16863_v59 = vpop.f32.mrb[66].mxu1  ;;  %v6098_v33 = vpop.f32.mrb[67].mxu0  ;;  %16393 = vmatmul.mubr.msk.bf16.gmra.mrb[172].mxu0 %vm4069_vm2, %v17553_v28  ;;  %v17557_v40 = vld [vmem:[%s26754_s0 + $0x2c8] sm:$0xff]  }
 0x163   :  { %v12036_v36 = vmax.f32 %v26889_v61, %v11082_v10  ;;  %v11895_v20 = vmax.f32 %v26890_v43, %v10509_v16  ;;  %v12039_v26 = vmax.f32 %v26891_v15, %v11085_v13  ;;  %v26892_v21 = vmax.f32 %v19026_v55, 0.0  ;;  %16969 = vmatmul.mubr.msk.bf16.gmra.mrb[172].mxu1 %vm4069_vm2, %v17554_v45  ;;  %v17558_v27 = vld [vmem:[%s26754_s0 + $0xbc8] sm:$0xff]   ;;  %v26895_v43 = vld [vmem:[#allocation25_spill] sm:$0xff] }
 0x164   :  { %v12182_v3 = vmax.f32 %v18781_v29, %v11894_v22  ;;  %v12326_v1 = vmax.f32 %v18785_v24, %v12038_v25  ;;  %v12180_v11 = vmax.f32 %v18791_v57, %v11892_v56  ;;  %v26893_v6 = vmax.f32 %v19029_v17, 0.0  ;;  %v8402_v29 = vpop.f32.mrb[67].mxu1  ;;  %v17555_v24 = vld [vmem:[%s26754_s0 + $0x2c0] sm:$0xff]  }
 0x165   :  { %v12324_v31 = vmax.f32 %v18795_v58, %v12036_v36  ;;  %v12183_v12 = vmax.f32 %v18803_v53, %v11895_v20  ;;  %v12327_v48 = vmax.f32 %v18807_v54, %v12039_v26  ;;  %v11893_v18 = vmax.f32 %v26892_v21, %v10507_v8  ;;  %v17556_v53 = vld [vmem:[%s26754_s0 + $0xbc0] sm:$0xff]   ;;  %16396 = vmatprep.mubr.msk.bf16.mxu0 %vm4069_vm2, %v17555_v24  ;;  %v16290_v63 = vpop.f32.mrb[68].mxu0  ;;  %v16866_v25 = vpop.f32.mrb[68].mxu1  ;;  %v17559_v24 = vld [vmem:[%s26754_s0 + $0x2d0] sm:$0xff]  }
 0x166   :  { %v12037_v5 = vmax.f32 %v26893_v6, %v11083_v19  ;;  %v15358_v57 = vpack.c.bf16 %v12182_v3, %v12182_v3  ;;  %v15502_v58 = vpack.c.bf16 %v12326_v1, %v12326_v1  ;;  %v15356_v34 = vpack.c.bf16 %v12180_v11, %v12180_v11  ;;  %v26894_v17 = vld [vmem:[#allocation2_spill] sm:$0xff]  ;;  %16972 = vmatprep.mubr.msk.bf16.mxu1 %vm4069_vm2, %v17556_v53  ;;  %v8415_v45 = vpop.f32.mrb[69].mxu1  ;;  %v26901_v1 = vld [vmem:[#allocation20_spill] sm:$0xff]  ;;  %v26907_v53 = vld [vmem:[#allocation5_spill] sm:$0xff] }
 0x167   :  { %v15500_v49 = vpack.c.bf16 %v12324_v31, %v12324_v31  ;;  %v15359_v54 = vpack.c.bf16 %v12183_v12, %v12183_v12  ;;  %v15503_v55 = vpack.c.bf16 %v12327_v48, %v12327_v48  ;;  %v12181_v39 = vmax.f32 %v18819_v47, %v11893_v18  ;;  %v26897_v26 = vld [vmem:[#allocation26_spill] sm:$0xff] }
 0x168   :  { %v12325_v7 = vmax.f32 %v26894_v17, %v12037_v5  ;;  %13623 = vst.msk [vmem:[%s26756_s3 + $0x20] sm:$0xf] %vm13614_vm3, %v15358_v57  ;;  %13767 = vst.msk [vmem:[%s26756_s3 + $0x260] sm:$0xf] %vm13614_vm3, %v15502_v58  ;;  %v6104_v47 = vadd.f32 %v19062_v23, %v16286_v38  ;;  %v8408_v52 = vadd.f32 %v19062_v23, %v16862_v37  ;;  %v6111_v37 = vpop.f32.mrb[69].mxu0  ;;  %v26896_v20 = vmax.f32 %v26895_v43, 0.0 }
 0x169   :  { %13621 = vst.msk [vmem:[%s26756_s3 + $0x18] sm:$0xf] %vm13614_vm3, %v15356_v34  ;;  %13765 = vst.msk [vmem:[%s26756_s3 + $0x258] sm:$0xf] %vm13614_vm3, %v15500_v49  ;;  %v6096_v44 = vadd.f32 %v19062_v23, %v6095_v42  ;;  %v8400_v35 = vadd.f32 %v19062_v23, %v8399_v51  ;;  %v15357_v0 = vpack.c.bf16 %v12181_v39, %v12181_v39  ;;  %v26898_v8 = vmax.f32 %v26897_v26, 0.0  ;;  %v26899_v42 = vld [vmem:[#allocation19_spill] sm:$0xff] }
 0x16a   :  { %13624 = vst.msk [vmem:[%s26756_s3 + $0x24] sm:$0xf] %vm13614_vm3, %v15359_v54  ;;  %13768 = vst.msk [vmem:[%s26756_s3 + $0x264] sm:$0xf] %vm13614_vm3, %v15503_v55  ;;  %v15501_v10 = vpack.c.bf16 %v12325_v7, %v12325_v7  ;;  %v6107_v16 = vadd.f32 %v19062_v23, %v16287_v50  ;;  %v8411_v13 = vadd.f32 %v19062_v23, %v16863_v59  ;;  %v10512_v62 = vmax.f32 %v6104_v47, 0.0  ;;  %v16291_v50 = vpop.f32.mrb[70].mxu0 }
 0x16b   :  { %v11088_v28 = vmax.f32 %v8408_v52, 0.0  ;;  %v10510_v30 = vmax.f32 %v6096_v44, 0.0  ;;  %v11086_v22 = vmax.f32 %v8400_v35, 0.0  ;;  %13622 = vst.msk [vmem:[%s26756_s3 + $0x1c] sm:$0xf] %vm13614_vm3, %v15357_v0  ;;  %v6099_v36 = vadd.f32 %v19062_v23, %v6098_v33  ;;  %v16867_v59 = vpop.f32.mrb[70].mxu1  ;;  %16397 = vmatmul.mubr.msk.bf16.gmra.mrb[176].mxu0 %vm4069_vm2, %v17557_v40  ;;  %16973 = vmatmul.mubr.msk.bf16.gmra.mrb[176].mxu1 %vm4069_vm2, %v17558_v27 }
 0x16c   :  { %13766 = vst.msk [vmem:[%s26756_s3 + $0x25c] sm:$0xf] %vm13614_vm3, %v15501_v10  ;;  %v10513_v56 = vmax.f32 %v6107_v16, 0.0  ;;  %v11089_v61 = vmax.f32 %v8411_v13, 0.0  ;;  %v8403_v38 = vadd.f32 %v19062_v23, %v8402_v29  ;;  %v11898_v15 = vmax.f32 %v26896_v20, %v10512_v62  ;;  %v6114_v33 = vpop.f32.mrb[71].mxu0  ;;  %v8418_v29 = vpop.f32.mrb[71].mxu1  ;;  %16400 = vmatprep.mubr.msk.bf16.mxu0 %vm4069_vm2, %v17559_v24 }
 0x16d   :  { %v12042_v19 = vmax.f32 %v26898_v8, %v11088_v28  ;;  %v26900_v51 = vmax.f32 %v26899_v42, 0.0  ;;  %v26902_v11 = vmax.f32 %v26901_v1, 0.0  ;;  %v26903_v12 = vmax.f32 %v19135_v60, 0.0  ;;  %v26905_v57 = vld [vmem:[#allocation3_spill] sm:$0xff]  ;;  %v26906_v34 = vld [vmem:[#allocation4_spill] sm:$0xff]  ;;  %v26908_v55 = vld [vmem:[#allocation6_spill] sm:$0xff] }
 0x16e   :  { %v26904_v21 = vmax.f32 %v19138_v9, 0.0  ;;  %v10511_v6 = vmax.f32 %v6099_v36, 0.0  ;;  %v11087_v5 = vmax.f32 %v8403_v38, 0.0  ;;  %v12186_v58 = vmax.f32 %v26905_v57, %v11898_v15  ;;  %v17560_v9 = vld [vmem:[%s26754_s0 + $0xbd0] sm:$0xff]   ;;  %v26909_v39 = vld [vmem:[#allocation7_spill] sm:$0xff]  ;;  %v26911_v52 = vld [vmem:[#allocation21_spill] sm:$0xff] }
 0x16f   :  { %v11896_v3 = vmax.f32 %v26900_v51, %v10510_v30  ;;  %v12040_v31 = vmax.f32 %v26902_v11, %v11086_v22  ;;  %v11899_v48 = vmax.f32 %v26903_v12, %v10513_v56  ;;  %v12330_v49 = vmax.f32 %v26906_v34, %v12042_v19  ;;  %v26910_v7 = vld [vmem:[#allocation8_spill] sm:$0xff]  ;;  %v26913_v0 = vld [vmem:[#allocation22_spill] sm:$0xff]  ;;  %v17561_v20 = vld [vmem:[%s26754_s0 + $0x2d8] sm:$0xff]   ;;  %v19446_v8 = vpop.f32.mrb[72].mxu0  ;;  %v19448_v19 = vpop.f32.mrb[72].mxu1  ;;  %16976 = vmatprep.mubr.msk.bf16.mxu1 %vm4069_vm2, %v17560_v9 }
 0x170   :  { %v12043_v18 = vmax.f32 %v26904_v21, %v11089_v61  ;;  %v26912_v44 = vmax.f32 %v26911_v52, 0.0  ;;  %v26914_v10 = vmax.f32 %v26913_v0, 0.0  ;;  %v15362_v13 = vpack.c.bf16 %v12186_v58, %v12186_v58  ;;  %v26915_v61 = vld [vmem:[#allocation9_spill] sm:$0xff]  ;;  %v26916_v38 = vld [vmem:[#allocation10_spill] sm:$0xff]  ;;  %v19464_v51 = vpop.f32.mrb[73].mxu0 }
 0x171   :  { %v12184_v54 = vmax.f32 %v26907_v53, %v11896_v3  ;;  %v12328_v60 = vmax.f32 %v26908_v55, %v12040_v31  ;;  %v12187_v17 = vmax.f32 %v26909_v39, %v11899_v48  ;;  %v15506_v62 = vpack.c.bf16 %v12330_v49, %v12330_v49  ;;  %v17562_v42 = vld [vmem:[%s26754_s0 + $0xbd8] sm:$0xff]   ;;  %v19466_v3 = vpop.f32.mrb[73].mxu1  ;;  %v19468_v48 = vpop.f32.mrb[74].mxu0  ;;  %v17563_v57 = vld [vmem:[%s26754_s0 + $0x2e0] sm:$0xff]   ;;  %v26917_v49 = vld [vmem:[#allocation23_spill] sm:$0xff] }
 0x172   :  { %v12331_v47 = vmax.f32 %v26910_v7, %v12043_v18  ;;  %v11897_v35 = vmax.f32 %v26912_v44, %v10511_v6  ;;  %v12041_v16 = vmax.f32 %v26914_v10, %v11087_v5  ;;  %13627 = vst.msk [vmem:[%s26756_s3 + $0x30] sm:$0xf] %vm13614_vm3, %v15362_v13  ;;  %v6120_v40 = vadd.f32 %v19062_v23, %v16290_v63  ;;  %v19470_v21 = vpop.f32.mrb[74].mxu1  ;;  %v19482_v5 = vpop.f32.mrb[75].mxu0  ;;  %v26925_v44 = vld [vmem:[#allocation13_spill] sm:$0xff]  ;;  %v26926_v0 = vld [vmem:[#allocation14_spill] sm:$0xff] }
 0x173   :  { %v15360_v28 = vpack.c.bf16 %v12184_v54, %v12184_v54  ;;  %v15504_v30 = vpack.c.bf16 %v12328_v60, %v12328_v60  ;;  %v15363_v22 = vpack.c.bf16 %v12187_v17, %v12187_v17  ;;  %13771 = vst.msk [vmem:[%s26756_s3 + $0x270] sm:$0xf] %vm13614_vm3, %v15506_v62  ;;  %v8424_v27 = vadd.f32 %v19062_v23, %v16866_v25  ;;  %v19484_v24 = vpop.f32.mrb[75].mxu1  ;;  %v17564_v60 = vld [vmem:[%s26754_s0 + $0xbe0] sm:$0xff]   ;;  %v26928_v13 = vld [vmem:[#allocation16_spill] sm:$0xff] }
 0x174   :  { %v15507_v56 = vpack.c.bf16 %v12331_v47, %v12331_v47  ;;  %v12185_v36 = vmax.f32 %v26915_v61, %v11897_v35  ;;  %v12329_v43 = vmax.f32 %v26916_v38, %v12041_v16  ;;  %v6112_v15 = vadd.f32 %v19062_v23, %v6111_v37  ;;  %16401 = vmatmul.mubr.msk.bf16.gmra.mrb[180].mxu0 %vm4069_vm2, %v17561_v20  ;;  %v26924_v47 = vld [vmem:[#allocation12_spill] sm:$0xff]  ;;  %v26927_v16 = vld [vmem:[#allocation15_spill] sm:$0xff] }
 0x175   :  { %13625 = vst.msk [vmem:[%s26756_s3 + $0x28] sm:$0xf] %vm13614_vm3, %v15360_v28  ;;  %13769 = vst.msk [vmem:[%s26756_s3 + $0x268] sm:$0xf] %vm13614_vm3, %v15504_v30  ;;  %v8416_v26 = vadd.f32 %v19062_v23, %v8415_v45  ;;  %v6123_v37 = vadd.f32 %v19062_v23, %v16291_v50  ;;  %v8427_v45 = vadd.f32 %v19062_v23, %v16867_v59  ;;  %v10516_v1 = vmax.f32 %v6120_v40, 0.0 }
 0x176   :  { %13628 = vst.msk [vmem:[%s26756_s3 + $0x34] sm:$0xf] %vm13614_vm3, %v15363_v22  ;;  %13772 = vst.msk [vmem:[%s26756_s3 + $0x274] sm:$0xf] %vm13614_vm3, %v15507_v56  ;;  %v15361_v63 = vpack.c.bf16 %v12185_v36, %v12185_v36  ;;  %v15505_v25 = vpack.c.bf16 %v12329_v43, %v12329_v43  ;;  %v11092_v11 = vmax.f32 %v8424_v27, 0.0  ;;  %v10514_v31 = vmax.f32 %v6112_v15, 0.0  ;;  %16977 = vmatmul.mubr.msk.bf16.gmra.mrb[180].mxu1 %vm4069_vm2, %v17562_v42 }
 0x177   :  { %v11090_v12 = vmax.f32 %v8416_v26, 0.0  ;;  %v10517_v50 = vmax.f32 %v6123_v37, 0.0  ;;  %v11093_v59 = vmax.f32 %v8427_v45, 0.0  ;;  %v6115_v18 = vadd.f32 %v19062_v23, %v6114_v33  ;;  %v26919_v33 = vld [vmem:[#allocation24_spill] sm:$0xff]  ;;  %16404 = vmatprep.mubr.msk.bf16.mxu0 %vm4069_vm2, %v17563_v57  ;;  %v17565_v36 = vld [vmem:[%s26754_s0 + $0x2e8] sm:$0xff]   ;;  %v16298_v27 = vpop.f32.mrb[76].mxu0  ;;  %16980 = vmatprep.mubr.msk.bf16.mxu1 %vm4069_vm2, %v17564_v60 }
 0x178   :  { %13626 = vst.msk [vmem:[%s26756_s3 + $0x2c] sm:$0xf] %vm13614_vm3, %v15361_v63  ;;  %13770 = vst.msk [vmem:[%s26756_s3 + $0x26c] sm:$0xf] %vm13614_vm3, %v15505_v25  ;;  %v8419_v6 = vadd.f32 %v19062_v23, %v8418_v29  ;;  %v11902_v58 = vmax.f32 %v10498_v2, %v10516_v1  ;;  %v12046_v34 = vmax.f32 %v11074_v41, %v11092_v11  ;;  %v26918_v53 = vmax.f32 %v26917_v49, 0.0  ;;  %v26931_v22 = vld [vmem:[#allocation28_spill] sm:$0xff] }
 0x179   :  { %v26920_v55 = vmax.f32 %v26919_v33, 0.0  ;;  %v26921_v9 = vmax.f32 %v19159_v14, 0.0  ;;  %v26922_v17 = vmax.f32 %v19162_v32, 0.0  ;;  %v10515_v2 = vmax.f32 %v6115_v18, 0.0  ;;  %v26929_v32 = vld [vmem:[#allocation27_spill] sm:$0xff]  ;;  %v16874_v15 = vpop.f32.mrb[76].mxu1 }
 0x17a   :  { %v11900_v54 = vmax.f32 %v26918_v53, %v10514_v31  ;;  %v11091_v7 = vmax.f32 %v8419_v6, 0.0  ;;  %v12190_v41 = vmax.f32 %v26923_v4, %v11902_v58  ;;  %v12334_v52 = vmax.f32 %v26924_v47, %v12046_v34  ;;  %v17566_v26 = vld [vmem:[%s26754_s0 + $0xbe8] sm:$0xff]   ;;  %v26933_v25 = vld [vmem:[#allocation17_spill] sm:$0xff]  ;;  %v26934_v45 = vld [vmem:[#allocation18_spill] sm:$0xff]  ;;  %v6143_v11 = vpop.f32.mrb[77].mxu0  ;;  %v8447_v31 = vpop.f32.mrb[77].mxu1 }
 0x17b   :  { %v12044_v29 = vmax.f32 %v26920_v55, %v11090_v12  ;;  %v11903_v39 = vmax.f32 %v26921_v9, %v10517_v50  ;;  %v12047_v46 = vmax.f32 %v26922_v17, %v11093_v59  ;;  %v26930_v28 = vmax.f32 %v26929_v32, 0.0  ;;  %v16299_v12 = vpop.f32.mrb[78].mxu0  ;;  %v16875_v50 = vpop.f32.mrb[78].mxu1  ;;  %v17567_v58 = vld [vmem:[%s26754_s0 + $0x2f0] sm:$0xff]   ;;  %v17569_v60 = vld [vmem:[%s26754_s0 + $0x2f8] sm:$0xff]  }
 0x17c   :  { %v12188_v35 = vmax.f32 %v26925_v44, %v11900_v54  ;;  %v26932_v56 = vmax.f32 %v26931_v22, 0.0  ;;  %v15366_v38 = vpack.c.bf16 %v12190_v41, %v12190_v41  ;;  %v15510_v43 = vpack.c.bf16 %v12334_v52, %v12334_v52  ;;  %v6146_v6 = vpop.f32.mrb[79].mxu0  ;;  %v8450_v57 = vpop.f32.mrb[79].mxu1  ;;  %v17568_v34 = vld [vmem:[%s26754_s0 + $0xbf0] sm:$0xff]   ;;  %16405 = vmatmul.mubr.msk.bf16.gmra.mrb[184].mxu0 %vm4069_vm2, %v17565_v36  ;;  %v19624_v44 = vld [vmem:[%s26755_s2] ss:$0 sm:$0xff] }
 0x17d   :  { %v12332_v10 = vmax.f32 %v26926_v0, %v12044_v29  ;;  %v12191_v14 = vmax.f32 %v26927_v16, %v11903_v39  ;;  %v12335_v62 = vmax.f32 %v26928_v13, %v12047_v46  ;;  %v11901_v30 = vmax.f32 %v26930_v28, %v10515_v2  ;;  %16408 = vmatprep.mubr.msk.bf16.mxu0 %vm4069_vm2, %v17567_v58  ;;  %v16302_v55 = vpop.f32.mrb[80].mxu0  ;;  %v16878_v29 = vpop.f32.mrb[80].mxu1  ;;  %v17571_v39 = vld [vmem:[%s26754_s0 + $0x300] sm:$0xff]   ;;  %v17575_v22 = vld [vmem:[%s26754_s0 + $0x310] sm:$0xff]  }
 0x17e   :  { %v12045_v61 = vmax.f32 %v26932_v56, %v11091_v7  ;;  %v15364_v20 = vpack.c.bf16 %v12188_v35, %v12188_v35  ;;  %13631 = vst.msk [vmem:[%s26756_s3 + $0x40] sm:$0xf] %vm13614_vm3, %v15366_v38  ;;  %13775 = vst.msk [vmem:[%s26756_s3 + $0x280] sm:$0xf] %vm13614_vm3, %v15510_v43  ;;  %16981 = vmatmul.mubr.msk.bf16.gmra.mrb[184].mxu1 %vm4069_vm2, %v17566_v26  ;;  %v19570_v49 = vadd.f32 %v19062_v23, %v19446_v8  ;;  %v8463_v9 = vpop.f32.mrb[81].mxu1  ;;  %v17576_v43 = vld [vmem:[%s26754_s0 + $0xc10] sm:$0xff]  }
 0x17f   :  { %v15508_v40 = vpack.c.bf16 %v12332_v10, %v12332_v10  ;;  %v15367_v42 = vpack.c.bf16 %v12191_v14, %v12191_v14  ;;  %v15511_v63 = vpack.c.bf16 %v12335_v62, %v12335_v62  ;;  %v12189_v37 = vmax.f32 %v26933_v25, %v11901_v30  ;;  %16984 = vmatprep.mubr.msk.bf16.mxu1 %vm4069_vm2, %v17568_v34  ;;  %v19603_v46 = vpop.f32.mrb[82].mxu1  ;;  %v17573_v14 = vld [vmem:[%s26754_s0 + $0x308] sm:$0xff]  }
 0x180   :  { %v12333_v1 = vmax.f32 %v26934_v45, %v12045_v61  ;;  %13629 = vst.msk [vmem:[%s26756_s3 + $0x38] sm:$0xf] %vm13614_vm3, %v15364_v20  ;;  %v19574_v53 = vadd.f32 %v19062_v23, %v19448_v19  ;;  %v19578_v54 = vadd.f32 %v19062_v23, %v19464_v51  ;;  %v19582_v33 = vadd.f32 %v19062_v23, %v19466_v3  ;;  %v6159_v51 = vpop.f32.mrb[81].mxu0  ;;  %v17570_v3 = vld [vmem:[%s26754_s0 + $0xbf8] sm:$0xff]   ;;  %v19607_v2 = vpop.f32.mrb[83].mxu1  ;;  %v17574_v30 = vld [vmem:[%s26754_s0 + $0xc08] sm:$0xff]  }
 0x181   :  { %13773 = vst.msk [vmem:[%s26756_s3 + $0x278] sm:$0xf] %vm13614_vm3, %v15508_v40  ;;  %13632 = vst.msk [vmem:[%s26756_s3 + $0x44] sm:$0xf] %vm13614_vm3, %v15367_v42  ;;  %v15365_v59 = vpack.c.bf16 %v12189_v37, %v12189_v37  ;;  %v19589_v8 = vadd.f32 %v19062_v23, %v19468_v48  ;;  %v19593_v19 = vadd.f32 %v19062_v23, %v19470_v21  ;;  %v19601_v17 = vpop.f32.mrb[82].mxu0  ;;  %v17572_v23 = vld [vmem:[%s26754_s0 + $0xc00] sm:$0xff]  }
 0x182   :  { %13776 = vst.msk [vmem:[%s26756_s3 + $0x284] sm:$0xf] %vm13614_vm3, %v15511_v63  ;;  %v15509_v18 = vpack.c.bf16 %v12333_v1, %v12333_v1  ;;  %v19605_v48 = vpop.f32.mrb[83].mxu0  ;;  %v10520_v21 = vmax.f32 %v19570_v49, 0.0  ;;  %v11096_v7 = vmax.f32 %v19574_v53, 0.0  ;;  %v10518_v4 = vmax.f32 %v19578_v54, 0.0 }
 0x183   :  { %13630 = vst.msk [vmem:[%s26756_s3 + $0x3c] sm:$0xf] %vm13614_vm3, %v15365_v59  ;;  %v11094_v41 = vmax.f32 %v19582_v33, 0.0  ;;  %v19628_v35 = vadd.f32 %v19624_v44, %v19482_v5  ;;  %v19632_v0 = vadd.f32 %v19624_v44, %v19484_v24  ;;  %v19635_v10 = vadd.f32 %v19624_v44, %v16298_v27  ;;  %v17585_v53 = vld [vmem:[%s26754_s0 + $0x338] sm:$0xff]  }
 0x184   :  { %13774 = vst.msk [vmem:[%s26756_s3 + $0x27c] sm:$0xf] %vm13614_vm3, %v15509_v18  ;;  %16409 = vmatmul.mubr.msk.bf16.gmra.mrb[188].mxu0 %vm4069_vm2, %v17569_v60  ;;  %v19638_v16 = vadd.f32 %v19624_v44, %v16874_v15  ;;  %v19645_v13 = vadd.f32 %v19624_v44, %v6143_v11  ;;  %v19648_v5 = vadd.f32 %v19624_v44, %v8447_v31  ;;  %v17578_v60 = vld [vmem:[%s26754_s0 + $0xc18] sm:$0xff]  }
 0x185   :  { %16412 = vmatprep.mubr.msk.bf16.mxu0 %vm4069_vm2, %v17571_v39  ;;  %v19651_v24 = vadd.f32 %v19624_v44, %v16299_v12  ;;  %v19654_v62 = vadd.f32 %v19624_v44, %v16875_v50  ;;  %v16306_v32 = vpop.f32.mrb[84].mxu0  ;;  %v16882_v28 = vpop.f32.mrb[84].mxu1  ;;  %v19663_v56 = vadd.f32 %v19624_v44, %v6146_v6  ;;  %v19666_v61 = vadd.f32 %v19624_v44, %v8450_v57  ;;  %v17577_v57 = vld [vmem:[%s26754_s0 + $0x318] sm:$0xff]  }
 0x186   :  { %16985 = vmatmul.mubr.msk.bf16.gmra.mrb[188].mxu1 %vm4069_vm2, %v17570_v3  ;;  %v19668_v36 = vpop.f32.mrb[85].mxu0  ;;  %v19670_v38 = vpop.f32.mrb[85].mxu1  ;;  %v19676_v20 = vadd.f32 %v19624_v44, %v16302_v55  ;;  %v19679_v40 = vadd.f32 %v19624_v44, %v16878_v29  ;;  %v10519_v26 = vmax.f32 %v19628_v35, 0.0  ;;  %v11095_v42 = vmax.f32 %v19632_v0, 0.0  ;;  %v17579_v3 = vld [vmem:[%s26754_s0 + $0x320] sm:$0xff]  }
 0x187   :  { %16988 = vmatprep.mubr.msk.bf16.mxu1 %vm4069_vm2, %v17572_v23  ;;  %v19681_v27 = vpop.f32.mrb[86].mxu0  ;;  %v19683_v15 = vpop.f32.mrb[86].mxu1  ;;  %v10522_v1 = vmax.f32 %v19645_v13, 0.0  ;;  %v11098_v11 = vmax.f32 %v19648_v5, 0.0  ;;  %v10523_v50 = vmax.f32 %v19663_v56, 0.0  ;;  %v19709_v58 = vadd.f32 %v19624_v44, %v6159_v51 }
 0x188   :  { %v19689_v37 = vpop.f32.mrb[87].mxu0  ;;  %v19691_v45 = vpop.f32.mrb[87].mxu1  ;;  %v19712_v34 = vadd.f32 %v19624_v44, %v8463_v9  ;;  %v19728_v9 = vadd.f32 %v19624_v44, %v19601_v17  ;;  %v19732_v0 = vadd.f32 %v19624_v44, %v19603_v46  ;;  %v19754_v31 = vadd.f32 %v19624_v44, %v16306_v32 }
 0x189   :  { %v26935_v49 = vmax.f32 %v19666_v61, 0.0  ;;  %v17586_v61 = vld [vmem:[%s26754_s0 + $0xc38] sm:$0xff]  }
 0x18c   :  { %16413 = vmatmul.mubr.msk.bf16.gmra.mrb[192].mxu0 %vm4069_vm2, %v17573_v14  ;;  %v19736_v14 = vadd.f32 %v19624_v44, %v19605_v48  ;;  %v17580_v48 = vld [vmem:[%s26754_s0 + $0xc20] sm:$0xff]  }
 0x18d   :  { %16416 = vmatprep.mubr.msk.bf16.mxu0 %vm4069_vm2, %v17575_v22  ;;  %v16310_v55 = vpop.f32.mrb[88].mxu0  ;;  %v16886_v29 = vpop.f32.mrb[88].mxu1 }
 0x18e   :  { %16989 = vmatmul.mubr.msk.bf16.gmra.mrb[192].mxu1 %vm4069_vm2, %v17574_v30  ;;  %v6200_v39 = vadd.f32 %v19624_v44, %v16310_v55  ;;  %v8504_v23 = vadd.f32 %v19624_v44, %v16886_v29  ;;  %v19722_v35 = vpop.f32.mrb[89].mxu0  ;;  %v19724_v51 = vpop.f32.mrb[89].mxu1  ;;  %v19740_v30 = vadd.f32 %v19624_v44, %v19607_v2 }
 0x18f   :  { %16992 = vmatprep.mubr.msk.bf16.mxu1 %vm4069_vm2, %v17576_v43  ;;  %v16311_v22 = vpop.f32.mrb[90].mxu0  ;;  %v16887_v43 = vpop.f32.mrb[90].mxu1 }
 0x190   :  { %v10536_v55 = vmax.f32 %v6200_v39, 0.0  ;;  %v11112_v29 = vmax.f32 %v8504_v23, 0.0  ;;  %v6203_v6 = vadd.f32 %v19624_v44, %v16311_v22  ;;  %v8507_v17 = vadd.f32 %v19624_v44, %v16887_v43  ;;  %v19744_v18 = vpop.f32.mrb[91].mxu0  ;;  %v19746_v46 = vpop.f32.mrb[91].mxu1 }
 0x191   :  { %v19757_v39 = vadd.f32 %v19624_v44, %v16882_v28 }
 0x192   :  { %v19761_v23 = vmax.f32 %v10518_v4, %v10536_v55  ;;  %v19765_v22 = vmax.f32 %v11094_v41, %v11112_v29  ;;  %v10537_v43 = vmax.f32 %v6203_v6, 0.0  ;;  %v11113_v25 = vmax.f32 %v8507_v17, 0.0  ;;  %v17581_v41 = vld [vmem:[%s26754_s0 + $0x328] sm:$0xff]  }
 0x193   :  { %v17582_v55 = vld [vmem:[%s26754_s0 + $0xc28] sm:$0xff]  }
 0x194   :  { %16417 = vmatmul.mubr.msk.bf16.gmra.mrb[196].mxu0 %vm4069_vm2, %v17577_v57  ;;  %v19774_v28 = vmax.f32 %v10519_v26, %v10537_v43  ;;  %v19776_v33 = vmax.f32 %v11095_v42, %v11113_v25  ;;  %v17583_v26 = vld [vmem:[%s26754_s0 + $0x330] sm:$0xff]   ;;  %v19797_v43 = vadd.f32 %v19624_v44, %v19668_v36  ;;  %v19801_v57 = vadd.f32 %v19624_v44, %v19670_v38 }
 0x195   :  { %16420 = vmatprep.mubr.msk.bf16.mxu0 %vm4069_vm2, %v17579_v3  ;;  %v16890_v3 = vpop.f32.mrb[92].mxu1 }
 0x196   :  { %16993 = vmatmul.mubr.msk.bf16.gmra.mrb[196].mxu1 %vm4069_vm2, %v17578_v60  ;;  %v16314_v60 = vpop.f32.mrb[92].mxu0  ;;  %v8520_v25 = vadd.f32 %v19624_v44, %v16890_v3  ;;  %v8511_v17 = vpop.f32.mrb[93].mxu1  ;;  %v10530_v5 = vmax.f32 %v19797_v43, 0.0 }
 0x197   :  { %16996 = vmatprep.mubr.msk.bf16.mxu1 %vm4069_vm2, %v17580_v48  ;;  %v6216_v42 = vadd.f32 %v19624_v44, %v16314_v60  ;;  %v6207_v29 = vpop.f32.mrb[93].mxu0  ;;  %v17584_v48 = vld [vmem:[%s26754_s0 + $0xc30] sm:$0xff]   ;;  %v8512_v60 = vadd.f32 %v19624_v44, %v8511_v17  ;;  %v16891_v3 = vpop.f32.mrb[94].mxu1  ;;  %v19871_v17 = vadd.f32 %v19624_v44, %v19689_v37 }
 0x198   :  { %v6208_v6 = vadd.f32 %v19624_v44, %v6207_v29  ;;  %v16315_v32 = vpop.f32.mrb[94].mxu0  ;;  %v11116_v4 = vmax.f32 %v8520_v25, 0.0  ;;  %v8523_v2 = vadd.f32 %v19624_v44, %v16891_v3  ;;  %v8514_v52 = vpop.f32.mrb[95].mxu1 }
 0x199   :  { %v10540_v63 = vmax.f32 %v6216_v42, 0.0  ;;  %v6219_v54 = vadd.f32 %v19624_v44, %v16315_v32  ;;  %v6210_v12 = vpop.f32.mrb[95].mxu0  ;;  %v11114_v47 = vmax.f32 %v8512_v60, 0.0  ;;  %v8515_v38 = vadd.f32 %v19624_v44, %v8514_v52 }
 0x19a   :  { %v10538_v36 = vmax.f32 %v6208_v6, 0.0  ;;  %v6211_v59 = vadd.f32 %v19624_v44, %v6210_v12  ;;  %v19815_v42 = vmax.f32 %v11098_v11, %v11116_v4  ;;  %v11117_v32 = vmax.f32 %v8523_v2, 0.0  ;;  %v17587_v2 = vld [vmem:[%s26754_s0 + $0x340] sm:$0xff]  }
 0x19b   :  { %v19811_v29 = vmax.f32 %v10522_v1, %v10540_v63  ;;  %v10541_v25 = vmax.f32 %v6219_v54, 0.0  ;;  %v19824_v12 = vmax.f32 %v11096_v7, %v11114_v47  ;;  %v11115_v13 = vmax.f32 %v8515_v38, 0.0 }
 0x19c   :  { %16421 = vmatmul.mubr.msk.bf16.gmra.mrb[200].mxu0 %vm4069_vm2, %v17581_v41  ;;  %v19820_v6 = vmax.f32 %v10520_v21, %v10538_v36  ;;  %v10539_v52 = vmax.f32 %v6211_v59, 0.0  ;;  %v11106_v63 = vmax.f32 %v19801_v57, 0.0  ;;  %v19836_v21 = vmax.f32 %v26935_v49, %v11117_v32 }
 0x19d   :  { %16424 = vmatprep.mubr.msk.bf16.mxu0 %vm4069_vm2, %v17583_v26  ;;  %v19832_v1 = vmax.f32 %v10523_v50, %v10541_v25  ;;  %v26936_v7 = vmax.f32 %v19589_v8, 0.0  ;;  %v26937_v11 = vmax.f32 %v19593_v19, 0.0  ;;  %v16318_v56 = vpop.f32.mrb[96].mxu0  ;;  %v16894_v50 = vpop.f32.mrb[96].mxu1  ;;  %v19858_v54 = vadd.f32 %v19624_v44, %v19681_v27  ;;  %v17588_v26 = vld [vmem:[%s26754_s0 + $0xc40] sm:$0xff]  }
 0x19e   :  { %16997 = vmatmul.mubr.msk.bf16.gmra.mrb[200].mxu1 %vm4069_vm2, %v17582_v55  ;;  %v19862_v8 = vadd.f32 %v19624_v44, %v19683_v15  ;;  %v6232_v19 = vadd.f32 %v19624_v44, %v16318_v56  ;;  %v8536_v4 = vadd.f32 %v19624_v44, %v16894_v50  ;;  %v6223_v41 = vpop.f32.mrb[97].mxu0  ;;  %v8527_v55 = vpop.f32.mrb[97].mxu1  ;;  %v19875_v27 = vadd.f32 %v19624_v44, %v19691_v45 }
 0x19f   :  { %17000 = vmatprep.mubr.msk.bf16.mxu1 %vm4069_vm2, %v17584_v48  ;;  %v19844_v47 = vmax.f32 %v26936_v7, %v10539_v52  ;;  %v19848_v59 = vmax.f32 %v26937_v11, %v11115_v13  ;;  %v6224_v15 = vadd.f32 %v19624_v44, %v6223_v41  ;;  %v8528_v48 = vadd.f32 %v19624_v44, %v8527_v55  ;;  %v16319_v60 = vpop.f32.mrb[98].mxu0  ;;  %v16895_v3 = vpop.f32.mrb[98].mxu1 }
 0x1a0   :  { %v10544_v36 = vmax.f32 %v6232_v19, 0.0  ;;  %v11120_v38 = vmax.f32 %v8536_v4, 0.0  ;;  %v6235_v25 = vadd.f32 %v19624_v44, %v16319_v60  ;;  %v8539_v32 = vadd.f32 %v19624_v44, %v16895_v3  ;;  %v6226_v52 = vpop.f32.mrb[99].mxu0  ;;  %v8530_v13 = vpop.f32.mrb[99].mxu1 }
 0x1a1   :  { %v10542_v37 = vmax.f32 %v6224_v15, 0.0  ;;  %v11118_v49 = vmax.f32 %v8528_v48, 0.0  ;;  %v6227_v7 = vadd.f32 %v19624_v44, %v6226_v52  ;;  %v8531_v45 = vadd.f32 %v19624_v44, %v8530_v13 }
 0x1a2   :  { %v26938_v11 = vmax.f32 %v19709_v58, 0.0  ;;  %v26939_v50 = vmax.f32 %v19712_v34, 0.0  ;;  %v10545_v4 = vmax.f32 %v6235_v25, 0.0  ;;  %v11121_v41 = vmax.f32 %v8539_v32, 0.0 }
 0x1a3   :  { %v26940_v55 = vmax.f32 %v19635_v10, 0.0  ;;  %v26941_v48 = vmax.f32 %v19638_v16, 0.0  ;;  %v10543_v3 = vmax.f32 %v6227_v7, 0.0  ;;  %v11119_v58 = vmax.f32 %v8531_v45, 0.0  ;;  %v17589_v16 = vld [vmem:[%s26754_s0 + $0x348] sm:$0xff]  }
 0x1a4   :  { %v19885_v56 = vmax.f32 %v26938_v11, %v10544_v36  ;;  %v19889_v19 = vmax.f32 %v26939_v50, %v11120_v38  ;;  %16425 = vmatmul.mubr.msk.bf16.gmra.mrb[204].mxu0 %vm4069_vm2, %v17585_v53  ;;  %v10533_v34 = vmax.f32 %v19858_v54, 0.0  ;;  %v11109_v36 = vmax.f32 %v19862_v8, 0.0  ;;  %v17592_v11 = vld [vmem:[%s26754_s0 + $0xc50] sm:$0xff]   ;;  %v17598_v54 = vld [vmem:[%s26754_s0 + $0xc68] sm:$0xff]  }
 0x1a5   :  { %v19894_v15 = vmax.f32 %v26940_v55, %v10542_v37  ;;  %v19898_v60 = vmax.f32 %v26941_v48, %v11118_v49  ;;  %16428 = vmatprep.mubr.msk.bf16.mxu0 %vm4069_vm2, %v17587_v2  ;;  %v26942_v53 = vmax.f32 %v19736_v14, 0.0  ;;  %v26943_v10 = vmax.f32 %v19740_v30, 0.0  ;;  %v16322_v30 = vpop.f32.mrb[100].mxu0  ;;  %v16898_v37 = vpop.f32.mrb[100].mxu1  ;;  %v17599_v8 = vld [vmem:[%s26754_s0 + $0x370] sm:$0xff]  }
 0x1a6   :  { %17001 = vmatmul.mubr.msk.bf16.gmra.mrb[204].mxu1 %vm4069_vm2, %v17586_v61  ;;  %v10531_v61 = vmax.f32 %v19871_v17, 0.0  ;;  %v11107_v2 = vmax.f32 %v19875_v27, 0.0  ;;  %v26944_v32 = vmax.f32 %v19651_v24, 0.0  ;;  %v26945_v14 = vmax.f32 %v19654_v62, 0.0  ;;  %v17591_v17 = vld [vmem:[%s26754_s0 + $0x350] sm:$0xff]   ;;  %v6239_v7 = vpop.f32.mrb[101].mxu0 }
 0x1a7   :  { %v19906_v38 = vmax.f32 %v26942_v53, %v10545_v4  ;;  %v19910_v25 = vmax.f32 %v26943_v10, %v11121_v41  ;;  %17004 = vmatprep.mubr.msk.bf16.mxu1 %vm4069_vm2, %v17588_v26  ;;  %v17590_v26 = vld [vmem:[%s26754_s0 + $0xc48] sm:$0xff]   ;;  %v19934_v27 = vadd.f32 %v19624_v44, %v19722_v35  ;;  %v19938_v24 = vadd.f32 %v19624_v44, %v19724_v51  ;;  %v8543_v45 = vpop.f32.mrb[101].mxu1  ;;  %v16323_v41 = vpop.f32.mrb[102].mxu0 }
 0x1a8   :  { %v19920_v52 = vmax.f32 %v26944_v32, %v10543_v3  ;;  %v19924_v13 = vmax.f32 %v26945_v14, %v11119_v58  ;;  %v6248_v62 = vadd.f32 %v19624_v44, %v16322_v30  ;;  %v8552_v49 = vadd.f32 %v19624_v44, %v16898_v37  ;;  %v16899_v55 = vpop.f32.mrb[102].mxu1  ;;  %v6242_v10 = vpop.f32.mrb[103].mxu0 }
 0x1a9   :  { %v19947_v50 = vadd.f32 %v19624_v44, %v19744_v18  ;;  %v19951_v35 = vadd.f32 %v19624_v44, %v19746_v46  ;;  %v6240_v51 = vadd.f32 %v19624_v44, %v6239_v7  ;;  %v8544_v4 = vadd.f32 %v19624_v44, %v8543_v45  ;;  %v8546_v32 = vpop.f32.mrb[103].mxu1 }
 0x1aa   :  { %26946 = vst [vmem:[#allocation2_spill] sm:$0xff] %v19924_v13  ;;  %v10548_v48 = vmax.f32 %v6248_v62, 0.0  ;;  %v11124_v3 = vmax.f32 %v8552_v49, 0.0  ;;  %v6251_v58 = vadd.f32 %v19624_v44, %v16323_v41  ;;  %v8555_v53 = vadd.f32 %v19624_v44, %v16899_v55 }
 0x1ab   :  { %v10546_v18 = vmax.f32 %v6240_v51, 0.0  ;;  %v11122_v14 = vmax.f32 %v8544_v4, 0.0  ;;  %v6243_v30 = vadd.f32 %v19624_v44, %v6242_v10  ;;  %v8547_v46 = vadd.f32 %v19624_v44, %v8546_v32  ;;  %v17596_v10 = vld [vmem:[%s26754_s0 + $0xc60] sm:$0xff]  }
 0x1ac   :  { %v19961_v37 = vmax.f32 %v10530_v5, %v10548_v48  ;;  %v19965_v62 = vmax.f32 %v11106_v63, %v11124_v3  ;;  %v10549_v49 = vmax.f32 %v6251_v58, 0.0  ;;  %v11125_v7 = vmax.f32 %v8555_v53, 0.0  ;;  %16429 = vmatmul.mubr.msk.bf16.gmra.mrb[208].mxu0 %vm4069_vm2, %v17589_v16 }
 0x1ad   :  { %v26949_v45 = vmax.f32 %v19676_v20, 0.0  ;;  %v26951_v4 = vmax.f32 %v19679_v40, 0.0  ;;  %v10547_v55 = vmax.f32 %v6243_v30, 0.0  ;;  %v11123_v43 = vmax.f32 %v8547_v46, 0.0  ;;  %16432 = vmatprep.mubr.msk.bf16.mxu0 %vm4069_vm2, %v17591_v17  ;;  %v17593_v20 = vld [vmem:[%s26754_s0 + $0x358] sm:$0xff]   ;;  %v16902_v17 = vpop.f32.mrb[104].mxu1 }
 0x1ae   :  { %26947 = vst [vmem:[#allocation25_spill] sm:$0xff] %v19961_v37  ;;  %26948 = vst [vmem:[#allocation26_spill] sm:$0xff] %v19965_v62  ;;  %17005 = vmatmul.mubr.msk.bf16.gmra.mrb[208].mxu1 %vm4069_vm2, %v17590_v26  ;;  %v19978_v57 = vmax.f32 %v10531_v61, %v10549_v49  ;;  %v19980_v5 = vmax.f32 %v11107_v2, %v11125_v7  ;;  %v10534_v40 = vmax.f32 %v19934_v27, 0.0  ;;  %v11110_v63 = vmax.f32 %v19938_v24, 0.0  ;;  %v16326_v2 = vpop.f32.mrb[104].mxu0  ;;  %v17595_v27 = vld [vmem:[%s26754_s0 + $0x360] sm:$0xff]  }
 0x1af   :  { %v19970_v51 = vmax.f32 %v26949_v45, %v10546_v18  ;;  %v19974_v41 = vmax.f32 %v26951_v4, %v11122_v14  ;;  %17008 = vmatprep.mubr.msk.bf16.mxu1 %vm4069_vm2, %v17592_v11  ;;  %v26955_v16 = vmax.f32 %v19728_v9, 0.0  ;;  %v26957_v26 = vmax.f32 %v19732_v0, 0.0  ;;  %v17594_v11 = vld [vmem:[%s26754_s0 + $0xc58] sm:$0xff]   ;;  %v6255_v58 = vpop.f32.mrb[105].mxu0  ;;  %v8559_v53 = vpop.f32.mrb[105].mxu1 }
 0x1b0   :  { %26953 = vst [vmem:[#allocation3_spill] sm:$0xff] %v19978_v57  ;;  %26954 = vst [vmem:[#allocation4_spill] sm:$0xff] %v19980_v5  ;;  %v10535_v24 = vmax.f32 %v19947_v50, 0.0  ;;  %v11111_v9 = vmax.f32 %v19951_v35, 0.0  ;;  %v6264_v3 = vadd.f32 %v19624_v44, %v16326_v2  ;;  %v8568_v0 = vadd.f32 %v19624_v44, %v16902_v17  ;;  %v16327_v14 = vpop.f32.mrb[106].mxu0  ;;  %v16903_v30 = vpop.f32.mrb[106].mxu1 }
 0x1b1   :  { %26950 = vst [vmem:[#allocation19_spill] sm:$0xff] %v19970_v51  ;;  %26952 = vst [vmem:[#allocation20_spill] sm:$0xff] %v19974_v41  ;;  %v19990_v48 = vmax.f32 %v26955_v16, %v10547_v55  ;;  %v19994_v61 = vmax.f32 %v26957_v26, %v11123_v43  ;;  %v6256_v32 = vadd.f32 %v19624_v44, %v6255_v58  ;;  %v6258_v7 = vpop.f32.mrb[107].mxu0  ;;  %v8562_v45 = vpop.f32.mrb[107].mxu1 }
 0x1b2   :  { %v8560_v18 = vadd.f32 %v19624_v44, %v8559_v53  ;;  %v10552_v46 = vmax.f32 %v6264_v3, 0.0  ;;  %v11128_v50 = vmax.f32 %v8568_v0, 0.0  ;;  %v6267_v35 = vadd.f32 %v19624_v44, %v16327_v14 }
 0x1b3   :  { %26956 = vst [vmem:[#allocation5_spill] sm:$0xff] %v19990_v48  ;;  %26958 = vst [vmem:[#allocation6_spill] sm:$0xff] %v19994_v61  ;;  %v8571_v49 = vadd.f32 %v19624_v44, %v16903_v30  ;;  %v10550_v4 = vmax.f32 %v6256_v32, 0.0  ;;  %v6259_v43 = vadd.f32 %v19624_v44, %v6258_v7  ;;  %v8563_v16 = vadd.f32 %v19624_v44, %v8562_v45  ;;  %v17601_v45 = vld [vmem:[%s26754_s0 + $0x378] sm:$0xff]  }
 0x1b4   :  { %v11126_v55 = vmax.f32 %v8560_v18, 0.0  ;;  %v20015_v26 = vmax.f32 %v10534_v40, %v10552_v46  ;;  %v20017_v2 = vmax.f32 %v11110_v63, %v11128_v50  ;;  %v10553_v17 = vmax.f32 %v6267_v35, 0.0  ;;  %16433 = vmatmul.mubr.msk.bf16.gmra.mrb[212].mxu0 %vm4069_vm2, %v17593_v20 }
 0x1b5   :  { %v11129_v58 = vmax.f32 %v8571_v49, 0.0  ;;  %v26961_v3 = vmax.f32 %v19754_v31, 0.0  ;;  %v26963_v53 = vmax.f32 %v19757_v39, 0.0  ;;  %v10551_v18 = vmax.f32 %v6259_v43, 0.0  ;;  %16436 = vmatprep.mubr.msk.bf16.mxu0 %vm4069_vm2, %v17595_v27  ;;  %v16330_v20 = vpop.f32.mrb[108].mxu0  ;;  %v16906_v30 = vpop.f32.mrb[108].mxu1 }
 0x1b6   :  { %26959 = vst [vmem:[#allocation7_spill] sm:$0xff] %v20015_v26  ;;  %26960 = vst [vmem:[#allocation8_spill] sm:$0xff] %v20017_v2  ;;  %v11127_v14 = vmax.f32 %v8563_v16, 0.0  ;;  %17009 = vmatmul.mubr.msk.bf16.gmra.mrb[212].mxu1 %vm4069_vm2, %v17594_v11  ;;  %v20030_v40 = vmax.f32 %v10535_v24, %v10553_v17  ;;  %v6271_v46 = vpop.f32.mrb[109].mxu0  ;;  %v8575_v11 = vpop.f32.mrb[109].mxu1  ;;  %v17597_v27 = vld [vmem:[%s26754_s0 + $0x368] sm:$0xff]  }
 0x1b7   :  { %v20022_v0 = vmax.f32 %v26961_v3, %v10550_v4  ;;  %v20026_v32 = vmax.f32 %v26963_v53, %v11126_v55  ;;  %v20032_v63 = vmax.f32 %v11111_v9, %v11129_v58  ;;  %17012 = vmatprep.mubr.msk.bf16.mxu1 %vm4069_vm2, %v17596_v10  ;;  %v20037_v31 = vmax.f32 %v10533_v34, %v10551_v18  ;;  %v16331_v24 = vpop.f32.mrb[110].mxu0  ;;  %v16907_v9 = vpop.f32.mrb[110].mxu1  ;;  %v17600_v10 = vld [vmem:[%s26754_s0 + $0xc70] sm:$0xff]   ;;  %v17602_v17 = vld [vmem:[%s26754_s0 + $0xc78] sm:$0xff]   ;;  %v17603_v58 = vld [vmem:[%s26754_s0 + $0x380] sm:$0xff]  }
 0x1b8   :  { %26965 = vst [vmem:[#allocation9_spill] sm:$0xff] %v20030_v40  ;;  %v20041_v39 = vmax.f32 %v11109_v36, %v11127_v14  ;;  %v6274_v34 = vpop.f32.mrb[111].mxu0  ;;  %v8578_v36 = vpop.f32.mrb[111].mxu1  ;;  %v20063_v4 = vadd.f32 %v19624_v44, %v16330_v20  ;;  %v20066_v55 = vadd.f32 %v19624_v44, %v16906_v30  ;;  %v17604_v18 = vld [vmem:[%s26754_s0 + $0xc80] sm:$0xff]   ;;  %v20078_v14 = vadd.f32 %v19624_v44, %v6271_v46  ;;  %v17605_v46 = vld [vmem:[%s26754_s0 + $0x388] sm:$0xff]  }
 0x1b9   :  { %26962 = vst [vmem:[#allocation21_spill] sm:$0xff] %v20022_v0  ;;  %26964 = vst [vmem:[#allocation22_spill] sm:$0xff] %v20026_v32  ;;  %v20081_v20 = vadd.f32 %v19624_v44, %v8575_v11  ;;  %v20099_v11 = vadd.f32 %v19624_v44, %v6274_v34  ;;  %v17606_v34 = vld [vmem:[%s26754_s0 + $0xc88] sm:$0xff]  }
 0x1ba   :  { %26966 = vst [vmem:[#allocation10_spill] sm:$0xff] %v20032_v63  ;;  %26967 = vst [vmem:[#allocation23_spill] sm:$0xff] %v20037_v31 }
 0x1bb   :  { %26968 = vst [vmem:[#allocation24_spill] sm:$0xff] %v20041_v39 }
 0x1bc   :  { %16437 = vmatmul.mubr.msk.bf16.gmra.mrb[216].mxu0 %vm4069_vm2, %v17597_v27 }
 0x1bd   :  { %16440 = vmatprep.mubr.msk.bf16.mxu0 %vm4069_vm2, %v17599_v8  ;;  %v16334_v50 = vpop.f32.mrb[112].mxu0  ;;  %v16910_v35 = vpop.f32.mrb[112].mxu1  ;;  %v20090_v8 = vadd.f32 %v19624_v44, %v16907_v9 }
 0x1be   :  { %17013 = vmatmul.mubr.msk.bf16.gmra.mrb[216].mxu1 %vm4069_vm2, %v17598_v54  ;;  %v6287_v49 = vpop.f32.mrb[113].mxu0  ;;  %v8591_v7 = vpop.f32.mrb[113].mxu1  ;;  %v20087_v54 = vadd.f32 %v19624_v44, %v16331_v24 }
 0x1bf   :  { %17016 = vmatprep.mubr.msk.bf16.mxu1 %vm4069_vm2, %v17600_v10  ;;  %v16335_v43 = vpop.f32.mrb[114].mxu0  ;;  %v16911_v16 = vpop.f32.mrb[114].mxu1  ;;  %v20102_v10 = vadd.f32 %v19624_v44, %v8578_v36  ;;  %v17607_v36 = vld [vmem:[%s26754_s0 + $0x390] sm:$0xff]  }
 0x1c0   :  { %v6290_v3 = vpop.f32.mrb[115].mxu0  ;;  %v8594_v53 = vpop.f32.mrb[115].mxu1  ;;  %v20127_v63 = vadd.f32 %v19624_v44, %v16335_v43  ;;  %v20130_v40 = vadd.f32 %v19624_v44, %v16911_v16 }
 0x1c1   :  { %v20133_v32 = vadd.f32 %v19624_v44, %v6290_v3  ;;  %v20136_v9 = vadd.f32 %v19624_v44, %v8594_v53  ;;  %v17611_v3 = vld [vmem:[%s26754_s0 + $0x3a0] sm:$0xff]  }
 0x1c4   :  { %16441 = vmatmul.mubr.msk.bf16.gmra.mrb[220].mxu0 %vm4069_vm2, %v17601_v45 }
 0x1c5   :  { %16444 = vmatprep.mubr.msk.bf16.mxu0 %vm4069_vm2, %v17603_v58  ;;  %v16338_v24 = vpop.f32.mrb[116].mxu0  ;;  %v16914_v45 = vpop.f32.mrb[116].mxu1  ;;  %v20107_v58 = vadd.f32 %v19624_v44, %v16334_v50  ;;  %v20121_v50 = vadd.f32 %v19624_v44, %v6287_v49 }
 0x1c6   :  { %17017 = vmatmul.mubr.msk.bf16.gmra.mrb[220].mxu1 %vm4069_vm2, %v17602_v17  ;;  %v6303_v27 = vpop.f32.mrb[117].mxu0  ;;  %v8607_v30 = vpop.f32.mrb[117].mxu1  ;;  %v20144_v2 = vadd.f32 %v19624_v44, %v16338_v24  ;;  %v20147_v16 = vadd.f32 %v19624_v44, %v16914_v45 }
 0x1c7   :  { %17020 = vmatprep.mubr.msk.bf16.mxu1 %vm4069_vm2, %v17604_v18  ;;  %v20110_v18 = vadd.f32 %v19624_v44, %v16910_v35  ;;  %v20124_v35 = vadd.f32 %v19624_v44, %v8591_v7  ;;  %v16339_v39 = vpop.f32.mrb[118].mxu0  ;;  %v16915_v31 = vpop.f32.mrb[118].mxu1  ;;  %v17608_v7 = vld [vmem:[%s26754_s0 + $0xc90] sm:$0xff]   ;;  %v20170_v24 = vadd.f32 %v19624_v44, %v8607_v30 }
 0x1c8   :  { %v6306_v17 = vpop.f32.mrb[119].mxu0  ;;  %v8610_v49 = vpop.f32.mrb[119].mxu1  ;;  %26969 = vst [vmem:[#allocation11_spill] sm:$0xff] %v20144_v2  ;;  %26970 = vst [vmem:[#allocation12_spill] sm:$0xff] %v20147_v16  ;;  %v20179_v53 = vadd.f32 %v19624_v44, %v16339_v39 }
 0x1c9   :  { %v20185_v30 = vadd.f32 %v19624_v44, %v6306_v17  ;;  %v20188_v26 = vadd.f32 %v19624_v44, %v8610_v49  ;;  %v17612_v49 = vld [vmem:[%s26754_s0 + $0xca0] sm:$0xff]  }
 0x1ca   :  { %26971 = vst [vmem:[#allocation13_spill] sm:$0xff] %v20179_v53 }
 0x1cc   :  { %16445 = vmatmul.mubr.msk.bf16.gmra.mrb[224].mxu0 %vm4069_vm2, %v17605_v46  ;;  %v17609_v46 = vld [vmem:[%s26754_s0 + $0x398] sm:$0xff]  }
 0x1cd   :  { %16448 = vmatprep.mubr.msk.bf16.mxu0 %vm4069_vm2, %v17607_v36  ;;  %v20167_v36 = vadd.f32 %v19624_v44, %v6303_v27  ;;  %v16342_v43 = vpop.f32.mrb[120].mxu0  ;;  %v16918_v45 = vpop.f32.mrb[120].mxu1 }
 0x1ce   :  { %17021 = vmatmul.mubr.msk.bf16.gmra.mrb[224].mxu1 %vm4069_vm2, %v17606_v34  ;;  %v20182_v34 = vadd.f32 %v19624_v44, %v16915_v31  ;;  %v6319_v27 = vpop.f32.mrb[121].mxu0  ;;  %v8623_v61 = vpop.f32.mrb[121].mxu1  ;;  %v20191_v5 = vadd.f32 %v19624_v44, %v16342_v43  ;;  %v20194_v57 = vadd.f32 %v19624_v44, %v16918_v45 }
 0x1cf   :  { %17024 = vmatprep.mubr.msk.bf16.mxu1 %vm4069_vm2, %v17608_v7  ;;  %v17610_v7 = vld [vmem:[%s26754_s0 + $0xc98] sm:$0xff]   ;;  %v16343_v0 = vpop.f32.mrb[122].mxu0  ;;  %v16919_v48 = vpop.f32.mrb[122].mxu1  ;;  %v20197_v39 = vadd.f32 %v19624_v44, %v6319_v27  ;;  %v20200_v31 = vadd.f32 %v19624_v44, %v8623_v61 }
 0x1d0   :  { %26972 = vst [vmem:[#allocation14_spill] sm:$0xff] %v20182_v34  ;;  %26973 = vst [vmem:[#allocation15_spill] sm:$0xff] %v20191_v5  ;;  %v6322_v41 = vpop.f32.mrb[123].mxu0  ;;  %v8626_v17 = vpop.f32.mrb[123].mxu1  ;;  %v20208_v62 = vadd.f32 %v19624_v44, %v16343_v0  ;;  %v20211_v45 = vadd.f32 %v19624_v44, %v16919_v48  ;;  %v17614_v48 = vld [vmem:[%s26754_s0 + $0xca8] sm:$0xff]  }
 0x1d1   :  { %26974 = vst [vmem:[#allocation16_spill] sm:$0xff] %v20194_v57  ;;  %26975 = vst [vmem:[#allocation27_spill] sm:$0xff] %v20197_v39  ;;  %v26979_v39 = vmax.f32 %v20078_v14, 0.0 }
 0x1d2   :  { %26976 = vst [vmem:[#allocation28_spill] sm:$0xff] %v20200_v31  ;;  %26977 = vst [vmem:[#allocation17_spill] sm:$0xff] %v20208_v62 }
 0x1d3   :  { %26978 = vst [vmem:[#allocation18_spill] sm:$0xff] %v20211_v45 }
 0x1d4   :  { %16449 = vmatmul.mubr.msk.bf16.gmra.mrb[228].mxu0 %vm4069_vm2, %v17609_v46  ;;  %v17613_v46 = vld [vmem:[%s26754_s0 + $0x3a8] sm:$0xff]  }
 0x1d5   :  { %16452 = vmatprep.mubr.msk.bf16.mxu0 %vm4069_vm2, %v17611_v3  ;;  %v20233_v3 = vld [vmem:[%s26755_s2] ss:$0 sm:$0xff]  ;;  %v16922_v27 = vpop.f32.mrb[124].mxu1 }
 0x1d6   :  { %17025 = vmatmul.mubr.msk.bf16.gmra.mrb[228].mxu1 %vm4069_vm2, %v17610_v7  ;;  %v20236_v43 = vadd.f32 %v20233_v3, %v6322_v41  ;;  %v20239_v0 = vadd.f32 %v20233_v3, %v8626_v17  ;;  %v17615_v7 = vld [vmem:[%s26754_s0 + $0x3b0] sm:$0xff]   ;;  %v8648_v44 = vadd.f32 %v20233_v3, %v16922_v27  ;;  %v8639_v41 = vpop.f32.mrb[125].mxu1 }
 0x1d7   :  { %17028 = vmatprep.mubr.msk.bf16.mxu1 %vm4069_vm2, %v17612_v49  ;;  %v16346_v49 = vpop.f32.mrb[124].mxu0  ;;  %v17616_v17 = vld [vmem:[%s26754_s0 + $0xcb0] sm:$0xff]   ;;  %v20256_v51 = vadd.f32 %v20233_v3, %v8639_v41  ;;  %v16923_v62 = vpop.f32.mrb[126].mxu1 }
 0x1d8   :  { %v6344_v61 = vadd.f32 %v20233_v3, %v16346_v49  ;;  %v6335_v16 = vpop.f32.mrb[125].mxu0  ;;  %v11148_v5 = vmax.f32 %v8648_v44, 0.0  ;;  %v8651_v27 = vadd.f32 %v20233_v3, %v16923_v62  ;;  %v8642_v53 = vpop.f32.mrb[127].mxu1  ;;  %v26980_v44 = vmax.f32 %v20081_v20, 0.0 }
 0x1d9   :  { %v20253_v37 = vadd.f32 %v20233_v3, %v6335_v16  ;;  %v16347_v45 = vpop.f32.mrb[126].mxu0  ;;  %v20266_v41 = vadd.f32 %v20233_v3, %v8642_v53  ;;  %v11146_v31 = vmax.f32 %v20256_v51, 0.0  ;;  %v27028_v51 = vld [vmem:[#allocation7_spill] sm:$0xff] }
 0x1da   :  { %v10572_v57 = vmax.f32 %v6344_v61, 0.0  ;;  %v6347_v49 = vadd.f32 %v20233_v3, %v16347_v45  ;;  %v6338_v34 = vpop.f32.mrb[127].mxu0  ;;  %v12048_v45 = vmax.f32 %v26980_v44, %v11148_v5  ;;  %v11149_v62 = vmax.f32 %v8651_v27, 0.0  ;;  %v17620_v44 = vld [vmem:[%s26754_s0 + $0xcc0] sm:$0xff]  }
 0x1db   :  { %v20263_v16 = vadd.f32 %v20233_v3, %v6338_v34  ;;  %v10570_v2 = vmax.f32 %v20253_v37, 0.0  ;;  %v26982_v5 = vmax.f32 %v20102_v10, 0.0 }
 0x1dc   :  { %v11904_v61 = vmax.f32 %v26979_v39, %v10572_v57  ;;  %v10573_v13 = vmax.f32 %v6347_v49, 0.0  ;;  %16453 = vmatmul.mubr.msk.bf16.gmra.mrb[232].mxu0 %vm4069_vm2, %v17613_v46  ;;  %v12336_v14 = vmax.f32 %v19765_v22, %v12048_v45  ;;  %v26981_v57 = vmax.f32 %v20099_v11, 0.0  ;;  %v17617_v39 = vld [vmem:[%s26754_s0 + $0x3b8] sm:$0xff]  }
 0x1dd   :  { %16456 = vmatprep.mubr.msk.bf16.mxu0 %vm4069_vm2, %v17615_v7  ;;  %v12049_v34 = vmax.f32 %v26982_v5, %v11149_v62  ;;  %v16350_v7 = vpop.f32.mrb[128].mxu0  ;;  %v17618_v22 = vld [vmem:[%s26754_s0 + $0xcb8] sm:$0xff]  }
 0x1de   :  { %17029 = vmatmul.mubr.msk.bf16.gmra.mrb[232].mxu1 %vm4069_vm2, %v17614_v48  ;;  %v12192_v53 = vmax.f32 %v19761_v23, %v11904_v61  ;;  %v11905_v20 = vmax.f32 %v26981_v57, %v10573_v13  ;;  %v16926_v23 = vpop.f32.mrb[128].mxu1  ;;  %v15512_v11 = vpack.c.bf16 %v12336_v14, %v12336_v14  ;;  %v6351_v49 = vpop.f32.mrb[129].mxu0  ;;  %v17619_v61 = vld [vmem:[%s26754_s0 + $0x3c0] sm:$0xff]   ;;  %v6360_v45 = vadd.f32 %v20233_v3, %v16350_v7 }
 0x1df   :  { %17032 = vmatprep.mubr.msk.bf16.mxu1 %vm4069_vm2, %v17616_v17  ;;  %v12337_v17 = vmax.f32 %v19776_v33, %v12049_v34  ;;  %v8655_v27 = vpop.f32.mrb[129].mxu1  ;;  %v8664_v62 = vadd.f32 %v20233_v3, %v16926_v23  ;;  %v16351_v14 = vpop.f32.mrb[130].mxu0 }
 0x1e0   :  { %v15368_v13 = vpack.c.bf16 %v12192_v53, %v12192_v53  ;;  %v12193_v10 = vmax.f32 %v19774_v28, %v11905_v20  ;;  %v6352_v53 = vadd.f32 %v20233_v3, %v6351_v49  ;;  %v8656_v28 = vadd.f32 %v20233_v3, %v8655_v27  ;;  %v16927_v33 = vpop.f32.mrb[130].mxu1  ;;  %13777 = vst.msk [vmem:[%s26756_s3 + $0x288] sm:$0xf] %vm13614_vm3, %v15512_v11  ;;  %v6354_v7 = vpop.f32.mrb[131].mxu0 }
 0x1e1   :  { %v15513_v20 = vpack.c.bf16 %v12337_v17, %v12337_v17  ;;  %v6363_v5 = vadd.f32 %v20233_v3, %v16351_v14  ;;  %v8667_v34 = vadd.f32 %v20233_v3, %v16927_v33  ;;  %v8658_v23 = vpop.f32.mrb[131].mxu1  ;;  %v10576_v49 = vmax.f32 %v6360_v45, 0.0 }
 0x1e2   :  { %13633 = vst.msk [vmem:[%s26756_s3 + $0x48] sm:$0xf] %vm13614_vm3, %v15368_v13  ;;  %v15369_v57 = vpack.c.bf16 %v12193_v10, %v12193_v10  ;;  %v11152_v27 = vmax.f32 %v8664_v62, 0.0  ;;  %v10574_v46 = vmax.f32 %v6352_v53, 0.0  ;;  %v11150_v48 = vmax.f32 %v8656_v28, 0.0 }
 0x1e3   :  { %13778 = vst.msk [vmem:[%s26756_s3 + $0x28c] sm:$0xf] %vm13614_vm3, %v15513_v20  ;;  %v10577_v13 = vmax.f32 %v6363_v5, 0.0  ;;  %v11153_v11 = vmax.f32 %v8667_v34, 0.0  ;;  %v6355_v10 = vadd.f32 %v20233_v3, %v6354_v7  ;;  %v8659_v17 = vadd.f32 %v20233_v3, %v8658_v23 }
 0x1e4   :  { %13634 = vst.msk [vmem:[%s26756_s3 + $0x4c] sm:$0xf] %vm13614_vm3, %v15369_v57  ;;  %16457 = vmatmul.mubr.msk.bf16.gmra.mrb[236].mxu0 %vm4069_vm2, %v17617_v39  ;;  %v26983_v45 = vmax.f32 %v20121_v50, 0.0  ;;  %v26984_v53 = vmax.f32 %v20124_v35, 0.0  ;;  %v26985_v14 = vmax.f32 %v20063_v4, 0.0  ;;  %v26986_v57 = vmax.f32 %v20066_v55, 0.0 }
 0x1e5   :  { %v26987_v5 = vmax.f32 %v20133_v32, 0.0  ;;  %v26988_v7 = vmax.f32 %v20136_v9, 0.0  ;;  %v10575_v23 = vmax.f32 %v6355_v10, 0.0  ;;  %v11151_v50 = vmax.f32 %v8659_v17, 0.0  ;;  %16460 = vmatprep.mubr.msk.bf16.mxu0 %vm4069_vm2, %v17619_v61  ;;  %v17621_v4 = vld [vmem:[%s26754_s0 + $0x3c8] sm:$0xff]   ;;  %v16354_v9 = vpop.f32.mrb[132].mxu0 }
 0x1e6   :  { %v11908_v62 = vmax.f32 %v26983_v45, %v10576_v49  ;;  %v12052_v28 = vmax.f32 %v26984_v53, %v11152_v27  ;;  %v11906_v33 = vmax.f32 %v26985_v14, %v10574_v46  ;;  %v12050_v20 = vmax.f32 %v26986_v57, %v11150_v48  ;;  %17033 = vmatmul.mubr.msk.bf16.gmra.mrb[236].mxu1 %vm4069_vm2, %v17618_v22  ;;  %v16930_v46 = vpop.f32.mrb[132].mxu1  ;;  %v17622_v22 = vld [vmem:[%s26754_s0 + $0xcc8] sm:$0xff]   ;;  %v17623_v61 = vld [vmem:[%s26754_s0 + $0x3d0] sm:$0xff]   ;;  %v6367_v27 = vpop.f32.mrb[133].mxu0 }
 0x1e7   :  { %v11909_v34 = vmax.f32 %v26987_v5, %v10577_v13  ;;  %v12053_v39 = vmax.f32 %v26988_v7, %v11153_v11  ;;  %17036 = vmatprep.mubr.msk.bf16.mxu1 %vm4069_vm2, %v17620_v44  ;;  %v8671_v13 = vpop.f32.mrb[133].mxu1  ;;  %v17624_v11 = vld [vmem:[%s26754_s0 + $0xcd0] sm:$0xff]   ;;  %v16355_v53 = vpop.f32.mrb[134].mxu0  ;;  %v6368_v57 = vadd.f32 %v20233_v3, %v6367_v27 }
 0x1e8   :  { %v12196_v55 = vmax.f32 %v19811_v29, %v11908_v62  ;;  %v12340_v35 = vmax.f32 %v19815_v42, %v12052_v28  ;;  %v12194_v32 = vmax.f32 %v19820_v6, %v11906_v33  ;;  %v12338_v48 = vmax.f32 %v19824_v12, %v12050_v20 }
 0x1e9   :  { %v12197_v44 = vmax.f32 %v19832_v1, %v11909_v34  ;;  %v12341_v29 = vmax.f32 %v19836_v21, %v12053_v39  ;;  %v26989_v42 = vmax.f32 %v20087_v54, 0.0  ;;  %v26990_v6 = vmax.f32 %v20090_v8, 0.0  ;;  %v16931_v1 = vpop.f32.mrb[134].mxu1  ;;  %v6370_v8 = vpop.f32.mrb[135].mxu0 }
 0x1ea   :  { %v15372_v10 = vpack.c.bf16 %v12196_v55, %v12196_v55  ;;  %v15516_v17 = vpack.c.bf16 %v12340_v35, %v12340_v35  ;;  %v15370_v45 = vpack.c.bf16 %v12194_v32, %v12194_v32  ;;  %v15514_v62 = vpack.c.bf16 %v12338_v48, %v12338_v48  ;;  %v8674_v33 = vpop.f32.mrb[135].mxu1 }
 0x1eb   :  { %v11907_v49 = vmax.f32 %v26989_v42, %v10575_v23  ;;  %v12051_v12 = vmax.f32 %v26990_v6, %v11151_v50  ;;  %v15373_v28 = vpack.c.bf16 %v12197_v44, %v12197_v44  ;;  %v15517_v21 = vpack.c.bf16 %v12341_v29, %v12341_v29 }
 0x1ec   :  { %13637 = vst.msk [vmem:[%s26756_s3 + $0x58] sm:$0xf] %vm13614_vm3, %v15372_v10  ;;  %13781 = vst.msk [vmem:[%s26756_s3 + $0x298] sm:$0xf] %vm13614_vm3, %v15516_v17  ;;  %v8672_v20 = vadd.f32 %v20233_v3, %v8671_v13  ;;  %v6379_v7 = vadd.f32 %v20233_v3, %v16355_v53  ;;  %v8683_v39 = vadd.f32 %v20233_v3, %v16931_v1  ;;  %16461 = vmatmul.mubr.msk.bf16.gmra.mrb[240].mxu0 %vm4069_vm2, %v17621_v4 }
 0x1ed   :  { %v12195_v54 = vmax.f32 %v19844_v47, %v11907_v49  ;;  %v12339_v14 = vmax.f32 %v19848_v59, %v12051_v12  ;;  %13635 = vst.msk [vmem:[%s26756_s3 + $0x50] sm:$0xf] %vm13614_vm3, %v15370_v45  ;;  %13779 = vst.msk [vmem:[%s26756_s3 + $0x290] sm:$0xf] %vm13614_vm3, %v15514_v62  ;;  %v6376_v47 = vadd.f32 %v20233_v3, %v16354_v9  ;;  %v10578_v55 = vmax.f32 %v6368_v57, 0.0  ;;  %v16358_v27 = vpop.f32.mrb[136].mxu0 }
 0x1ee   :  { %v8680_v59 = vadd.f32 %v20233_v3, %v16930_v46  ;;  %13638 = vst.msk [vmem:[%s26756_s3 + $0x5c] sm:$0xf] %vm13614_vm3, %v15373_v28  ;;  %13782 = vst.msk [vmem:[%s26756_s3 + $0x29c] sm:$0xf] %vm13614_vm3, %v15517_v21  ;;  %v11154_v35 = vmax.f32 %v8672_v20, 0.0  ;;  %17037 = vmatmul.mubr.msk.bf16.gmra.mrb[240].mxu1 %vm4069_vm2, %v17622_v22  ;;  %16464 = vmatprep.mubr.msk.bf16.mxu0 %vm4069_vm2, %v17623_v61  ;;  %v10581_v32 = vmax.f32 %v6379_v7, 0.0 }
 0x1ef   :  { %v15371_v5 = vpack.c.bf16 %v12195_v54, %v12195_v54  ;;  %v15515_v34 = vpack.c.bf16 %v12339_v14, %v12339_v14  ;;  %v10580_v23 = vmax.f32 %v6376_v47, 0.0  ;;  %v11157_v4 = vmax.f32 %v8683_v39, 0.0  ;;  %17040 = vmatprep.mubr.msk.bf16.mxu1 %vm4069_vm2, %v17624_v11  ;;  %v17625_v46 = vld [vmem:[%s26754_s0 + $0x3d8] sm:$0xff]   ;;  %v16934_v13 = vpop.f32.mrb[136].mxu1  ;;  %v6383_v53 = vpop.f32.mrb[137].mxu0 }
 0x1f0   :  { %v11156_v50 = vmax.f32 %v8680_v59, 0.0  ;;  %v6371_v48 = vadd.f32 %v20233_v3, %v6370_v8  ;;  %v8675_v9 = vadd.f32 %v20233_v3, %v8674_v33  ;;  %v26991_v22 = vmax.f32 %v20167_v36, 0.0  ;;  %v17626_v11 = vld [vmem:[%s26754_s0 + $0xcd8] sm:$0xff]   ;;  %v16359_v54 = vpop.f32.mrb[138].mxu0 }
 0x1f1   :  { %13636 = vst.msk [vmem:[%s26756_s3 + $0x54] sm:$0xf] %vm13614_vm3, %v15371_v5  ;;  %13780 = vst.msk [vmem:[%s26756_s3 + $0x294] sm:$0xf] %vm13614_vm3, %v15515_v34  ;;  %v26992_v44 = vmax.f32 %v20170_v24, 0.0  ;;  %v26993_v42 = vmax.f32 %v20107_v58, 0.0  ;;  %v8696_v39 = vadd.f32 %v20233_v3, %v16934_v13 }
 0x1f2   :  { %v11912_v61 = vmax.f32 %v26991_v22, %v10580_v23  ;;  %v26994_v6 = vmax.f32 %v20110_v18, 0.0  ;;  %v26995_v10 = vmax.f32 %v20185_v30, 0.0  ;;  %v26996_v36 = vmax.f32 %v20188_v26, 0.0  ;;  %v8687_v58 = vpop.f32.mrb[137].mxu1  ;;  %v6386_v57 = vpop.f32.mrb[139].mxu0 }
 0x1f3   :  { %v12056_v29 = vmax.f32 %v26992_v44, %v11156_v50  ;;  %v11910_v49 = vmax.f32 %v26993_v42, %v10578_v55  ;;  %v10579_v24 = vmax.f32 %v6371_v48, 0.0  ;;  %v11155_v62 = vmax.f32 %v8675_v9, 0.0  ;;  %v16935_v14 = vpop.f32.mrb[138].mxu1  ;;  %v17629_v48 = vld [vmem:[%s26754_s0 + $0x3e8] sm:$0xff]  }
 0x1f4   :  { %v12054_v12 = vmax.f32 %v26994_v6, %v11154_v35  ;;  %v11913_v17 = vmax.f32 %v26995_v10, %v10581_v32  ;;  %v12057_v45 = vmax.f32 %v26996_v36, %v11157_v4  ;;  %v12200_v1 = vmax.f32 %v19885_v56, %v11912_v61  ;;  %v8690_v56 = vpop.f32.mrb[139].mxu1  ;;  %16465 = vmatmul.mubr.msk.bf16.gmra.mrb[244].mxu0 %vm4069_vm2, %v17625_v46  ;;  %v17630_v42 = vld [vmem:[%s26754_s0 + $0xce8] sm:$0xff]  }
 0x1f5   :  { %v12344_v18 = vmax.f32 %v19889_v19, %v12056_v29  ;;  %v12198_v28 = vmax.f32 %v19894_v15, %v11910_v49  ;;  %v26997_v26 = vmax.f32 %v20127_v63, 0.0  ;;  %v26998_v47 = vmax.f32 %v20130_v40, 0.0  ;;  %v17627_v19 = vld [vmem:[%s26754_s0 + $0x3e0] sm:$0xff]   ;;  %v16362_v44 = vpop.f32.mrb[140].mxu0  ;;  %v27000_v10 = vld [vmem:[#allocation27_spill] sm:$0xff] }
 0x1f6   :  { %v12342_v21 = vmax.f32 %v19898_v60, %v12054_v12  ;;  %v12201_v30 = vmax.f32 %v19906_v38, %v11913_v17  ;;  %v12345_v8 = vmax.f32 %v19910_v25, %v12057_v45  ;;  %v15376_v15 = vpack.c.bf16 %v12200_v1, %v12200_v1  ;;  %v17628_v38 = vld [vmem:[%s26754_s0 + $0xce0] sm:$0xff]   ;;  %17041 = vmatmul.mubr.msk.bf16.gmra.mrb[244].mxu1 %vm4069_vm2, %v17626_v11  ;;  %v16938_v29 = vpop.f32.mrb[140].mxu1  ;;  %v6399_v13 = vpop.f32.mrb[141].mxu0  ;;  %v27002_v45 = vld [vmem:[#allocation28_spill] sm:$0xff] }
 0x1f7   :  { %v11911_v33 = vmax.f32 %v26997_v26, %v10579_v24  ;;  %v12055_v59 = vmax.f32 %v26998_v47, %v11155_v62  ;;  %v15520_v60 = vpack.c.bf16 %v12344_v18, %v12344_v18  ;;  %v15374_v20 = vpack.c.bf16 %v12198_v28, %v12198_v28  ;;  %v26999_v40 = vld [vmem:[#allocation2_spill] sm:$0xff]  ;;  %16468 = vmatprep.mubr.msk.bf16.mxu0 %vm4069_vm2, %v17627_v19  ;;  %v8703_v11 = vpop.f32.mrb[141].mxu1  ;;  %v27006_v18 = vld [vmem:[#allocation12_spill] sm:$0xff] }
 0x1f8   :  { %v15518_v5 = vpack.c.bf16 %v12342_v21, %v12342_v21  ;;  %v15377_v25 = vpack.c.bf16 %v12201_v30, %v12201_v30  ;;  %v15521_v63 = vpack.c.bf16 %v12345_v8, %v12345_v8  ;;  %13641 = vst.msk [vmem:[%s26756_s3 + $0x68] sm:$0xf] %vm13614_vm3, %v15376_v15  ;;  %v6384_v23 = vadd.f32 %v20233_v3, %v6383_v53  ;;  %v27004_v53 = vld [vmem:[#allocation11_spill] sm:$0xff]  ;;  %v17631_v19 = vld [vmem:[%s26754_s0 + $0x3f0] sm:$0xff]   ;;  %v27010_v15 = vld [vmem:[#allocation25_spill] sm:$0xff] }
 0x1f9   :  { %v12199_v34 = vmax.f32 %v19920_v52, %v11911_v33  ;;  %v12343_v7 = vmax.f32 %v26999_v40, %v12055_v59  ;;  %13785 = vst.msk [vmem:[%s26756_s3 + $0x2a8] sm:$0xf] %vm13614_vm3, %v15520_v60  ;;  %13639 = vst.msk [vmem:[%s26756_s3 + $0x60] sm:$0xf] %vm13614_vm3, %v15374_v20  ;;  %v6392_v52 = vadd.f32 %v20233_v3, %v16358_v27  ;;  %v11160_v46 = vmax.f32 %v8696_v39, 0.0  ;;  %v27011_v20 = vld [vmem:[#allocation26_spill] sm:$0xff] }
 0x1fa   :  { %13783 = vst.msk [vmem:[%s26756_s3 + $0x2a0] sm:$0xf] %vm13614_vm3, %v15518_v5  ;;  %v8688_v50 = vadd.f32 %v20233_v3, %v8687_v58  ;;  %13642 = vst.msk [vmem:[%s26756_s3 + $0x6c] sm:$0xf] %vm13614_vm3, %v15377_v25  ;;  %v6395_v32 = vadd.f32 %v20233_v3, %v16359_v54  ;;  %v8699_v4 = vadd.f32 %v20233_v3, %v16935_v14  ;;  %v10582_v22 = vmax.f32 %v6384_v23, 0.0  ;;  %v16363_v54 = vpop.f32.mrb[142].mxu0 }
 0x1fb   :  { %13786 = vst.msk [vmem:[%s26756_s3 + $0x2ac] sm:$0xf] %vm13614_vm3, %v15521_v63  ;;  %v15375_v55 = vpack.c.bf16 %v12199_v34, %v12199_v34  ;;  %v15519_v35 = vpack.c.bf16 %v12343_v7, %v12343_v7  ;;  %v10584_v9 = vmax.f32 %v6392_v52, 0.0  ;;  %17044 = vmatprep.mubr.msk.bf16.mxu1 %vm4069_vm2, %v17628_v38  ;;  %v6387_v12 = vadd.f32 %v20233_v3, %v6386_v57  ;;  %v16939_v14 = vpop.f32.mrb[142].mxu1  ;;  %v6402_v57 = vpop.f32.mrb[143].mxu0  ;;  %v27012_v38 = vld [vmem:[#allocation19_spill] sm:$0xff] }
 0x1fc   :  { %v11158_v61 = vmax.f32 %v8688_v50, 0.0  ;;  %v10585_v49 = vmax.f32 %v6395_v32, 0.0  ;;  %v11161_v6 = vmax.f32 %v8699_v4, 0.0  ;;  %v8691_v27 = vadd.f32 %v20233_v3, %v8690_v56  ;;  %v8706_v56 = vpop.f32.mrb[143].mxu1  ;;  %v27013_v63 = vld [vmem:[#allocation20_spill] sm:$0xff]  ;;  %v27014_v34 = vld [vmem:[#allocation3_spill] sm:$0xff]  ;;  %16469 = vmatmul.mubr.msk.bf16.gmra.mrb[248].mxu0 %vm4069_vm2, %v17629_v48 }
 0x1fd   :  { %13640 = vst.msk [vmem:[%s26756_s3 + $0x64] sm:$0xf] %vm13614_vm3, %v15375_v55  ;;  %13784 = vst.msk [vmem:[%s26756_s3 + $0x2a4] sm:$0xf] %vm13614_vm3, %v15519_v35  ;;  %v27001_v17 = vmax.f32 %v27000_v10, 0.0  ;;  %v27003_v24 = vmax.f32 %v27002_v45, 0.0  ;;  %16472 = vmatprep.mubr.msk.bf16.mxu0 %vm4069_vm2, %v17631_v19  ;;  %v6408_v48 = vadd.f32 %v20233_v3, %v16362_v44  ;;  %v8704_v45 = vadd.f32 %v20233_v3, %v8703_v11 }
 0x1fe   :  { %v27005_v58 = vmax.f32 %v27004_v53, 0.0  ;;  %v27007_v28 = vmax.f32 %v27006_v18, 0.0  ;;  %v27008_v30 = vmax.f32 %v20236_v43, 0.0  ;;  %v27009_v26 = vmax.f32 %v20239_v0, 0.0  ;;  %v17632_v0 = vld [vmem:[%s26754_s0 + $0xcf0] sm:$0xff]   ;;  %v27016_v39 = vld [vmem:[#allocation13_spill] sm:$0xff]  ;;  %17045 = vmatmul.mubr.msk.bf16.gmra.mrb[248].mxu1 %vm4069_vm2, %v17630_v42 }
 0x1ff   :  { %v11916_v36 = vmax.f32 %v27001_v17, %v10584_v9  ;;  %v12060_v62 = vmax.f32 %v27003_v24, %v11160_v46  ;;  %v10583_v47 = vmax.f32 %v6387_v12, 0.0  ;;  %v11159_v59 = vmax.f32 %v8691_v27, 0.0  ;;  %v27015_v7 = vld [vmem:[#allocation4_spill] sm:$0xff]  ;;  %v27018_v55 = vld [vmem:[#allocation14_spill] sm:$0xff]  ;;  %v17633_v17 = vld [vmem:[%s26754_s0 + $0x3f8] sm:$0xff]   ;;  %v20550_v24 = vpop.f32.mrb[144].mxu0  ;;  %17048 = vmatprep.mubr.msk.bf16.mxu1 %vm4069_vm2, %v17632_v0 }
 0x200   :  { %v11914_v1 = vmax.f32 %v27005_v58, %v10582_v22  ;;  %v12058_v21 = vmax.f32 %v27007_v28, %v11158_v61  ;;  %v11917_v8 = vmax.f32 %v27008_v30, %v10585_v49  ;;  %v12061_v33 = vmax.f32 %v27009_v26, %v11161_v6  ;;  %v27020_v6 = vld [vmem:[#allocation5_spill] sm:$0xff]  ;;  %v27021_v27 = vld [vmem:[#allocation6_spill] sm:$0xff]  ;;  %v20568_v58 = vpop.f32.mrb[145].mxu0 }
 0x201   :  { %v12204_v60 = vmax.f32 %v27010_v15, %v11916_v36  ;;  %v12348_v5 = vmax.f32 %v27011_v20, %v12060_v62  ;;  %v27017_v23 = vmax.f32 %v27016_v39, 0.0  ;;  %v27019_v35 = vmax.f32 %v27018_v55, 0.0  ;;  %v20552_v62 = vpop.f32.mrb[144].mxu1  ;;  %v17634_v53 = vld [vmem:[%s26754_s0 + $0xcf8] sm:$0xff]   ;;  %v17635_v15 = vld [vmem:[%s26754_s0 + $0x400] sm:$0xff]  }
 0x202   :  { %v12202_v25 = vmax.f32 %v27012_v38, %v11914_v1  ;;  %v12346_v43 = vmax.f32 %v27013_v63, %v12058_v21  ;;  %v12205_v40 = vmax.f32 %v27014_v34, %v11917_v8  ;;  %v12349_v52 = vmax.f32 %v27015_v7, %v12061_v33  ;;  %v20570_v1 = vpop.f32.mrb[145].mxu1  ;;  %v20572_v8 = vpop.f32.mrb[146].mxu0  ;;  %v27031_v55 = vld [vmem:[#allocation22_spill] sm:$0xff] }
 0x203   :  { %v11915_v50 = vmax.f32 %v27017_v23, %v10583_v47  ;;  %v12059_v32 = vmax.f32 %v27019_v35, %v11159_v59  ;;  %v15380_v4 = vpack.c.bf16 %v12204_v60, %v12204_v60  ;;  %v15524_v9 = vpack.c.bf16 %v12348_v5, %v12348_v5  ;;  %v20574_v26 = vpop.f32.mrb[146].mxu1  ;;  %v20586_v59 = vpop.f32.mrb[147].mxu0  ;;  %v27022_v5 = vld [vmem:[#allocation15_spill] sm:$0xff]  ;;  %v27030_v23 = vld [vmem:[#allocation21_spill] sm:$0xff] }
 0x204   :  { %v15378_v46 = vpack.c.bf16 %v12202_v25, %v12202_v25  ;;  %v15522_v22 = vpack.c.bf16 %v12346_v43, %v12346_v43  ;;  %v15381_v61 = vpack.c.bf16 %v12205_v40, %v12205_v40  ;;  %v15525_v49 = vpack.c.bf16 %v12349_v52, %v12349_v52  ;;  %v20588_v19 = vpop.f32.mrb[147].mxu1  ;;  %v17636_v43 = vld [vmem:[%s26754_s0 + $0xd00] sm:$0xff]   ;;  %16473 = vmatmul.mubr.msk.bf16.gmra.mrb[252].mxu0 %vm4069_vm2, %v17633_v17  ;;  %v27029_v52 = vld [vmem:[#allocation8_spill] sm:$0xff] }
 0x205   :  { %v12203_v12 = vmax.f32 %v27020_v6, %v11915_v50  ;;  %v12347_v10 = vmax.f32 %v27021_v27, %v12059_v32  ;;  %13645 = vst.msk [vmem:[%s26756_s3 + $0x78] sm:$0xf] %vm13614_vm3, %v15380_v4  ;;  %13789 = vst.msk [vmem:[%s26756_s3 + $0x2b8] sm:$0xf] %vm13614_vm3, %v15524_v9  ;;  %v8712_v42 = vadd.f32 %v20233_v3, %v16938_v29  ;;  %v10588_v18 = vmax.f32 %v6408_v48, 0.0  ;;  %v27032_v32 = vld [vmem:[#allocation9_spill] sm:$0xff] }
 0x206   :  { %13643 = vst.msk [vmem:[%s26756_s3 + $0x70] sm:$0xf] %vm13614_vm3, %v15378_v46  ;;  %13787 = vst.msk [vmem:[%s26756_s3 + $0x2b0] sm:$0xf] %vm13614_vm3, %v15522_v22  ;;  %v6400_v36 = vadd.f32 %v20233_v3, %v6399_v13  ;;  %v6411_v13 = vadd.f32 %v20233_v3, %v16363_v54  ;;  %v8715_v11 = vadd.f32 %v20233_v3, %v16939_v14  ;;  %v11162_v30 = vmax.f32 %v8704_v45, 0.0  ;;  %v27033_v4 = vld [vmem:[#allocation10_spill] sm:$0xff] }
 0x207   :  { %13646 = vst.msk [vmem:[%s26756_s3 + $0x7c] sm:$0xf] %vm13614_vm3, %v15381_v61  ;;  %13790 = vst.msk [vmem:[%s26756_s3 + $0x2bc] sm:$0xf] %vm13614_vm3, %v15525_v49  ;;  %v15379_v44 = vpack.c.bf16 %v12203_v12, %v12203_v12  ;;  %v15523_v29 = vpack.c.bf16 %v12347_v10, %v12347_v10  ;;  %v11164_v28 = vmax.f32 %v8712_v42, 0.0  ;;  %v6403_v33 = vadd.f32 %v20233_v3, %v6402_v57  ;;  %v27024_v57 = vld [vmem:[#allocation16_spill] sm:$0xff] }
 0x208   :  { %v10586_v21 = vmax.f32 %v6400_v36, 0.0  ;;  %v10589_v54 = vmax.f32 %v6411_v13, 0.0  ;;  %v11165_v14 = vmax.f32 %v8715_v11, 0.0  ;;  %v8707_v47 = vadd.f32 %v20233_v3, %v8706_v56  ;;  %17049 = vmatmul.mubr.msk.bf16.gmra.mrb[252].mxu1 %vm4069_vm2, %v17634_v53  ;;  %v27036_v61 = vld [vmem:[#allocation18_spill] sm:$0xff]  ;;  %16476 = vmatprep.mubr.msk.bf16.mxu0 %vm4069_vm2, %v17635_v15  ;;  %v17637_v12 = vld [vmem:[%s26754_s0 + $0x408] sm:$0xff]   ;;  %v16370_v42 = vpop.f32.mrb[148].mxu0 }
 0x209   :  { %13644 = vst.msk [vmem:[%s26756_s3 + $0x74] sm:$0xf] %vm13614_vm3, %v15379_v44  ;;  %13788 = vst.msk [vmem:[%s26756_s3 + $0x2b4] sm:$0xf] %vm13614_vm3, %v15523_v29  ;;  %v11920_v60 = vmax.f32 %v10570_v2, %v10588_v18  ;;  %v12064_v20 = vmax.f32 %v11146_v31, %v11164_v28  ;;  %v27023_v38 = vmax.f32 %v27022_v5, 0.0  ;;  %v27025_v63 = vmax.f32 %v27024_v57, 0.0  ;;  %17052 = vmatprep.mubr.msk.bf16.mxu1 %vm4069_vm2, %v17636_v43 }
 0x20a   :  { %v27026_v0 = vmax.f32 %v20263_v16, 0.0  ;;  %v27027_v40 = vmax.f32 %v20266_v41, 0.0  ;;  %v10587_v2 = vmax.f32 %v6403_v33, 0.0  ;;  %v11163_v7 = vmax.f32 %v8707_v47, 0.0  ;;  %v27034_v41 = vld [vmem:[#allocation17_spill] sm:$0xff]  ;;  %v16946_v36 = vpop.f32.mrb[148].mxu1 }
 0x20b   :  { %v11918_v25 = vmax.f32 %v27023_v38, %v10586_v21  ;;  %v12062_v56 = vmax.f32 %v27025_v63, %v11162_v30  ;;  %v12208_v31 = vmax.f32 %v27028_v51, %v11920_v60  ;;  %v12352_v39 = vmax.f32 %v27029_v52, %v12064_v20  ;;  %v17638_v45 = vld [vmem:[%s26754_s0 + $0xd08] sm:$0xff]   ;;  %v27039_v11 = vld [vmem:[#allocation24_spill] sm:$0xff]  ;;  %v6431_v28 = vpop.f32.mrb[149].mxu0  ;;  %v8735_v21 = vpop.f32.mrb[149].mxu1  ;;  %v17643_v43 = vld [vmem:[%s26754_s0 + $0x420] sm:$0xff]  }
 0x20c   :  { %v11921_v34 = vmax.f32 %v27026_v0, %v10589_v54  ;;  %v12065_v37 = vmax.f32 %v27027_v40, %v11165_v14  ;;  %v27035_v46 = vmax.f32 %v27034_v41, 0.0  ;;  %v27037_v49 = vmax.f32 %v27036_v61, 0.0  ;;  %v27038_v29 = vld [vmem:[#allocation23_spill] sm:$0xff]  ;;  %v16371_v30 = vpop.f32.mrb[150].mxu0  ;;  %v16947_v54 = vpop.f32.mrb[150].mxu1  ;;  %v17639_v60 = vld [vmem:[%s26754_s0 + $0x410] sm:$0xff]   ;;  %16477 = vmatmul.mubr.msk.bf16.gmra.mrb[0].mxu0 %vm4069_vm2, %v17637_v12 }
 0x20d   :  { %v12206_v50 = vmax.f32 %v27030_v23, %v11918_v25  ;;  %v12350_v35 = vmax.f32 %v27031_v55, %v12062_v56  ;;  %v15384_v27 = vpack.c.bf16 %v12208_v31, %v12208_v31  ;;  %v15528_v10 = vpack.c.bf16 %v12352_v39, %v12352_v39  ;;  %v20654_v47 = vpop.f32.mrb[151].mxu0  ;;  %v20656_v15 = vpop.f32.mrb[151].mxu1  ;;  %v17640_v20 = vld [vmem:[%s26754_s0 + $0xd10] sm:$0xff]   ;;  %16480 = vmatprep.mubr.msk.bf16.mxu0 %vm4069_vm2, %v17639_v60  ;;  %v17641_v25 = vld [vmem:[%s26754_s0 + $0x418] sm:$0xff]   ;;  %v17644_v51 = vld [vmem:[%s26754_s0 + $0xd20] sm:$0xff]  }
 0x20e   :  { %v12209_v16 = vmax.f32 %v27032_v32, %v11921_v34  ;;  %v12353_v9 = vmax.f32 %v27033_v4, %v12065_v37  ;;  %v11919_v22 = vmax.f32 %v27035_v46, %v10587_v2  ;;  %v12063_v6 = vmax.f32 %v27037_v49, %v11163_v7  ;;  %v20676_v5 = vpop.f32.mrb[152].mxu0  ;;  %v20678_v38 = vpop.f32.mrb[152].mxu1  ;;  %v17642_v56 = vld [vmem:[%s26754_s0 + $0xd18] sm:$0xff]   ;;  %v17646_v32 = vld [vmem:[%s26754_s0 + $0xd28] sm:$0xff]   ;;  %v17648_v41 = vld [vmem:[%s26754_s0 + $0xd30] sm:$0xff]  }
 0x20f   :  { %v15382_v17 = vpack.c.bf16 %v12206_v50, %v12206_v50  ;;  %v15526_v48 = vpack.c.bf16 %v12350_v35, %v12350_v35  ;;  %13649 = vst.msk [vmem:[%s26756_s3 + $0x88] sm:$0xf] %vm13614_vm3, %v15384_v27  ;;  %13793 = vst.msk [vmem:[%s26756_s3 + $0x2c8] sm:$0xf] %vm13614_vm3, %v15528_v10  ;;  %v20683_v57 = vpop.f32.mrb[153].mxu0  ;;  %v20685_v63 = vpop.f32.mrb[153].mxu1  ;;  %v20699_v40 = vadd.f32 %v20233_v3, %v20550_v24 }
 0x210   :  { %v15385_v53 = vpack.c.bf16 %v12209_v16, %v12209_v16  ;;  %v15529_v44 = vpack.c.bf16 %v12353_v9, %v12353_v9  ;;  %v12207_v13 = vmax.f32 %v27038_v29, %v11919_v22  ;;  %v12351_v18 = vmax.f32 %v27039_v11, %v12063_v6  ;;  %17053 = vmatmul.mubr.msk.bf16.gmra.mrb[0].mxu1 %vm4069_vm2, %v17638_v45  ;;  %v20693_v0 = vpop.f32.mrb[154].mxu0  ;;  %v20695_v34 = vpop.f32.mrb[154].mxu1  ;;  %v17649_v11 = vld [vmem:[%s26754_s0 + $0x438] sm:$0xff]  }
 0x211   :  { %13647 = vst.msk [vmem:[%s26756_s3 + $0x80] sm:$0xf] %vm13614_vm3, %v15382_v17  ;;  %13791 = vst.msk [vmem:[%s26756_s3 + $0x2c0] sm:$0xf] %vm13614_vm3, %v15526_v48  ;;  %17056 = vmatprep.mubr.msk.bf16.mxu1 %vm4069_vm2, %v17640_v20  ;;  %v20703_v37 = vadd.f32 %v20233_v3, %v20552_v62  ;;  %v20705_v2 = vpop.f32.mrb[155].mxu0  ;;  %v20707_v7 = vpop.f32.mrb[155].mxu1  ;;  %v20715_v31 = vadd.f32 %v20233_v3, %v20568_v58  ;;  %v20719_v24 = vadd.f32 %v20233_v3, %v20570_v1 }
 0x212   :  { %13650 = vst.msk [vmem:[%s26756_s3 + $0x8c] sm:$0xf] %vm13614_vm3, %v15385_v53  ;;  %13794 = vst.msk [vmem:[%s26756_s3 + $0x2cc] sm:$0xf] %vm13614_vm3, %v15529_v44  ;;  %v15383_v14 = vpack.c.bf16 %v12207_v13, %v12207_v13  ;;  %v15527_v33 = vpack.c.bf16 %v12351_v18, %v12351_v18  ;;  %v10592_v62 = vmax.f32 %v20699_v40, 0.0  ;;  %v20727_v39 = vadd.f32 %v20233_v3, %v20572_v8  ;;  %v17645_v1 = vld [vmem:[%s26754_s0 + $0x428] sm:$0xff]  }
 0x213   :  { %v11168_v52 = vmax.f32 %v20703_v37, 0.0  ;;  %v20731_v58 = vadd.f32 %v20233_v3, %v20574_v26  ;;  %v20739_v23 = vadd.f32 %v20233_v3, %v20586_v59  ;;  %v20743_v50 = vadd.f32 %v20233_v3, %v20588_v19  ;;  %v17647_v59 = vld [vmem:[%s26754_s0 + $0x430] sm:$0xff]   ;;  %v20810_v18 = vld [vmem:[%s26755_s2] ss:$0 sm:$0xff]  ;;  %v17657_v40 = vld [vmem:[%s26754_s0 + $0x458] sm:$0xff]  }
 0x214   :  { %13648 = vst.msk [vmem:[%s26756_s3 + $0x84] sm:$0xf] %vm13614_vm3, %v15383_v14  ;;  %13792 = vst.msk [vmem:[%s26756_s3 + $0x2c4] sm:$0xf] %vm13614_vm3, %v15527_v33  ;;  %16481 = vmatmul.mubr.msk.bf16.gmra.mrb[4].mxu0 %vm4069_vm2, %v17641_v25  ;;  %v20746_v8 = vadd.f32 %v20233_v3, %v16370_v42  ;;  %v20749_v26 = vadd.f32 %v20233_v3, %v16946_v36  ;;  %v20762_v19 = vadd.f32 %v20233_v3, %v6431_v28  ;;  %v17650_v14 = vld [vmem:[%s26754_s0 + $0xd38] sm:$0xff]   ;;  %v17651_v33 = vld [vmem:[%s26754_s0 + $0x440] sm:$0xff]  }
 0x215   :  { %16484 = vmatprep.mubr.msk.bf16.mxu0 %vm4069_vm2, %v17643_v43  ;;  %v20751_v55 = vpop.f32.mrb[156].mxu0  ;;  %v20765_v16 = vadd.f32 %v20233_v3, %v8735_v21  ;;  %v20775_v46 = vadd.f32 %v20233_v3, %v16371_v30  ;;  %v20778_v22 = vadd.f32 %v20233_v3, %v16947_v54  ;;  %v10590_v6 = vmax.f32 %v20715_v31, 0.0 }
 0x216   :  { %v20753_v35 = vpop.f32.mrb[156].mxu1  ;;  %v20767_v4 = vpop.f32.mrb[157].mxu0  ;;  %v11166_v12 = vmax.f32 %v20719_v24, 0.0  ;;  %v10593_v27 = vmax.f32 %v20727_v39, 0.0  ;;  %v10591_v42 = vmax.f32 %v20739_v23, 0.0  ;;  %v11167_v3 = vmax.f32 %v20743_v50, 0.0 }
 0x217   :  { %v20769_v9 = vpop.f32.mrb[157].mxu1  ;;  %v20780_v61 = vpop.f32.mrb[158].mxu0  ;;  %v10594_v53 = vmax.f32 %v20762_v19, 0.0  ;;  %v11170_v44 = vmax.f32 %v20765_v16, 0.0  ;;  %v20814_v28 = vadd.f32 %v20810_v18, %v20654_v47  ;;  %v20818_v21 = vadd.f32 %v20810_v18, %v20656_v15 }
 0x218   :  { %17057 = vmatmul.mubr.msk.bf16.gmra.mrb[4].mxu1 %vm4069_vm2, %v17642_v56  ;;  %v20782_v49 = vpop.f32.mrb[158].mxu1  ;;  %v20788_v17 = vpop.f32.mrb[159].mxu0  ;;  %v20834_v15 = vadd.f32 %v20810_v18, %v20676_v5  ;;  %v20838_v56 = vadd.f32 %v20810_v18, %v20678_v38  ;;  %v20842_v43 = vadd.f32 %v20810_v18, %v20683_v57  ;;  %v17652_v57 = vld [vmem:[%s26754_s0 + $0xd40] sm:$0xff]   ;;  %v20967_v39 = vadd.f32 %v20810_v18, %v20767_v4 }
 0x219   :  { %17060 = vmatprep.mubr.msk.bf16.mxu1 %vm4069_vm2, %v17644_v51  ;;  %v20790_v48 = vpop.f32.mrb[159].mxu1  ;;  %v20846_v51 = vadd.f32 %v20810_v18, %v20685_v63  ;;  %v11171_v63 = vmax.f32 %v20818_v21, 0.0 }
 0x21a   :  { %v20982_v4 = vadd.f32 %v20810_v18, %v20790_v48  ;;  %v27041_v48 = vmax.f32 %v20842_v43, 0.0  ;;  %v21009_v43 = vadd.f32 %v20810_v18, %v20780_v61 }
 0x21c   :  { %16485 = vmatmul.mubr.msk.bf16.gmra.mrb[8].mxu0 %vm4069_vm2, %v17645_v1 }
 0x21d   :  { %16488 = vmatprep.mubr.msk.bf16.mxu0 %vm4069_vm2, %v17647_v59  ;;  %v16382_v30 = vpop.f32.mrb[160].mxu0  ;;  %v10595_v59 = vmax.f32 %v20814_v28, 0.0 }
 0x21e   :  { %v16958_v54 = vpop.f32.mrb[160].mxu1  ;;  %v6488_v60 = vadd.f32 %v20810_v18, %v16382_v30  ;;  %v20828_v47 = vpop.f32.mrb[161].mxu0  ;;  %v20865_v30 = vadd.f32 %v20810_v18, %v20695_v34 }
 0x21f   :  { %v8792_v20 = vadd.f32 %v20810_v18, %v16958_v54  ;;  %v20830_v25 = vpop.f32.mrb[161].mxu1  ;;  %v16383_v31 = vpop.f32.mrb[162].mxu0 }
 0x220   :  { %17061 = vmatmul.mubr.msk.bf16.gmra.mrb[8].mxu1 %vm4069_vm2, %v17646_v32  ;;  %v16959_v24 = vpop.f32.mrb[162].mxu1  ;;  %v10608_v1 = vmax.f32 %v6488_v60, 0.0  ;;  %v6491_v50 = vadd.f32 %v20810_v18, %v16383_v31  ;;  %v20850_v32 = vpop.f32.mrb[163].mxu0 }
 0x221   :  { %17064 = vmatprep.mubr.msk.bf16.mxu1 %vm4069_vm2, %v17648_v41  ;;  %v11184_v23 = vmax.f32 %v8792_v20, 0.0  ;;  %v8795_v5 = vadd.f32 %v20810_v18, %v16959_v24  ;;  %v20852_v38 = vpop.f32.mrb[163].mxu1  ;;  %v20861_v41 = vadd.f32 %v20810_v18, %v20693_v0  ;;  %v20909_v24 = vadd.f32 %v20810_v18, %v20751_v55 }
 0x222   :  { %v20867_v54 = vmax.f32 %v10590_v6, %v10608_v1  ;;  %v10609_v20 = vmax.f32 %v6491_v50, 0.0 }
 0x223   :  { %v20869_v60 = vmax.f32 %v11166_v12, %v11184_v23  ;;  %v11185_v31 = vmax.f32 %v8795_v5, 0.0  ;;  %v17654_v23 = vld [vmem:[%s26754_s0 + $0xd48] sm:$0xff]   ;;  %v10604_v37 = vmax.f32 %v20909_v24, 0.0 }
 0x224   :  { %16489 = vmatmul.mubr.msk.bf16.gmra.mrb[12].mxu0 %vm4069_vm2, %v17649_v11  ;;  %v20878_v6 = vmax.f32 %v10591_v42, %v10609_v20  ;;  %v17653_v11 = vld [vmem:[%s26754_s0 + $0x448] sm:$0xff]   ;;  %v17655_v42 = vld [vmem:[%s26754_s0 + $0x450] sm:$0xff]  }
 0x225   :  { %16492 = vmatprep.mubr.msk.bf16.mxu0 %vm4069_vm2, %v17651_v33  ;;  %v20880_v12 = vmax.f32 %v11167_v3, %v11185_v31  ;;  %v16386_v1 = vpop.f32.mrb[164].mxu0  ;;  %v20896_v3 = vadd.f32 %v20810_v18, %v20705_v2  ;;  %v17656_v31 = vld [vmem:[%s26754_s0 + $0xd50] sm:$0xff]  }
 0x226   :  { %v16962_v33 = vpop.f32.mrb[164].mxu1  ;;  %v6504_v50 = vadd.f32 %v20810_v18, %v16386_v1 }
 0x227   :  { %v8808_v5 = vadd.f32 %v20810_v18, %v16962_v33  ;;  %v8799_v20 = vpop.f32.mrb[165].mxu1  ;;  %v10599_v16 = vmax.f32 %v20896_v3, 0.0 }
 0x228   :  { %17065 = vmatmul.mubr.msk.bf16.gmra.mrb[12].mxu1 %vm4069_vm2, %v17650_v14  ;;  %v20905_v14 = vadd.f32 %v20810_v18, %v20707_v7  ;;  %v8800_v1 = vadd.f32 %v20810_v18, %v8799_v20  ;;  %v16963_v33 = vpop.f32.mrb[166].mxu1  ;;  %v10612_v28 = vmax.f32 %v6504_v50, 0.0 }
 0x229   :  { %17068 = vmatprep.mubr.msk.bf16.mxu1 %vm4069_vm2, %v17652_v57  ;;  %v6495_v57 = vpop.f32.mrb[165].mxu0  ;;  %v11188_v13 = vmax.f32 %v8808_v5, 0.0  ;;  %v8811_v45 = vadd.f32 %v20810_v18, %v16963_v33  ;;  %v8802_v34 = vpop.f32.mrb[167].mxu1 }
 0x22a   :  { %v6496_v2 = vadd.f32 %v20810_v18, %v6495_v57  ;;  %v16387_v21 = vpop.f32.mrb[166].mxu0  ;;  %v11186_v0 = vmax.f32 %v8800_v1, 0.0  ;;  %v8803_v55 = vadd.f32 %v20810_v18, %v8802_v34  ;;  %v20919_v57 = vmax.f32 %v10594_v53, %v10612_v28 }
 0x22b   :  { %v6507_v29 = vadd.f32 %v20810_v18, %v16387_v21  ;;  %v6498_v36 = vpop.f32.mrb[167].mxu0  ;;  %v20923_v50 = vmax.f32 %v11170_v44, %v11188_v13  ;;  %v11189_v21 = vmax.f32 %v8811_v45, 0.0  ;;  %v11175_v45 = vmax.f32 %v20905_v14, 0.0  ;;  %v17658_v13 = vld [vmem:[%s26754_s0 + $0xd58] sm:$0xff]  }
 0x22c   :  { %v10610_v7 = vmax.f32 %v6496_v2, 0.0  ;;  %v6499_v10 = vadd.f32 %v20810_v18, %v6498_v36  ;;  %16493 = vmatmul.mubr.msk.bf16.gmra.mrb[16].mxu0 %vm4069_vm2, %v17653_v11  ;;  %v20932_v36 = vmax.f32 %v11168_v52, %v11186_v0  ;;  %v11187_v19 = vmax.f32 %v8803_v55, 0.0 }
 0x22d   :  { %v10613_v5 = vmax.f32 %v6507_v29, 0.0  ;;  %16496 = vmatprep.mubr.msk.bf16.mxu0 %vm4069_vm2, %v17655_v42  ;;  %v20940_v44 = vmax.f32 %v11171_v63, %v11189_v21  ;;  %v27040_v52 = vmax.f32 %v20731_v58, 0.0  ;;  %v16390_v29 = vpop.f32.mrb[168].mxu0  ;;  %v20963_v63 = vadd.f32 %v20810_v18, %v20753_v35 }
 0x22e   :  { %v20928_v20 = vmax.f32 %v10592_v62, %v10610_v7  ;;  %v10611_v34 = vmax.f32 %v6499_v10, 0.0  ;;  %v6520_v58 = vadd.f32 %v20810_v18, %v16390_v29  ;;  %v6511_v28 = vpop.f32.mrb[169].mxu0  ;;  %v20972_v0 = vadd.f32 %v20810_v18, %v20769_v9 }
 0x22f   :  { %v20938_v53 = vmax.f32 %v10595_v59, %v10613_v5  ;;  %v20953_v10 = vmax.f32 %v27040_v52, %v11187_v19  ;;  %v17659_v59 = vld [vmem:[%s26754_s0 + $0x460] sm:$0xff]   ;;  %v20976_v11 = vadd.f32 %v20810_v18, %v20788_v17  ;;  %v6512_v35 = vadd.f32 %v20810_v18, %v6511_v28  ;;  %v16391_v42 = vpop.f32.mrb[170].mxu0 }
 0x230   :  { %17069 = vmatmul.mubr.msk.bf16.gmra.mrb[16].mxu1 %vm4069_vm2, %v17654_v23  ;;  %v20949_v62 = vmax.f32 %v10593_v27, %v10611_v34  ;;  %v16966_v27 = vpop.f32.mrb[168].mxu1  ;;  %v10616_v3 = vmax.f32 %v6520_v58, 0.0  ;;  %v6523_v9 = vadd.f32 %v20810_v18, %v16391_v42  ;;  %v6514_v1 = vpop.f32.mrb[171].mxu0  ;;  %v17660_v17 = vld [vmem:[%s26754_s0 + $0xd60] sm:$0xff]   ;;  %v27042_v58 = vmax.f32 %v20846_v51, 0.0 }
 0x231   :  { %17072 = vmatprep.mubr.msk.bf16.mxu1 %vm4069_vm2, %v17656_v31  ;;  %v8824_v14 = vadd.f32 %v20810_v18, %v16966_v27  ;;  %v8815_v23 = vpop.f32.mrb[169].mxu1  ;;  %v10614_v7 = vmax.f32 %v6512_v35, 0.0  ;;  %v6515_v5 = vadd.f32 %v20810_v18, %v6514_v1  ;;  %v27043_v28 = vmax.f32 %v20746_v8, 0.0 }
 0x232   :  { %v8816_v31 = vadd.f32 %v20810_v18, %v8815_v23  ;;  %v16967_v2 = vpop.f32.mrb[170].mxu1  ;;  %v20993_v34 = vmax.f32 %v27041_v48, %v10616_v3  ;;  %v10617_v52 = vmax.f32 %v6523_v9, 0.0  ;;  %v10602_v8 = vmax.f32 %v20967_v39, 0.0  ;;  %v17663_v39 = vld [vmem:[%s26754_s0 + $0x470] sm:$0xff]  }
 0x233   :  { %v11192_v33 = vmax.f32 %v8824_v14, 0.0  ;;  %v8827_v55 = vadd.f32 %v20810_v18, %v16967_v2  ;;  %v8818_v21 = vpop.f32.mrb[171].mxu1  ;;  %v21003_v14 = vmax.f32 %v27043_v28, %v10614_v7  ;;  %v10615_v23 = vmax.f32 %v6515_v5, 0.0 }
 0x234   :  { %v11190_v19 = vmax.f32 %v8816_v31, 0.0  ;;  %v8819_v29 = vadd.f32 %v20810_v18, %v8818_v21  ;;  %16497 = vmatmul.mubr.msk.bf16.gmra.mrb[20].mxu0 %vm4069_vm2, %v17657_v40  ;;  %v27044_v40 = vmax.f32 %v20749_v26, 0.0  ;;  %v21015_v51 = vmax.f32 %v10599_v16, %v10617_v52  ;;  %v17661_v26 = vld [vmem:[%s26754_s0 + $0x468] sm:$0xff]  }
 0x235   :  { %v20999_v27 = vmax.f32 %v27042_v58, %v11192_v33  ;;  %v11193_v35 = vmax.f32 %v8827_v55, 0.0  ;;  %16500 = vmatprep.mubr.msk.bf16.mxu0 %vm4069_vm2, %v17659_v59  ;;  %v11178_v31 = vmax.f32 %v20972_v0, 0.0  ;;  %v27045_v59 = vmax.f32 %v20775_v46, 0.0  ;;  %v16394_v61 = vpop.f32.mrb[172].mxu0  ;;  %v17662_v16 = vld [vmem:[%s26754_s0 + $0xd68] sm:$0xff]  }
 0x236   :  { %v21013_v42 = vmax.f32 %v27044_v40, %v11190_v19  ;;  %v11191_v3 = vmax.f32 %v8819_v29, 0.0  ;;  %v11179_v0 = vmax.f32 %v20982_v4, 0.0  ;;  %v27046_v46 = vmax.f32 %v20778_v22, 0.0  ;;  %v6527_v33 = vpop.f32.mrb[173].mxu0 }
 0x237   :  { %v21024_v9 = vmax.f32 %v27045_v59, %v10615_v23  ;;  %v6536_v1 = vadd.f32 %v20810_v18, %v16394_v61  ;;  %v21044_v7 = vadd.f32 %v20810_v18, %v20828_v47  ;;  %v21048_v55 = vadd.f32 %v20810_v18, %v20830_v25  ;;  %v16395_v22 = vpop.f32.mrb[174].mxu0  ;;  %v17664_v25 = vld [vmem:[%s26754_s0 + $0xd70] sm:$0xff]  }
 0x238   :  { %17073 = vmatmul.mubr.msk.bf16.gmra.mrb[20].mxu1 %vm4069_vm2, %v17658_v13  ;;  %v21020_v13 = vmax.f32 %v11175_v45, %v11193_v35  ;;  %v10603_v45 = vmax.f32 %v20976_v11, 0.0  ;;  %v21039_v2 = vmax.f32 %v27046_v46, %v11191_v3  ;;  %v6528_v4 = vadd.f32 %v20810_v18, %v6527_v33  ;;  %v6530_v29 = vpop.f32.mrb[175].mxu0 }
 0x239   :  { %17076 = vmatprep.mubr.msk.bf16.mxu1 %vm4069_vm2, %v17660_v17  ;;  %v16970_v17 = vpop.f32.mrb[172].mxu1  ;;  %v21054_v21 = vadd.f32 %v20810_v18, %v20850_v32  ;;  %v10620_v48 = vmax.f32 %v6536_v1, 0.0  ;;  %v6539_v47 = vadd.f32 %v20810_v18, %v16395_v22  ;;  %v6531_v23 = vadd.f32 %v20810_v18, %v6530_v29 }
 0x23a   :  { %27047 = vst [vmem:[#allocation2_spill] sm:$0xff] %v21039_v2  ;;  %v8840_v11 = vadd.f32 %v20810_v18, %v16970_v17  ;;  %v8831_v5 = vpop.f32.mrb[173].mxu1  ;;  %v10618_v28 = vmax.f32 %v6528_v4, 0.0  ;;  %v27050_v1 = vmax.f32 %v20834_v15, 0.0  ;;  %v27052_v4 = vmax.f32 %v20838_v56, 0.0  ;;  %v17665_v15 = vld [vmem:[%s26754_s0 + $0x478] sm:$0xff]  }
 0x23b   :  { %v8832_v19 = vadd.f32 %v20810_v18, %v8831_v5  ;;  %v16971_v52 = vpop.f32.mrb[174].mxu1  ;;  %v21063_v32 = vmax.f32 %v10602_v8, %v10620_v48  ;;  %v10621_v59 = vmax.f32 %v6539_v47, 0.0  ;;  %v8787_v8 = vadd.f32 %v20810_v18, %v20852_v38  ;;  %v17666_v48 = vld [vmem:[%s26754_s0 + $0xd78] sm:$0xff]  }
 0x23c   :  { %v11196_v58 = vmax.f32 %v8840_v11, 0.0  ;;  %v8843_v35 = vadd.f32 %v20810_v18, %v16971_v52  ;;  %v8834_v40 = vpop.f32.mrb[175].mxu1  ;;  %16501 = vmatmul.mubr.msk.bf16.gmra.mrb[24].mxu0 %vm4069_vm2, %v17661_v26  ;;  %v21071_v17 = vmax.f32 %v27050_v1, %v10618_v28  ;;  %v10619_v11 = vmax.f32 %v6531_v23, 0.0 }
 0x23d   :  { %27048 = vst [vmem:[#allocation27_spill] sm:$0xff] %v21063_v32  ;;  %v11194_v3 = vmax.f32 %v8832_v19, 0.0  ;;  %v8835_v61 = vadd.f32 %v20810_v18, %v8834_v40  ;;  %16504 = vmatprep.mubr.msk.bf16.mxu0 %vm4069_vm2, %v17663_v39  ;;  %v21081_v26 = vmax.f32 %v10603_v45, %v10621_v59  ;;  %v8779_v39 = vadd.f32 %v20810_v18, %v20782_v49 }
 0x23e   :  { %v21067_v46 = vmax.f32 %v11178_v31, %v11196_v58  ;;  %27051 = vst [vmem:[#allocation11_spill] sm:$0xff] %v21071_v17  ;;  %v11197_v33 = vmax.f32 %v8843_v35, 0.0  ;;  %v27056_v56 = vmax.f32 %v20861_v41, 0.0  ;;  %v16398_v45 = vpop.f32.mrb[176].mxu0  ;;  %v10605_v19 = vmax.f32 %v21009_v43, 0.0  ;;  %v17667_v41 = vld [vmem:[%s26754_s0 + $0x480] sm:$0xff]  }
 0x23f   :  { %v21079_v5 = vmax.f32 %v27052_v4, %v11194_v3  ;;  %27054 = vst [vmem:[#allocation25_spill] sm:$0xff] %v21081_v26  ;;  %v11195_v31 = vmax.f32 %v8835_v61, 0.0  ;;  %v10606_v47 = vmax.f32 %v21044_v7, 0.0  ;;  %v6552_v49 = vadd.f32 %v20810_v18, %v16398_v45  ;;  %v6543_v29 = vpop.f32.mrb[177].mxu0 }
 0x240   :  { %27049 = vst [vmem:[#allocation28_spill] sm:$0xff] %v21067_v46  ;;  %17077 = vmatmul.mubr.msk.bf16.gmra.mrb[24].mxu1 %vm4069_vm2, %v17662_v16  ;;  %v11180_v16 = vmax.f32 %v20963_v63, 0.0  ;;  %v21090_v22 = vmax.f32 %v11179_v0, %v11197_v33  ;;  %v21094_v38 = vmax.f32 %v27056_v56, %v10619_v11  ;;  %v27058_v63 = vmax.f32 %v20865_v30, 0.0  ;;  %v16974_v0 = vpop.f32.mrb[176].mxu1  ;;  %v16399_v35 = vpop.f32.mrb[178].mxu0 }
 0x241   :  { %27053 = vst [vmem:[#allocation12_spill] sm:$0xff] %v21079_v5  ;;  %17080 = vmatprep.mubr.msk.bf16.mxu1 %vm4069_vm2, %v17664_v25  ;;  %v17668_v25 = vld [vmem:[%s26754_s0 + $0xd80] sm:$0xff]   ;;  %v11182_v43 = vmax.f32 %v21048_v55, 0.0  ;;  %v10607_v7 = vmax.f32 %v21054_v21, 0.0  ;;  %v8856_v30 = vadd.f32 %v20810_v18, %v16974_v0  ;;  %v6544_v58 = vadd.f32 %v20810_v18, %v6543_v29  ;;  %v8847_v28 = vpop.f32.mrb[177].mxu1  ;;  %v6546_v1 = vpop.f32.mrb[179].mxu0 }
 0x242   :  { %27055 = vst [vmem:[#allocation26_spill] sm:$0xff] %v21090_v22  ;;  %27057 = vst [vmem:[#allocation19_spill] sm:$0xff] %v21094_v38  ;;  %v21103_v52 = vmax.f32 %v27058_v63, %v11195_v31  ;;  %v11183_v23 = vmax.f32 %v8787_v8, 0.0  ;;  %v10624_v40 = vmax.f32 %v6552_v49, 0.0  ;;  %v8848_v3 = vadd.f32 %v20810_v18, %v8847_v28  ;;  %v16975_v61 = vpop.f32.mrb[178].mxu1  ;;  %v17686_v38 = vld [vmem:[%s26754_s0 + $0xdc8] sm:$0xff]  }
 0x243   :  { %v6555_v59 = vadd.f32 %v20810_v18, %v16399_v35  ;;  %v11200_v33 = vmax.f32 %v8856_v30, 0.0  ;;  %v10622_v11 = vmax.f32 %v6544_v58, 0.0  ;;  %v8859_v55 = vadd.f32 %v20810_v18, %v16975_v61  ;;  %v8850_v4 = vpop.f32.mrb[179].mxu1 }
 0x244   :  { %27059 = vst [vmem:[#allocation20_spill] sm:$0xff] %v21103_v52  ;;  %v6547_v21 = vadd.f32 %v20810_v18, %v6546_v1  ;;  %v21120_v31 = vmax.f32 %v10606_v47, %v10624_v40  ;;  %v11198_v56 = vmax.f32 %v8848_v3, 0.0  ;;  %v8851_v8 = vadd.f32 %v20810_v18, %v8850_v4  ;;  %16505 = vmatmul.mubr.msk.bf16.gmra.mrb[28].mxu0 %vm4069_vm2, %v17665_v15  ;;  %v17675_v4 = vld [vmem:[%s26754_s0 + $0x4a0] sm:$0xff]  }
 0x245   :  { %v10625_v45 = vmax.f32 %v6555_v59, 0.0  ;;  %v21124_v63 = vmax.f32 %v11182_v43, %v11200_v33  ;;  %v21128_v49 = vmax.f32 %v10604_v37, %v10622_v11  ;;  %v11201_v0 = vmax.f32 %v8859_v55, 0.0  ;;  %16508 = vmatprep.mubr.msk.bf16.mxu0 %vm4069_vm2, %v17667_v41  ;;  %v17670_v41 = vld [vmem:[%s26754_s0 + $0xd88] sm:$0xff]   ;;  %v17673_v33 = vld [vmem:[%s26754_s0 + $0x498] sm:$0xff]  }
 0x246   :  { %27060 = vst [vmem:[#allocation3_spill] sm:$0xff] %v21120_v31  ;;  %v10623_v29 = vmax.f32 %v6547_v21, 0.0  ;;  %v11181_v47 = vmax.f32 %v8779_v39, 0.0  ;;  %v21132_v30 = vmax.f32 %v11180_v16, %v11198_v56  ;;  %v11199_v28 = vmax.f32 %v8851_v8, 0.0  ;;  %v17669_v39 = vld [vmem:[%s26754_s0 + $0x488] sm:$0xff]   ;;  %v17674_v21 = vld [vmem:[%s26754_s0 + $0xd98] sm:$0xff]  }
 0x247   :  { %27061 = vst [vmem:[#allocation4_spill] sm:$0xff] %v21124_v63  ;;  %27062 = vst [vmem:[#allocation13_spill] sm:$0xff] %v21128_v49  ;;  %v21134_v58 = vmax.f32 %v10607_v7, %v10625_v45  ;;  %v21137_v15 = vmax.f32 %v11183_v23, %v11201_v0  ;;  %v16402_v24 = vpop.f32.mrb[180].mxu0  ;;  %v17672_v23 = vld [vmem:[%s26754_s0 + $0xd90] sm:$0xff]   ;;  %v17676_v8 = vld [vmem:[%s26754_s0 + $0xda0] sm:$0xff]  }
 0x248   :  { %17081 = vmatmul.mubr.msk.bf16.gmra.mrb[28].mxu1 %vm4069_vm2, %v17666_v48  ;;  %27063 = vst [vmem:[#allocation14_spill] sm:$0xff] %v21132_v30  ;;  %v21139_v43 = vmax.f32 %v10605_v19, %v10623_v29  ;;  %v21141_v37 = vmax.f32 %v11181_v47, %v11199_v28  ;;  %v6559_v40 = vpop.f32.mrb[181].mxu0  ;;  %v17671_v19 = vld [vmem:[%s26754_s0 + $0x490] sm:$0xff]   ;;  %v21172_v0 = vadd.f32 %v20810_v18, %v16402_v24 }
 0x249   :  { %27064 = vst [vmem:[#allocation5_spill] sm:$0xff] %v21134_v58  ;;  %17084 = vmatprep.mubr.msk.bf16.mxu1 %vm4069_vm2, %v17668_v25  ;;  %27065 = vst [vmem:[#allocation6_spill] sm:$0xff] %v21137_v15  ;;  %v16978_v35 = vpop.f32.mrb[180].mxu1  ;;  %v16403_v48 = vpop.f32.mrb[182].mxu0  ;;  %v21178_v28 = vadd.f32 %v20810_v18, %v6559_v40 }
 0x24a   :  { %27066 = vst [vmem:[#allocation15_spill] sm:$0xff] %v21139_v43  ;;  %27067 = vst [vmem:[#allocation16_spill] sm:$0xff] %v21141_v37  ;;  %v8863_v16 = vpop.f32.mrb[181].mxu1  ;;  %v6562_v7 = vpop.f32.mrb[183].mxu0  ;;  %v21175_v47 = vadd.f32 %v20810_v18, %v16978_v35  ;;  %v17677_v35 = vld [vmem:[%s26754_s0 + $0x4a8] sm:$0xff]  }
 0x24b   :  { %v16979_v25 = vpop.f32.mrb[182].mxu1 }
 0x24c   :  { %v8866_v3 = vpop.f32.mrb[183].mxu1  ;;  %16509 = vmatmul.mubr.msk.bf16.gmra.mrb[32].mxu0 %vm4069_vm2, %v17669_v39  ;;  %v21182_v39 = vadd.f32 %v20810_v18, %v8863_v16  ;;  %v21190_v24 = vadd.f32 %v20810_v18, %v16979_v25  ;;  %v21198_v16 = vadd.f32 %v20810_v18, %v6562_v7 }
 0x24d   :  { %16512 = vmatprep.mubr.msk.bf16.mxu0 %vm4069_vm2, %v17671_v19 }
 0x24f   :  { %v16406_v59 = vpop.f32.mrb[184].mxu0 }
 0x250   :  { %17085 = vmatmul.mubr.msk.bf16.gmra.mrb[32].mxu1 %vm4069_vm2, %v17670_v41  ;;  %v6575_v1 = vpop.f32.mrb[185].mxu0  ;;  %v21185_v41 = vadd.f32 %v20810_v18, %v16403_v48  ;;  %v21201_v48 = vadd.f32 %v20810_v18, %v8866_v3  ;;  %v21204_v19 = vadd.f32 %v20810_v18, %v16406_v59  ;;  %v17678_v3 = vld [vmem:[%s26754_s0 + $0xda8] sm:$0xff]   ;;  %v17679_v59 = vld [vmem:[%s26754_s0 + $0x4b0] sm:$0xff]  }
 0x251   :  { %17088 = vmatprep.mubr.msk.bf16.mxu1 %vm4069_vm2, %v17672_v23  ;;  %v16982_v61 = vpop.f32.mrb[184].mxu1  ;;  %v16407_v55 = vpop.f32.mrb[186].mxu0 }
 0x252   :  { %v8879_v11 = vpop.f32.mrb[185].mxu1  ;;  %v6578_v45 = vpop.f32.mrb[187].mxu0 }
 0x253   :  { %v16983_v56 = vpop.f32.mrb[186].mxu1  ;;  %v21233_v58 = vadd.f32 %v20810_v18, %v6578_v45 }
 0x254   :  { %v8882_v29 = vpop.f32.mrb[187].mxu1  ;;  %16513 = vmatmul.mubr.msk.bf16.gmra.mrb[36].mxu0 %vm4069_vm2, %v17673_v33  ;;  %v21230_v15 = vadd.f32 %v20810_v18, %v16983_v56 }
 0x255   :  { %16516 = vmatprep.mubr.msk.bf16.mxu0 %vm4069_vm2, %v17675_v4  ;;  %v21212_v4 = vadd.f32 %v20810_v18, %v6575_v1  ;;  %v21226_v1 = vadd.f32 %v20810_v18, %v16407_v55  ;;  %v21236_v25 = vadd.f32 %v20810_v18, %v8882_v29 }
 0x257   :  { %v16410_v23 = vpop.f32.mrb[188].mxu0 }
 0x258   :  { %17089 = vmatmul.mubr.msk.bf16.gmra.mrb[36].mxu1 %vm4069_vm2, %v17674_v21  ;;  %v21209_v21 = vadd.f32 %v20810_v18, %v16982_v61  ;;  %v6591_v7 = vpop.f32.mrb[189].mxu0  ;;  %v21223_v61 = vadd.f32 %v20810_v18, %v8879_v11  ;;  %v17680_v11 = vld [vmem:[%s26754_s0 + $0xdb0] sm:$0xff]   ;;  %v21245_v56 = vadd.f32 %v20810_v18, %v16410_v23 }
 0x259   :  { %17092 = vmatprep.mubr.msk.bf16.mxu1 %vm4069_vm2, %v17676_v8  ;;  %v16986_v8 = vpop.f32.mrb[188].mxu1  ;;  %v16411_v37 = vpop.f32.mrb[190].mxu0 }
 0x25a   :  { %v8895_v33 = vpop.f32.mrb[189].mxu1  ;;  %v6594_v30 = vpop.f32.mrb[191].mxu0  ;;  %27068 = vst [vmem:[#allocation7_spill] sm:$0xff] %v21245_v56  ;;  %v21258_v63 = vadd.f32 %v20810_v18, %v16986_v8  ;;  %v21272_v43 = vadd.f32 %v20810_v18, %v16411_v37  ;;  %v17682_v8 = vld [vmem:[%s26754_s0 + $0xdb8] sm:$0xff]  }
 0x25b   :  { %v16987_v40 = vpop.f32.mrb[190].mxu1 }
 0x25c   :  { %v8898_v45 = vpop.f32.mrb[191].mxu1  ;;  %16517 = vmatmul.mubr.msk.bf16.gmra.mrb[40].mxu0 %vm4069_vm2, %v17677_v35  ;;  %27069 = vst [vmem:[#allocation8_spill] sm:$0xff] %v21258_v63  ;;  %v17681_v35 = vld [vmem:[%s26754_s0 + $0x4b8] sm:$0xff]   ;;  %27070 = vst [vmem:[#allocation21_spill] sm:$0xff] %v21272_v43  ;;  %v21281_v52 = vadd.f32 %v20810_v18, %v16987_v40 }
 0x25d   :  { %16520 = vmatprep.mubr.msk.bf16.mxu0 %vm4069_vm2, %v17679_v59  ;;  %v21269_v59 = vadd.f32 %v20810_v18, %v8895_v33  ;;  %v21287_v37 = vadd.f32 %v20810_v18, %v8898_v45 }
 0x25e   :  { %27071 = vst [vmem:[#allocation22_spill] sm:$0xff] %v21281_v52 }
 0x25f   :  { %v16414_v49 = vpop.f32.mrb[192].mxu0 }
 0x260   :  { %17093 = vmatmul.mubr.msk.bf16.gmra.mrb[40].mxu1 %vm4069_vm2, %v17678_v3  ;;  %v21266_v3 = vadd.f32 %v20810_v18, %v6591_v7  ;;  %v21284_v7 = vadd.f32 %v20810_v18, %v6594_v30  ;;  %v6607_v23 = vpop.f32.mrb[193].mxu0  ;;  %v21290_v31 = vadd.f32 %v20810_v18, %v16414_v49  ;;  %v17684_v49 = vld [vmem:[%s26754_s0 + $0xdc0] sm:$0xff]  }
 0x261   :  { %17096 = vmatprep.mubr.msk.bf16.mxu1 %vm4069_vm2, %v17680_v11  ;;  %v17683_v11 = vld [vmem:[%s26754_s0 + $0x4c0] sm:$0xff]   ;;  %v16990_v33 = vpop.f32.mrb[192].mxu1  ;;  %v16415_v55 = vpop.f32.mrb[194].mxu0  ;;  %v21297_v40 = vadd.f32 %v20810_v18, %v6607_v23 }
 0x262   :  { %27072 = vst [vmem:[#allocation9_spill] sm:$0xff] %v21290_v31  ;;  %v8911_v29 = vpop.f32.mrb[193].mxu1  ;;  %v21294_v22 = vadd.f32 %v20810_v18, %v16990_v33  ;;  %v6610_v5 = vpop.f32.mrb[195].mxu0  ;;  %v21309_v33 = vadd.f32 %v20810_v18, %v16415_v55 }
 0x263   :  { %27074 = vst [vmem:[#allocation17_spill] sm:$0xff] %v21297_v40  ;;  %v21300_v30 = vadd.f32 %v20810_v18, %v8911_v29  ;;  %v16991_v26 = vpop.f32.mrb[194].mxu1 }
 0x264   :  { %27073 = vst [vmem:[#allocation10_spill] sm:$0xff] %v21294_v22  ;;  %27076 = vst [vmem:[#allocation23_spill] sm:$0xff] %v21309_v33  ;;  %v8914_v23 = vpop.f32.mrb[195].mxu1  ;;  %16521 = vmatmul.mubr.msk.bf16.gmra.mrb[44].mxu0 %vm4069_vm2, %v17681_v35  ;;  %v21322_v46 = vadd.f32 %v20810_v18, %v16991_v26  ;;  %v17685_v35 = vld [vmem:[%s26754_s0 + $0x4c8] sm:$0xff]   ;;  %v17687_v26 = vld [vmem:[%s26754_s0 + $0x4d0] sm:$0xff]  }
 0x265   :  { %27075 = vst [vmem:[#allocation18_spill] sm:$0xff] %v21300_v30  ;;  %16524 = vmatprep.mubr.msk.bf16.mxu0 %vm4069_vm2, %v17683_v11 }
 0x266   :  { %27077 = vst [vmem:[#allocation24_spill] sm:$0xff] %v21322_v46 }
 0x267   :  { %v16418_v11 = vpop.f32.mrb[196].mxu0 }
 0x268   :  { %17097 = vmatmul.mubr.msk.bf16.gmra.mrb[44].mxu1 %vm4069_vm2, %v17682_v8  ;;  %v21330_v8 = vadd.f32 %v20810_v18, %v6610_v5  ;;  %v6632_v17 = vadd.f32 %v20810_v18, %v16418_v11  ;;  %v6623_v63 = vpop.f32.mrb[197].mxu0  ;;  %v17688_v5 = vld [vmem:[%s26754_s0 + $0xdd0] sm:$0xff]  }
 0x269   :  { %17100 = vmatprep.mubr.msk.bf16.mxu1 %vm4069_vm2, %v17684_v49  ;;  %v21339_v49 = vadd.f32 %v20810_v18, %v8914_v23  ;;  %v16994_v55 = vpop.f32.mrb[196].mxu1  ;;  %v21347_v29 = vadd.f32 %v20810_v18, %v6623_v63  ;;  %v16419_v33 = vpop.f32.mrb[198].mxu0 }
 0x26a   :  { %v8936_v32 = vadd.f32 %v20810_v18, %v16994_v55  ;;  %v8927_v45 = vpop.f32.mrb[197].mxu1  ;;  %v10644_v31 = vmax.f32 %v6632_v17, 0.0  ;;  %v6635_v11 = vadd.f32 %v20810_v18, %v16419_v33  ;;  %v6626_v43 = vpop.f32.mrb[199].mxu0  ;;  %v27078_v17 = vmax.f32 %v21178_v28, 0.0 }
 0x26b   :  { %v21351_v23 = vadd.f32 %v20810_v18, %v8927_v45  ;;  %v16995_v52 = vpop.f32.mrb[198].mxu1  ;;  %v21357_v63 = vadd.f32 %v20810_v18, %v6626_v43  ;;  %v11215_v2 = vmax.f32 %v21339_v49, 0.0  ;;  %v27079_v33 = vmax.f32 %v21182_v39, 0.0  ;;  %v17689_v39 = vld [vmem:[%s26754_s0 + $0x4d8] sm:$0xff]   ;;  %v27115_v49 = vld [vmem:[#allocation26_spill] sm:$0xff] }
 0x26c   :  { %v11220_v30 = vmax.f32 %v8936_v32, 0.0  ;;  %v8939_v55 = vadd.f32 %v20810_v18, %v16995_v52  ;;  %v8930_v40 = vpop.f32.mrb[199].mxu1  ;;  %v11922_v22 = vmax.f32 %v27078_v17, %v10644_v31  ;;  %v10645_v45 = vmax.f32 %v6635_v11, 0.0  ;;  %16525 = vmatmul.mubr.msk.bf16.gmra.mrb[48].mxu0 %vm4069_vm2, %v17685_v35 }
 0x26d   :  { %v21363_v46 = vadd.f32 %v20810_v18, %v8930_v40  ;;  %v10642_v52 = vmax.f32 %v21347_v29, 0.0  ;;  %16528 = vmatprep.mubr.msk.bf16.mxu0 %vm4069_vm2, %v17687_v26  ;;  %v27080_v28 = vmax.f32 %v21198_v16, 0.0  ;;  %v17690_v16 = vld [vmem:[%s26754_s0 + $0xdd8] sm:$0xff]   ;;  %v17691_v26 = vld [vmem:[%s26754_s0 + $0x4e0] sm:$0xff]   ;;  %v27120_v29 = vmax.f32 %v21351_v23, 0.0  ;;  %v27127_v23 = vld [vmem:[#allocation4_spill] sm:$0xff] }
 0x26e   :  { %v12066_v32 = vmax.f32 %v27079_v33, %v11220_v30  ;;  %v11221_v56 = vmax.f32 %v8939_v55, 0.0  ;;  %v12210_v43 = vmax.f32 %v20867_v54, %v11922_v22 }
 0x26f   :  { %v11923_v18 = vmax.f32 %v27080_v28, %v10645_v45  ;;  %v16422_v22 = vpop.f32.mrb[200].mxu0 }
 0x270   :  { %17101 = vmatmul.mubr.msk.bf16.gmra.mrb[48].mxu1 %vm4069_vm2, %v17686_v38  ;;  %v12354_v30 = vmax.f32 %v20869_v60, %v12066_v32  ;;  %v27081_v38 = vmax.f32 %v21201_v48, 0.0  ;;  %v21394_v60 = vld [vmem:[%s26755_s2] ss:$0 sm:$0xff]  ;;  %v6639_v55 = vpop.f32.mrb[201].mxu0 }
 0x271   :  { %17104 = vmatprep.mubr.msk.bf16.mxu1 %vm4069_vm2, %v17688_v5  ;;  %v15386_v5 = vpack.c.bf16 %v12210_v43, %v12210_v43  ;;  %v12211_v11 = vmax.f32 %v20878_v6, %v11923_v18  ;;  %v6648_v48 = vadd.f32 %v21394_v60, %v16422_v22  ;;  %v6640_v32 = vadd.f32 %v21394_v60, %v6639_v55  ;;  %v16423_v43 = vpop.f32.mrb[202].mxu0 }
 0x272   :  { %v12067_v35 = vmax.f32 %v27081_v38, %v11221_v56  ;;  %v16998_v56 = vpop.f32.mrb[200].mxu1  ;;  %v15530_v17 = vpack.c.bf16 %v12354_v30, %v12354_v30  ;;  %v6651_v22 = vadd.f32 %v21394_v60, %v16423_v43  ;;  %v6642_v54 = vpop.f32.mrb[203].mxu0  ;;  %v27082_v55 = vmax.f32 %v21212_v4, 0.0 }
 0x273   :  { %v8952_v33 = vadd.f32 %v21394_v60, %v16998_v56  ;;  %v8943_v28 = vpop.f32.mrb[201].mxu1  ;;  %13651 = vst.msk [vmem:[%s26756_s3 + $0x90] sm:$0xf] %vm13614_vm3, %v15386_v5  ;;  %v15387_v6 = vpack.c.bf16 %v12211_v11, %v12211_v11  ;;  %v10648_v18 = vmax.f32 %v6648_v48, 0.0  ;;  %v10646_v5 = vmax.f32 %v6640_v32, 0.0 }
 0x274   :  { %v12355_v45 = vmax.f32 %v20880_v12, %v12067_v35  ;;  %v8944_v38 = vadd.f32 %v21394_v60, %v8943_v28  ;;  %v16999_v30 = vpop.f32.mrb[202].mxu1  ;;  %v17692_v12 = vld [vmem:[%s26754_s0 + $0xde0] sm:$0xff]   ;;  %13795 = vst.msk [vmem:[%s26756_s3 + $0x2d0] sm:$0xf] %vm13614_vm3, %v15530_v17  ;;  %v10649_v40 = vmax.f32 %v6651_v22, 0.0  ;;  %v6643_v31 = vadd.f32 %v21394_v60, %v6642_v54  ;;  %16529 = vmatmul.mubr.msk.bf16.gmra.mrb[52].mxu0 %vm4069_vm2, %v17689_v39 }
 0x275   :  { %v11224_v56 = vmax.f32 %v8952_v33, 0.0  ;;  %v8955_v11 = vadd.f32 %v21394_v60, %v16999_v30  ;;  %v8946_v48 = vpop.f32.mrb[203].mxu1  ;;  %13652 = vst.msk [vmem:[%s26756_s3 + $0x94] sm:$0xf] %vm13614_vm3, %v15387_v6  ;;  %v11926_v28 = vmax.f32 %v27082_v55, %v10648_v18  ;;  %v27083_v17 = vmax.f32 %v21223_v61, 0.0  ;;  %16532 = vmatprep.mubr.msk.bf16.mxu0 %vm4069_vm2, %v17691_v26 }
 0x276   :  { %v15531_v35 = vpack.c.bf16 %v12355_v45, %v12355_v45  ;;  %v11222_v43 = vmax.f32 %v8944_v38, 0.0  ;;  %v27084_v33 = vmax.f32 %v21172_v0, 0.0  ;;  %v8947_v4 = vadd.f32 %v21394_v60, %v8946_v48  ;;  %v17693_v0 = vld [vmem:[%s26754_s0 + $0x4e8] sm:$0xff]  }
 0x277   :  { %v12070_v45 = vmax.f32 %v27083_v17, %v11224_v56  ;;  %v11225_v6 = vmax.f32 %v8955_v11, 0.0  ;;  %v12214_v39 = vmax.f32 %v20919_v57, %v11926_v28  ;;  %v27085_v54 = vmax.f32 %v21175_v47, 0.0  ;;  %v16426_v47 = vpop.f32.mrb[204].mxu0  ;;  %v17696_v11 = vld [vmem:[%s26754_s0 + $0xdf0] sm:$0xff]  }
 0x278   :  { %13796 = vst.msk [vmem:[%s26756_s3 + $0x2d4] sm:$0xf] %vm13614_vm3, %v15531_v35  ;;  %v11924_v32 = vmax.f32 %v27084_v33, %v10646_v5  ;;  %17105 = vmatmul.mubr.msk.bf16.gmra.mrb[52].mxu1 %vm4069_vm2, %v17690_v16  ;;  %v27086_v38 = vmax.f32 %v21233_v58, 0.0  ;;  %v10647_v61 = vmax.f32 %v6643_v31, 0.0  ;;  %v27087_v26 = vmax.f32 %v21236_v25, 0.0  ;;  %v17694_v58 = vld [vmem:[%s26754_s0 + $0xde8] sm:$0xff]  }
 0x279   :  { %v12068_v18 = vmax.f32 %v27085_v54, %v11222_v43  ;;  %17108 = vmatprep.mubr.msk.bf16.mxu1 %vm4069_vm2, %v17692_v12  ;;  %v12358_v30 = vmax.f32 %v20923_v50, %v12070_v45  ;;  %v11223_v35 = vmax.f32 %v8947_v4, 0.0  ;;  %v17695_v31 = vld [vmem:[%s26754_s0 + $0x4f0] sm:$0xff]   ;;  %v17002_v25 = vpop.f32.mrb[204].mxu1  ;;  %v6655_v5 = vpop.f32.mrb[205].mxu0  ;;  %v27089_v43 = vmax.f32 %v21190_v24, 0.0 }
 0x27a   :  { %v11927_v22 = vmax.f32 %v27086_v38, %v10649_v40  ;;  %v12212_v16 = vmax.f32 %v20928_v20, %v11924_v32  ;;  %v12071_v57 = vmax.f32 %v27087_v26, %v11225_v6  ;;  %v15390_v40 = vpack.c.bf16 %v12214_v39, %v12214_v39  ;;  %v8959_v45 = vpop.f32.mrb[205].mxu1 }
 0x27b   :  { %v12356_v12 = vmax.f32 %v20932_v36, %v12068_v18  ;;  %v27088_v20 = vmax.f32 %v21185_v41, 0.0  ;;  %v15534_v48 = vpack.c.bf16 %v12358_v30, %v12358_v30  ;;  %v12069_v17 = vmax.f32 %v27089_v43, %v11223_v35  ;;  %v16427_v36 = vpop.f32.mrb[206].mxu0  ;;  %v17003_v6 = vpop.f32.mrb[206].mxu1 }
 0x27c   :  { %v12215_v50 = vmax.f32 %v20938_v53, %v11927_v22  ;;  %v15388_v55 = vpack.c.bf16 %v12212_v16, %v12212_v16  ;;  %v12359_v28 = vmax.f32 %v20940_v44, %v12071_v57  ;;  %13655 = vst.msk [vmem:[%s26756_s3 + $0xa0] sm:$0xf] %vm13614_vm3, %v15390_v40  ;;  %v6664_v32 = vadd.f32 %v21394_v60, %v16426_v47  ;;  %v6658_v4 = vpop.f32.mrb[207].mxu0  ;;  %v8962_v54 = vpop.f32.mrb[207].mxu1 }
 0x27d   :  { %v11925_v56 = vmax.f32 %v27088_v20, %v10647_v61  ;;  %v15532_v53 = vpack.c.bf16 %v12356_v12, %v12356_v12  ;;  %13799 = vst.msk [vmem:[%s26756_s3 + $0x2e0] sm:$0xf] %vm13614_vm3, %v15534_v48  ;;  %v12357_v24 = vmax.f32 %v20953_v10, %v12069_v17  ;;  %v8968_v39 = vadd.f32 %v21394_v60, %v17002_v25 }
 0x27e   :  { %v15391_v41 = vpack.c.bf16 %v12215_v50, %v12215_v50  ;;  %13653 = vst.msk [vmem:[%s26756_s3 + $0x98] sm:$0xf] %vm13614_vm3, %v15388_v55  ;;  %v15535_v44 = vpack.c.bf16 %v12359_v28, %v12359_v28  ;;  %v10652_v38 = vmax.f32 %v6664_v32, 0.0  ;;  %v8960_v22 = vadd.f32 %v21394_v60, %v8959_v45  ;;  %16533 = vmatmul.mubr.msk.bf16.gmra.mrb[56].mxu0 %vm4069_vm2, %v17693_v0 }
 0x27f   :  { %v12213_v33 = vmax.f32 %v20949_v62, %v11925_v56  ;;  %v6656_v62 = vadd.f32 %v21394_v60, %v6655_v5  ;;  %13797 = vst.msk [vmem:[%s26756_s3 + $0x2d8] sm:$0xf] %vm13614_vm3, %v15532_v53  ;;  %v6667_v10 = vadd.f32 %v21394_v60, %v16427_v36  ;;  %v15533_v61 = vpack.c.bf16 %v12357_v24, %v12357_v24  ;;  %v16430_v56 = vpop.f32.mrb[208].mxu0  ;;  %v17700_v24 = vld [vmem:[%s26754_s0 + $0xe00] sm:$0xff]  }
 0x280   :  { %13656 = vst.msk [vmem:[%s26756_s3 + $0xa4] sm:$0xf] %vm13614_vm3, %v15391_v41  ;;  %13800 = vst.msk [vmem:[%s26756_s3 + $0x2e4] sm:$0xf] %vm13614_vm3, %v15535_v44  ;;  %v11228_v30 = vmax.f32 %v8968_v39, 0.0  ;;  %v8971_v26 = vadd.f32 %v21394_v60, %v17003_v6  ;;  %17109 = vmatmul.mubr.msk.bf16.gmra.mrb[56].mxu1 %vm4069_vm2, %v17694_v58  ;;  %16536 = vmatprep.mubr.msk.bf16.mxu0 %vm4069_vm2, %v17695_v31  ;;  %v27090_v0 = vmax.f32 %v21266_v3, 0.0 }
 0x281   :  { %v15389_v18 = vpack.c.bf16 %v12213_v33, %v12213_v33  ;;  %v10650_v16 = vmax.f32 %v6656_v62, 0.0  ;;  %v11226_v35 = vmax.f32 %v8960_v22, 0.0  ;;  %v10653_v47 = vmax.f32 %v6667_v10, 0.0  ;;  %17112 = vmatprep.mubr.msk.bf16.mxu1 %vm4069_vm2, %v17696_v11  ;;  %13798 = vst.msk [vmem:[%s26756_s3 + $0x2dc] sm:$0xf] %vm13614_vm3, %v15533_v61  ;;  %v17006_v43 = vpop.f32.mrb[208].mxu1 }
 0x282   :  { %v11930_v57 = vmax.f32 %v27090_v0, %v10652_v38  ;;  %v6659_v40 = vadd.f32 %v21394_v60, %v6658_v4  ;;  %v27091_v58 = vmax.f32 %v21269_v59, 0.0  ;;  %v27092_v12 = vmax.f32 %v21204_v19, 0.0  ;;  %v6671_v17 = vpop.f32.mrb[209].mxu0  ;;  %v17697_v19 = vld [vmem:[%s26754_s0 + $0x4f8] sm:$0xff]  }
 0x283   :  { %13654 = vst.msk [vmem:[%s26756_s3 + $0x9c] sm:$0xf] %vm13614_vm3, %v15389_v18  ;;  %v11229_v20 = vmax.f32 %v8971_v26, 0.0  ;;  %v8963_v3 = vadd.f32 %v21394_v60, %v8962_v54  ;;  %v27093_v5 = vmax.f32 %v21209_v21, 0.0  ;;  %v27094_v48 = vmax.f32 %v21284_v7, 0.0  ;;  %v8975_v21 = vpop.f32.mrb[209].mxu1 }
 0x284   :  { %v12074_v31 = vmax.f32 %v27091_v58, %v11228_v30  ;;  %v11928_v50 = vmax.f32 %v27092_v12, %v10650_v16  ;;  %v12218_v25 = vmax.f32 %v20993_v34, %v11930_v57  ;;  %v10651_v28 = vmax.f32 %v6659_v40, 0.0  ;;  %v16431_v41 = vpop.f32.mrb[210].mxu0  ;;  %v17698_v7 = vld [vmem:[%s26754_s0 + $0xdf8] sm:$0xff]   ;;  %v17007_v44 = vpop.f32.mrb[210].mxu1 }
 0x285   :  { %v12072_v11 = vmax.f32 %v27093_v5, %v11226_v35  ;;  %v11931_v55 = vmax.f32 %v27094_v48, %v10653_v47  ;;  %v27095_v36 = vmax.f32 %v21287_v37, 0.0  ;;  %v11227_v53 = vmax.f32 %v8963_v3, 0.0  ;;  %v17699_v37 = vld [vmem:[%s26754_s0 + $0x500] sm:$0xff]   ;;  %v8978_v18 = vpop.f32.mrb[211].mxu1  ;;  %v27099_v12 = vld [vmem:[#allocation17_spill] sm:$0xff]  ;;  %v17701_v48 = vld [vmem:[%s26754_s0 + $0x508] sm:$0xff]  }
 0x286   :  { %v12362_v59 = vmax.f32 %v20999_v27, %v12074_v31  ;;  %v12216_v45 = vmax.f32 %v21003_v14, %v11928_v50  ;;  %v15394_v33 = vpack.c.bf16 %v12218_v25, %v12218_v25  ;;  %v27096_v4 = vmax.f32 %v21226_v1, 0.0  ;;  %v6674_v14 = vpop.f32.mrb[211].mxu0  ;;  %16537 = vmatmul.mubr.msk.bf16.gmra.mrb[60].mxu0 %vm4069_vm2, %v17697_v19 }
 0x287   :  { %v12075_v34 = vmax.f32 %v27095_v36, %v11229_v20  ;;  %v12360_v32 = vmax.f32 %v21013_v42, %v12072_v11  ;;  %v12219_v6 = vmax.f32 %v21015_v51, %v11931_v55  ;;  %v27097_v42 = vmax.f32 %v21230_v15, 0.0  ;;  %v27098_v15 = vld [vmem:[#allocation2_spill] sm:$0xff]  ;;  %16540 = vmatprep.mubr.msk.bf16.mxu0 %vm4069_vm2, %v17699_v37  ;;  %v16434_v31 = vpop.f32.mrb[212].mxu0 }
 0x288   :  { %v11929_v27 = vmax.f32 %v27096_v4, %v10651_v28  ;;  %v15538_v39 = vpack.c.bf16 %v12362_v59, %v12362_v59  ;;  %v15392_v62 = vpack.c.bf16 %v12216_v45, %v12216_v45  ;;  %13659 = vst.msk [vmem:[%s26756_s3 + $0xb0] sm:$0xf] %vm13614_vm3, %v15394_v33  ;;  %v6680_v10 = vadd.f32 %v21394_v60, %v16430_v56  ;;  %v6687_v11 = vpop.f32.mrb[213].mxu0  ;;  %v27101_v55 = vld [vmem:[#allocation18_spill] sm:$0xff]  ;;  %v27106_v33 = vld [vmem:[#allocation8_spill] sm:$0xff] }
 0x289   :  { %v12363_v54 = vmax.f32 %v21020_v13, %v12075_v34  ;;  %v12073_v51 = vmax.f32 %v27097_v42, %v11227_v53  ;;  %v15536_v1 = vpack.c.bf16 %v12360_v32, %v12360_v32  ;;  %v15395_v38 = vpack.c.bf16 %v12219_v6, %v12219_v6  ;;  %17113 = vmatmul.mubr.msk.bf16.gmra.mrb[60].mxu1 %vm4069_vm2, %v17698_v7  ;;  %v17010_v5 = vpop.f32.mrb[212].mxu1  ;;  %v16435_v53 = vpop.f32.mrb[214].mxu0 }
 0x28a   :  { %v12217_v22 = vmax.f32 %v21024_v9, %v11929_v27  ;;  %13803 = vst.msk [vmem:[%s26756_s3 + $0x2f0] sm:$0xf] %vm13614_vm3, %v15538_v39  ;;  %13657 = vst.msk [vmem:[%s26756_s3 + $0xa8] sm:$0xf] %vm13614_vm3, %v15392_v62  ;;  %v8984_v30 = vadd.f32 %v21394_v60, %v17006_v43  ;;  %v6672_v9 = vadd.f32 %v21394_v60, %v6671_v17  ;;  %v10656_v26 = vmax.f32 %v6680_v10, 0.0  ;;  %v27103_v17 = vld [vmem:[#allocation7_spill] sm:$0xff] }
 0x28b   :  { %v15539_v13 = vpack.c.bf16 %v12363_v54, %v12363_v54  ;;  %v12361_v61 = vmax.f32 %v27098_v15, %v12073_v51  ;;  %13801 = vst.msk [vmem:[%s26756_s3 + $0x2e8] sm:$0xf] %vm13614_vm3, %v15536_v1  ;;  %13660 = vst.msk [vmem:[%s26756_s3 + $0xb4] sm:$0xf] %vm13614_vm3, %v15395_v38  ;;  %v8976_v0 = vadd.f32 %v21394_v60, %v8975_v21  ;;  %17116 = vmatprep.mubr.msk.bf16.mxu1 %vm4069_vm2, %v17700_v24  ;;  %v8991_v34 = vpop.f32.mrb[213].mxu1  ;;  %v17702_v21 = vld [vmem:[%s26754_s0 + $0xe08] sm:$0xff]  }
 0x28c   :  { %v15393_v16 = vpack.c.bf16 %v12217_v22, %v12217_v22  ;;  %v6683_v57 = vadd.f32 %v21394_v60, %v16431_v41  ;;  %v11232_v47 = vmax.f32 %v8984_v30, 0.0  ;;  %v10654_v40 = vmax.f32 %v6672_v9, 0.0  ;;  %v27105_v41 = vld [vmem:[#allocation27_spill] sm:$0xff]  ;;  %v6690_v37 = vpop.f32.mrb[215].mxu0  ;;  %v17703_v24 = vld [vmem:[%s26754_s0 + $0x510] sm:$0xff]  }
 0x28d   :  { %13804 = vst.msk [vmem:[%s26756_s3 + $0x2f4] sm:$0xf] %vm13614_vm3, %v15539_v13  ;;  %v15537_v35 = vpack.c.bf16 %v12361_v61, %v12361_v61  ;;  %v8987_v58 = vadd.f32 %v21394_v60, %v17007_v44  ;;  %v27100_v50 = vmax.f32 %v27099_v12, 0.0  ;;  %v11230_v3 = vmax.f32 %v8976_v0, 0.0  ;;  %v27109_v39 = vld [vmem:[#allocation28_spill] sm:$0xff]  ;;  %v27110_v54 = vld [vmem:[#allocation11_spill] sm:$0xff] }
 0x28e   :  { %13658 = vst.msk [vmem:[%s26756_s3 + $0xac] sm:$0xf] %vm13614_vm3, %v15393_v16  ;;  %v10657_v56 = vmax.f32 %v6683_v57, 0.0  ;;  %v6675_v25 = vadd.f32 %v21394_v60, %v6674_v14  ;;  %v27102_v28 = vmax.f32 %v27101_v55, 0.0  ;;  %v27104_v19 = vmax.f32 %v27103_v17, 0.0  ;;  %v17011_v14 = vpop.f32.mrb[214].mxu1  ;;  %16541 = vmatmul.mubr.msk.bf16.gmra.mrb[64].mxu0 %vm4069_vm2, %v17701_v48 }
 0x28f   :  { %v11934_v20 = vmax.f32 %v27100_v50, %v10656_v26  ;;  %13802 = vst.msk [vmem:[%s26756_s3 + $0x2ec] sm:$0xf] %vm13614_vm3, %v15537_v35  ;;  %v11233_v45 = vmax.f32 %v8987_v58, 0.0  ;;  %v8979_v36 = vadd.f32 %v21394_v60, %v8978_v18  ;;  %v27107_v32 = vmax.f32 %v27106_v33, 0.0  ;;  %v8994_v1 = vpop.f32.mrb[215].mxu1  ;;  %v27111_v22 = vld [vmem:[#allocation12_spill] sm:$0xff]  ;;  %16544 = vmatprep.mubr.msk.bf16.mxu0 %vm4069_vm2, %v17703_v24 }
 0x290   :  { %v12078_v43 = vmax.f32 %v27102_v28, %v11232_v47  ;;  %v11932_v59 = vmax.f32 %v27104_v19, %v10654_v40  ;;  %v27108_v4 = vmax.f32 %v21330_v8, 0.0  ;;  %v10655_v44 = vmax.f32 %v6675_v25, 0.0  ;;  %v17704_v8 = vld [vmem:[%s26754_s0 + $0xe10] sm:$0xff]   ;;  %v27112_v13 = vld [vmem:[#allocation25_spill] sm:$0xff]  ;;  %v27116_v0 = vld [vmem:[#allocation22_spill] sm:$0xff] }
 0x291   :  { %v12222_v7 = vmax.f32 %v27105_v41, %v11934_v20  ;;  %v12076_v6 = vmax.f32 %v27107_v32, %v11230_v3  ;;  %v12079_v51 = vmax.f32 %v11215_v2, %v11233_v45  ;;  %v11231_v18 = vmax.f32 %v8979_v36, 0.0  ;;  %v27113_v61 = vld [vmem:[#allocation21_spill] sm:$0xff]  ;;  %17117 = vmatmul.mubr.msk.bf16.gmra.mrb[64].mxu1 %vm4069_vm2, %v17702_v21  ;;  %v27118_v58 = vld [vmem:[#allocation19_spill] sm:$0xff]  ;;  %v27119_v3 = vld [vmem:[#allocation20_spill] sm:$0xff] }
 0x292   :  { %v11935_v27 = vmax.f32 %v27108_v4, %v10657_v56  ;;  %v12366_v62 = vmax.f32 %v27109_v39, %v12078_v43  ;;  %v12220_v42 = vmax.f32 %v27110_v54, %v11932_v59  ;;  %v27114_v30 = vmax.f32 %v27113_v61, 0.0  ;;  %17120 = vmatprep.mubr.msk.bf16.mxu1 %vm4069_vm2, %v17704_v8  ;;  %v21655_v43 = vpop.f32.mrb[216].mxu1  ;;  %v17705_v19 = vld [vmem:[%s26754_s0 + $0x518] sm:$0xff]   ;;  %v27124_v8 = vld [vmem:[#allocation10_spill] sm:$0xff] }
 0x293   :  { %v15398_v38 = vpack.c.bf16 %v12222_v7, %v12222_v7  ;;  %v12364_v10 = vmax.f32 %v27111_v22, %v12076_v6  ;;  %v12367_v2 = vmax.f32 %v27115_v49, %v12079_v51  ;;  %v27117_v57 = vmax.f32 %v27116_v0, 0.0  ;;  %v21667_v21 = vpop.f32.mrb[217].mxu1  ;;  %v17706_v41 = vld [vmem:[%s26754_s0 + $0xe18] sm:$0xff]   ;;  %v17707_v7 = vld [vmem:[%s26754_s0 + $0x520] sm:$0xff]   ;;  %v27123_v51 = vld [vmem:[#allocation3_spill] sm:$0xff] }
 0x294   :  { %v12223_v15 = vmax.f32 %v27112_v13, %v11935_v27  ;;  %v11933_v9 = vmax.f32 %v27114_v30, %v10655_v44  ;;  %v15542_v16 = vpack.c.bf16 %v12366_v62, %v12366_v62  ;;  %v15396_v26 = vpack.c.bf16 %v12220_v42, %v12220_v42  ;;  %v21684_v27 = vpop.f32.mrb[218].mxu1  ;;  %v27121_v24 = vld [vmem:[#allocation9_spill] sm:$0xff] }
 0x295   :  { %v12077_v35 = vmax.f32 %v27117_v57, %v11231_v18  ;;  %13663 = vst.msk [vmem:[%s26756_s3 + $0xc0] sm:$0xf] %vm13614_vm3, %v15398_v38  ;;  %v15540_v47 = vpack.c.bf16 %v12364_v10, %v12364_v10  ;;  %v6696_v50 = vadd.f32 %v21394_v60, %v16434_v31  ;;  %v15543_v20 = vpack.c.bf16 %v12367_v2, %v12367_v2  ;;  %v21642_v31 = vpop.f32.mrb[216].mxu0  ;;  %v21700_v42 = vpop.f32.mrb[219].mxu1  ;;  %v27128_v30 = vld [vmem:[#allocation13_spill] sm:$0xff]  ;;  %v27130_v2 = vld [vmem:[#allocation14_spill] sm:$0xff] }
 0x296   :  { %v15399_v40 = vpack.c.bf16 %v12223_v15, %v12223_v15  ;;  %v12221_v12 = vmax.f32 %v27118_v58, %v11933_v9  ;;  %13807 = vst.msk [vmem:[%s26756_s3 + $0x300] sm:$0xf] %vm13614_vm3, %v15542_v16  ;;  %13661 = vst.msk [vmem:[%s26756_s3 + $0xb8] sm:$0xf] %vm13614_vm3, %v15396_v26  ;;  %v9000_v25 = vadd.f32 %v21394_v60, %v17010_v5  ;;  %v21657_v17 = vpop.f32.mrb[217].mxu0  ;;  %v27122_v39 = vmax.f32 %v27121_v24, 0.0 }
 0x297   :  { %v12365_v56 = vmax.f32 %v27119_v3, %v12077_v35  ;;  %v6688_v48 = vadd.f32 %v21394_v60, %v6687_v11  ;;  %13805 = vst.msk [vmem:[%s26756_s3 + $0x2f8] sm:$0xf] %vm13614_vm3, %v15540_v47  ;;  %v10660_v28 = vmax.f32 %v6696_v50, 0.0  ;;  %v8992_v5 = vadd.f32 %v21394_v60, %v8991_v34  ;;  %13808 = vst.msk [vmem:[%s26756_s3 + $0x304] sm:$0xf] %vm13614_vm3, %v15543_v20  ;;  %v27132_v35 = vld [vmem:[#allocation23_spill] sm:$0xff] }
 0x298   :  { %13664 = vst.msk [vmem:[%s26756_s3 + $0xc4] sm:$0xf] %vm13614_vm3, %v15399_v40  ;;  %v15397_v55 = vpack.c.bf16 %v12221_v12, %v12221_v12  ;;  %v6699_v11 = vadd.f32 %v21394_v60, %v16435_v53  ;;  %v11236_v45 = vmax.f32 %v9000_v25, 0.0  ;;  %v9003_v34 = vadd.f32 %v21394_v60, %v17011_v14  ;;  %v21669_v53 = vpop.f32.mrb[218].mxu0  ;;  %v17708_v14 = vld [vmem:[%s26754_s0 + $0xe20] sm:$0xff]   ;;  %16545 = vmatmul.mubr.msk.bf16.gmra.mrb[68].mxu0 %vm4069_vm2, %v17705_v19  ;;  %v27135_v20 = vld [vmem:[#allocation24_spill] sm:$0xff] }
 0x299   :  { %v15541_v59 = vpack.c.bf16 %v12365_v56, %v12365_v56  ;;  %v10658_v36 = vmax.f32 %v6688_v48, 0.0  ;;  %v11938_v33 = vmax.f32 %v10642_v52, %v10660_v28  ;;  %v11234_v32 = vmax.f32 %v8992_v5, 0.0  ;;  %v21686_v44 = vpop.f32.mrb[219].mxu0  ;;  %17121 = vmatmul.mubr.msk.bf16.gmra.mrb[68].mxu1 %vm4069_vm2, %v17706_v41  ;;  %16548 = vmatprep.mubr.msk.bf16.mxu0 %vm4069_vm2, %v17707_v7  ;;  %v27134_v50 = vld [vmem:[#allocation6_spill] sm:$0xff]  ;;  %v27137_v28 = vld [vmem:[#allocation15_spill] sm:$0xff] }
 0x29a   :  { %13662 = vst.msk [vmem:[%s26756_s3 + $0xbc] sm:$0xf] %vm13614_vm3, %v15397_v55  ;;  %v10661_v6 = vmax.f32 %v6699_v11, 0.0  ;;  %v6691_v4 = vadd.f32 %v21394_v60, %v6690_v37  ;;  %v12082_v52 = vmax.f32 %v27120_v29, %v11236_v45  ;;  %v11237_v37 = vmax.f32 %v9003_v34, 0.0  ;;  %17124 = vmatprep.mubr.msk.bf16.mxu1 %vm4069_vm2, %v17708_v14  ;;  %v21722_v25 = vpop.f32.mrb[220].mxu0  ;;  %v21729_v11 = vpop.f32.mrb[220].mxu1 }
 0x29b   :  { %13806 = vst.msk [vmem:[%s26756_s3 + $0x2fc] sm:$0xf] %vm13614_vm3, %v15541_v59  ;;  %v11936_v62 = vmax.f32 %v27122_v39, %v10658_v36  ;;  %v8995_v54 = vadd.f32 %v21394_v60, %v8994_v1  ;;  %v12226_v18 = vmax.f32 %v27123_v51, %v11938_v33  ;;  %v27125_v38 = vmax.f32 %v27124_v8, 0.0  ;;  %v21731_v19 = vpop.f32.mrb[221].mxu0  ;;  %v17709_v59 = vld [vmem:[%s26754_s0 + $0x528] sm:$0xff]   ;;  %v27138_v36 = vld [vmem:[#allocation16_spill] sm:$0xff] }
 0x29c   :  { %v27126_v10 = vmax.f32 %v21357_v63, 0.0  ;;  %v10659_v15 = vmax.f32 %v6691_v4, 0.0  ;;  %v12370_v61 = vmax.f32 %v27127_v23, %v12082_v52  ;;  %v27129_v16 = vmax.f32 %v21363_v46, 0.0  ;;  %v27131_v63 = vld [vmem:[#allocation5_spill] sm:$0xff]  ;;  %v9023_v41 = vpop.f32.mrb[221].mxu1  ;;  %v21745_v7 = vpop.f32.mrb[222].mxu0 }
 0x29d   :  { %v12080_v22 = vmax.f32 %v27125_v38, %v11234_v32  ;;  %v12224_v9 = vmax.f32 %v27128_v30, %v11936_v62  ;;  %v11235_v26 = vmax.f32 %v8995_v54, 0.0  ;;  %v15402_v49 = vpack.c.bf16 %v12226_v18, %v12226_v18  ;;  %v17710_v33 = vld [vmem:[%s26754_s0 + $0xe28] sm:$0xff]   ;;  %v17711_v32 = vld [vmem:[%s26754_s0 + $0x530] sm:$0xff]   ;;  %v21761_v4 = vpop.f32.mrb[222].mxu1  ;;  %v21763_v14 = vpop.f32.mrb[223].mxu0  ;;  %v17713_v54 = vld [vmem:[%s26754_s0 + $0x538] sm:$0xff]  }
 0x29e   :  { %v11939_v13 = vmax.f32 %v27126_v10, %v10661_v6  ;;  %v12083_v1 = vmax.f32 %v27129_v16, %v11237_v37  ;;  %v27133_v47 = vmax.f32 %v27132_v35, 0.0  ;;  %v15546_v58 = vpack.c.bf16 %v12370_v61, %v12370_v61  ;;  %v17712_v29 = vld [vmem:[%s26754_s0 + $0xe30] sm:$0xff]   ;;  %v21772_v24 = vpop.f32.mrb[223].mxu1  ;;  %v17714_v8 = vld [vmem:[%s26754_s0 + $0xe38] sm:$0xff]   ;;  %v17715_v38 = vld [vmem:[%s26754_s0 + $0x540] sm:$0xff]  }
 0x29f   :  { %v12368_v0 = vmax.f32 %v27130_v2, %v12080_v22  ;;  %v15400_v12 = vpack.c.bf16 %v12224_v9, %v12224_v9  ;;  %v27136_v3 = vmax.f32 %v27135_v20, 0.0  ;;  %13667 = vst.msk [vmem:[%s26756_s3 + $0xd0] sm:$0xf] %vm13614_vm3, %v15402_v49  ;;  %v21786_v39 = vpop.f32.mrb[224].mxu0  ;;  %v17717_v9 = vld [vmem:[%s26754_s0 + $0x548] sm:$0xff]   ;;  %v21829_v16 = vadd.f32 %v21394_v60, %v21642_v31  ;;  %v17719_v2 = vld [vmem:[%s26754_s0 + $0x550] sm:$0xff]  }
 0x2a0   :  { %v12227_v57 = vmax.f32 %v27131_v63, %v11939_v13  ;;  %v11937_v40 = vmax.f32 %v27133_v47, %v10659_v15  ;;  %v12371_v46 = vmax.f32 %v27134_v50, %v12083_v1  ;;  %13811 = vst.msk [vmem:[%s26756_s3 + $0x310] sm:$0xf] %vm13614_vm3, %v15546_v58  ;;  %16549 = vmatmul.mubr.msk.bf16.gmra.mrb[72].mxu0 %vm4069_vm2, %v17709_v59  ;;  %v21790_v37 = vpop.f32.mrb[225].mxu0  ;;  %v17716_v13 = vld [vmem:[%s26754_s0 + $0xe40] sm:$0xff]   ;;  %v17718_v49 = vld [vmem:[%s26754_s0 + $0xe48] sm:$0xff]  }
 0x2a1   :  { %v12081_v56 = vmax.f32 %v27136_v3, %v11235_v26  ;;  %v15544_v48 = vpack.c.bf16 %v12368_v0, %v12368_v0  ;;  %13665 = vst.msk [vmem:[%s26756_s3 + $0xc8] sm:$0xf] %vm13614_vm3, %v15400_v12  ;;  %17125 = vmatmul.mubr.msk.bf16.gmra.mrb[72].mxu1 %vm4069_vm2, %v17710_v33  ;;  %16552 = vmatprep.mubr.msk.bf16.mxu0 %vm4069_vm2, %v17711_v32  ;;  %v21788_v62 = vpop.f32.mrb[224].mxu1  ;;  %v21797_v18 = vpop.f32.mrb[226].mxu0 }
 0x2a2   :  { %v15403_v55 = vpack.c.bf16 %v12227_v57, %v12227_v57  ;;  %v12225_v5 = vmax.f32 %v27137_v28, %v11937_v40  ;;  %v15547_v45 = vpack.c.bf16 %v12371_v46, %v12371_v46  ;;  %17128 = vmatprep.mubr.msk.bf16.mxu1 %vm4069_vm2, %v17712_v29  ;;  %v21795_v51 = vpop.f32.mrb[225].mxu1  ;;  %v21807_v10 = vpop.f32.mrb[227].mxu0  ;;  %v21843_v0 = vadd.f32 %v21394_v60, %v21655_v43  ;;  %v17720_v40 = vld [vmem:[%s26754_s0 + $0xe50] sm:$0xff]  }
 0x2a3   :  { %v12369_v34 = vmax.f32 %v27138_v36, %v12081_v56  ;;  %13809 = vst.msk [vmem:[%s26756_s3 + $0x308] sm:$0xf] %vm13614_vm3, %v15544_v48  ;;  %v21805_v22 = vpop.f32.mrb[226].mxu1  ;;  %v6704_v31 = vadd.f32 %v21394_v60, %v21657_v17  ;;  %v9008_v63 = vadd.f32 %v21394_v60, %v21667_v21  ;;  %v21851_v57 = vadd.f32 %v21394_v60, %v21669_v53 }
 0x2a4   :  { %13668 = vst.msk [vmem:[%s26756_s3 + $0xd4] sm:$0xf] %vm13614_vm3, %v15403_v55  ;;  %v15401_v6 = vpack.c.bf16 %v12225_v5, %v12225_v5  ;;  %13812 = vst.msk [vmem:[%s26756_s3 + $0x314] sm:$0xf] %vm13614_vm3, %v15547_v45  ;;  %v21812_v15 = vpop.f32.mrb[227].mxu1  ;;  %v21862_v43 = vadd.f32 %v21394_v60, %v21684_v27  ;;  %v21866_v17 = vadd.f32 %v21394_v60, %v21686_v44  ;;  %v10664_v44 = vmax.f32 %v21829_v16, 0.0 }
 0x2a5   :  { %v15545_v52 = vpack.c.bf16 %v12369_v34, %v12369_v34  ;;  %v21870_v21 = vadd.f32 %v21394_v60, %v21700_v42  ;;  %v21876_v58 = vadd.f32 %v21394_v60, %v21722_v25  ;;  %v21880_v12 = vadd.f32 %v21394_v60, %v21729_v11  ;;  %v17721_v34 = vld [vmem:[%s26754_s0 + $0x558] sm:$0xff]  }
 0x2a6   :  { %13666 = vst.msk [vmem:[%s26756_s3 + $0xcc] sm:$0xf] %vm13614_vm3, %v15401_v6  ;;  %v21884_v27 = vadd.f32 %v21394_v60, %v21731_v19  ;;  %v21889_v42 = vadd.f32 %v21394_v60, %v9023_v41  ;;  %v11240_v50 = vmax.f32 %v21843_v0, 0.0  ;;  %v10662_v46 = vmax.f32 %v6704_v31, 0.0 }
 0x2a7   :  { %13810 = vst.msk [vmem:[%s26756_s3 + $0x30c] sm:$0xf] %vm13614_vm3, %v15545_v52  ;;  %v21818_v23 = vpop.f32.mrb[228].mxu0  ;;  %v11238_v20 = vmax.f32 %v9008_v63, 0.0  ;;  %v10665_v3 = vmax.f32 %v21851_v57, 0.0  ;;  %v11241_v56 = vmax.f32 %v21862_v43, 0.0  ;;  %v21901_v55 = vadd.f32 %v21394_v60, %v21745_v7 }
 0x2a8   :  { %16553 = vmatmul.mubr.msk.bf16.gmra.mrb[76].mxu0 %vm4069_vm2, %v17713_v54  ;;  %v21822_v30 = vpop.f32.mrb[229].mxu0  ;;  %v10663_v25 = vmax.f32 %v21866_v17, 0.0  ;;  %v11239_v48 = vmax.f32 %v21870_v21, 0.0  ;;  %v10666_v19 = vmax.f32 %v21884_v27, 0.0  ;;  %v11242_v41 = vmax.f32 %v21889_v42, 0.0  ;;  %v17722_v52 = vld [vmem:[%s26754_s0 + $0xe58] sm:$0xff]  }
 0x2a9   :  { %17129 = vmatmul.mubr.msk.bf16.gmra.mrb[76].mxu1 %vm4069_vm2, %v17714_v8  ;;  %16556 = vmatprep.mubr.msk.bf16.mxu0 %vm4069_vm2, %v17715_v38  ;;  %v21820_v61 = vpop.f32.mrb[228].mxu1  ;;  %v21833_v26 = vpop.f32.mrb[230].mxu0  ;;  %v21915_v7 = vadd.f32 %v21394_v60, %v21761_v4  ;;  %v21919_v33 = vadd.f32 %v21394_v60, %v21763_v14  ;;  %v17723_v54 = vld [vmem:[%s26754_s0 + $0x560] sm:$0xff]   ;;  %v21932_v4 = vadd.f32 %v21394_v60, %v21772_v24  ;;  %v17729_v57 = vld [vmem:[%s26754_s0 + $0x578] sm:$0xff]  }
 0x2aa   :  { %17132 = vmatprep.mubr.msk.bf16.mxu1 %vm4069_vm2, %v17716_v13  ;;  %v21831_v1 = vpop.f32.mrb[229].mxu1  ;;  %v21855_v47 = vpop.f32.mrb[231].mxu0  ;;  %v21936_v14 = vadd.f32 %v21394_v60, %v21786_v39  ;;  %v21950_v24 = vadd.f32 %v21394_v60, %v21790_v37  ;;  %v21961_v17 = vadd.f32 %v21394_v60, %v21797_v18 }
 0x2ab   :  { %v21853_v35 = vpop.f32.mrb[230].mxu1  ;;  %v10667_v18 = vmax.f32 %v21919_v33, 0.0  ;;  %v21990_v33 = vadd.f32 %v21394_v60, %v21807_v10 }
 0x2ac   :  { %v21872_v53 = vpop.f32.mrb[231].mxu1 }
 0x2ad   :  { %v10671_v27 = vmax.f32 %v21990_v33, 0.0  ;;  %v17731_v33 = vld [vmem:[%s26754_s0 + $0x580] sm:$0xff]  }
 0x2af   :  { %v16454_v28 = vpop.f32.mrb[232].mxu0 }
 0x2b0   :  { %16557 = vmatmul.mubr.msk.bf16.gmra.mrb[80].mxu0 %vm4069_vm2, %v17717_v9  ;;  %v6776_v59 = vadd.f32 %v21394_v60, %v16454_v28  ;;  %v21907_v36 = vpop.f32.mrb[233].mxu0  ;;  %v21969_v28 = vadd.f32 %v21394_v60, %v21805_v22  ;;  %v17728_v22 = vld [vmem:[%s26754_s0 + $0xe70] sm:$0xff]  }
 0x2b1   :  { %17133 = vmatmul.mubr.msk.bf16.gmra.mrb[80].mxu1 %vm4069_vm2, %v17718_v49  ;;  %16560 = vmatprep.mubr.msk.bf16.mxu0 %vm4069_vm2, %v17719_v2  ;;  %v17030_v45 = vpop.f32.mrb[232].mxu1  ;;  %v16455_v29 = vpop.f32.mrb[234].mxu0  ;;  %v17724_v49 = vld [vmem:[%s26754_s0 + $0xe60] sm:$0xff]   ;;  %v21946_v2 = vadd.f32 %v21394_v60, %v21788_v62 }
 0x2b2   :  { %17136 = vmatprep.mubr.msk.bf16.mxu1 %vm4069_vm2, %v17720_v40  ;;  %v9080_v32 = vadd.f32 %v21394_v60, %v17030_v45  ;;  %v21922_v6 = vpop.f32.mrb[233].mxu1  ;;  %v10680_v8 = vmax.f32 %v6776_v59, 0.0  ;;  %v6779_v38 = vadd.f32 %v21394_v60, %v16455_v29  ;;  %v21939_v9 = vpop.f32.mrb[235].mxu0  ;;  %v21957_v40 = vadd.f32 %v21394_v60, %v21795_v51 }
 0x2b3   :  { %v17031_v13 = vpop.f32.mrb[234].mxu1 }
 0x2b4   :  { %v11256_v39 = vmax.f32 %v9080_v32, 0.0  ;;  %v9083_v31 = vadd.f32 %v21394_v60, %v17031_v13  ;;  %v21953_v63 = vpop.f32.mrb[235].mxu1  ;;  %v21963_v21 = vmax.f32 %v10662_v46, %v10680_v8  ;;  %v10681_v62 = vmax.f32 %v6779_v38, 0.0  ;;  %v17725_v13 = vld [vmem:[%s26754_s0 + $0x568] sm:$0xff]  }
 0x2b5   :  { %v11243_v46 = vmax.f32 %v21932_v4, 0.0 }
 0x2b6   :  { %v21971_v59 = vmax.f32 %v11238_v20, %v11256_v39  ;;  %v11257_v45 = vmax.f32 %v9083_v31, 0.0 }
 0x2b8   :  { %16561 = vmatmul.mubr.msk.bf16.gmra.mrb[84].mxu0 %vm4069_vm2, %v17721_v34  ;;  %v21978_v34 = vmax.f32 %v10663_v25, %v10681_v62  ;;  %v21984_v29 = vmax.f32 %v11239_v48, %v11257_v45  ;;  %v17726_v45 = vld [vmem:[%s26754_s0 + $0xe68] sm:$0xff]   ;;  %v22011_v48 = vadd.f32 %v21394_v60, %v21818_v23 }
 0x2b9   :  { %17137 = vmatmul.mubr.msk.bf16.gmra.mrb[84].mxu1 %vm4069_vm2, %v17722_v52  ;;  %16564 = vmatprep.mubr.msk.bf16.mxu0 %vm4069_vm2, %v17723_v54  ;;  %v16458_v52 = vpop.f32.mrb[236].mxu0  ;;  %v17034_v4 = vpop.f32.mrb[236].mxu1 }
 0x2ba   :  { %17140 = vmatprep.mubr.msk.bf16.mxu1 %vm4069_vm2, %v17724_v49  ;;  %v6792_v25 = vadd.f32 %v21394_v60, %v16458_v52  ;;  %v6783_v38 = vpop.f32.mrb[237].mxu0  ;;  %v21999_v49 = vadd.f32 %v21394_v60, %v21812_v15  ;;  %v9096_v39 = vadd.f32 %v21394_v60, %v17034_v4  ;;  %v9087_v10 = vpop.f32.mrb[237].mxu1  ;;  %v17727_v52 = vld [vmem:[%s26754_s0 + $0x570] sm:$0xff]  }
 0x2bb   :  { %v6784_v31 = vadd.f32 %v21394_v60, %v6783_v38  ;;  %v16459_v62 = vpop.f32.mrb[238].mxu0  ;;  %v9088_v8 = vadd.f32 %v21394_v60, %v9087_v10  ;;  %v17035_v38 = vpop.f32.mrb[238].mxu1 }
 0x2bc   :  { %v10684_v15 = vmax.f32 %v6792_v25, 0.0  ;;  %v6795_v4 = vadd.f32 %v21394_v60, %v16459_v62  ;;  %v6786_v20 = vpop.f32.mrb[239].mxu0  ;;  %v11260_v51 = vmax.f32 %v9096_v39, 0.0  ;;  %v9099_v11 = vadd.f32 %v21394_v60, %v17035_v38  ;;  %v9090_v54 = vpop.f32.mrb[239].mxu1 }
 0x2bd   :  { %v10682_v37 = vmax.f32 %v6784_v31, 0.0  ;;  %v6787_v5 = vadd.f32 %v21394_v60, %v6786_v20  ;;  %v11258_v25 = vmax.f32 %v9088_v8, 0.0  ;;  %v9091_v62 = vadd.f32 %v21394_v60, %v9090_v54  ;;  %v17730_v8 = vld [vmem:[%s26754_s0 + $0xe78] sm:$0xff]  }
 0x2be   :  { %v22022_v23 = vmax.f32 %v10666_v19, %v10684_v15  ;;  %v10685_v10 = vmax.f32 %v6795_v4, 0.0  ;;  %v22028_v32 = vmax.f32 %v11242_v41, %v11260_v51  ;;  %v11261_v20 = vmax.f32 %v9099_v11, 0.0  ;;  %v17732_v15 = vld [vmem:[%s26754_s0 + $0xe80] sm:$0xff]  }
 0x2bf   :  { %v22032_v39 = vmax.f32 %v10664_v44, %v10682_v37  ;;  %v10683_v31 = vmax.f32 %v6787_v5, 0.0  ;;  %v22039_v19 = vmax.f32 %v11240_v50, %v11258_v25  ;;  %v11259_v42 = vmax.f32 %v9091_v62, 0.0  ;;  %v16462_v0 = vpop.f32.mrb[240].mxu0 }
 0x2c0   :  { %16565 = vmatmul.mubr.msk.bf16.gmra.mrb[88].mxu0 %vm4069_vm2, %v17725_v13  ;;  %v22041_v54 = vmax.f32 %v10667_v18, %v10685_v10  ;;  %v11247_v16 = vmax.f32 %v21999_v49, 0.0  ;;  %v22047_v44 = vadd.f32 %v21394_v60, %v21820_v61  ;;  %v22049_v5 = vmax.f32 %v11243_v46, %v11261_v20  ;;  %v6799_v18 = vpop.f32.mrb[241].mxu0 }
 0x2c1   :  { %17141 = vmatmul.mubr.msk.bf16.gmra.mrb[88].mxu1 %vm4069_vm2, %v17726_v45  ;;  %16568 = vmatprep.mubr.msk.bf16.mxu0 %vm4069_vm2, %v17727_v52  ;;  %v22053_v11 = vmax.f32 %v10665_v3, %v10683_v31  ;;  %v10676_v50 = vmax.f32 %v22011_v48, 0.0  ;;  %v22058_v41 = vadd.f32 %v21394_v60, %v21822_v30  ;;  %v22062_v37 = vmax.f32 %v11241_v56, %v11259_v42  ;;  %v17038_v51 = vpop.f32.mrb[240].mxu1 }
 0x2c2   :  { %17144 = vmatprep.mubr.msk.bf16.mxu1 %vm4069_vm2, %v17728_v22  ;;  %v6808_v61 = vadd.f32 %v21394_v60, %v16462_v0  ;;  %v22070_v3 = vadd.f32 %v21394_v60, %v21831_v1  ;;  %v22074_v30 = vadd.f32 %v21394_v60, %v21855_v47  ;;  %v9112_v43 = vadd.f32 %v21394_v60, %v17038_v51  ;;  %v9103_v46 = vpop.f32.mrb[241].mxu1  ;;  %v16463_v22 = vpop.f32.mrb[242].mxu0 }
 0x2c3   :  { %v6800_v56 = vadd.f32 %v21394_v60, %v6799_v18  ;;  %v22086_v1 = vadd.f32 %v21394_v60, %v21872_v53  ;;  %v9104_v13 = vadd.f32 %v21394_v60, %v9103_v46  ;;  %v6811_v49 = vadd.f32 %v21394_v60, %v16463_v22  ;;  %v17039_v45 = vpop.f32.mrb[242].mxu1  ;;  %v6802_v52 = vpop.f32.mrb[243].mxu0 }
 0x2c4   :  { %v10688_v47 = vmax.f32 %v6808_v61, 0.0  ;;  %v11264_v4 = vmax.f32 %v9112_v43, 0.0  ;;  %v9115_v25 = vadd.f32 %v21394_v60, %v17039_v45  ;;  %v6803_v10 = vadd.f32 %v21394_v60, %v6802_v52  ;;  %v9106_v62 = vpop.f32.mrb[243].mxu1  ;;  %v17733_v52 = vld [vmem:[%s26754_s0 + $0x588] sm:$0xff]  }
 0x2c5   :  { %v10686_v38 = vmax.f32 %v6800_v56, 0.0  ;;  %v27139_v53 = vmax.f32 %v21950_v24, 0.0  ;;  %v11262_v31 = vmax.f32 %v9104_v13, 0.0  ;;  %v10689_v42 = vmax.f32 %v6811_v49, 0.0 }
 0x2c6   :  { %v9107_v0 = vadd.f32 %v21394_v60, %v9106_v62  ;;  %v27140_v61 = vmax.f32 %v21957_v40, 0.0  ;;  %v27141_v18 = vmax.f32 %v21876_v58, 0.0  ;;  %v11265_v56 = vmax.f32 %v9115_v25, 0.0  ;;  %v17734_v25 = vld [vmem:[%s26754_s0 + $0xe88] sm:$0xff]  }
 0x2c7   :  { %v22097_v20 = vmax.f32 %v27139_v53, %v10688_v47  ;;  %v10687_v46 = vmax.f32 %v6803_v10, 0.0  ;;  %v22113_v24 = vadd.f32 %v21394_v60, %v21833_v26  ;;  %v22119_v40 = vmax.f32 %v10671_v27, %v10689_v42  ;;  %v16466_v60 = vpop.f32.mrb[244].mxu0  ;;  %v17735_v10 = vld [vmem:[%s26754_s0 + $0x590] sm:$0xff]  }
 0x2c8   :  { %16569 = vmatmul.mubr.msk.bf16.gmra.mrb[92].mxu0 %vm4069_vm2, %v17729_v57  ;;  %v22103_v51 = vmax.f32 %v27140_v61, %v11264_v4  ;;  %v22107_v43 = vmax.f32 %v27141_v18, %v10686_v38  ;;  %v27142_v57 = vmax.f32 %v21880_v12, 0.0  ;;  %v11263_v47 = vmax.f32 %v9107_v0, 0.0  ;;  %v17736_v0 = vld [vmem:[%s26754_s0 + $0xe90] sm:$0xff]  }
 0x2c9   :  { %17145 = vmatmul.mubr.msk.bf16.gmra.mrb[92].mxu1 %vm4069_vm2, %v17730_v8  ;;  %16572 = vmatprep.mubr.msk.bf16.mxu0 %vm4069_vm2, %v17731_v33  ;;  %v10674_v58 = vmax.f32 %v22058_v41, 0.0  ;;  %v11250_v13 = vmax.f32 %v22070_v3, 0.0  ;;  %v22124_v8 = vmax.f32 %v11247_v16, %v11265_v56  ;;  %v27143_v33 = vmax.f32 %v21901_v55, 0.0  ;;  %v22139_v41 = vld [vmem:[%s26755_s2] ss:$0 sm:$0xff]  ;;  %v17042_v3 = vpop.f32.mrb[244].mxu1 }
 0x2ca   :  { %v22117_v22 = vmax.f32 %v27142_v57, %v11262_v31  ;;  %17148 = vmatprep.mubr.msk.bf16.mxu1 %vm4069_vm2, %v17732_v15  ;;  %v10675_v26 = vmax.f32 %v22074_v30, 0.0  ;;  %v11251_v12 = vmax.f32 %v22086_v1, 0.0  ;;  %v27145_v27 = vmax.f32 %v21915_v7, 0.0  ;;  %v6815_v55 = vpop.f32.mrb[245].mxu0  ;;  %v9119_v4 = vpop.f32.mrb[245].mxu1 }
 0x2cb   :  { %v22128_v49 = vmax.f32 %v27143_v33, %v10687_v46  ;;  %v6824_v16 = vadd.f32 %v22139_v41, %v16466_v60  ;;  %v22147_v30 = vadd.f32 %v22139_v41, %v21907_v36  ;;  %v22151_v7 = vadd.f32 %v22139_v41, %v21922_v6  ;;  %v16467_v38 = vpop.f32.mrb[246].mxu0  ;;  %v17043_v31 = vpop.f32.mrb[246].mxu1 }
 0x2cc   :  { %v22134_v45 = vmax.f32 %v27145_v27, %v11263_v47  ;;  %v9128_v1 = vadd.f32 %v22139_v41, %v17042_v3  ;;  %v6816_v15 = vadd.f32 %v22139_v41, %v6815_v55  ;;  %v22163_v36 = vadd.f32 %v22139_v41, %v21939_v9  ;;  %v6818_v42 = vpop.f32.mrb[247].mxu0  ;;  %v9122_v57 = vpop.f32.mrb[247].mxu1 }
 0x2cd   :  { %27144 = vst [vmem:[#allocation2_spill] sm:$0xff] %v22128_v49  ;;  %v10692_v6 = vmax.f32 %v6824_v16, 0.0  ;;  %v9120_v62 = vadd.f32 %v22139_v41, %v9119_v4  ;;  %v6827_v53 = vadd.f32 %v22139_v41, %v16467_v38  ;;  %v9131_v56 = vadd.f32 %v22139_v41, %v17043_v31 }
 0x2ce   :  { %27146 = vst [vmem:[#allocation17_spill] sm:$0xff] %v22134_v45  ;;  %v11268_v61 = vmax.f32 %v9128_v1, 0.0  ;;  %v10690_v18 = vmax.f32 %v6816_v15, 0.0  ;;  %v6819_v46 = vadd.f32 %v22139_v41, %v6818_v42  ;;  %v9123_v60 = vadd.f32 %v22139_v41, %v9122_v57 }
 0x2cf   :  { %v22172_v9 = vmax.f32 %v10674_v58, %v10692_v6  ;;  %v11266_v47 = vmax.f32 %v9120_v62, 0.0  ;;  %v10693_v33 = vmax.f32 %v6827_v53, 0.0  ;;  %v27149_v16 = vmax.f32 %v21936_v14, 0.0 }
 0x2d0   :  { %16573 = vmatmul.mubr.msk.bf16.gmra.mrb[96].mxu0 %vm4069_vm2, %v17733_v52  ;;  %v22176_v27 = vmax.f32 %v11250_v13, %v11268_v61  ;;  %v11269_v55 = vmax.f32 %v9131_v56, 0.0  ;;  %v10691_v1 = vmax.f32 %v6819_v46, 0.0  ;;  %v9075_v58 = vadd.f32 %v22139_v41, %v21953_v63  ;;  %v16470_v63 = vpop.f32.mrb[248].mxu0  ;;  %v17738_v61 = vld [vmem:[%s26754_s0 + $0xe98] sm:$0xff]  }
 0x2d1   :  { %27147 = vst [vmem:[#allocation18_spill] sm:$0xff] %v22172_v9  ;;  %v22180_v3 = vmax.f32 %v27149_v16, %v10690_v18  ;;  %17149 = vmatmul.mubr.msk.bf16.gmra.mrb[96].mxu1 %vm4069_vm2, %v17734_v25  ;;  %16576 = vmatprep.mubr.msk.bf16.mxu0 %vm4069_vm2, %v17735_v10  ;;  %v27151_v15 = vmax.f32 %v21946_v2, 0.0  ;;  %v22190_v52 = vmax.f32 %v10675_v26, %v10693_v33  ;;  %v11267_v13 = vmax.f32 %v9123_v60, 0.0  ;;  %v17046_v31 = vpop.f32.mrb[248].mxu1  ;;  %v6831_v42 = vpop.f32.mrb[249].mxu0  ;;  %v17739_v18 = vld [vmem:[%s26754_s0 + $0x5a0] sm:$0xff]  }
 0x2d2   :  { %27148 = vst [vmem:[#allocation7_spill] sm:$0xff] %v22176_v27  ;;  %17152 = vmatprep.mubr.msk.bf16.mxu1 %vm4069_vm2, %v17736_v0  ;;  %v11252_v14 = vmax.f32 %v22047_v44, 0.0  ;;  %v9067_v38 = vadd.f32 %v22139_v41, %v21853_v35  ;;  %v22196_v25 = vmax.f32 %v11251_v12, %v11269_v55  ;;  %v27155_v10 = vmax.f32 %v21961_v17, 0.0  ;;  %v17737_v35 = vld [vmem:[%s26754_s0 + $0x598] sm:$0xff]   ;;  %v9135_v0 = vpop.f32.mrb[249].mxu1  ;;  %v17740_v33 = vld [vmem:[%s26754_s0 + $0xea0] sm:$0xff]  }
 0x2d3   :  { %27150 = vst [vmem:[#allocation27_spill] sm:$0xff] %v22180_v3  ;;  %v22188_v4 = vmax.f32 %v27151_v15, %v11266_v47  ;;  %27153 = vst [vmem:[#allocation28_spill] sm:$0xff] %v22190_v52  ;;  %v10677_v2 = vmax.f32 %v22113_v24, 0.0  ;;  %v10678_v26 = vmax.f32 %v22147_v30, 0.0  ;;  %v27157_v62 = vmax.f32 %v21969_v28, 0.0  ;;  %v16471_v28 = vpop.f32.mrb[250].mxu0 }
 0x2d4   :  { %27154 = vst [vmem:[#allocation11_spill] sm:$0xff] %v22196_v25  ;;  %v22200_v6 = vmax.f32 %v27155_v10, %v10691_v1  ;;  %v6840_v44 = vadd.f32 %v22139_v41, %v16470_v63  ;;  %v11254_v17 = vmax.f32 %v22151_v7, 0.0  ;;  %v10679_v12 = vmax.f32 %v22163_v36, 0.0  ;;  %v17047_v57 = vpop.f32.mrb[250].mxu1  ;;  %v6834_v47 = vpop.f32.mrb[251].mxu0  ;;  %v17756_v52 = vld [vmem:[%s26754_s0 + $0xee0] sm:$0xff]  }
 0x2d5   :  { %27152 = vst [vmem:[#allocation8_spill] sm:$0xff] %v22188_v4  ;;  %v22206_v53 = vmax.f32 %v27157_v62, %v11267_v13  ;;  %v9144_v24 = vadd.f32 %v22139_v41, %v17046_v31  ;;  %v6832_v30 = vadd.f32 %v22139_v41, %v6831_v42  ;;  %v11255_v56 = vmax.f32 %v9075_v58, 0.0  ;;  %v9138_v15 = vpop.f32.mrb[251].mxu1  ;;  %v17757_v3 = vld [vmem:[%s26754_s0 + $0x5e8] sm:$0xff]  }
 0x2d6   :  { %27156 = vst [vmem:[#allocation12_spill] sm:$0xff] %v22200_v6  ;;  %v10696_v46 = vmax.f32 %v6840_v44, 0.0  ;;  %v9136_v7 = vadd.f32 %v22139_v41, %v9135_v0  ;;  %v6843_v36 = vadd.f32 %v22139_v41, %v16471_v28  ;;  %v9147_v55 = vadd.f32 %v22139_v41, %v17047_v57 }
 0x2d7   :  { %27158 = vst [vmem:[#allocation25_spill] sm:$0xff] %v22206_v53  ;;  %v11272_v60 = vmax.f32 %v9144_v24, 0.0  ;;  %v10694_v16 = vmax.f32 %v6832_v30, 0.0  ;;  %v6835_v1 = vadd.f32 %v22139_v41, %v6834_v47  ;;  %v9139_v63 = vadd.f32 %v22139_v41, %v9138_v15  ;;  %v16474_v48 = vpop.f32.mrb[252].mxu0  ;;  %v17747_v15 = vld [vmem:[%s26754_s0 + $0x5c0] sm:$0xff]  }
 0x2d8   :  { %v22229_v13 = vmax.f32 %v10678_v26, %v10696_v46  ;;  %v11270_v58 = vmax.f32 %v9136_v7, 0.0  ;;  %v10697_v10 = vmax.f32 %v6843_v36, 0.0  ;;  %16577 = vmatmul.mubr.msk.bf16.gmra.mrb[100].mxu0 %vm4069_vm2, %v17737_v35  ;;  %v11273_v31 = vmax.f32 %v9147_v55, 0.0  ;;  %v6847_v46 = vpop.f32.mrb[253].mxu0  ;;  %v17744_v7 = vld [vmem:[%s26754_s0 + $0xeb0] sm:$0xff]   ;;  %v17755_v53 = vld [vmem:[%s26754_s0 + $0x5e0] sm:$0xff]  }
 0x2d9   :  { %v22233_v62 = vmax.f32 %v11254_v17, %v11272_v60  ;;  %v22237_v44 = vmax.f32 %v10676_v50, %v10694_v16  ;;  %v10695_v42 = vmax.f32 %v6835_v1, 0.0  ;;  %17153 = vmatmul.mubr.msk.bf16.gmra.mrb[100].mxu1 %vm4069_vm2, %v17738_v61  ;;  %16580 = vmatprep.mubr.msk.bf16.mxu0 %vm4069_vm2, %v17739_v18  ;;  %v11253_v26 = vmax.f32 %v9067_v38, 0.0  ;;  %v17741_v38 = vld [vmem:[%s26754_s0 + $0x5a8] sm:$0xff]   ;;  %v16475_v61 = vpop.f32.mrb[254].mxu0  ;;  %v17745_v60 = vld [vmem:[%s26754_s0 + $0x5b8] sm:$0xff]  }
 0x2da   :  { %27159 = vst [vmem:[#allocation21_spill] sm:$0xff] %v22229_v13  ;;  %v22241_v24 = vmax.f32 %v11252_v14, %v11270_v58  ;;  %v22243_v30 = vmax.f32 %v10679_v12, %v10697_v10  ;;  %v11271_v0 = vmax.f32 %v9139_v63, 0.0  ;;  %17156 = vmatprep.mubr.msk.bf16.mxu1 %vm4069_vm2, %v17740_v33  ;;  %v22246_v35 = vmax.f32 %v11255_v56, %v11273_v31  ;;  %v17742_v12 = vld [vmem:[%s26754_s0 + $0xea8] sm:$0xff]   ;;  %v6850_v56 = vpop.f32.mrb[255].mxu0  ;;  %v17746_v1 = vld [vmem:[%s26754_s0 + $0xeb8] sm:$0xff]   ;;  %v17748_v63 = vld [vmem:[%s26754_s0 + $0xec0] sm:$0xff]  }
 0x2db   :  { %27160 = vst [vmem:[#allocation26_spill] sm:$0xff] %v22233_v62  ;;  %27161 = vst [vmem:[#allocation22_spill] sm:$0xff] %v22237_v44  ;;  %v22248_v17 = vmax.f32 %v10677_v2, %v10695_v42  ;;  %v17050_v28 = vpop.f32.mrb[252].mxu1  ;;  %v17743_v2 = vld [vmem:[%s26754_s0 + $0x5b0] sm:$0xff]  }
 0x2dc   :  { %27162 = vst [vmem:[#allocation19_spill] sm:$0xff] %v22241_v24  ;;  %27163 = vst [vmem:[#allocation20_spill] sm:$0xff] %v22243_v30  ;;  %v22250_v50 = vmax.f32 %v11253_v26, %v11271_v0  ;;  %v9151_v14 = vpop.f32.mrb[253].mxu1  ;;  %v17752_v30 = vld [vmem:[%s26754_s0 + $0xed0] sm:$0xff]  }
 0x2dd   :  { %27164 = vst [vmem:[#allocation9_spill] sm:$0xff] %v22246_v35  ;;  %27165 = vst [vmem:[#allocation3_spill] sm:$0xff] %v22248_v17  ;;  %v17051_v18 = vpop.f32.mrb[254].mxu1 }
 0x2de   :  { %27166 = vst [vmem:[#allocation10_spill] sm:$0xff] %v22250_v50  ;;  %v9154_v36 = vpop.f32.mrb[255].mxu1  ;;  %v22303_v50 = vadd.f32 %v22139_v41, %v9151_v14  ;;  %v22312_v24 = vadd.f32 %v22139_v41, %v17051_v18  ;;  %v17754_v18 = vld [vmem:[%s26754_s0 + $0xed8] sm:$0xff]  }
 0x2df   :  { %v16478_v57 = vpop.f32.mrb[0].mxu0 }
 0x2e0   :  { %16581 = vmatmul.mubr.msk.bf16.gmra.mrb[104].mxu0 %vm4069_vm2, %v17741_v38  ;;  %v6863_v33 = vpop.f32.mrb[1].mxu0  ;;  %v17749_v38 = vld [vmem:[%s26754_s0 + $0x5c8] sm:$0xff]   ;;  %v22321_v14 = vadd.f32 %v22139_v41, %v16478_v57 }
 0x2e1   :  { %17157 = vmatmul.mubr.msk.bf16.gmra.mrb[104].mxu1 %vm4069_vm2, %v17742_v12  ;;  %16584 = vmatprep.mubr.msk.bf16.mxu0 %vm4069_vm2, %v17743_v2  ;;  %v16479_v55 = vpop.f32.mrb[2].mxu0  ;;  %v22288_v12 = vadd.f32 %v22139_v41, %v16474_v48  ;;  %v22306_v48 = vadd.f32 %v22139_v41, %v16475_v61  ;;  %v22327_v62 = vadd.f32 %v22139_v41, %v6863_v33 }
 0x2e2   :  { %17160 = vmatprep.mubr.msk.bf16.mxu1 %vm4069_vm2, %v17744_v7  ;;  %v6866_v10 = vpop.f32.mrb[3].mxu0  ;;  %v22348_v57 = vadd.f32 %v22139_v41, %v16479_v55 }
 0x2e3   :  { %v17054_v47 = vpop.f32.mrb[0].mxu1 }
 0x2e4   :  { %v9167_v16 = vpop.f32.mrb[1].mxu1  ;;  %v22324_v44 = vadd.f32 %v22139_v41, %v17054_v47 }
 0x2e5   :  { %v17055_v58 = vpop.f32.mrb[2].mxu1 }
 0x2e6   :  { %v9170_v31 = vpop.f32.mrb[3].mxu1  ;;  %v22351_v33 = vadd.f32 %v22139_v41, %v17055_v58 }
 0x2e7   :  { %v16482_v42 = vpop.f32.mrb[4].mxu0 }
 0x2e8   :  { %16585 = vmatmul.mubr.msk.bf16.gmra.mrb[108].mxu0 %vm4069_vm2, %v17745_v60  ;;  %v6879_v0 = vpop.f32.mrb[5].mxu0  ;;  %v17750_v60 = vld [vmem:[%s26754_s0 + $0xec8] sm:$0xff]   ;;  %27167 = vst [vmem:[#allocation4_spill] sm:$0xff] %v22351_v33  ;;  %v22364_v55 = vadd.f32 %v22139_v41, %v16482_v42 }
 0x2e9   :  { %17161 = vmatmul.mubr.msk.bf16.gmra.mrb[108].mxu1 %vm4069_vm2, %v17746_v1  ;;  %16588 = vmatprep.mubr.msk.bf16.mxu0 %vm4069_vm2, %v17747_v15  ;;  %v16483_v7 = vpop.f32.mrb[6].mxu0  ;;  %v17751_v1 = vld [vmem:[%s26754_s0 + $0x5d0] sm:$0xff]   ;;  %v22297_v15 = vadd.f32 %v22139_v41, %v17050_v28  ;;  %v22315_v28 = vadd.f32 %v22139_v41, %v6850_v56  ;;  %v22332_v56 = vadd.f32 %v22139_v41, %v9167_v16 }
 0x2ea   :  { %17164 = vmatprep.mubr.msk.bf16.mxu1 %vm4069_vm2, %v17748_v63  ;;  %v22300_v63 = vadd.f32 %v22139_v41, %v6847_v46  ;;  %v6882_v35 = vpop.f32.mrb[7].mxu0  ;;  %v22318_v46 = vadd.f32 %v22139_v41, %v9154_v36  ;;  %27168 = vst [vmem:[#allocation13_spill] sm:$0xff] %v22364_v55  ;;  %v22382_v42 = vadd.f32 %v22139_v41, %v16483_v7 }
 0x2eb   :  { %v17058_v26 = vpop.f32.mrb[4].mxu1 }
 0x2ec   :  { %v9183_v2 = vpop.f32.mrb[5].mxu1  ;;  %v22373_v16 = vadd.f32 %v22139_v41, %v17058_v26  ;;  %27170 = vst [vmem:[#allocation5_spill] sm:$0xff] %v22382_v42  ;;  %v22391_v26 = vadd.f32 %v22139_v41, %v6882_v35  ;;  %v17759_v35 = vld [vmem:[%s26754_s0 + $0x5f0] sm:$0xff]  }
 0x2ed   :  { %v17059_v17 = vpop.f32.mrb[6].mxu1 }
 0x2ee   :  { %v9186_v61 = vpop.f32.mrb[7].mxu1  ;;  %27169 = vst [vmem:[#allocation14_spill] sm:$0xff] %v22373_v16  ;;  %v22388_v4 = vadd.f32 %v22139_v41, %v17059_v17 }
 0x2ef   :  { %v16486_v13 = vpop.f32.mrb[8].mxu0 }
 0x2f0   :  { %16589 = vmatmul.mubr.msk.bf16.gmra.mrb[112].mxu0 %vm4069_vm2, %v17749_v38  ;;  %v6895_v47 = vpop.f32.mrb[9].mxu0  ;;  %v17753_v38 = vld [vmem:[%s26754_s0 + $0x5d8] sm:$0xff]   ;;  %27171 = vst [vmem:[#allocation23_spill] sm:$0xff] %v22388_v4  ;;  %v17760_v4 = vld [vmem:[%s26754_s0 + $0xef0] sm:$0xff]  }
 0x2f1   :  { %17165 = vmatmul.mubr.msk.bf16.gmra.mrb[112].mxu1 %vm4069_vm2, %v17750_v60  ;;  %16592 = vmatprep.mubr.msk.bf16.mxu0 %vm4069_vm2, %v17751_v1  ;;  %v22358_v60 = vadd.f32 %v22139_v41, %v6866_v10  ;;  %v22361_v1 = vadd.f32 %v22139_v41, %v9170_v31  ;;  %v16487_v58 = vpop.f32.mrb[10].mxu0  ;;  %v22376_v10 = vadd.f32 %v22139_v41, %v6879_v0 }
 0x2f2   :  { %17168 = vmatprep.mubr.msk.bf16.mxu1 %vm4069_vm2, %v17752_v30  ;;  %v22379_v31 = vadd.f32 %v22139_v41, %v9183_v2  ;;  %v6898_v25 = vpop.f32.mrb[11].mxu0  ;;  %v22394_v0 = vadd.f32 %v22139_v41, %v9186_v61  ;;  %v22397_v2 = vadd.f32 %v22139_v41, %v16486_v13  ;;  %v22405_v17 = vadd.f32 %v22139_v41, %v6895_v47 }
 0x2f3   :  { %v17062_v30 = vpop.f32.mrb[8].mxu1  ;;  %v22428_v47 = vadd.f32 %v22139_v41, %v16487_v58 }
 0x2f4   :  { %v9199_v36 = vpop.f32.mrb[9].mxu1  ;;  %27172 = vst [vmem:[#allocation6_spill] sm:$0xff] %v22397_v2  ;;  %v22402_v9 = vadd.f32 %v22139_v41, %v17062_v30  ;;  %27174 = vst [vmem:[#allocation15_spill] sm:$0xff] %v22405_v17 }
 0x2f5   :  { %v17063_v6 = vpop.f32.mrb[10].mxu1  ;;  %v22412_v45 = vadd.f32 %v22139_v41, %v9199_v36 }
 0x2f6   :  { %v9202_v7 = vpop.f32.mrb[11].mxu1  ;;  %27173 = vst [vmem:[#allocation24_spill] sm:$0xff] %v22402_v9 }
 0x2f7   :  { %27175 = vst [vmem:[#allocation16_spill] sm:$0xff] %v22412_v45  ;;  %v16490_v61 = vpop.f32.mrb[12].mxu0  ;;  %v22449_v36 = vadd.f32 %v22139_v41, %v9202_v7 }
 0x2f8   :  { %16593 = vmatmul.mubr.msk.bf16.gmra.mrb[116].mxu0 %vm4069_vm2, %v17753_v38  ;;  %v6920_v38 = vadd.f32 %v22139_v41, %v16490_v61  ;;  %v17758_v61 = vld [vmem:[%s26754_s0 + $0xee8] sm:$0xff]  }
 0x2f9   :  { %17169 = vmatmul.mubr.msk.bf16.gmra.mrb[116].mxu1 %vm4069_vm2, %v17754_v18  ;;  %16596 = vmatprep.mubr.msk.bf16.mxu0 %vm4069_vm2, %v17755_v53  ;;  %v22436_v18 = vadd.f32 %v22139_v41, %v17063_v6  ;;  %v22439_v53 = vadd.f32 %v22139_v41, %v6898_v25 }
 0x2fa   :  { %17172 = vmatprep.mubr.msk.bf16.mxu1 %vm4069_vm2, %v17756_v52  ;;  %v6911_v52 = vpop.f32.mrb[13].mxu0  ;;  %v10716_v6 = vmax.f32 %v6920_v38, 0.0 }
 0x2fb   :  { %v17066_v27 = vpop.f32.mrb[12].mxu1  ;;  %v16491_v13 = vpop.f32.mrb[14].mxu0  ;;  %v22452_v9 = vadd.f32 %v22139_v41, %v6911_v52 }
 0x2fc   :  { %v9224_v30 = vadd.f32 %v22139_v41, %v17066_v27  ;;  %v9215_v58 = vpop.f32.mrb[13].mxu1  ;;  %v6923_v25 = vadd.f32 %v22139_v41, %v16491_v13  ;;  %v6914_v2 = vpop.f32.mrb[15].mxu0  ;;  %v27176_v13 = vmax.f32 %v22300_v63, 0.0  ;;  %v11287_v63 = vmax.f32 %v22449_v36, 0.0  ;;  %v27214_v36 = vld [vmem:[#allocation11_spill] sm:$0xff] }
 0x2fd   :  { %v17067_v27 = vpop.f32.mrb[14].mxu1  ;;  %v22459_v16 = vadd.f32 %v22139_v41, %v9215_v58  ;;  %v22463_v7 = vadd.f32 %v22139_v41, %v6914_v2  ;;  %v10711_v58 = vmax.f32 %v22439_v53, 0.0  ;;  %v17776_v53 = vld [vmem:[%s26754_s0 + $0xf30] sm:$0xff]  }
 0x2fe   :  { %v11292_v42 = vmax.f32 %v9224_v30, 0.0  ;;  %v9227_v55 = vadd.f32 %v22139_v41, %v17067_v27  ;;  %v9218_v38 = vpop.f32.mrb[15].mxu1  ;;  %v11940_v45 = vmax.f32 %v27176_v13, %v10716_v6  ;;  %v10717_v17 = vmax.f32 %v6923_v25, 0.0  ;;  %v17764_v30 = vld [vmem:[%s26754_s0 + $0xf00] sm:$0xff]  }
 0x2ff   :  { %v22469_v49 = vadd.f32 %v22139_v41, %v9218_v38  ;;  %v27177_v27 = vmax.f32 %v22303_v50, 0.0 }
 0x300   :  { %16597 = vmatmul.mubr.msk.bf16.gmra.mrb[120].mxu0 %vm4069_vm2, %v17757_v3  ;;  %v11293_v33 = vmax.f32 %v9227_v55, 0.0  ;;  %v12228_v6 = vmax.f32 %v21963_v21, %v11940_v45  ;;  %v27178_v3 = vmax.f32 %v22315_v28, 0.0  ;;  %v27179_v55 = vmax.f32 %v22318_v46, 0.0 }
 0x301   :  { %v12084_v2 = vmax.f32 %v27177_v27, %v11292_v42  ;;  %17173 = vmatmul.mubr.msk.bf16.gmra.mrb[120].mxu1 %vm4069_vm2, %v17758_v61  ;;  %16600 = vmatprep.mubr.msk.bf16.mxu0 %vm4069_vm2, %v17759_v35  ;;  %v16494_v61 = vpop.f32.mrb[16].mxu0 }
 0x302   :  { %v11941_v38 = vmax.f32 %v27178_v3, %v10717_v17  ;;  %17176 = vmatprep.mubr.msk.bf16.mxu1 %vm4069_vm2, %v17760_v4  ;;  %v12085_v42 = vmax.f32 %v27179_v55, %v11293_v33  ;;  %v15404_v27 = vpack.c.bf16 %v12228_v6, %v12228_v6  ;;  %v6936_v28 = vadd.f32 %v22139_v41, %v16494_v61  ;;  %v6927_v3 = vpop.f32.mrb[17].mxu0 }
 0x303   :  { %v12372_v13 = vmax.f32 %v21971_v59, %v12084_v2  ;;  %v17070_v17 = vpop.f32.mrb[16].mxu1  ;;  %v17761_v59 = vld [vmem:[%s26754_s0 + $0x5f8] sm:$0xff]   ;;  %v6928_v2 = vadd.f32 %v22139_v41, %v6927_v3  ;;  %v16495_v55 = vpop.f32.mrb[18].mxu0 }
 0x304   :  { %v12229_v21 = vmax.f32 %v21978_v34, %v11941_v38  ;;  %v12373_v46 = vmax.f32 %v21984_v29, %v12085_v42  ;;  %v9240_v33 = vadd.f32 %v22139_v41, %v17070_v17  ;;  %v9231_v6 = vpop.f32.mrb[17].mxu1  ;;  %v17762_v34 = vld [vmem:[%s26754_s0 + $0xef8] sm:$0xff]   ;;  %v17763_v38 = vld [vmem:[%s26754_s0 + $0x600] sm:$0xff]   ;;  %13669 = vst.msk [vmem:[%s26756_s3 + $0xd8] sm:$0xf] %vm13614_vm3, %v15404_v27  ;;  %v6939_v61 = vadd.f32 %v22139_v41, %v16495_v55  ;;  %v6930_v3 = vpop.f32.mrb[19].mxu0 }
 0x305   :  { %v15548_v4 = vpack.c.bf16 %v12372_v13, %v12372_v13  ;;  %v10720_v13 = vmax.f32 %v6936_v28, 0.0  ;;  %v9232_v42 = vadd.f32 %v22139_v41, %v9231_v6  ;;  %v17071_v17 = vpop.f32.mrb[18].mxu1  ;;  %v10718_v27 = vmax.f32 %v6928_v2, 0.0 }
 0x306   :  { %v15405_v29 = vpack.c.bf16 %v12229_v21, %v12229_v21  ;;  %v15549_v52 = vpack.c.bf16 %v12373_v46, %v12373_v46  ;;  %v11296_v45 = vmax.f32 %v9240_v33, 0.0  ;;  %v9243_v21 = vadd.f32 %v22139_v41, %v17071_v17  ;;  %v9234_v28 = vpop.f32.mrb[19].mxu1 }
 0x307   :  { %13813 = vst.msk [vmem:[%s26756_s3 + $0x318] sm:$0xf] %vm13614_vm3, %v15548_v4  ;;  %v27180_v6 = vmax.f32 %v22327_v62, 0.0  ;;  %v11294_v35 = vmax.f32 %v9232_v42, 0.0  ;;  %v10721_v50 = vmax.f32 %v6939_v61, 0.0  ;;  %v6931_v25 = vadd.f32 %v22139_v41, %v6930_v3 }
 0x308   :  { %13670 = vst.msk [vmem:[%s26756_s3 + $0xdc] sm:$0xf] %vm13614_vm3, %v15405_v29  ;;  %16601 = vmatmul.mubr.msk.bf16.gmra.mrb[124].mxu0 %vm4069_vm2, %v17761_v59  ;;  %13814 = vst.msk [vmem:[%s26756_s3 + $0x31c] sm:$0xf] %vm13614_vm3, %v15549_v52  ;;  %v27181_v4 = vmax.f32 %v22332_v56, 0.0  ;;  %v27182_v33 = vmax.f32 %v22288_v12, 0.0  ;;  %v9235_v62 = vadd.f32 %v22139_v41, %v9234_v28 }
 0x309   :  { %v11944_v55 = vmax.f32 %v27180_v6, %v10720_v13  ;;  %v11297_v29 = vmax.f32 %v9243_v21, 0.0  ;;  %17177 = vmatmul.mubr.msk.bf16.gmra.mrb[124].mxu1 %vm4069_vm2, %v17762_v34  ;;  %16604 = vmatprep.mubr.msk.bf16.mxu0 %vm4069_vm2, %v17763_v38  ;;  %v27183_v13 = vmax.f32 %v22297_v15, 0.0  ;;  %v27184_v52 = vmax.f32 %v22358_v60, 0.0  ;;  %v16498_v38 = vpop.f32.mrb[20].mxu0 }
 0x30a   :  { %v12088_v46 = vmax.f32 %v27181_v4, %v11296_v45  ;;  %v11942_v2 = vmax.f32 %v27182_v33, %v10718_v27  ;;  %v10719_v56 = vmax.f32 %v6931_v25, 0.0  ;;  %17180 = vmatprep.mubr.msk.bf16.mxu1 %vm4069_vm2, %v17764_v30  ;;  %v27185_v17 = vmax.f32 %v22361_v1, 0.0 }
 0x30b   :  { %v12232_v59 = vmax.f32 %v22022_v23, %v11944_v55  ;;  %v12086_v42 = vmax.f32 %v27183_v13, %v11294_v35  ;;  %v11945_v61 = vmax.f32 %v27184_v52, %v10721_v50  ;;  %v11295_v3 = vmax.f32 %v9235_v62, 0.0  ;;  %v17074_v25 = vpop.f32.mrb[20].mxu1  ;;  %v6943_v35 = vpop.f32.mrb[21].mxu0 }
 0x30c   :  { %v12376_v12 = vmax.f32 %v22028_v32, %v12088_v46  ;;  %v12230_v45 = vmax.f32 %v22032_v39, %v11942_v2  ;;  %v12089_v34 = vmax.f32 %v27185_v17, %v11297_v29  ;;  %v27186_v60 = vmax.f32 %v22306_v48, 0.0  ;;  %v17765_v32 = vld [vmem:[%s26754_s0 + $0x608] sm:$0xff]   ;;  %v9247_v6 = vpop.f32.mrb[21].mxu1  ;;  %v17767_v48 = vld [vmem:[%s26754_s0 + $0x610] sm:$0xff]  }
 0x30d   :  { %v15408_v27 = vpack.c.bf16 %v12232_v59, %v12232_v59  ;;  %v12374_v23 = vmax.f32 %v22039_v19, %v12086_v42  ;;  %v12233_v15 = vmax.f32 %v22041_v54, %v11945_v61  ;;  %v27187_v21 = vmax.f32 %v22312_v24, 0.0  ;;  %v16499_v19 = vpop.f32.mrb[22].mxu0  ;;  %v17766_v54 = vld [vmem:[%s26754_s0 + $0xf08] sm:$0xff]   ;;  %v17075_v46 = vpop.f32.mrb[22].mxu1  ;;  %v17768_v2 = vld [vmem:[%s26754_s0 + $0xf10] sm:$0xff]  }
 0x30e   :  { %v11943_v50 = vmax.f32 %v27186_v60, %v10719_v56  ;;  %v15552_v39 = vpack.c.bf16 %v12376_v12, %v12376_v12  ;;  %v15406_v30 = vpack.c.bf16 %v12230_v45, %v12230_v45  ;;  %v12377_v1 = vmax.f32 %v22049_v5, %v12089_v34  ;;  %v6946_v33 = vpop.f32.mrb[23].mxu0  ;;  %v9250_v13 = vpop.f32.mrb[23].mxu1 }
 0x30f   :  { %v12087_v28 = vmax.f32 %v27187_v21, %v11295_v3  ;;  %13673 = vst.msk [vmem:[%s26756_s3 + $0xe8] sm:$0xf] %vm13614_vm3, %v15408_v27  ;;  %v15550_v55 = vpack.c.bf16 %v12374_v23, %v12374_v23  ;;  %v15409_v5 = vpack.c.bf16 %v12233_v15, %v12233_v15  ;;  %v6952_v4 = vadd.f32 %v22139_v41, %v16498_v38 }
 0x310   :  { %v12231_v24 = vmax.f32 %v22053_v11, %v11943_v50  ;;  %13817 = vst.msk [vmem:[%s26756_s3 + $0x328] sm:$0xf] %vm13614_vm3, %v15552_v39  ;;  %13671 = vst.msk [vmem:[%s26756_s3 + $0xe0] sm:$0xf] %vm13614_vm3, %v15406_v30  ;;  %v15553_v29 = vpack.c.bf16 %v12377_v1, %v12377_v1  ;;  %v9256_v62 = vadd.f32 %v22139_v41, %v17074_v25  ;;  %16605 = vmatmul.mubr.msk.bf16.gmra.mrb[128].mxu0 %vm4069_vm2, %v17765_v32  ;;  %v16502_v32 = vpop.f32.mrb[24].mxu0 }
 0x311   :  { %v12375_v11 = vmax.f32 %v22062_v37, %v12087_v28  ;;  %v6944_v59 = vadd.f32 %v22139_v41, %v6943_v35  ;;  %13815 = vst.msk [vmem:[%s26756_s3 + $0x320] sm:$0xf] %vm13614_vm3, %v15550_v55  ;;  %13674 = vst.msk [vmem:[%s26756_s3 + $0xec] sm:$0xf] %vm13614_vm3, %v15409_v5  ;;  %v10724_v52 = vmax.f32 %v6952_v4, 0.0  ;;  %v9248_v61 = vadd.f32 %v22139_v41, %v9247_v6 }
 0x312   :  { %v15407_v42 = vpack.c.bf16 %v12231_v24, %v12231_v24  ;;  %v6955_v37 = vadd.f32 %v22139_v41, %v16499_v19  ;;  %13818 = vst.msk [vmem:[%s26756_s3 + $0x32c] sm:$0xf] %vm13614_vm3, %v15553_v29  ;;  %v11300_v12 = vmax.f32 %v9256_v62, 0.0  ;;  %v9259_v17 = vadd.f32 %v22139_v41, %v17075_v46  ;;  %17181 = vmatmul.mubr.msk.bf16.gmra.mrb[128].mxu1 %vm4069_vm2, %v17766_v54  ;;  %v6959_v54 = vpop.f32.mrb[25].mxu0 }
 0x313   :  { %v15551_v56 = vpack.c.bf16 %v12375_v11, %v12375_v11  ;;  %v10722_v45 = vmax.f32 %v6944_v59, 0.0  ;;  %16608 = vmatprep.mubr.msk.bf16.mxu0 %vm4069_vm2, %v17767_v48  ;;  %v27188_v34 = vmax.f32 %v22376_v10, 0.0  ;;  %v11298_v38 = vmax.f32 %v9248_v61, 0.0  ;;  %17184 = vmatprep.mubr.msk.bf16.mxu1 %vm4069_vm2, %v17768_v2  ;;  %v17078_v19 = vpop.f32.mrb[24].mxu1  ;;  %v16503_v24 = vpop.f32.mrb[26].mxu0  ;;  %v17772_v11 = vld [vmem:[%s26754_s0 + $0xf20] sm:$0xff]  }
 0x314   :  { %13672 = vst.msk [vmem:[%s26756_s3 + $0xe4] sm:$0xf] %vm13614_vm3, %v15407_v42  ;;  %v10725_v27 = vmax.f32 %v6955_v37, 0.0  ;;  %v6947_v23 = vadd.f32 %v22139_v41, %v6946_v33  ;;  %v27189_v15 = vmax.f32 %v22379_v31, 0.0  ;;  %v27190_v50 = vmax.f32 %v22321_v14, 0.0  ;;  %v17769_v14 = vld [vmem:[%s26754_s0 + $0x618] sm:$0xff]  }
 0x315   :  { %v11948_v3 = vmax.f32 %v27188_v34, %v10724_v52  ;;  %13816 = vst.msk [vmem:[%s26756_s3 + $0x324] sm:$0xf] %vm13614_vm3, %v15551_v56  ;;  %v11301_v35 = vmax.f32 %v9259_v17, 0.0  ;;  %v9251_v10 = vadd.f32 %v22139_v41, %v9250_v13  ;;  %v27191_v30 = vmax.f32 %v22324_v44, 0.0  ;;  %v9263_v44 = vpop.f32.mrb[25].mxu1  ;;  %v27197_v37 = vld [vmem:[#allocation2_spill] sm:$0xff] }
 0x316   :  { %v12092_v60 = vmax.f32 %v27189_v15, %v11300_v12  ;;  %v11946_v25 = vmax.f32 %v27190_v50, %v10722_v45  ;;  %v27192_v21 = vmax.f32 %v22391_v26, 0.0  ;;  %v10723_v6 = vmax.f32 %v6947_v23, 0.0  ;;  %v17770_v26 = vld [vmem:[%s26754_s0 + $0xf18] sm:$0xff]   ;;  %v17079_v29 = vpop.f32.mrb[26].mxu1 }
 0x317   :  { %v12236_v39 = vmax.f32 %v22097_v20, %v11948_v3  ;;  %v12090_v1 = vmax.f32 %v27191_v30, %v11298_v38  ;;  %v27193_v55 = vmax.f32 %v22394_v0, 0.0  ;;  %v11299_v5 = vmax.f32 %v9251_v10, 0.0  ;;  %v17771_v0 = vld [vmem:[%s26754_s0 + $0x620] sm:$0xff]   ;;  %v9266_v52 = vpop.f32.mrb[27].mxu1  ;;  %v27198_v45 = vld [vmem:[#allocation17_spill] sm:$0xff] }
 0x318   :  { %v11949_v28 = vmax.f32 %v27192_v21, %v10725_v27  ;;  %v12380_v31 = vmax.f32 %v22103_v51, %v12092_v60  ;;  %v12234_v48 = vmax.f32 %v22107_v43, %v11946_v25  ;;  %v27194_v2 = vmax.f32 %v22348_v57, 0.0  ;;  %v6962_v43 = vpop.f32.mrb[27].mxu0  ;;  %16609 = vmatmul.mubr.msk.bf16.gmra.mrb[132].mxu0 %vm4069_vm2, %v17769_v14  ;;  %v27201_v14 = vld [vmem:[#allocation16_spill] sm:$0xff] }
 0x319   :  { %v12093_v20 = vmax.f32 %v27193_v55, %v11301_v35  ;;  %v15412_v4 = vpack.c.bf16 %v12236_v39, %v12236_v39  ;;  %v12378_v46 = vmax.f32 %v22117_v22, %v12090_v1  ;;  %v27195_v22 = vld [vmem:[#allocation4_spill] sm:$0xff]  ;;  %v6968_v12 = vadd.f32 %v22139_v41, %v16502_v32  ;;  %16612 = vmatprep.mubr.msk.bf16.mxu0 %vm4069_vm2, %v17771_v0  ;;  %v16506_v10 = vpop.f32.mrb[28].mxu0  ;;  %v27199_v32 = vld [vmem:[#allocation15_spill] sm:$0xff]  ;;  %v27203_v55 = vld [vmem:[#allocation13_spill] sm:$0xff] }
 0x31a   :  { %v12237_v33 = vmax.f32 %v22119_v40, %v11949_v28  ;;  %v11947_v51 = vmax.f32 %v27194_v2, %v10723_v6  ;;  %v15556_v62 = vpack.c.bf16 %v12380_v31, %v12380_v31  ;;  %v15410_v59 = vpack.c.bf16 %v12234_v48, %v12234_v48  ;;  %17185 = vmatmul.mubr.msk.bf16.gmra.mrb[132].mxu1 %vm4069_vm2, %v17770_v26 }
 0x31b   :  { %v12381_v13 = vmax.f32 %v22124_v8, %v12093_v20  ;;  %v27196_v42 = vmax.f32 %v27195_v22, 0.0  ;;  %13677 = vst.msk [vmem:[%s26756_s3 + $0xf8] sm:$0xf] %vm13614_vm3, %v15412_v4  ;;  %v15554_v57 = vpack.c.bf16 %v12378_v46, %v12378_v46  ;;  %v9272_v34 = vadd.f32 %v22139_v41, %v17078_v19  ;;  %17188 = vmatprep.mubr.msk.bf16.mxu1 %vm4069_vm2, %v17772_v11  ;;  %v17082_v6 = vpop.f32.mrb[28].mxu1  ;;  %v6975_v19 = vpop.f32.mrb[29].mxu0  ;;  %v17774_v46 = vld [vmem:[%s26754_s0 + $0xf28] sm:$0xff]  }
 0x31c   :  { %v15413_v61 = vpack.c.bf16 %v12237_v33, %v12237_v33  ;;  %v12235_v56 = vmax.f32 %v27197_v37, %v11947_v51  ;;  %13821 = vst.msk [vmem:[%s26756_s3 + $0x338] sm:$0xf] %vm13614_vm3, %v15556_v62  ;;  %13675 = vst.msk [vmem:[%s26756_s3 + $0xf0] sm:$0xf] %vm13614_vm3, %v15410_v59  ;;  %v6960_v3 = vadd.f32 %v22139_v41, %v6959_v54  ;;  %v10728_v27 = vmax.f32 %v6968_v12, 0.0  ;;  %v17773_v54 = vld [vmem:[%s26754_s0 + $0x628] sm:$0xff]  }
 0x31d   :  { %v12091_v40 = vmax.f32 %v27196_v42, %v11299_v5  ;;  %v15557_v8 = vpack.c.bf16 %v12381_v13, %v12381_v13  ;;  %13819 = vst.msk [vmem:[%s26756_s3 + $0x330] sm:$0xf] %vm13614_vm3, %v15554_v57  ;;  %v9264_v23 = vadd.f32 %v22139_v41, %v9263_v44  ;;  %v6971_v15 = vadd.f32 %v22139_v41, %v16503_v24  ;;  %v9279_v26 = vpop.f32.mrb[29].mxu1  ;;  %v16507_v4 = vpop.f32.mrb[30].mxu0  ;;  %v27205_v33 = vld [vmem:[#allocation18_spill] sm:$0xff]  ;;  %v17775_v13 = vld [vmem:[%s26754_s0 + $0x630] sm:$0xff]  }
 0x31e   :  { %13678 = vst.msk [vmem:[%s26756_s3 + $0xfc] sm:$0xf] %vm13614_vm3, %v15413_v61  ;;  %v15411_v38 = vpack.c.bf16 %v12235_v56, %v12235_v56  ;;  %v11304_v50 = vmax.f32 %v9272_v34, 0.0  ;;  %v10726_v25 = vmax.f32 %v6960_v3, 0.0  ;;  %v9275_v35 = vadd.f32 %v22139_v41, %v17079_v29  ;;  %v27206_v51 = vld [vmem:[#allocation14_spill] sm:$0xff]  ;;  %v17083_v62 = vpop.f32.mrb[30].mxu1 }
 0x31f   :  { %v12379_v17 = vmax.f32 %v27198_v45, %v12091_v40  ;;  %13822 = vst.msk [vmem:[%s26756_s3 + $0x33c] sm:$0xf] %vm13614_vm3, %v15557_v8  ;;  %v27200_v39 = vmax.f32 %v27199_v32, 0.0  ;;  %v11302_v1 = vmax.f32 %v9264_v23, 0.0  ;;  %v10729_v21 = vmax.f32 %v6971_v15, 0.0  ;;  %v6978_v59 = vpop.f32.mrb[31].mxu0 }
 0x320   :  { %13676 = vst.msk [vmem:[%s26756_s3 + $0xf4] sm:$0xf] %vm13614_vm3, %v15411_v38  ;;  %v6963_v28 = vadd.f32 %v22139_v41, %v6962_v43  ;;  %v27202_v31 = vmax.f32 %v27201_v14, 0.0  ;;  %v27204_v20 = vmax.f32 %v27203_v55, 0.0  ;;  %v11305_v44 = vmax.f32 %v9275_v35, 0.0  ;;  %v27208_v22 = vld [vmem:[#allocation7_spill] sm:$0xff]  ;;  %16613 = vmatmul.mubr.msk.bf16.gmra.mrb[136].mxu0 %vm4069_vm2, %v17773_v54 }
 0x321   :  { %v15555_v60 = vpack.c.bf16 %v12379_v17, %v12379_v17  ;;  %v11952_v30 = vmax.f32 %v27200_v39, %v10728_v27  ;;  %v9267_v24 = vadd.f32 %v22139_v41, %v9266_v52  ;;  %v27207_v29 = vmax.f32 %v27206_v51, 0.0  ;;  %v27209_v40 = vld [vmem:[#allocation27_spill] sm:$0xff]  ;;  %v9282_v37 = vpop.f32.mrb[31].mxu1  ;;  %v27210_v56 = vld [vmem:[#allocation8_spill] sm:$0xff]  ;;  %v27212_v17 = vld [vmem:[#allocation5_spill] sm:$0xff]  ;;  %16616 = vmatprep.mubr.msk.bf16.mxu0 %vm4069_vm2, %v17775_v13 }
 0x322   :  { %v12096_v48 = vmax.f32 %v27202_v31, %v11304_v50  ;;  %v11950_v5 = vmax.f32 %v27204_v20, %v10726_v25  ;;  %v11953_v0 = vmax.f32 %v10711_v58, %v10729_v21  ;;  %v10727_v11 = vmax.f32 %v6963_v28, 0.0  ;;  %v27211_v8 = vld [vmem:[#allocation28_spill] sm:$0xff]  ;;  %v27215_v23 = vld [vmem:[#allocation23_spill] sm:$0xff]  ;;  %17189 = vmatmul.mubr.msk.bf16.gmra.mrb[136].mxu1 %vm4069_vm2, %v17774_v46  ;;  %v17777_v20 = vld [vmem:[%s26754_s0 + $0x638] sm:$0xff]  }
 0x323   :  { %13820 = vst.msk [vmem:[%s26756_s3 + $0x334] sm:$0xf] %vm13614_vm3, %v15555_v60  ;;  %v12240_v2 = vmax.f32 %v27205_v33, %v11952_v30  ;;  %v12094_v43 = vmax.f32 %v27207_v29, %v11302_v1  ;;  %v12097_v57 = vmax.f32 %v11287_v63, %v11305_v44  ;;  %v11303_v61 = vmax.f32 %v9267_v24, 0.0  ;;  %v27217_v35 = vld [vmem:[#allocation12_spill] sm:$0xff]  ;;  %v27218_v1 = vld [vmem:[#allocation25_spill] sm:$0xff]  ;;  %17192 = vmatprep.mubr.msk.bf16.mxu1 %vm4069_vm2, %v17776_v53 }
 0x324   :  { %v12384_v42 = vmax.f32 %v27208_v22, %v12096_v48  ;;  %v12238_v52 = vmax.f32 %v27209_v40, %v11950_v5  ;;  %v12241_v45 = vmax.f32 %v27211_v8, %v11953_v0  ;;  %v27213_v34 = vmax.f32 %v27212_v17, 0.0  ;;  %v22759_v48 = vpop.f32.mrb[32].mxu1  ;;  %v17778_v33 = vld [vmem:[%s26754_s0 + $0xf38] sm:$0xff]   ;;  %v17780_v22 = vld [vmem:[%s26754_s0 + $0xf40] sm:$0xff]  }
 0x325   :  { %v15416_v58 = vpack.c.bf16 %v12240_v2, %v12240_v2  ;;  %v12382_v12 = vmax.f32 %v27210_v56, %v12094_v43  ;;  %v12385_v63 = vmax.f32 %v27214_v36, %v12097_v57  ;;  %v27216_v15 = vmax.f32 %v27215_v23, 0.0  ;;  %v22771_v46 = vpop.f32.mrb[33].mxu1  ;;  %v17779_v2 = vld [vmem:[%s26754_s0 + $0x640] sm:$0xff]  }
 0x326   :  { %v11951_v3 = vmax.f32 %v27213_v34, %v10727_v11  ;;  %v15560_v38 = vpack.c.bf16 %v12384_v42, %v12384_v42  ;;  %v15414_v27 = vpack.c.bf16 %v12238_v52, %v12238_v52  ;;  %v15417_v25 = vpack.c.bf16 %v12241_v45, %v12241_v45  ;;  %v27221_v40 = vld [vmem:[#allocation6_spill] sm:$0xff] }
 0x327   :  { %v12095_v60 = vmax.f32 %v27216_v15, %v11303_v61  ;;  %13681 = vst.msk [vmem:[%s26756_s3 + $0x108] sm:$0xf] %vm13614_vm3, %v15416_v58  ;;  %v15558_v50 = vpack.c.bf16 %v12382_v12, %v12382_v12  ;;  %v6984_v39 = vadd.f32 %v22139_v41, %v16506_v10  ;;  %v15561_v30 = vpack.c.bf16 %v12385_v63, %v12385_v63  ;;  %v22746_v10 = vpop.f32.mrb[32].mxu0  ;;  %v27223_v58 = vld [vmem:[#allocation21_spill] sm:$0xff]  ;;  %v27224_v12 = vld [vmem:[#allocation24_spill] sm:$0xff]  ;;  %v27230_v15 = vld [vmem:[#allocation19_spill] sm:$0xff] }
 0x328   :  { %v12239_v32 = vmax.f32 %v27217_v35, %v11951_v3  ;;  %13825 = vst.msk [vmem:[%s26756_s3 + $0x348] sm:$0xf] %vm13614_vm3, %v15560_v38  ;;  %13679 = vst.msk [vmem:[%s26756_s3 + $0x100] sm:$0xf] %vm13614_vm3, %v15414_v27  ;;  %v9288_v28 = vadd.f32 %v22139_v41, %v17082_v6  ;;  %v6976_v54 = vadd.f32 %v22139_v41, %v6975_v19  ;;  %v22761_v55 = vpop.f32.mrb[33].mxu0  ;;  %v27219_v51 = vmax.f32 %v22452_v9, 0.0 }
 0x329   :  { %v12383_v21 = vmax.f32 %v27218_v1, %v12095_v60  ;;  %13823 = vst.msk [vmem:[%s26756_s3 + $0x340] sm:$0xf] %vm13614_vm3, %v15558_v50  ;;  %13682 = vst.msk [vmem:[%s26756_s3 + $0x10c] sm:$0xf] %vm13614_vm3, %v15417_v25  ;;  %v10732_v31 = vmax.f32 %v6984_v39, 0.0  ;;  %v9280_v6 = vadd.f32 %v22139_v41, %v9279_v26  ;;  %v6987_v19 = vadd.f32 %v22139_v41, %v16507_v4  ;;  %v22773_v4 = vpop.f32.mrb[34].mxu0 }
 0x32a   :  { %v15415_v14 = vpack.c.bf16 %v12239_v32, %v12239_v32  ;;  %13826 = vst.msk [vmem:[%s26756_s3 + $0x34c] sm:$0xf] %vm13614_vm3, %v15561_v30  ;;  %v11308_v44 = vmax.f32 %v9288_v28, 0.0  ;;  %v10730_v24 = vmax.f32 %v6976_v54, 0.0  ;;  %v9291_v26 = vadd.f32 %v22139_v41, %v17083_v62  ;;  %v22788_v62 = vpop.f32.mrb[34].mxu1  ;;  %v22790_v13 = vpop.f32.mrb[35].mxu0  ;;  %16617 = vmatmul.mubr.msk.bf16.gmra.mrb[140].mxu0 %vm4069_vm2, %v17777_v20  ;;  %17193 = vmatmul.mubr.msk.bf16.gmra.mrb[140].mxu1 %vm4069_vm2, %v17778_v33 }
 0x32b   :  { %v15559_v5 = vpack.c.bf16 %v12383_v21, %v12383_v21  ;;  %v11956_v29 = vmax.f32 %v27219_v51, %v10732_v31  ;;  %v11306_v43 = vmax.f32 %v9280_v6, 0.0  ;;  %v10733_v0 = vmax.f32 %v6987_v19, 0.0  ;;  %v22804_v53 = vpop.f32.mrb[35].mxu1  ;;  %v27228_v27 = vld [vmem:[#allocation22_spill] sm:$0xff]  ;;  %16620 = vmatprep.mubr.msk.bf16.mxu0 %vm4069_vm2, %v17779_v2  ;;  %17196 = vmatprep.mubr.msk.bf16.mxu1 %vm4069_vm2, %v17780_v22  ;;  %v27233_v30 = vld [vmem:[#allocation9_spill] sm:$0xff]  ;;  %v22826_v28 = vpop.f32.mrb[36].mxu0 }
 0x32c   :  { %13680 = vst.msk [vmem:[%s26756_s3 + $0x104] sm:$0xf] %vm13614_vm3, %v15415_v14  ;;  %v6979_v11 = vadd.f32 %v22139_v41, %v6978_v59  ;;  %v27220_v9 = vmax.f32 %v22459_v16, 0.0  ;;  %v27222_v52 = vmax.f32 %v27221_v40, 0.0  ;;  %v11309_v59 = vmax.f32 %v9291_v26, 0.0  ;;  %v27227_v16 = vld [vmem:[#allocation26_spill] sm:$0xff] }
 0x32d   :  { %13824 = vst.msk [vmem:[%s26756_s3 + $0x344] sm:$0xf] %vm13614_vm3, %v15559_v5  ;;  %v9283_v61 = vadd.f32 %v22139_v41, %v9282_v37  ;;  %v12244_v56 = vmax.f32 %v27223_v58, %v11956_v29  ;;  %v27225_v8 = vmax.f32 %v27224_v12, 0.0  ;;  %v27226_v17 = vmax.f32 %v22463_v7, 0.0  ;;  %v27231_v7 = vld [vmem:[#allocation20_spill] sm:$0xff]  ;;  %v22833_v6 = vpop.f32.mrb[36].mxu1 }
 0x32e   :  { %v12100_v42 = vmax.f32 %v27220_v9, %v11308_v44  ;;  %v11954_v57 = vmax.f32 %v27222_v52, %v10730_v24  ;;  %v10731_v3 = vmax.f32 %v6979_v11, 0.0  ;;  %v27229_v63 = vmax.f32 %v22469_v49, 0.0  ;;  %v22835_v19 = vpop.f32.mrb[37].mxu0  ;;  %v27236_v5 = vld [vmem:[#allocation10_spill] sm:$0xff]  ;;  %v9311_v24 = vpop.f32.mrb[37].mxu1  ;;  %v17782_v33 = vld [vmem:[%s26754_s0 + $0xf48] sm:$0xff]  }
 0x32f   :  { %v12098_v45 = vmax.f32 %v27225_v8, %v11306_v43  ;;  %v11957_v34 = vmax.f32 %v27226_v17, %v10733_v0  ;;  %v11307_v37 = vmax.f32 %v9283_v61, 0.0  ;;  %v15420_v23 = vpack.c.bf16 %v12244_v56, %v12244_v56  ;;  %v22849_v26 = vpop.f32.mrb[38].mxu0  ;;  %v17783_v2 = vld [vmem:[%s26754_s0 + $0x650] sm:$0xff]   ;;  %v22865_v29 = vpop.f32.mrb[38].mxu1  ;;  %v17785_v52 = vld [vmem:[%s26754_s0 + $0x658] sm:$0xff]   ;;  %v17787_v58 = vld [vmem:[%s26754_s0 + $0x660] sm:$0xff]  }
 0x330   :  { %v12388_v38 = vmax.f32 %v27227_v16, %v12100_v42  ;;  %v12242_v36 = vmax.f32 %v27228_v27, %v11954_v57  ;;  %v12101_v41 = vmax.f32 %v27229_v63, %v11309_v59  ;;  %v27232_v25 = vmax.f32 %v22428_v47, 0.0  ;;  %v27235_v47 = vld [vmem:[#allocation3_spill] sm:$0xff]  ;;  %v22867_v43 = vpop.f32.mrb[39].mxu0  ;;  %v17784_v0 = vld [vmem:[%s26754_s0 + $0xf50] sm:$0xff]   ;;  %v22876_v22 = vpop.f32.mrb[39].mxu1  ;;  %v17786_v61 = vld [vmem:[%s26754_s0 + $0xf58] sm:$0xff]  }
 0x331   :  { %v12386_v60 = vmax.f32 %v27230_v15, %v12098_v45  ;;  %v12245_v50 = vmax.f32 %v27231_v7, %v11957_v34  ;;  %v27234_v1 = vmax.f32 %v22436_v18, 0.0  ;;  %13685 = vst.msk [vmem:[%s26756_s3 + $0x118] sm:$0xf] %vm13614_vm3, %v15420_v23  ;;  %v17781_v18 = vld [vmem:[%s26754_s0 + $0x648] sm:$0xff]   ;;  %v22890_v9 = vpop.f32.mrb[40].mxu0  ;;  %v17788_v8 = vld [vmem:[%s26754_s0 + $0xf60] sm:$0xff]  }
 0x332   :  { %v11955_v35 = vmax.f32 %v27232_v25, %v10731_v3  ;;  %v15564_v32 = vpack.c.bf16 %v12388_v38, %v12388_v38  ;;  %v15418_v39 = vpack.c.bf16 %v12242_v36, %v12242_v36  ;;  %v12389_v49 = vmax.f32 %v27233_v30, %v12101_v41  ;;  %16621 = vmatmul.mubr.msk.bf16.gmra.mrb[144].mxu0 %vm4069_vm2, %v17781_v18  ;;  %v22894_v40 = vpop.f32.mrb[41].mxu0  ;;  %v17789_v16 = vld [vmem:[%s26754_s0 + $0x668] sm:$0xff]   ;;  %v22934_v38 = vld [vmem:[%s26755_s2] ss:$0 sm:$0xff]  ;;  %v17792_v25 = vld [vmem:[%s26754_s0 + $0xf70] sm:$0xff]  }
 0x333   :  { %v12099_v21 = vmax.f32 %v27234_v1, %v11307_v37  ;;  %v15562_v54 = vpack.c.bf16 %v12386_v60, %v12386_v60  ;;  %v15421_v14 = vpack.c.bf16 %v12245_v50, %v12245_v50  ;;  %17197 = vmatmul.mubr.msk.bf16.gmra.mrb[144].mxu1 %vm4069_vm2, %v17782_v33  ;;  %16624 = vmatprep.mubr.msk.bf16.mxu0 %vm4069_vm2, %v17783_v2  ;;  %v22892_v42 = vpop.f32.mrb[40].mxu1  ;;  %v22901_v59 = vpop.f32.mrb[42].mxu0  ;;  %v17790_v41 = vld [vmem:[%s26754_s0 + $0xf68] sm:$0xff]   ;;  %v17791_v37 = vld [vmem:[%s26754_s0 + $0x670] sm:$0xff]  }
 0x334   :  { %v12243_v31 = vmax.f32 %v27235_v47, %v11955_v35  ;;  %13829 = vst.msk [vmem:[%s26756_s3 + $0x358] sm:$0xf] %vm13614_vm3, %v15564_v32  ;;  %13683 = vst.msk [vmem:[%s26756_s3 + $0x110] sm:$0xf] %vm13614_vm3, %v15418_v39  ;;  %v15565_v20 = vpack.c.bf16 %v12389_v49, %v12389_v49  ;;  %17200 = vmatprep.mubr.msk.bf16.mxu1 %vm4069_vm2, %v17784_v0  ;;  %v22899_v57 = vpop.f32.mrb[41].mxu1  ;;  %v22911_v12 = vpop.f32.mrb[43].mxu0  ;;  %v22938_v27 = vadd.f32 %v22934_v38, %v22746_v10 }
 0x335   :  { %v12387_v44 = vmax.f32 %v27236_v5, %v12099_v21  ;;  %13827 = vst.msk [vmem:[%s26756_s3 + $0x350] sm:$0xf] %vm13614_vm3, %v15562_v54  ;;  %13686 = vst.msk [vmem:[%s26756_s3 + $0x11c] sm:$0xf] %vm13614_vm3, %v15421_v14  ;;  %v22909_v56 = vpop.f32.mrb[42].mxu1  ;;  %v22952_v23 = vadd.f32 %v22934_v38, %v22759_v48  ;;  %v6992_v10 = vadd.f32 %v22934_v38, %v22761_v55 }
 0x336   :  { %v15419_v51 = vpack.c.bf16 %v12243_v31, %v12243_v31  ;;  %13830 = vst.msk [vmem:[%s26756_s3 + $0x35c] sm:$0xf] %vm13614_vm3, %v15565_v20  ;;  %v22916_v45 = vpop.f32.mrb[43].mxu1  ;;  %v9296_v15 = vadd.f32 %v22934_v38, %v22771_v46  ;;  %v22960_v60 = vadd.f32 %v22934_v38, %v22773_v4  ;;  %v22971_v48 = vadd.f32 %v22934_v38, %v22788_v62 }
 0x337   :  { %v15563_v11 = vpack.c.bf16 %v12387_v44, %v12387_v44  ;;  %v22922_v17 = vpop.f32.mrb[44].mxu0  ;;  %v22975_v55 = vadd.f32 %v22934_v38, %v22790_v13  ;;  %v22979_v46 = vadd.f32 %v22934_v38, %v22804_v53  ;;  %v22985_v35 = vadd.f32 %v22934_v38, %v22826_v28  ;;  %v17793_v44 = vld [vmem:[%s26754_s0 + $0x678] sm:$0xff]  }
 0x338   :  { %13684 = vst.msk [vmem:[%s26756_s3 + $0x114] sm:$0xf] %vm13614_vm3, %v15419_v51  ;;  %v22926_v3 = vpop.f32.mrb[45].mxu0  ;;  %v22989_v32 = vadd.f32 %v22934_v38, %v22833_v6  ;;  %v22993_v62 = vadd.f32 %v22934_v38, %v22835_v19  ;;  %v10736_v13 = vmax.f32 %v22938_v27, 0.0  ;;  %v22998_v53 = vadd.f32 %v22934_v38, %v9311_v24 }
 0x339   :  { %13828 = vst.msk [vmem:[%s26756_s3 + $0x354] sm:$0xf] %vm13614_vm3, %v15563_v11  ;;  %v22942_v63 = vpop.f32.mrb[46].mxu0  ;;  %v11312_v39 = vmax.f32 %v22952_v23, 0.0  ;;  %v10734_v30 = vmax.f32 %v6992_v10, 0.0  ;;  %v11310_v49 = vmax.f32 %v9296_v15, 0.0  ;;  %v23010_v14 = vadd.f32 %v22934_v38, %v22849_v26 }
 0x33a   :  { %16625 = vmatmul.mubr.msk.bf16.gmra.mrb[148].mxu0 %vm4069_vm2, %v17785_v52  ;;  %v22964_v50 = vpop.f32.mrb[47].mxu0  ;;  %v10737_v1 = vmax.f32 %v22960_v60, 0.0  ;;  %v11313_v21 = vmax.f32 %v22971_v48, 0.0  ;;  %v10735_v28 = vmax.f32 %v22975_v55, 0.0  ;;  %v11311_v54 = vmax.f32 %v22979_v46, 0.0  ;;  %v17794_v11 = vld [vmem:[%s26754_s0 + $0xf78] sm:$0xff]  }
 0x33b   :  { %17201 = vmatmul.mubr.msk.bf16.gmra.mrb[148].mxu1 %vm4069_vm2, %v17786_v61  ;;  %16628 = vmatprep.mubr.msk.bf16.mxu0 %vm4069_vm2, %v17787_v58  ;;  %v22924_v34 = vpop.f32.mrb[44].mxu1  ;;  %v10738_v19 = vmax.f32 %v22993_v62, 0.0  ;;  %v11314_v24 = vmax.f32 %v22998_v53, 0.0  ;;  %v23024_v26 = vadd.f32 %v22934_v38, %v22865_v29  ;;  %v23028_v33 = vadd.f32 %v22934_v38, %v22867_v43  ;;  %v17795_v52 = vld [vmem:[%s26754_s0 + $0x680] sm:$0xff]   ;;  %v17801_v60 = vld [vmem:[%s26754_s0 + $0x698] sm:$0xff]  }
 0x33c   :  { %17204 = vmatprep.mubr.msk.bf16.mxu1 %vm4069_vm2, %v17788_v8  ;;  %v22940_v36 = vpop.f32.mrb[45].mxu1  ;;  %v23041_v29 = vadd.f32 %v22934_v38, %v22876_v22  ;;  %v23045_v43 = vadd.f32 %v22934_v38, %v22890_v9  ;;  %v23059_v22 = vadd.f32 %v22934_v38, %v22894_v40  ;;  %v23070_v55 = vadd.f32 %v22934_v38, %v22901_v59 }
 0x33d   :  { %v22962_v7 = vpop.f32.mrb[46].mxu1  ;;  %v10739_v59 = vmax.f32 %v23028_v33, 0.0  ;;  %v23099_v33 = vadd.f32 %v22934_v38, %v22911_v12 }
 0x33e   :  { %v22981_v4 = vpop.f32.mrb[47].mxu1 }
 0x33f   :  { %v16526_v47 = vpop.f32.mrb[48].mxu0  ;;  %v10743_v62 = vmax.f32 %v23099_v33, 0.0  ;;  %v17803_v33 = vld [vmem:[%s26754_s0 + $0x6a0] sm:$0xff]  }
 0x340   :  { %v7064_v18 = vadd.f32 %v22934_v38, %v16526_v47  ;;  %v23016_v5 = vpop.f32.mrb[49].mxu0  ;;  %v23078_v47 = vadd.f32 %v22934_v38, %v22909_v56  ;;  %v17800_v56 = vld [vmem:[%s26754_s0 + $0xf90] sm:$0xff]  }
 0x341   :  { %v16527_v0 = vpop.f32.mrb[50].mxu0 }
 0x342   :  { %16629 = vmatmul.mubr.msk.bf16.gmra.mrb[152].mxu0 %vm4069_vm2, %v17789_v16  ;;  %v10752_v61 = vmax.f32 %v7064_v18, 0.0  ;;  %v7067_v58 = vadd.f32 %v22934_v38, %v16527_v0  ;;  %v23048_v16 = vpop.f32.mrb[51].mxu0 }
 0x343   :  { %17205 = vmatmul.mubr.msk.bf16.gmra.mrb[152].mxu1 %vm4069_vm2, %v17790_v41  ;;  %16632 = vmatprep.mubr.msk.bf16.mxu0 %vm4069_vm2, %v17791_v37  ;;  %v17102_v20 = vpop.f32.mrb[48].mxu1  ;;  %v17796_v41 = vld [vmem:[%s26754_s0 + $0xf80] sm:$0xff]   ;;  %v23055_v37 = vadd.f32 %v22934_v38, %v22892_v42 }
 0x344   :  { %17208 = vmatprep.mubr.msk.bf16.mxu1 %vm4069_vm2, %v17792_v25  ;;  %v9368_v2 = vadd.f32 %v22934_v38, %v17102_v20  ;;  %v23031_v51 = vpop.f32.mrb[49].mxu1  ;;  %v23066_v25 = vadd.f32 %v22934_v38, %v22899_v57  ;;  %v23072_v46 = vmax.f32 %v10734_v30, %v10752_v61  ;;  %v10753_v42 = vmax.f32 %v7067_v58, 0.0 }
 0x345   :  { %v17103_v8 = vpop.f32.mrb[50].mxu1  ;;  %v11315_v30 = vmax.f32 %v23041_v29, 0.0 }
 0x346   :  { %v11328_v9 = vmax.f32 %v9368_v2, 0.0  ;;  %v9371_v10 = vadd.f32 %v22934_v38, %v17103_v8  ;;  %v23062_v15 = vpop.f32.mrb[51].mxu1  ;;  %v17797_v8 = vld [vmem:[%s26754_s0 + $0x688] sm:$0xff]  }
 0x348   :  { %v23080_v18 = vmax.f32 %v11310_v49, %v11328_v9  ;;  %v11329_v20 = vmax.f32 %v9371_v10, 0.0 }
 0x34a   :  { %16633 = vmatmul.mubr.msk.bf16.gmra.mrb[156].mxu0 %vm4069_vm2, %v17793_v44  ;;  %v23087_v44 = vmax.f32 %v10735_v28, %v10753_v42  ;;  %v23093_v0 = vmax.f32 %v11311_v54, %v11329_v20  ;;  %v17798_v20 = vld [vmem:[%s26754_s0 + $0xf88] sm:$0xff]   ;;  %v23120_v54 = vadd.f32 %v22934_v38, %v22922_v17 }
 0x34b   :  { %17209 = vmatmul.mubr.msk.bf16.gmra.mrb[156].mxu1 %vm4069_vm2, %v17794_v11  ;;  %16636 = vmatprep.mubr.msk.bf16.mxu0 %vm4069_vm2, %v17795_v52  ;;  %v16530_v11 = vpop.f32.mrb[52].mxu0  ;;  %v17106_v29 = vpop.f32.mrb[52].mxu1 }
 0x34c   :  { %17212 = vmatprep.mubr.msk.bf16.mxu1 %vm4069_vm2, %v17796_v41  ;;  %v7080_v28 = vadd.f32 %v22934_v38, %v16530_v11  ;;  %v7071_v58 = vpop.f32.mrb[53].mxu0  ;;  %v23108_v41 = vadd.f32 %v22934_v38, %v22916_v45  ;;  %v9384_v9 = vadd.f32 %v22934_v38, %v17106_v29  ;;  %v9375_v12 = vpop.f32.mrb[53].mxu1  ;;  %v17799_v11 = vld [vmem:[%s26754_s0 + $0x690] sm:$0xff]  }
 0x34d   :  { %v7072_v10 = vadd.f32 %v22934_v38, %v7071_v58  ;;  %v16531_v42 = vpop.f32.mrb[54].mxu0  ;;  %v9376_v61 = vadd.f32 %v22934_v38, %v9375_v12  ;;  %v17107_v58 = vpop.f32.mrb[54].mxu1 }
 0x34e   :  { %v10756_v45 = vmax.f32 %v7080_v28, 0.0  ;;  %v7083_v29 = vadd.f32 %v22934_v38, %v16531_v42  ;;  %v7074_v49 = vpop.f32.mrb[55].mxu0  ;;  %v11332_v57 = vmax.f32 %v9384_v9, 0.0  ;;  %v9387_v6 = vadd.f32 %v22934_v38, %v17107_v58  ;;  %v9378_v52 = vpop.f32.mrb[55].mxu1 }
 0x34f   :  { %v10754_v40 = vmax.f32 %v7072_v10, 0.0  ;;  %v7075_v31 = vadd.f32 %v22934_v38, %v7074_v49  ;;  %v11330_v28 = vmax.f32 %v9376_v61, 0.0  ;;  %v9379_v42 = vadd.f32 %v22934_v38, %v9378_v52  ;;  %v17802_v61 = vld [vmem:[%s26754_s0 + $0xf98] sm:$0xff]  }
 0x350   :  { %v23131_v17 = vmax.f32 %v10738_v19, %v10756_v45  ;;  %v10757_v12 = vmax.f32 %v7083_v29, 0.0  ;;  %v23137_v2 = vmax.f32 %v11314_v24, %v11332_v57  ;;  %v11333_v49 = vmax.f32 %v9387_v6, 0.0  ;;  %v17804_v45 = vld [vmem:[%s26754_s0 + $0xfa0] sm:$0xff]  }
 0x351   :  { %v23141_v9 = vmax.f32 %v10736_v13, %v10754_v40  ;;  %v10755_v10 = vmax.f32 %v7075_v31, 0.0  ;;  %v23148_v19 = vmax.f32 %v11312_v39, %v11330_v28  ;;  %v11331_v53 = vmax.f32 %v9379_v42, 0.0  ;;  %v16534_v23 = vpop.f32.mrb[56].mxu0 }
 0x352   :  { %16637 = vmatmul.mubr.msk.bf16.gmra.mrb[160].mxu0 %vm4069_vm2, %v17797_v8  ;;  %v23150_v52 = vmax.f32 %v10739_v59, %v10757_v12  ;;  %v11319_v27 = vmax.f32 %v23108_v41, 0.0  ;;  %v23156_v13 = vadd.f32 %v22934_v38, %v22924_v34  ;;  %v23158_v31 = vmax.f32 %v11315_v30, %v11333_v49  ;;  %v7087_v59 = vpop.f32.mrb[57].mxu0 }
 0x353   :  { %17213 = vmatmul.mubr.msk.bf16.gmra.mrb[160].mxu1 %vm4069_vm2, %v17798_v20  ;;  %16640 = vmatprep.mubr.msk.bf16.mxu0 %vm4069_vm2, %v17799_v11  ;;  %v23162_v6 = vmax.f32 %v10737_v1, %v10755_v10  ;;  %v10748_v39 = vmax.f32 %v23120_v54, 0.0  ;;  %v23167_v24 = vadd.f32 %v22934_v38, %v22926_v3  ;;  %v23171_v40 = vmax.f32 %v11313_v21, %v11331_v53  ;;  %v17110_v57 = vpop.f32.mrb[56].mxu1 }
 0x354   :  { %17216 = vmatprep.mubr.msk.bf16.mxu1 %vm4069_vm2, %v17800_v56  ;;  %v7096_v34 = vadd.f32 %v22934_v38, %v16534_v23  ;;  %v23179_v1 = vadd.f32 %v22934_v38, %v22940_v36  ;;  %v23183_v3 = vadd.f32 %v22934_v38, %v22964_v50  ;;  %v9400_v48 = vadd.f32 %v22934_v38, %v17110_v57  ;;  %v9391_v30 = vpop.f32.mrb[57].mxu1  ;;  %v16535_v56 = vpop.f32.mrb[58].mxu0 }
 0x355   :  { %v7088_v21 = vadd.f32 %v22934_v38, %v7087_v59  ;;  %v23195_v36 = vadd.f32 %v22934_v38, %v22981_v4  ;;  %v9392_v8 = vadd.f32 %v22934_v38, %v9391_v30  ;;  %v7099_v41 = vadd.f32 %v22934_v38, %v16535_v56  ;;  %v17111_v20 = vpop.f32.mrb[58].mxu1  ;;  %v7090_v11 = vpop.f32.mrb[59].mxu0 }
 0x356   :  { %v10760_v50 = vmax.f32 %v7096_v34, 0.0  ;;  %v11336_v29 = vmax.f32 %v9400_v48, 0.0  ;;  %v9403_v28 = vadd.f32 %v22934_v38, %v17111_v20  ;;  %v7091_v12 = vadd.f32 %v22934_v38, %v7090_v11  ;;  %v9394_v42 = vpop.f32.mrb[59].mxu1 }
 0x357   :  { %v10758_v58 = vmax.f32 %v7088_v21, 0.0  ;;  %v27237_v4 = vmax.f32 %v23059_v22, 0.0  ;;  %v11334_v10 = vmax.f32 %v9392_v8, 0.0  ;;  %v10761_v53 = vmax.f32 %v7099_v41, 0.0 }
 0x358   :  { %v9395_v23 = vadd.f32 %v22934_v38, %v9394_v42  ;;  %v27238_v34 = vmax.f32 %v23066_v25, 0.0  ;;  %v27239_v59 = vmax.f32 %v22985_v35, 0.0  ;;  %v11337_v21 = vmax.f32 %v9403_v28, 0.0  ;;  %v17806_v28 = vld [vmem:[%s26754_s0 + $0xfa8] sm:$0xff]  }
 0x359   :  { %v23206_v49 = vmax.f32 %v27237_v4, %v10760_v50  ;;  %v10759_v30 = vmax.f32 %v7091_v12, 0.0  ;;  %v23222_v22 = vadd.f32 %v22934_v38, %v22942_v63  ;;  %v23228_v25 = vmax.f32 %v10743_v62, %v10761_v53  ;;  %v16538_v63 = vpop.f32.mrb[60].mxu0  ;;  %v17807_v12 = vld [vmem:[%s26754_s0 + $0x6b0] sm:$0xff]  }
 0x35a   :  { %16641 = vmatmul.mubr.msk.bf16.gmra.mrb[164].mxu0 %vm4069_vm2, %v17801_v60  ;;  %v23212_v57 = vmax.f32 %v27238_v34, %v11336_v29  ;;  %v23216_v48 = vmax.f32 %v27239_v59, %v10758_v58  ;;  %v27240_v60 = vmax.f32 %v22989_v32, 0.0  ;;  %v11335_v50 = vmax.f32 %v9395_v23, 0.0  ;;  %v7103_v29 = vpop.f32.mrb[61].mxu0  ;;  %v17808_v23 = vld [vmem:[%s26754_s0 + $0xfb0] sm:$0xff]  }
 0x35b   :  { %17217 = vmatmul.mubr.msk.bf16.gmra.mrb[164].mxu1 %vm4069_vm2, %v17802_v61  ;;  %16644 = vmatprep.mubr.msk.bf16.mxu0 %vm4069_vm2, %v17803_v33  ;;  %v10746_v35 = vmax.f32 %v23167_v24, 0.0  ;;  %v11322_v8 = vmax.f32 %v23179_v1, 0.0  ;;  %v23233_v61 = vmax.f32 %v11319_v27, %v11337_v21  ;;  %v27241_v33 = vmax.f32 %v23010_v14, 0.0  ;;  %v17805_v27 = vld [vmem:[%s26754_s0 + $0x6a8] sm:$0xff]   ;;  %v16539_v58 = vpop.f32.mrb[62].mxu0 }
 0x35c   :  { %v23226_v56 = vmax.f32 %v27240_v60, %v11334_v10  ;;  %17220 = vmatprep.mubr.msk.bf16.mxu1 %vm4069_vm2, %v17804_v45  ;;  %v10747_v32 = vmax.f32 %v23183_v3, 0.0  ;;  %v11323_v20 = vmax.f32 %v23195_v36, 0.0  ;;  %v27243_v62 = vmax.f32 %v23024_v26, 0.0  ;;  %v17114_v24 = vpop.f32.mrb[60].mxu1  ;;  %v7106_v53 = vpop.f32.mrb[63].mxu0 }
 0x35d   :  { %v23237_v41 = vmax.f32 %v27241_v33, %v10759_v30  ;;  %v7112_v45 = vadd.f32 %v22934_v38, %v16538_v63  ;;  %v23251_v14 = vadd.f32 %v22934_v38, %v23016_v5  ;;  %v23255_v1 = vadd.f32 %v22934_v38, %v23031_v51  ;;  %v9407_v36 = vpop.f32.mrb[61].mxu1 }
 0x35e   :  { %v23243_v11 = vmax.f32 %v27243_v62, %v11335_v50  ;;  %v9416_v26 = vadd.f32 %v22934_v38, %v17114_v24  ;;  %v7104_v3 = vadd.f32 %v22934_v38, %v7103_v29  ;;  %v23267_v5 = vadd.f32 %v22934_v38, %v23048_v16  ;;  %v17115_v10 = vpop.f32.mrb[62].mxu1 }
 0x35f   :  { %27242 = vst [vmem:[#allocation4_spill] sm:$0xff] %v23237_v41  ;;  %v10764_v51 = vmax.f32 %v7112_v45, 0.0  ;;  %v9408_v42 = vadd.f32 %v22934_v38, %v9407_v36  ;;  %v7115_v4 = vadd.f32 %v22934_v38, %v16539_v58  ;;  %v9419_v21 = vadd.f32 %v22934_v38, %v17115_v10  ;;  %v9410_v60 = vpop.f32.mrb[63].mxu1 }
 0x360   :  { %27244 = vst [vmem:[#allocation2_spill] sm:$0xff] %v23243_v11  ;;  %v11340_v34 = vmax.f32 %v9416_v26, 0.0  ;;  %v10762_v59 = vmax.f32 %v7104_v3, 0.0  ;;  %v7107_v30 = vadd.f32 %v22934_v38, %v7106_v53  ;;  %v9411_v63 = vadd.f32 %v22934_v38, %v9410_v60 }
 0x361   :  { %v23276_v16 = vmax.f32 %v10746_v35, %v10764_v51  ;;  %v11338_v50 = vmax.f32 %v9408_v42, 0.0  ;;  %v10765_v33 = vmax.f32 %v7115_v4, 0.0  ;;  %v27247_v45 = vmax.f32 %v23045_v43, 0.0 }
 0x362   :  { %16645 = vmatmul.mubr.msk.bf16.gmra.mrb[168].mxu0 %vm4069_vm2, %v17805_v27  ;;  %v23280_v62 = vmax.f32 %v11322_v8, %v11340_v34  ;;  %v11341_v29 = vmax.f32 %v9419_v21, 0.0  ;;  %v10763_v26 = vmax.f32 %v7107_v30, 0.0  ;;  %v9363_v35 = vadd.f32 %v22934_v38, %v23062_v15  ;;  %v16542_v15 = vpop.f32.mrb[64].mxu0  ;;  %v17810_v34 = vld [vmem:[%s26754_s0 + $0xfb8] sm:$0xff]  }
 0x363   :  { %27245 = vst [vmem:[#allocation17_spill] sm:$0xff] %v23276_v16  ;;  %v23284_v24 = vmax.f32 %v27247_v45, %v10762_v59  ;;  %17221 = vmatmul.mubr.msk.bf16.gmra.mrb[168].mxu1 %vm4069_vm2, %v17806_v28  ;;  %16648 = vmatprep.mubr.msk.bf16.mxu0 %vm4069_vm2, %v17807_v12  ;;  %v27249_v3 = vmax.f32 %v23055_v37, 0.0  ;;  %v23294_v27 = vmax.f32 %v10747_v32, %v10765_v33  ;;  %v11339_v8 = vmax.f32 %v9411_v63, 0.0  ;;  %v7119_v53 = vpop.f32.mrb[65].mxu0  ;;  %v17811_v59 = vld [vmem:[%s26754_s0 + $0x6c0] sm:$0xff]  }
 0x364   :  { %27246 = vst [vmem:[#allocation15_spill] sm:$0xff] %v23280_v62  ;;  %17224 = vmatprep.mubr.msk.bf16.mxu1 %vm4069_vm2, %v17808_v23  ;;  %v11324_v43 = vmax.f32 %v23156_v13, 0.0  ;;  %v9355_v58 = vadd.f32 %v22934_v38, %v22962_v7  ;;  %v23300_v28 = vmax.f32 %v11323_v20, %v11341_v29  ;;  %v27253_v12 = vmax.f32 %v23070_v55, 0.0  ;;  %v17118_v10 = vpop.f32.mrb[64].mxu1  ;;  %v17809_v7 = vld [vmem:[%s26754_s0 + $0x6b8] sm:$0xff]   ;;  %v17812_v33 = vld [vmem:[%s26754_s0 + $0xfc0] sm:$0xff]  }
 0x365   :  { %27248 = vst [vmem:[#allocation16_spill] sm:$0xff] %v23284_v24  ;;  %v23292_v36 = vmax.f32 %v27249_v3, %v11338_v50  ;;  %27251 = vst [vmem:[#allocation18_spill] sm:$0xff] %v23294_v27  ;;  %v10749_v37 = vmax.f32 %v23222_v22, 0.0  ;;  %v10750_v32 = vmax.f32 %v23251_v14, 0.0  ;;  %v27255_v42 = vmax.f32 %v23078_v47, 0.0  ;;  %v9423_v23 = vpop.f32.mrb[65].mxu1 }
 0x366   :  { %27252 = vst [vmem:[#allocation14_spill] sm:$0xff] %v23300_v28  ;;  %v23304_v51 = vmax.f32 %v27253_v12, %v10763_v26  ;;  %v7128_v13 = vadd.f32 %v22934_v38, %v16542_v15  ;;  %v11326_v55 = vmax.f32 %v23255_v1, 0.0  ;;  %v10751_v20 = vmax.f32 %v23267_v5, 0.0  ;;  %v16543_v47 = vpop.f32.mrb[66].mxu0  ;;  %v17119_v60 = vpop.f32.mrb[66].mxu1  ;;  %v17828_v27 = vld [vmem:[%s26754_s0 + $0x1000] sm:$0xff]  }
 0x367   :  { %27250 = vst [vmem:[#allocation13_spill] sm:$0xff] %v23292_v36  ;;  %v23310_v4 = vmax.f32 %v27255_v42, %v11339_v8  ;;  %v9432_v22 = vadd.f32 %v22934_v38, %v17118_v10  ;;  %v7120_v14 = vadd.f32 %v22934_v38, %v7119_v53  ;;  %v11327_v21 = vmax.f32 %v9363_v35, 0.0  ;;  %v7122_v50 = vpop.f32.mrb[67].mxu0  ;;  %v9426_v3 = vpop.f32.mrb[67].mxu1  ;;  %v17829_v24 = vld [vmem:[%s26754_s0 + $0x708] sm:$0xff]  }
 0x368   :  { %27254 = vst [vmem:[#allocation7_spill] sm:$0xff] %v23304_v51  ;;  %v10768_v30 = vmax.f32 %v7128_v13, 0.0  ;;  %v9424_v1 = vadd.f32 %v22934_v38, %v9423_v23  ;;  %v7131_v5 = vadd.f32 %v22934_v38, %v16543_v47  ;;  %v9435_v29 = vadd.f32 %v22934_v38, %v17119_v60 }
 0x369   :  { %27256 = vst [vmem:[#allocation27_spill] sm:$0xff] %v23310_v4  ;;  %v11344_v63 = vmax.f32 %v9432_v22, 0.0  ;;  %v10766_v45 = vmax.f32 %v7120_v14, 0.0  ;;  %v7123_v26 = vadd.f32 %v22934_v38, %v7122_v50  ;;  %v9427_v15 = vadd.f32 %v22934_v38, %v9426_v3  ;;  %v17819_v3 = vld [vmem:[%s26754_s0 + $0x6e0] sm:$0xff]  }
 0x36a   :  { %v23333_v8 = vmax.f32 %v10750_v32, %v10768_v30  ;;  %v11342_v35 = vmax.f32 %v9424_v1, 0.0  ;;  %v10769_v12 = vmax.f32 %v7131_v5, 0.0  ;;  %16649 = vmatmul.mubr.msk.bf16.gmra.mrb[172].mxu0 %vm4069_vm2, %v17809_v7  ;;  %v11345_v10 = vmax.f32 %v9435_v29, 0.0  ;;  %v17816_v1 = vld [vmem:[%s26754_s0 + $0xfd0] sm:$0xff]   ;;  %v17827_v4 = vld [vmem:[%s26754_s0 + $0x700] sm:$0xff]  }
 0x36b   :  { %v23337_v42 = vmax.f32 %v11326_v55, %v11344_v63  ;;  %v23341_v13 = vmax.f32 %v10748_v39, %v10766_v45  ;;  %v10767_v53 = vmax.f32 %v7123_v26, 0.0  ;;  %17225 = vmatmul.mubr.msk.bf16.gmra.mrb[172].mxu1 %vm4069_vm2, %v17810_v34  ;;  %16652 = vmatprep.mubr.msk.bf16.mxu0 %vm4069_vm2, %v17811_v59  ;;  %v11325_v32 = vmax.f32 %v9355_v58, 0.0  ;;  %v16546_v54 = vpop.f32.mrb[68].mxu0  ;;  %v17813_v58 = vld [vmem:[%s26754_s0 + $0x6c8] sm:$0xff]   ;;  %v17817_v63 = vld [vmem:[%s26754_s0 + $0x6d8] sm:$0xff]  }
 0x36c   :  { %27257 = vst [vmem:[#allocation8_spill] sm:$0xff] %v23333_v8  ;;  %v23345_v22 = vmax.f32 %v11324_v43, %v11342_v35  ;;  %v23347_v14 = vmax.f32 %v10751_v20, %v10769_v12  ;;  %v11343_v23 = vmax.f32 %v9427_v15, 0.0  ;;  %17228 = vmatprep.mubr.msk.bf16.mxu1 %vm4069_vm2, %v17812_v33  ;;  %v23350_v7 = vmax.f32 %v11327_v21, %v11345_v10  ;;  %v17122_v47 = vpop.f32.mrb[68].mxu1  ;;  %v7135_v30 = vpop.f32.mrb[69].mxu0  ;;  %v17814_v20 = vld [vmem:[%s26754_s0 + $0xfc8] sm:$0xff]   ;;  %v17818_v26 = vld [vmem:[%s26754_s0 + $0xfd8] sm:$0xff]  }
 0x36d   :  { %27258 = vst [vmem:[#allocation28_spill] sm:$0xff] %v23337_v42  ;;  %27259 = vst [vmem:[#allocation5_spill] sm:$0xff] %v23341_v13  ;;  %v23352_v55 = vmax.f32 %v10749_v37, %v10767_v53  ;;  %v9439_v43 = vpop.f32.mrb[69].mxu1  ;;  %v16547_v34 = vpop.f32.mrb[70].mxu0  ;;  %v17815_v37 = vld [vmem:[%s26754_s0 + $0x6d0] sm:$0xff]   ;;  %v17820_v15 = vld [vmem:[%s26754_s0 + $0xfe0] sm:$0xff]  }
 0x36e   :  { %27260 = vst [vmem:[#allocation11_spill] sm:$0xff] %v23345_v22  ;;  %27261 = vst [vmem:[#allocation23_spill] sm:$0xff] %v23347_v14  ;;  %v23354_v39 = vmax.f32 %v11325_v32, %v11343_v23  ;;  %v17123_v59 = vpop.f32.mrb[70].mxu1  ;;  %v7138_v21 = vpop.f32.mrb[71].mxu0  ;;  %v17824_v14 = vld [vmem:[%s26754_s0 + $0xff0] sm:$0xff]  }
 0x36f   :  { %27262 = vst [vmem:[#allocation12_spill] sm:$0xff] %v23350_v7  ;;  %27263 = vst [vmem:[#allocation25_spill] sm:$0xff] %v23352_v55  ;;  %v9442_v5 = vpop.f32.mrb[71].mxu1  ;;  %v23416_v22 = vadd.f32 %v22934_v38, %v17123_v59  ;;  %v17826_v59 = vld [vmem:[%s26754_s0 + $0xff8] sm:$0xff]  }
 0x370   :  { %27264 = vst [vmem:[#allocation6_spill] sm:$0xff] %v23354_v39  ;;  %v23407_v39 = vadd.f32 %v22934_v38, %v9439_v43 }
 0x372   :  { %16653 = vmatmul.mubr.msk.bf16.gmra.mrb[176].mxu0 %vm4069_vm2, %v17813_v58  ;;  %v17821_v58 = vld [vmem:[%s26754_s0 + $0x6e8] sm:$0xff]  }
 0x373   :  { %17229 = vmatmul.mubr.msk.bf16.gmra.mrb[176].mxu1 %vm4069_vm2, %v17814_v20  ;;  %16656 = vmatprep.mubr.msk.bf16.mxu0 %vm4069_vm2, %v17815_v37  ;;  %v16550_v60 = vpop.f32.mrb[72].mxu0  ;;  %v23392_v20 = vadd.f32 %v22934_v38, %v16546_v54  ;;  %v23410_v54 = vadd.f32 %v22934_v38, %v16547_v34 }
 0x374   :  { %17232 = vmatprep.mubr.msk.bf16.mxu1 %vm4069_vm2, %v17816_v1  ;;  %v17126_v50 = vpop.f32.mrb[72].mxu1  ;;  %v7151_v33 = vpop.f32.mrb[73].mxu0  ;;  %v23425_v43 = vadd.f32 %v22934_v38, %v16550_v60 }
 0x375   :  { %v9455_v45 = vpop.f32.mrb[73].mxu1  ;;  %v16551_v29 = vpop.f32.mrb[74].mxu0  ;;  %v23428_v13 = vadd.f32 %v22934_v38, %v17126_v50  ;;  %v23431_v42 = vadd.f32 %v22934_v38, %v7151_v33 }
 0x376   :  { %v17127_v35 = vpop.f32.mrb[74].mxu1  ;;  %v7154_v12 = vpop.f32.mrb[75].mxu0  ;;  %v23452_v60 = vadd.f32 %v22934_v38, %v16551_v29 }
 0x377   :  { %v9458_v10 = vpop.f32.mrb[75].mxu1  ;;  %v23455_v33 = vadd.f32 %v22934_v38, %v17127_v35 }
 0x379   :  { %27265 = vst [vmem:[#allocation21_spill] sm:$0xff] %v23455_v33 }
 0x37a   :  { %16657 = vmatmul.mubr.msk.bf16.gmra.mrb[180].mxu0 %vm4069_vm2, %v17817_v63  ;;  %v17822_v63 = vld [vmem:[%s26754_s0 + $0xfe8] sm:$0xff]  }
 0x37b   :  { %17233 = vmatmul.mubr.msk.bf16.gmra.mrb[180].mxu1 %vm4069_vm2, %v17818_v26  ;;  %16660 = vmatprep.mubr.msk.bf16.mxu0 %vm4069_vm2, %v17819_v3  ;;  %v16554_v53 = vpop.f32.mrb[76].mxu0  ;;  %v17823_v26 = vld [vmem:[%s26754_s0 + $0x6f0] sm:$0xff]   ;;  %v23401_v3 = vadd.f32 %v22934_v38, %v17122_v47  ;;  %v23419_v47 = vadd.f32 %v22934_v38, %v7138_v21  ;;  %v23436_v21 = vadd.f32 %v22934_v38, %v9455_v45 }
 0x37c   :  { %17236 = vmatprep.mubr.msk.bf16.mxu1 %vm4069_vm2, %v17820_v15  ;;  %v17130_v32 = vpop.f32.mrb[76].mxu1  ;;  %v7167_v23 = vpop.f32.mrb[77].mxu0  ;;  %v23404_v15 = vadd.f32 %v22934_v38, %v7135_v30  ;;  %v23422_v30 = vadd.f32 %v22934_v38, %v9442_v5  ;;  %v23468_v29 = vadd.f32 %v22934_v38, %v16554_v53 }
 0x37d   :  { %v9471_v37 = vpop.f32.mrb[77].mxu1  ;;  %v16555_v1 = vpop.f32.mrb[78].mxu0  ;;  %v23477_v45 = vadd.f32 %v22934_v38, %v17130_v32 }
 0x37e   :  { %v17131_v55 = vpop.f32.mrb[78].mxu1  ;;  %v7170_v7 = vpop.f32.mrb[79].mxu0  ;;  %27266 = vst [vmem:[#allocation24_spill] sm:$0xff] %v23468_v29  ;;  %v23486_v53 = vadd.f32 %v22934_v38, %v16555_v1 }
 0x37f   :  { %v9474_v34 = vpop.f32.mrb[79].mxu1  ;;  %27267 = vst [vmem:[#allocation26_spill] sm:$0xff] %v23477_v45  ;;  %v23492_v36 = vadd.f32 %v22934_v38, %v17131_v55  ;;  %v23495_v32 = vadd.f32 %v22934_v38, %v7170_v7  ;;  %v17831_v7 = vld [vmem:[%s26754_s0 + $0x710] sm:$0xff]  }
 0x380   :  { %27268 = vst [vmem:[#allocation22_spill] sm:$0xff] %v23486_v53 }
 0x381   :  { %27269 = vst [vmem:[#allocation19_spill] sm:$0xff] %v23492_v36  ;;  %v17832_v36 = vld [vmem:[%s26754_s0 + $0x1010] sm:$0xff]  }
 0x382   :  { %16661 = vmatmul.mubr.msk.bf16.gmra.mrb[184].mxu0 %vm4069_vm2, %v17821_v58  ;;  %v17825_v58 = vld [vmem:[%s26754_s0 + $0x6f8] sm:$0xff]  }
 0x383   :  { %17237 = vmatmul.mubr.msk.bf16.gmra.mrb[184].mxu1 %vm4069_vm2, %v17822_v63  ;;  %16664 = vmatprep.mubr.msk.bf16.mxu0 %vm4069_vm2, %v17823_v26  ;;  %v16558_v8 = vpop.f32.mrb[80].mxu0  ;;  %v23462_v63 = vadd.f32 %v22934_v38, %v7154_v12  ;;  %v23465_v26 = vadd.f32 %v22934_v38, %v9458_v10  ;;  %v23480_v12 = vadd.f32 %v22934_v38, %v7167_v23 }
 0x384   :  { %17240 = vmatprep.mubr.msk.bf16.mxu1 %vm4069_vm2, %v17824_v14  ;;  %v17134_v14 = vpop.f32.mrb[80].mxu1  ;;  %v7183_v50 = vpop.f32.mrb[81].mxu0  ;;  %v23483_v10 = vadd.f32 %v22934_v38, %v9471_v37  ;;  %v23498_v23 = vadd.f32 %v22934_v38, %v9474_v34  ;;  %v23501_v37 = vadd.f32 %v22934_v38, %v16558_v8 }
 0x385   :  { %v9487_v5 = vpop.f32.mrb[81].mxu1  ;;  %v16559_v35 = vpop.f32.mrb[82].mxu0  ;;  %v23506_v16 = vadd.f32 %v22934_v38, %v17134_v14  ;;  %v23509_v55 = vadd.f32 %v22934_v38, %v7183_v50 }
 0x386   :  { %v17135_v51 = vpop.f32.mrb[82].mxu1  ;;  %v7186_v28 = vpop.f32.mrb[83].mxu0  ;;  %27270 = vst [vmem:[#allocation20_spill] sm:$0xff] %v23501_v37  ;;  %v23516_v11 = vadd.f32 %v22934_v38, %v9487_v5  ;;  %v23532_v50 = vadd.f32 %v22934_v38, %v16559_v35 }
 0x387   :  { %v9490_v1 = vpop.f32.mrb[83].mxu1  ;;  %27271 = vst [vmem:[#allocation9_spill] sm:$0xff] %v23506_v16  ;;  %27272 = vst [vmem:[#allocation3_spill] sm:$0xff] %v23509_v55 }
 0x388   :  { %27273 = vst [vmem:[#allocation10_spill] sm:$0xff] %v23516_v11  ;;  %v23553_v5 = vadd.f32 %v22934_v38, %v9490_v1 }
 0x38a   :  { %16665 = vmatmul.mubr.msk.bf16.gmra.mrb[188].mxu0 %vm4069_vm2, %v17825_v58 }
 0x38b   :  { %17241 = vmatmul.mubr.msk.bf16.gmra.mrb[188].mxu1 %vm4069_vm2, %v17826_v59  ;;  %16668 = vmatprep.mubr.msk.bf16.mxu0 %vm4069_vm2, %v17827_v4  ;;  %v16562_v34 = vpop.f32.mrb[84].mxu0  ;;  %v23540_v59 = vadd.f32 %v22934_v38, %v17135_v51  ;;  %v23543_v4 = vadd.f32 %v22934_v38, %v7186_v28 }
 0x38c   :  { %17244 = vmatprep.mubr.msk.bf16.mxu1 %vm4069_vm2, %v17828_v27  ;;  %v7208_v58 = vadd.f32 %v22934_v38, %v16562_v34  ;;  %v17138_v62 = vpop.f32.mrb[84].mxu1  ;;  %v7199_v27 = vpop.f32.mrb[85].mxu0  ;;  %v17830_v34 = vld [vmem:[%s26754_s0 + $0x1008] sm:$0xff]  }
 0x38d   :  { %v9512_v14 = vadd.f32 %v22934_v38, %v17138_v62  ;;  %v9503_v35 = vpop.f32.mrb[85].mxu1  ;;  %v16563_v8 = vpop.f32.mrb[86].mxu0  ;;  %v23556_v16 = vadd.f32 %v22934_v38, %v7199_v27 }
 0x38e   :  { %v10788_v51 = vmax.f32 %v7208_v58, 0.0  ;;  %v7211_v28 = vadd.f32 %v22934_v38, %v16563_v8  ;;  %v17139_v62 = vpop.f32.mrb[86].mxu1  ;;  %v7202_v37 = vpop.f32.mrb[87].mxu0  ;;  %v23563_v45 = vadd.f32 %v22934_v38, %v9503_v35  ;;  %v27274_v8 = vmax.f32 %v23404_v15, 0.0 }
 0x38f   :  { %v11364_v53 = vmax.f32 %v9512_v14, 0.0  ;;  %v9515_v29 = vadd.f32 %v22934_v38, %v17139_v62  ;;  %v23567_v1 = vadd.f32 %v22934_v38, %v7202_v37  ;;  %v9506_v58 = vpop.f32.mrb[87].mxu1  ;;  %v10783_v35 = vmax.f32 %v23543_v4, 0.0  ;;  %v17836_v14 = vld [vmem:[%s26754_s0 + $0x1020] sm:$0xff]   ;;  %v17848_v4 = vld [vmem:[%s26754_s0 + $0x1050] sm:$0xff]  }
 0x390   :  { %v11958_v11 = vmax.f32 %v27274_v8, %v10788_v51  ;;  %v10789_v55 = vmax.f32 %v7211_v28, 0.0  ;;  %v23573_v41 = vadd.f32 %v22934_v38, %v9506_v58  ;;  %v27275_v62 = vmax.f32 %v23407_v39, 0.0 }
 0x391   :  { %v11365_v33 = vmax.f32 %v9515_v29, 0.0  ;;  %v11359_v15 = vmax.f32 %v23553_v5, 0.0  ;;  %v27277_v29 = vmax.f32 %v23422_v30, 0.0  ;;  %v27312_v5 = vld [vmem:[#allocation14_spill] sm:$0xff] }
 0x392   :  { %16669 = vmatmul.mubr.msk.bf16.gmra.mrb[192].mxu0 %vm4069_vm2, %v17829_v24  ;;  %v12102_v37 = vmax.f32 %v27275_v62, %v11364_v53  ;;  %v12246_v51 = vmax.f32 %v23072_v46, %v11958_v11  ;;  %v27276_v24 = vmax.f32 %v23419_v47, 0.0 }
 0x393   :  { %17245 = vmatmul.mubr.msk.bf16.gmra.mrb[192].mxu1 %vm4069_vm2, %v17830_v34  ;;  %16672 = vmatprep.mubr.msk.bf16.mxu0 %vm4069_vm2, %v17831_v7  ;;  %v12103_v53 = vmax.f32 %v27277_v29, %v11365_v33  ;;  %v16566_v34 = vpop.f32.mrb[88].mxu0 }
 0x394   :  { %v11959_v58 = vmax.f32 %v27276_v24, %v10789_v55  ;;  %17248 = vmatprep.mubr.msk.bf16.mxu1 %vm4069_vm2, %v17832_v36  ;;  %v12390_v8 = vmax.f32 %v23080_v18, %v12102_v37  ;;  %v15422_v62 = vpack.c.bf16 %v12246_v51, %v12246_v51  ;;  %v7224_v47 = vadd.f32 %v22934_v38, %v16566_v34  ;;  %v17142_v55 = vpop.f32.mrb[88].mxu1  ;;  %v7215_v24 = vpop.f32.mrb[89].mxu0  ;;  %v17833_v18 = vld [vmem:[%s26754_s0 + $0x718] sm:$0xff]  }
 0x395   :  { %v12391_v30 = vmax.f32 %v23093_v0, %v12103_v53  ;;  %v9528_v33 = vadd.f32 %v22934_v38, %v17142_v55  ;;  %v7216_v37 = vadd.f32 %v22934_v38, %v7215_v24  ;;  %v9519_v51 = vpop.f32.mrb[89].mxu1  ;;  %v16567_v29 = vpop.f32.mrb[90].mxu0 }
 0x396   :  { %v12247_v46 = vmax.f32 %v23087_v44, %v11959_v58  ;;  %v15566_v36 = vpack.c.bf16 %v12390_v8, %v12390_v8  ;;  %v17834_v44 = vld [vmem:[%s26754_s0 + $0x1018] sm:$0xff]   ;;  %v17835_v58 = vld [vmem:[%s26754_s0 + $0x720] sm:$0xff]   ;;  %13687 = vst.msk [vmem:[%s26756_s3 + $0x120] sm:$0xf] %vm13614_vm3, %v15422_v62  ;;  %v10792_v8 = vmax.f32 %v7224_v47, 0.0  ;;  %v9520_v53 = vadd.f32 %v22934_v38, %v9519_v51  ;;  %v17143_v55 = vpop.f32.mrb[90].mxu1 }
 0x397   :  { %v7227_v34 = vadd.f32 %v22934_v38, %v16567_v29  ;;  %v7218_v24 = vpop.f32.mrb[91].mxu0  ;;  %v15567_v27 = vpack.c.bf16 %v12391_v30, %v12391_v30  ;;  %v11368_v11 = vmax.f32 %v9528_v33, 0.0  ;;  %v10790_v62 = vmax.f32 %v7216_v37, 0.0  ;;  %v9522_v47 = vpop.f32.mrb[91].mxu1 }
 0x398   :  { %v15423_v0 = vpack.c.bf16 %v12247_v46, %v12247_v46  ;;  %13831 = vst.msk [vmem:[%s26756_s3 + $0x360] sm:$0xf] %vm13614_vm3, %v15566_v36  ;;  %v9531_v46 = vadd.f32 %v22934_v38, %v17143_v55  ;;  %v27278_v51 = vmax.f32 %v23431_v42, 0.0  ;;  %v11366_v7 = vmax.f32 %v9520_v53, 0.0 }
 0x399   :  { %v10793_v39 = vmax.f32 %v7227_v34, 0.0  ;;  %v7219_v28 = vadd.f32 %v22934_v38, %v7218_v24  ;;  %13832 = vst.msk [vmem:[%s26756_s3 + $0x364] sm:$0xf] %vm13614_vm3, %v15567_v27  ;;  %v27279_v36 = vmax.f32 %v23436_v21, 0.0  ;;  %v27280_v33 = vmax.f32 %v23392_v20, 0.0 }
 0x39a   :  { %13688 = vst.msk [vmem:[%s26756_s3 + $0x124] sm:$0xf] %vm13614_vm3, %v15423_v0  ;;  %v11962_v29 = vmax.f32 %v27278_v51, %v10792_v8  ;;  %16673 = vmatmul.mubr.msk.bf16.gmra.mrb[196].mxu0 %vm4069_vm2, %v17833_v18  ;;  %v11369_v0 = vmax.f32 %v9531_v46, 0.0  ;;  %v9523_v42 = vadd.f32 %v22934_v38, %v9522_v47  ;;  %v27281_v8 = vmax.f32 %v23401_v3, 0.0 }
 0x39b   :  { %v12106_v30 = vmax.f32 %v27279_v36, %v11368_v11  ;;  %v11960_v37 = vmax.f32 %v27280_v33, %v10790_v62  ;;  %17249 = vmatmul.mubr.msk.bf16.gmra.mrb[196].mxu1 %vm4069_vm2, %v17834_v44  ;;  %16676 = vmatprep.mubr.msk.bf16.mxu0 %vm4069_vm2, %v17835_v58  ;;  %v27282_v27 = vmax.f32 %v23462_v63, 0.0  ;;  %v10791_v21 = vmax.f32 %v7219_v28, 0.0  ;;  %v16570_v58 = vpop.f32.mrb[92].mxu0 }
 0x39c   :  { %v12250_v18 = vmax.f32 %v23131_v17, %v11962_v29  ;;  %v12104_v53 = vmax.f32 %v27281_v8, %v11366_v7  ;;  %17252 = vmatprep.mubr.msk.bf16.mxu1 %vm4069_vm2, %v17836_v14  ;;  %v27283_v55 = vmax.f32 %v23465_v26, 0.0  ;;  %v11367_v24 = vmax.f32 %v9523_v42, 0.0  ;;  %v17146_v28 = vpop.f32.mrb[92].mxu1  ;;  %v7231_v7 = vpop.f32.mrb[93].mxu0 }
 0x39d   :  { %v11963_v34 = vmax.f32 %v27282_v27, %v10793_v39  ;;  %v12394_v20 = vmax.f32 %v23137_v2, %v12106_v30  ;;  %v12248_v11 = vmax.f32 %v23141_v9, %v11960_v37  ;;  %v27284_v63 = vmax.f32 %v23410_v54, 0.0  ;;  %v17837_v2 = vld [vmem:[%s26754_s0 + $0x728] sm:$0xff]   ;;  %v9535_v51 = vpop.f32.mrb[93].mxu1  ;;  %v17839_v54 = vld [vmem:[%s26754_s0 + $0x730] sm:$0xff]  }
 0x39e   :  { %v12107_v44 = vmax.f32 %v27283_v55, %v11369_v0  ;;  %v15426_v62 = vpack.c.bf16 %v12250_v18, %v12250_v18  ;;  %v12392_v17 = vmax.f32 %v23148_v19, %v12104_v53  ;;  %v27285_v46 = vmax.f32 %v23416_v22, 0.0  ;;  %v16571_v19 = vpop.f32.mrb[94].mxu0  ;;  %v17147_v30 = vpop.f32.mrb[94].mxu1  ;;  %v17840_v37 = vld [vmem:[%s26754_s0 + $0x1030] sm:$0xff]  }
 0x39f   :  { %v12251_v3 = vmax.f32 %v23150_v52, %v11963_v34  ;;  %v11961_v39 = vmax.f32 %v27284_v63, %v10791_v21  ;;  %v15570_v9 = vpack.c.bf16 %v12394_v20, %v12394_v20  ;;  %v15424_v14 = vpack.c.bf16 %v12248_v11, %v12248_v11  ;;  %v17838_v52 = vld [vmem:[%s26754_s0 + $0x1028] sm:$0xff]   ;;  %v7234_v33 = vpop.f32.mrb[95].mxu0  ;;  %v9538_v8 = vpop.f32.mrb[95].mxu1 }
 0x3a0   :  { %v12395_v26 = vmax.f32 %v23158_v31, %v12107_v44  ;;  %v12105_v47 = vmax.f32 %v27285_v46, %v11367_v24  ;;  %13691 = vst.msk [vmem:[%s26756_s3 + $0x130] sm:$0xf] %vm13614_vm3, %v15426_v62  ;;  %v15568_v29 = vpack.c.bf16 %v12392_v17, %v12392_v17  ;;  %v7240_v36 = vadd.f32 %v22934_v38, %v16570_v58  ;;  %v23688_v38 = vld [vmem:[%s26755_s2] ss:$0 sm:$0xff] }
 0x3a1   :  { %v15427_v31 = vpack.c.bf16 %v12251_v3, %v12251_v3  ;;  %v12249_v22 = vmax.f32 %v23162_v6, %v11961_v39  ;;  %13835 = vst.msk [vmem:[%s26756_s3 + $0x370] sm:$0xf] %vm13614_vm3, %v15570_v9  ;;  %13689 = vst.msk [vmem:[%s26756_s3 + $0x128] sm:$0xf] %vm13614_vm3, %v15424_v14  ;;  %v9544_v42 = vadd.f32 %v23688_v38, %v17146_v28  ;;  %v27286_v44 = vmax.f32 %v23480_v12, 0.0 }
 0x3a2   :  { %v15571_v0 = vpack.c.bf16 %v12395_v26, %v12395_v26  ;;  %v12393_v6 = vmax.f32 %v23171_v40, %v12105_v47  ;;  %v7232_v18 = vadd.f32 %v23688_v38, %v7231_v7  ;;  %13833 = vst.msk [vmem:[%s26756_s3 + $0x368] sm:$0xf] %vm13614_vm3, %v15568_v29  ;;  %v10796_v53 = vmax.f32 %v7240_v36, 0.0  ;;  %16677 = vmatmul.mubr.msk.bf16.gmra.mrb[200].mxu0 %vm4069_vm2, %v17837_v2 }
 0x3a3   :  { %13692 = vst.msk [vmem:[%s26756_s3 + $0x134] sm:$0xf] %vm13614_vm3, %v15427_v31  ;;  %v15425_v40 = vpack.c.bf16 %v12249_v22, %v12249_v22  ;;  %v9536_v27 = vadd.f32 %v23688_v38, %v9535_v51  ;;  %v7243_v34 = vadd.f32 %v23688_v38, %v16571_v19  ;;  %v11372_v20 = vmax.f32 %v9544_v42, 0.0  ;;  %17253 = vmatmul.mubr.msk.bf16.gmra.mrb[200].mxu1 %vm4069_vm2, %v17838_v52  ;;  %v16574_v2 = vpop.f32.mrb[96].mxu0 }
 0x3a4   :  { %13836 = vst.msk [vmem:[%s26756_s3 + $0x374] sm:$0xf] %vm13614_vm3, %v15571_v0  ;;  %v15569_v21 = vpack.c.bf16 %v12393_v6, %v12393_v6  ;;  %v10794_v11 = vmax.f32 %v7232_v18, 0.0  ;;  %v9547_v55 = vadd.f32 %v23688_v38, %v17147_v30  ;;  %16680 = vmatprep.mubr.msk.bf16.mxu0 %vm4069_vm2, %v17839_v54  ;;  %v11966_v24 = vmax.f32 %v27286_v44, %v10796_v53  ;;  %v17150_v19 = vpop.f32.mrb[96].mxu1  ;;  %v7247_v52 = vpop.f32.mrb[97].mxu0  ;;  %v17844_v6 = vld [vmem:[%s26754_s0 + $0x1040] sm:$0xff]  }
 0x3a5   :  { %13690 = vst.msk [vmem:[%s26756_s3 + $0x12c] sm:$0xf] %vm13614_vm3, %v15425_v40  ;;  %v11370_v58 = vmax.f32 %v9536_v27, 0.0  ;;  %v10797_v62 = vmax.f32 %v7243_v34, 0.0  ;;  %v7235_v17 = vadd.f32 %v23688_v38, %v7234_v33  ;;  %17256 = vmatprep.mubr.msk.bf16.mxu1 %vm4069_vm2, %v17840_v37  ;;  %v27287_v3 = vmax.f32 %v23483_v10, 0.0  ;;  %v16575_v22 = vpop.f32.mrb[98].mxu0 }
 0x3a6   :  { %13834 = vst.msk [vmem:[%s26756_s3 + $0x36c] sm:$0xf] %vm13614_vm3, %v15569_v21  ;;  %v27288_v39 = vmax.f32 %v23425_v43, 0.0  ;;  %v11373_v7 = vmax.f32 %v9547_v55, 0.0  ;;  %v9539_v12 = vadd.f32 %v23688_v38, %v9538_v8  ;;  %v12254_v9 = vmax.f32 %v23206_v49, %v11966_v24  ;;  %v17841_v43 = vld [vmem:[%s26754_s0 + $0x738] sm:$0xff]   ;;  %v27295_v34 = vld [vmem:[#allocation4_spill] sm:$0xff] }
 0x3a7   :  { %v12110_v63 = vmax.f32 %v27287_v3, %v11372_v20  ;;  %v27289_v14 = vmax.f32 %v23428_v13, 0.0  ;;  %v27290_v46 = vmax.f32 %v23495_v32, 0.0  ;;  %v10795_v51 = vmax.f32 %v7235_v17, 0.0  ;;  %v9551_v13 = vpop.f32.mrb[97].mxu1  ;;  %v17842_v32 = vld [vmem:[%s26754_s0 + $0x1038] sm:$0xff]  }
 0x3a8   :  { %v11964_v28 = vmax.f32 %v27288_v39, %v10794_v11  ;;  %v27291_v29 = vmax.f32 %v23498_v23, 0.0  ;;  %v11371_v31 = vmax.f32 %v9539_v12, 0.0  ;;  %v15430_v36 = vpack.c.bf16 %v12254_v9, %v12254_v9  ;;  %v17151_v0 = vpop.f32.mrb[98].mxu1  ;;  %v17843_v23 = vld [vmem:[%s26754_s0 + $0x740] sm:$0xff]  }
 0x3a9   :  { %v12108_v26 = vmax.f32 %v27289_v14, %v11370_v58  ;;  %v11967_v47 = vmax.f32 %v27290_v46, %v10797_v62  ;;  %v12398_v10 = vmax.f32 %v23212_v57, %v12110_v63  ;;  %v27292_v37 = vmax.f32 %v23452_v60, 0.0  ;;  %v9554_v53 = vpop.f32.mrb[99].mxu1  ;;  %v27296_v11 = vld [vmem:[#allocation2_spill] sm:$0xff] }
 0x3aa   :  { %v12252_v54 = vmax.f32 %v23216_v48, %v11964_v28  ;;  %v12111_v49 = vmax.f32 %v27291_v29, %v11373_v7  ;;  %v7250_v48 = vpop.f32.mrb[99].mxu0  ;;  %13695 = vst.msk [vmem:[%s26756_s3 + $0x140] sm:$0xf] %vm13614_vm3, %v15430_v36  ;;  %v7256_v20 = vadd.f32 %v23688_v38, %v16574_v2  ;;  %16681 = vmatmul.mubr.msk.bf16.gmra.mrb[204].mxu0 %vm4069_vm2, %v17841_v43  ;;  %v27297_v2 = vld [vmem:[#allocation3_spill] sm:$0xff]  ;;  %v27299_v43 = vld [vmem:[#allocation10_spill] sm:$0xff]  ;;  %v27301_v29 = vld [vmem:[#allocation24_spill] sm:$0xff] }
 0x3ab   :  { %v12396_v30 = vmax.f32 %v23226_v56, %v12108_v26  ;;  %v12255_v33 = vmax.f32 %v23228_v25, %v11967_v47  ;;  %v11965_v57 = vmax.f32 %v27292_v37, %v10795_v51  ;;  %v15574_v42 = vpack.c.bf16 %v12398_v10, %v12398_v10  ;;  %v27293_v56 = vld [vmem:[#allocation21_spill] sm:$0xff]  ;;  %17257 = vmatmul.mubr.msk.bf16.gmra.mrb[204].mxu1 %vm4069_vm2, %v17842_v32  ;;  %v16578_v12 = vpop.f32.mrb[100].mxu0 }
 0x3ac   :  { %v15428_v18 = vpack.c.bf16 %v12252_v54, %v12252_v54  ;;  %v12399_v8 = vmax.f32 %v23233_v61, %v12111_v49  ;;  %v27294_v40 = vmax.f32 %v27293_v56, 0.0  ;;  %v9560_v44 = vadd.f32 %v23688_v38, %v17150_v19  ;;  %16684 = vmatprep.mubr.msk.bf16.mxu0 %vm4069_vm2, %v17843_v23  ;;  %17260 = vmatprep.mubr.msk.bf16.mxu1 %vm4069_vm2, %v17844_v6  ;;  %v17154_v51 = vpop.f32.mrb[100].mxu1  ;;  %v7263_v19 = vpop.f32.mrb[101].mxu0  ;;  %v27306_v56 = vld [vmem:[#allocation15_spill] sm:$0xff] }
 0x3ad   :  { %v15572_v60 = vpack.c.bf16 %v12396_v30, %v12396_v30  ;;  %v15431_v27 = vpack.c.bf16 %v12255_v33, %v12255_v33  ;;  %v12253_v21 = vmax.f32 %v27295_v34, %v11965_v57  ;;  %13839 = vst.msk [vmem:[%s26756_s3 + $0x380] sm:$0xf] %vm13614_vm3, %v15574_v42  ;;  %v7248_v24 = vadd.f32 %v23688_v38, %v7247_v52  ;;  %v17845_v52 = vld [vmem:[%s26754_s0 + $0x748] sm:$0xff]   ;;  %v9567_v32 = vpop.f32.mrb[101].mxu1  ;;  %v16579_v36 = vpop.f32.mrb[102].mxu0  ;;  %v27303_v33 = vld [vmem:[#allocation17_spill] sm:$0xff] }
 0x3ae   :  { %v12109_v25 = vmax.f32 %v27294_v40, %v11371_v31  ;;  %13693 = vst.msk [vmem:[%s26756_s3 + $0x138] sm:$0xf] %vm13614_vm3, %v15428_v18  ;;  %v15575_v61 = vpack.c.bf16 %v12399_v8, %v12399_v8  ;;  %v10800_v62 = vmax.f32 %v7256_v20, 0.0  ;;  %v9552_v17 = vadd.f32 %v23688_v38, %v9551_v13  ;;  %v17846_v30 = vld [vmem:[%s26754_s0 + $0x1048] sm:$0xff]   ;;  %v27304_v57 = vld [vmem:[#allocation26_spill] sm:$0xff]  ;;  %v17155_v42 = vpop.f32.mrb[102].mxu1 }
 0x3af   :  { %13837 = vst.msk [vmem:[%s26756_s3 + $0x378] sm:$0xf] %vm13614_vm3, %v15572_v60  ;;  %13696 = vst.msk [vmem:[%s26756_s3 + $0x144] sm:$0xf] %vm13614_vm3, %v15431_v27  ;;  %v15429_v58 = vpack.c.bf16 %v12253_v21, %v12253_v21  ;;  %v7259_v3 = vadd.f32 %v23688_v38, %v16575_v22  ;;  %v11376_v39 = vmax.f32 %v9560_v44, 0.0  ;;  %v10798_v28 = vmax.f32 %v7248_v24, 0.0 }
 0x3b0   :  { %v12397_v55 = vmax.f32 %v27296_v11, %v12109_v25  ;;  %13840 = vst.msk [vmem:[%s26756_s3 + $0x384] sm:$0xf] %vm13614_vm3, %v15575_v61  ;;  %v9563_v7 = vadd.f32 %v23688_v38, %v17151_v0  ;;  %v27298_v9 = vmax.f32 %v27297_v2, 0.0  ;;  %v11374_v26 = vmax.f32 %v9552_v17, 0.0  ;;  %v7266_v18 = vpop.f32.mrb[103].mxu0  ;;  %v17847_v8 = vld [vmem:[%s26754_s0 + $0x750] sm:$0xff]  }
 0x3b1   :  { %13694 = vst.msk [vmem:[%s26756_s3 + $0x13c] sm:$0xf] %vm13614_vm3, %v15429_v58  ;;  %v10801_v46 = vmax.f32 %v7259_v3, 0.0  ;;  %v7251_v47 = vadd.f32 %v23688_v38, %v7250_v48  ;;  %v27300_v10 = vmax.f32 %v27299_v43, 0.0  ;;  %v27302_v49 = vmax.f32 %v27301_v29, 0.0  ;;  %v27307_v25 = vld [vmem:[#allocation16_spill] sm:$0xff] }
 0x3b2   :  { %v15573_v63 = vpack.c.bf16 %v12397_v55, %v12397_v55  ;;  %v11970_v14 = vmax.f32 %v27298_v9, %v10800_v62  ;;  %v11377_v13 = vmax.f32 %v9563_v7, 0.0  ;;  %v9555_v22 = vadd.f32 %v23688_v38, %v9554_v53  ;;  %v9570_v34 = vpop.f32.mrb[103].mxu1  ;;  %v27308_v21 = vld [vmem:[#allocation13_spill] sm:$0xff]  ;;  %v27309_v61 = vld [vmem:[#allocation18_spill] sm:$0xff]  ;;  %16685 = vmatmul.mubr.msk.bf16.gmra.mrb[208].mxu0 %vm4069_vm2, %v17845_v52  ;;  %v27313_v17 = vld [vmem:[#allocation19_spill] sm:$0xff] }
 0x3b3   :  { %v12114_v54 = vmax.f32 %v27300_v10, %v11376_v39  ;;  %v11968_v31 = vmax.f32 %v27302_v49, %v10798_v28  ;;  %v27305_v0 = vmax.f32 %v27304_v57, 0.0  ;;  %v11971_v23 = vmax.f32 %v10783_v35, %v10801_v46  ;;  %v27310_v55 = vld [vmem:[#allocation22_spill] sm:$0xff]  ;;  %17261 = vmatmul.mubr.msk.bf16.gmra.mrb[208].mxu1 %vm4069_vm2, %v17846_v30  ;;  %v27315_v7 = vld [vmem:[#allocation7_spill] sm:$0xff]  ;;  %16688 = vmatprep.mubr.msk.bf16.mxu0 %vm4069_vm2, %v17847_v8  ;;  %v17849_v49 = vld [vmem:[%s26754_s0 + $0x758] sm:$0xff]  }
 0x3b4   :  { %13838 = vst.msk [vmem:[%s26756_s3 + $0x37c] sm:$0xf] %vm13614_vm3, %v15573_v63  ;;  %v12258_v37 = vmax.f32 %v27303_v33, %v11970_v14  ;;  %v10799_v6 = vmax.f32 %v7251_v47, 0.0  ;;  %v12115_v60 = vmax.f32 %v11359_v15, %v11377_v13  ;;  %v11375_v27 = vmax.f32 %v9555_v22, 0.0  ;;  %17264 = vmatprep.mubr.msk.bf16.mxu1 %vm4069_vm2, %v17848_v4  ;;  %v17850_v33 = vld [vmem:[%s26754_s0 + $0x1058] sm:$0xff]  }
 0x3b5   :  { %v12112_v48 = vmax.f32 %v27305_v0, %v11374_v26  ;;  %v12402_v40 = vmax.f32 %v27306_v56, %v12114_v54  ;;  %v12256_v53 = vmax.f32 %v27307_v25, %v11968_v31  ;;  %v12259_v11 = vmax.f32 %v27309_v61, %v11971_v23  ;;  %v27316_v26 = vld [vmem:[#allocation27_spill] sm:$0xff]  ;;  %v23868_v54 = vpop.f32.mrb[104].mxu1  ;;  %v17852_v56 = vld [vmem:[%s26754_s0 + $0x1060] sm:$0xff]   ;;  %v27319_v25 = vld [vmem:[#allocation20_spill] sm:$0xff] }
 0x3b6   :  { %v15434_v35 = vpack.c.bf16 %v12258_v37, %v12258_v37  ;;  %v27311_v44 = vmax.f32 %v27310_v55, 0.0  ;;  %v12403_v15 = vmax.f32 %v27312_v5, %v12115_v60  ;;  %v27314_v3 = vmax.f32 %v27313_v17, 0.0  ;;  %v23880_v30 = vpop.f32.mrb[105].mxu1  ;;  %v17851_v37 = vld [vmem:[%s26754_s0 + $0x760] sm:$0xff]  }
 0x3b7   :  { %v12400_v20 = vmax.f32 %v27308_v21, %v12112_v48  ;;  %v15578_v58 = vpack.c.bf16 %v12402_v40, %v12402_v40  ;;  %v15432_v62 = vpack.c.bf16 %v12256_v53, %v12256_v53  ;;  %v15435_v28 = vpack.c.bf16 %v12259_v11, %v12259_v11 }
 0x3b8   :  { %v11969_v24 = vmax.f32 %v27311_v44, %v10799_v6  ;;  %v12113_v63 = vmax.f32 %v27314_v3, %v11375_v27  ;;  %13699 = vst.msk [vmem:[%s26756_s3 + $0x150] sm:$0xf] %vm13614_vm3, %v15434_v35  ;;  %v7272_v9 = vadd.f32 %v23688_v38, %v16578_v12  ;;  %v15579_v14 = vpack.c.bf16 %v12403_v15, %v12403_v15  ;;  %v23855_v12 = vpop.f32.mrb[104].mxu0  ;;  %v27321_v35 = vld [vmem:[#allocation8_spill] sm:$0xff] }
 0x3b9   :  { %v15576_v39 = vpack.c.bf16 %v12400_v20, %v12400_v20  ;;  %13843 = vst.msk [vmem:[%s26756_s3 + $0x390] sm:$0xf] %vm13614_vm3, %v15578_v58  ;;  %13697 = vst.msk [vmem:[%s26756_s3 + $0x148] sm:$0xf] %vm13614_vm3, %v15432_v62  ;;  %v9576_v47 = vadd.f32 %v23688_v38, %v17154_v51  ;;  %v7264_v52 = vadd.f32 %v23688_v38, %v7263_v19  ;;  %v23870_v29 = vpop.f32.mrb[105].mxu0  ;;  %v27317_v57 = vmax.f32 %v23556_v16, 0.0 }
 0x3ba   :  { %v12257_v2 = vmax.f32 %v27315_v7, %v11969_v24  ;;  %v12401_v46 = vmax.f32 %v27316_v26, %v12113_v63  ;;  %13700 = vst.msk [vmem:[%s26756_s3 + $0x154] sm:$0xf] %vm13614_vm3, %v15435_v28  ;;  %v10804_v10 = vmax.f32 %v7272_v9, 0.0  ;;  %v9568_v51 = vadd.f32 %v23688_v38, %v9567_v32  ;;  %13844 = vst.msk [vmem:[%s26756_s3 + $0x394] sm:$0xf] %vm13614_vm3, %v15579_v14  ;;  %v27322_v20 = vld [vmem:[#allocation9_spill] sm:$0xff] }
 0x3bb   :  { %13841 = vst.msk [vmem:[%s26756_s3 + $0x388] sm:$0xf] %vm13614_vm3, %v15576_v39  ;;  %v7275_v19 = vadd.f32 %v23688_v38, %v16579_v36  ;;  %v11380_v13 = vmax.f32 %v9576_v47, 0.0  ;;  %v10802_v22 = vmax.f32 %v7264_v52, 0.0  ;;  %v9579_v32 = vadd.f32 %v23688_v38, %v17155_v42  ;;  %v23882_v36 = vpop.f32.mrb[106].mxu0  ;;  %v23897_v42 = vpop.f32.mrb[106].mxu1  ;;  %16689 = vmatmul.mubr.msk.bf16.gmra.mrb[212].mxu0 %vm4069_vm2, %v17849_v49  ;;  %17265 = vmatmul.mubr.msk.bf16.gmra.mrb[212].mxu1 %vm4069_vm2, %v17850_v33 }
 0x3bc   :  { %v15433_v43 = vpack.c.bf16 %v12257_v2, %v12257_v2  ;;  %v15577_v31 = vpack.c.bf16 %v12401_v46, %v12401_v46  ;;  %v11974_v0 = vmax.f32 %v27317_v57, %v10804_v10  ;;  %v11378_v48 = vmax.f32 %v9568_v51, 0.0  ;;  %v23899_v8 = vpop.f32.mrb[107].mxu0  ;;  %v23913_v4 = vpop.f32.mrb[107].mxu1  ;;  %v27326_v62 = vld [vmem:[#allocation5_spill] sm:$0xff]  ;;  %16692 = vmatprep.mubr.msk.bf16.mxu0 %vm4069_vm2, %v17851_v37  ;;  %v27328_v63 = vld [vmem:[#allocation11_spill] sm:$0xff]  ;;  %17268 = vmatprep.mubr.msk.bf16.mxu1 %vm4069_vm2, %v17852_v56  ;;  %v27331_v26 = vld [vmem:[#allocation12_spill] sm:$0xff] }
 0x3bd   :  { %v10805_v23 = vmax.f32 %v7275_v19, 0.0  ;;  %v7267_v6 = vadd.f32 %v23688_v38, %v7266_v18  ;;  %v27318_v16 = vmax.f32 %v23563_v45, 0.0  ;;  %v27320_v53 = vmax.f32 %v27319_v25, 0.0  ;;  %v27325_v45 = vld [vmem:[#allocation28_spill] sm:$0xff]  ;;  %v23935_v52 = vpop.f32.mrb[108].mxu0  ;;  %v23942_v19 = vpop.f32.mrb[108].mxu1 }
 0x3be   :  { %13698 = vst.msk [vmem:[%s26756_s3 + $0x14c] sm:$0xf] %vm13614_vm3, %v15433_v43  ;;  %13842 = vst.msk [vmem:[%s26756_s3 + $0x38c] sm:$0xf] %vm13614_vm3, %v15577_v31  ;;  %v11381_v18 = vmax.f32 %v9579_v32, 0.0  ;;  %v9571_v27 = vadd.f32 %v23688_v38, %v9570_v34  ;;  %v12262_v21 = vmax.f32 %v27321_v35, %v11974_v0  ;;  %v27323_v61 = vmax.f32 %v27322_v20, 0.0 }
 0x3bf   :  { %v12118_v40 = vmax.f32 %v27318_v16, %v11380_v13  ;;  %v11972_v60 = vmax.f32 %v27320_v53, %v10802_v22  ;;  %v27324_v55 = vmax.f32 %v23567_v1, 0.0  ;;  %v10803_v24 = vmax.f32 %v7267_v6, 0.0  ;;  %v27329_v1 = vld [vmem:[#allocation23_spill] sm:$0xff]  ;;  %v23944_v49 = vpop.f32.mrb[109].mxu0  ;;  %v27334_v13 = vld [vmem:[#allocation6_spill] sm:$0xff]  ;;  %v9599_v32 = vpop.f32.mrb[109].mxu1 }
 0x3c0   :  { %v12116_v11 = vmax.f32 %v27323_v61, %v11378_v48  ;;  %v27327_v15 = vmax.f32 %v23573_v41, 0.0  ;;  %v11379_v17 = vmax.f32 %v9571_v27, 0.0  ;;  %v15438_v3 = vpack.c.bf16 %v12262_v21, %v12262_v21  ;;  %v23958_v33 = vpop.f32.mrb[110].mxu0  ;;  %v17854_v37 = vld [vmem:[%s26754_s0 + $0x1068] sm:$0xff]   ;;  %v17855_v57 = vld [vmem:[%s26754_s0 + $0x770] sm:$0xff]   ;;  %v23974_v48 = vpop.f32.mrb[110].mxu1 }
 0x3c1   :  { %v11975_v44 = vmax.f32 %v27324_v55, %v10805_v23  ;;  %v12406_v58 = vmax.f32 %v27325_v45, %v12118_v40  ;;  %v12260_v5 = vmax.f32 %v27326_v62, %v11972_v60  ;;  %v27330_v7 = vmax.f32 %v23532_v50, 0.0  ;;  %v27333_v50 = vld [vmem:[#allocation25_spill] sm:$0xff]  ;;  %v23976_v23 = vpop.f32.mrb[111].mxu0  ;;  %v17856_v6 = vld [vmem:[%s26754_s0 + $0x1070] sm:$0xff]   ;;  %v23985_v16 = vpop.f32.mrb[111].mxu1  ;;  %v17859_v21 = vld [vmem:[%s26754_s0 + $0x780] sm:$0xff]  }
 0x3c2   :  { %v12119_v34 = vmax.f32 %v27327_v15, %v11381_v18  ;;  %v12404_v39 = vmax.f32 %v27328_v63, %v12116_v11  ;;  %v27332_v46 = vmax.f32 %v23540_v59, 0.0  ;;  %13703 = vst.msk [vmem:[%s26756_s3 + $0x160] sm:$0xf] %vm13614_vm3, %v15438_v3  ;;  %v17853_v59 = vld [vmem:[%s26754_s0 + $0x768] sm:$0xff]   ;;  %v17857_v60 = vld [vmem:[%s26754_s0 + $0x778] sm:$0xff]   ;;  %v17860_v11 = vld [vmem:[%s26754_s0 + $0x1080] sm:$0xff]   ;;  %v24042_v62 = vadd.f32 %v23688_v38, %v23855_v12 }
 0x3c3   :  { %v12263_v28 = vmax.f32 %v27329_v1, %v11975_v44  ;;  %v11973_v2 = vmax.f32 %v27330_v7, %v10803_v24  ;;  %v15582_v9 = vpack.c.bf16 %v12406_v58, %v12406_v58  ;;  %v15436_v14 = vpack.c.bf16 %v12260_v5, %v12260_v5  ;;  %16693 = vmatmul.mubr.msk.bf16.gmra.mrb[216].mxu0 %vm4069_vm2, %v17853_v59  ;;  %v23999_v40 = vpop.f32.mrb[112].mxu0  ;;  %v17858_v35 = vld [vmem:[%s26754_s0 + $0x1078] sm:$0xff]   ;;  %v17861_v58 = vld [vmem:[%s26754_s0 + $0x788] sm:$0xff]   ;;  %v17864_v7 = vld [vmem:[%s26754_s0 + $0x1090] sm:$0xff]  }
 0x3c4   :  { %v12407_v41 = vmax.f32 %v27331_v26, %v12119_v34  ;;  %v12117_v47 = vmax.f32 %v27332_v46, %v11379_v17  ;;  %v15580_v43 = vpack.c.bf16 %v12404_v39, %v12404_v39  ;;  %17269 = vmatmul.mubr.msk.bf16.gmra.mrb[216].mxu1 %vm4069_vm2, %v17854_v37  ;;  %16696 = vmatprep.mubr.msk.bf16.mxu0 %vm4069_vm2, %v17855_v57  ;;  %v24001_v25 = vpop.f32.mrb[112].mxu1  ;;  %v24003_v53 = vpop.f32.mrb[113].mxu0  ;;  %v17862_v34 = vld [vmem:[%s26754_s0 + $0x1088] sm:$0xff]   ;;  %v17863_v17 = vld [vmem:[%s26754_s0 + $0x790] sm:$0xff]  }
 0x3c5   :  { %v15439_v10 = vpack.c.bf16 %v12263_v28, %v12263_v28  ;;  %v12261_v51 = vmax.f32 %v27333_v50, %v11973_v2  ;;  %13847 = vst.msk [vmem:[%s26756_s3 + $0x3a0] sm:$0xf] %vm13614_vm3, %v15582_v9  ;;  %13701 = vst.msk [vmem:[%s26756_s3 + $0x158] sm:$0xf] %vm13614_vm3, %v15436_v14  ;;  %17272 = vmatprep.mubr.msk.bf16.mxu1 %vm4069_vm2, %v17856_v6  ;;  %v24008_v18 = vpop.f32.mrb[113].mxu1  ;;  %v24010_v27 = vpop.f32.mrb[114].mxu0  ;;  %v24056_v3 = vadd.f32 %v23688_v38, %v23868_v54 }
 0x3c6   :  { %v15583_v31 = vpack.c.bf16 %v12407_v41, %v12407_v41  ;;  %v12405_v22 = vmax.f32 %v27334_v13, %v12117_v47  ;;  %13845 = vst.msk [vmem:[%s26756_s3 + $0x398] sm:$0xf] %vm13614_vm3, %v15580_v43  ;;  %v24018_v20 = vpop.f32.mrb[114].mxu1  ;;  %v24020_v61 = vpop.f32.mrb[115].mxu0  ;;  %v7280_v12 = vadd.f32 %v23688_v38, %v23870_v29  ;;  %v9584_v63 = vadd.f32 %v23688_v38, %v23880_v30 }
 0x3c7   :  { %13704 = vst.msk [vmem:[%s26756_s3 + $0x164] sm:$0xf] %vm13614_vm3, %v15439_v10  ;;  %v15437_v0 = vpack.c.bf16 %v12261_v51, %v12261_v51  ;;  %v24025_v55 = vpop.f32.mrb[115].mxu1  ;;  %v24064_v39 = vadd.f32 %v23688_v38, %v23882_v36  ;;  %v24075_v54 = vadd.f32 %v23688_v38, %v23897_v42  ;;  %v24079_v29 = vadd.f32 %v23688_v38, %v23899_v8 }
 0x3c8   :  { %13848 = vst.msk [vmem:[%s26756_s3 + $0x3a4] sm:$0xf] %vm13614_vm3, %v15583_v31  ;;  %v15581_v56 = vpack.c.bf16 %v12405_v22, %v12405_v22  ;;  %v24083_v30 = vadd.f32 %v23688_v38, %v23913_v4  ;;  %v24089_v2 = vadd.f32 %v23688_v38, %v23935_v52  ;;  %v24093_v9 = vadd.f32 %v23688_v38, %v23942_v19  ;;  %v17865_v22 = vld [vmem:[%s26754_s0 + $0x798] sm:$0xff]  }
 0x3c9   :  { %13702 = vst.msk [vmem:[%s26756_s3 + $0x15c] sm:$0xf] %vm13614_vm3, %v15437_v0  ;;  %v24097_v42 = vadd.f32 %v23688_v38, %v23944_v49  ;;  %v10808_v8 = vmax.f32 %v24042_v62, 0.0  ;;  %v24102_v4 = vadd.f32 %v23688_v38, %v9599_v32  ;;  %v11384_v14 = vmax.f32 %v24056_v3, 0.0 }
 0x3ca   :  { %13846 = vst.msk [vmem:[%s26756_s3 + $0x39c] sm:$0xf] %vm13614_vm3, %v15581_v56  ;;  %v10806_v26 = vmax.f32 %v7280_v12, 0.0  ;;  %v11382_v41 = vmax.f32 %v9584_v63, 0.0  ;;  %v10809_v46 = vmax.f32 %v24064_v39, 0.0  ;;  %v11385_v47 = vmax.f32 %v24075_v54, 0.0 }
 0x3cb   :  { %16697 = vmatmul.mubr.msk.bf16.gmra.mrb[220].mxu0 %vm4069_vm2, %v17857_v60  ;;  %v24031_v44 = vpop.f32.mrb[116].mxu0  ;;  %v10807_v52 = vmax.f32 %v24079_v29, 0.0  ;;  %v11383_v43 = vmax.f32 %v24083_v30, 0.0  ;;  %v24114_v10 = vadd.f32 %v23688_v38, %v23958_v33  ;;  %v10810_v49 = vmax.f32 %v24097_v42, 0.0  ;;  %v17866_v56 = vld [vmem:[%s26754_s0 + $0x1098] sm:$0xff]   ;;  %v17867_v60 = vld [vmem:[%s26754_s0 + $0x7a0] sm:$0xff]  }
 0x3cc   :  { %17273 = vmatmul.mubr.msk.bf16.gmra.mrb[220].mxu1 %vm4069_vm2, %v17858_v35  ;;  %16700 = vmatprep.mubr.msk.bf16.mxu0 %vm4069_vm2, %v17859_v21  ;;  %v24033_v24 = vpop.f32.mrb[116].mxu1  ;;  %v24035_v45 = vpop.f32.mrb[117].mxu0  ;;  %v11386_v32 = vmax.f32 %v24102_v4, 0.0  ;;  %v24128_v33 = vadd.f32 %v23688_v38, %v23974_v48  ;;  %v24132_v37 = vadd.f32 %v23688_v38, %v23976_v23  ;;  %v24145_v48 = vadd.f32 %v23688_v38, %v23985_v16  ;;  %v17873_v39 = vld [vmem:[%s26754_s0 + $0x7b8] sm:$0xff]  }
 0x3cd   :  { %17276 = vmatprep.mubr.msk.bf16.mxu1 %vm4069_vm2, %v17860_v11  ;;  %v24044_v5 = vpop.f32.mrb[117].mxu1  ;;  %v24046_v15 = vpop.f32.mrb[118].mxu0  ;;  %v24149_v23 = vadd.f32 %v23688_v38, %v23999_v40  ;;  %v24163_v16 = vadd.f32 %v23688_v38, %v24003_v53  ;;  %v24174_v29 = vadd.f32 %v23688_v38, %v24010_v27 }
 0x3ce   :  { %v24066_v1 = vpop.f32.mrb[118].mxu1  ;;  %v24068_v28 = vpop.f32.mrb[119].mxu0  ;;  %v10811_v27 = vmax.f32 %v24132_v37, 0.0  ;;  %v24203_v37 = vadd.f32 %v23688_v38, %v24020_v61 }
 0x3cf   :  { %v24085_v36 = vpop.f32.mrb[119].mxu1 }
 0x3d0   :  { %v10815_v42 = vmax.f32 %v24203_v37, 0.0  ;;  %v17875_v37 = vld [vmem:[%s26754_s0 + $0x7c0] sm:$0xff]  }
 0x3d3   :  { %16701 = vmatmul.mubr.msk.bf16.gmra.mrb[224].mxu0 %vm4069_vm2, %v17861_v58  ;;  %v16598_v50 = vpop.f32.mrb[120].mxu0 }
 0x3d4   :  { %17277 = vmatmul.mubr.msk.bf16.gmra.mrb[224].mxu1 %vm4069_vm2, %v17862_v34  ;;  %16704 = vmatprep.mubr.msk.bf16.mxu0 %vm4069_vm2, %v17863_v17  ;;  %v7352_v59 = vadd.f32 %v23688_v38, %v16598_v50  ;;  %v17174_v31 = vpop.f32.mrb[120].mxu1  ;;  %v24120_v13 = vpop.f32.mrb[121].mxu0  ;;  %v17868_v34 = vld [vmem:[%s26754_s0 + $0x10a0] sm:$0xff]   ;;  %v24159_v17 = vadd.f32 %v23688_v38, %v24001_v25  ;;  %v24182_v50 = vadd.f32 %v23688_v38, %v24018_v20  ;;  %v17872_v20 = vld [vmem:[%s26754_s0 + $0x10b0] sm:$0xff]  }
 0x3d5   :  { %17280 = vmatprep.mubr.msk.bf16.mxu1 %vm4069_vm2, %v17864_v7  ;;  %v9656_v57 = vadd.f32 %v23688_v38, %v17174_v31  ;;  %v24135_v0 = vpop.f32.mrb[121].mxu1  ;;  %v16599_v6 = vpop.f32.mrb[122].mxu0  ;;  %v24170_v7 = vadd.f32 %v23688_v38, %v24008_v18 }
 0x3d6   :  { %v10824_v35 = vmax.f32 %v7352_v59, 0.0  ;;  %v7355_v21 = vadd.f32 %v23688_v38, %v16599_v6  ;;  %v17175_v11 = vpop.f32.mrb[122].mxu1  ;;  %v24152_v58 = vpop.f32.mrb[123].mxu0 }
 0x3d7   :  { %v11400_v40 = vmax.f32 %v9656_v57, 0.0  ;;  %v9659_v12 = vadd.f32 %v23688_v38, %v17175_v11  ;;  %v24166_v63 = vpop.f32.mrb[123].mxu1  ;;  %v17869_v11 = vld [vmem:[%s26754_s0 + $0x7a8] sm:$0xff]  }
 0x3d8   :  { %v24176_v30 = vmax.f32 %v10806_v26, %v10824_v35  ;;  %v10825_v25 = vmax.f32 %v7355_v21, 0.0  ;;  %v11387_v26 = vmax.f32 %v24145_v48, 0.0 }
 0x3d9   :  { %v24184_v59 = vmax.f32 %v11382_v41, %v11400_v40  ;;  %v11401_v31 = vmax.f32 %v9659_v12, 0.0 }
 0x3db   :  { %16705 = vmatmul.mubr.msk.bf16.gmra.mrb[228].mxu0 %vm4069_vm2, %v17865_v22  ;;  %v24191_v22 = vmax.f32 %v10807_v52, %v10825_v25  ;;  %v24197_v6 = vmax.f32 %v11383_v43, %v11401_v31  ;;  %v17870_v31 = vld [vmem:[%s26754_s0 + $0x10a8] sm:$0xff]   ;;  %v24224_v43 = vadd.f32 %v23688_v38, %v24031_v44 }
 0x3dc   :  { %17281 = vmatmul.mubr.msk.bf16.gmra.mrb[228].mxu1 %vm4069_vm2, %v17866_v56  ;;  %16708 = vmatprep.mubr.msk.bf16.mxu0 %vm4069_vm2, %v17867_v60  ;;  %v16602_v56 = vpop.f32.mrb[124].mxu0  ;;  %v17178_v48 = vpop.f32.mrb[124].mxu1 }
 0x3dd   :  { %17284 = vmatprep.mubr.msk.bf16.mxu1 %vm4069_vm2, %v17868_v34  ;;  %v7368_v52 = vadd.f32 %v23688_v38, %v16602_v56  ;;  %v7359_v21 = vpop.f32.mrb[125].mxu0  ;;  %v24212_v34 = vadd.f32 %v23688_v38, %v24025_v55  ;;  %v9672_v40 = vadd.f32 %v23688_v38, %v17178_v48  ;;  %v9663_v61 = vpop.f32.mrb[125].mxu1  ;;  %v17871_v56 = vld [vmem:[%s26754_s0 + $0x7b0] sm:$0xff]  }
 0x3de   :  { %v7360_v12 = vadd.f32 %v23688_v38, %v7359_v21  ;;  %v16603_v25 = vpop.f32.mrb[126].mxu0  ;;  %v9664_v35 = vadd.f32 %v23688_v38, %v9663_v61  ;;  %v17179_v21 = vpop.f32.mrb[126].mxu1 }
 0x3df   :  { %v10828_v55 = vmax.f32 %v7368_v52, 0.0  ;;  %v7371_v48 = vadd.f32 %v23688_v38, %v16603_v25  ;;  %v7362_v41 = vpop.f32.mrb[127].mxu0  ;;  %v11404_v18 = vmax.f32 %v9672_v40, 0.0  ;;  %v9675_v19 = vadd.f32 %v23688_v38, %v17179_v21  ;;  %v9666_v60 = vpop.f32.mrb[127].mxu1 }
 0x3e0   :  { %v10826_v53 = vmax.f32 %v7360_v12, 0.0  ;;  %v7363_v51 = vadd.f32 %v23688_v38, %v7362_v41  ;;  %v11402_v52 = vmax.f32 %v9664_v35, 0.0  ;;  %v9667_v25 = vadd.f32 %v23688_v38, %v9666_v60  ;;  %v17874_v35 = vld [vmem:[%s26754_s0 + $0x10b8] sm:$0xff]  }
 0x3e1   :  { %v24235_v44 = vmax.f32 %v10810_v49, %v10828_v55  ;;  %v10829_v61 = vmax.f32 %v7371_v48, 0.0  ;;  %v24241_v57 = vmax.f32 %v11386_v32, %v11404_v18  ;;  %v11405_v41 = vmax.f32 %v9675_v19, 0.0  ;;  %v17876_v55 = vld [vmem:[%s26754_s0 + $0x10c0] sm:$0xff]  }
 0x3e2   :  { %v24245_v40 = vmax.f32 %v10808_v8, %v10826_v53  ;;  %v10827_v12 = vmax.f32 %v7363_v51, 0.0  ;;  %v24252_v49 = vmax.f32 %v11384_v14, %v11402_v52  ;;  %v11403_v4 = vmax.f32 %v9667_v25, 0.0 }
 0x3e3   :  { %16709 = vmatmul.mubr.msk.bf16.gmra.mrb[232].mxu0 %vm4069_vm2, %v17869_v11  ;;  %v24254_v60 = vmax.f32 %v10811_v27, %v10829_v61  ;;  %v11391_v62 = vmax.f32 %v24212_v34, 0.0  ;;  %v24260_v8 = vadd.f32 %v23688_v38, %v24033_v24  ;;  %v24262_v51 = vmax.f32 %v11387_v26, %v11405_v41  ;;  %v16606_v3 = vpop.f32.mrb[128].mxu0 }
 0x3e4   :  { %17285 = vmatmul.mubr.msk.bf16.gmra.mrb[232].mxu1 %vm4069_vm2, %v17870_v31  ;;  %16712 = vmatprep.mubr.msk.bf16.mxu0 %vm4069_vm2, %v17871_v56  ;;  %v24266_v19 = vmax.f32 %v10809_v46, %v10827_v12  ;;  %v10820_v14 = vmax.f32 %v24224_v43, 0.0  ;;  %v24271_v32 = vadd.f32 %v23688_v38, %v24035_v45  ;;  %v24275_v53 = vmax.f32 %v11385_v47, %v11403_v4  ;;  %v7375_v27 = vpop.f32.mrb[129].mxu0 }
 0x3e5   :  { %17288 = vmatprep.mubr.msk.bf16.mxu1 %vm4069_vm2, %v17872_v20  ;;  %v7384_v24 = vadd.f32 %v23688_v38, %v16606_v3  ;;  %v17182_v18 = vpop.f32.mrb[128].mxu1  ;;  %v24283_v46 = vadd.f32 %v23688_v38, %v24044_v5  ;;  %v24287_v45 = vadd.f32 %v23688_v38, %v24068_v28  ;;  %v7376_v47 = vadd.f32 %v23688_v38, %v7375_v27  ;;  %v16607_v20 = vpop.f32.mrb[130].mxu0 }
 0x3e6   :  { %v9688_v54 = vadd.f32 %v23688_v38, %v17182_v18  ;;  %v9679_v26 = vpop.f32.mrb[129].mxu1  ;;  %v24299_v5 = vadd.f32 %v23688_v38, %v24085_v36  ;;  %v7387_v34 = vadd.f32 %v23688_v38, %v16607_v20  ;;  %v7378_v56 = vpop.f32.mrb[131].mxu0  ;;  %v27335_v36 = vmax.f32 %v24163_v16, 0.0 }
 0x3e7   :  { %v10832_v28 = vmax.f32 %v7384_v24, 0.0  ;;  %v9680_v11 = vadd.f32 %v23688_v38, %v9679_v26  ;;  %v17183_v31 = vpop.f32.mrb[130].mxu1  ;;  %v10830_v21 = vmax.f32 %v7376_v47, 0.0  ;;  %v7379_v61 = vadd.f32 %v23688_v38, %v7378_v56 }
 0x3e8   :  { %v11408_v48 = vmax.f32 %v9688_v54, 0.0  ;;  %v9691_v52 = vadd.f32 %v23688_v38, %v17183_v31  ;;  %v9682_v25 = vpop.f32.mrb[131].mxu1  ;;  %v10833_v4 = vmax.f32 %v7387_v34, 0.0  ;;  %v27336_v24 = vmax.f32 %v24170_v7, 0.0 }
 0x3e9   :  { %v24310_v41 = vmax.f32 %v27335_v36, %v10832_v28  ;;  %v11406_v12 = vmax.f32 %v9680_v11, 0.0  ;;  %v9683_v3 = vadd.f32 %v23688_v38, %v9682_v25  ;;  %v27337_v27 = vmax.f32 %v24089_v2, 0.0 }
 0x3ea   :  { %v24316_v18 = vmax.f32 %v27336_v24, %v11408_v48  ;;  %v11409_v47 = vmax.f32 %v9691_v52, 0.0  ;;  %v10831_v26 = vmax.f32 %v7379_v61, 0.0  ;;  %v24326_v16 = vadd.f32 %v23688_v38, %v24046_v15  ;;  %v17878_v52 = vld [vmem:[%s26754_s0 + $0x10c8] sm:$0xff]   ;;  %v17879_v61 = vld [vmem:[%s26754_s0 + $0x7d0] sm:$0xff]  }
 0x3eb   :  { %16713 = vmatmul.mubr.msk.bf16.gmra.mrb[236].mxu0 %vm4069_vm2, %v17873_v39  ;;  %v24320_v54 = vmax.f32 %v27337_v27, %v10830_v21  ;;  %v27338_v39 = vmax.f32 %v24093_v9, 0.0  ;;  %v24332_v7 = vmax.f32 %v10815_v42, %v10833_v4  ;;  %v11407_v28 = vmax.f32 %v9683_v3, 0.0  ;;  %v16610_v15 = vpop.f32.mrb[132].mxu0  ;;  %v17880_v3 = vld [vmem:[%s26754_s0 + $0x10d0] sm:$0xff]  }
 0x3ec   :  { %17289 = vmatmul.mubr.msk.bf16.gmra.mrb[236].mxu1 %vm4069_vm2, %v17874_v35  ;;  %16716 = vmatprep.mubr.msk.bf16.mxu0 %vm4069_vm2, %v17875_v37  ;;  %v10818_v2 = vmax.f32 %v24271_v32, 0.0  ;;  %v11394_v11 = vmax.f32 %v24283_v46, 0.0  ;;  %v24337_v35 = vmax.f32 %v11391_v62, %v11409_v47  ;;  %v27339_v37 = vmax.f32 %v24114_v10, 0.0  ;;  %v7391_v48 = vpop.f32.mrb[133].mxu0  ;;  %v17877_v62 = vld [vmem:[%s26754_s0 + $0x7c8] sm:$0xff]  }
 0x3ed   :  { %v24330_v20 = vmax.f32 %v27338_v39, %v11406_v12  ;;  %17292 = vmatprep.mubr.msk.bf16.mxu1 %vm4069_vm2, %v17876_v55  ;;  %v10819_v9 = vmax.f32 %v24287_v45, 0.0  ;;  %v11395_v31 = vmax.f32 %v24299_v5, 0.0  ;;  %v27341_v42 = vmax.f32 %v24128_v33, 0.0  ;;  %v17186_v32 = vpop.f32.mrb[132].mxu1  ;;  %v16611_v21 = vpop.f32.mrb[134].mxu0 }
 0x3ee   :  { %v24341_v34 = vmax.f32 %v27339_v37, %v10831_v26  ;;  %v7400_v55 = vadd.f32 %v23688_v38, %v16610_v15  ;;  %v24355_v10 = vadd.f32 %v23688_v38, %v24120_v13  ;;  %v24359_v46 = vadd.f32 %v23688_v38, %v24135_v0  ;;  %v9695_v5 = vpop.f32.mrb[133].mxu1  ;;  %v7394_v4 = vpop.f32.mrb[135].mxu0 }
 0x3ef   :  { %v24347_v56 = vmax.f32 %v27341_v42, %v11407_v28  ;;  %v9704_v33 = vadd.f32 %v23688_v38, %v17186_v32  ;;  %v7392_v45 = vadd.f32 %v23688_v38, %v7391_v48  ;;  %v24371_v13 = vadd.f32 %v23688_v38, %v24152_v58  ;;  %v17187_v12 = vpop.f32.mrb[134].mxu1 }
 0x3f0   :  { %27340 = vst [vmem:[#allocation21_spill] sm:$0xff] %v24341_v34  ;;  %v10836_v0 = vmax.f32 %v7400_v55, 0.0  ;;  %v9696_v25 = vadd.f32 %v23688_v38, %v9695_v5  ;;  %v7403_v36 = vadd.f32 %v23688_v38, %v16611_v21  ;;  %v9707_v47 = vadd.f32 %v23688_v38, %v17187_v12  ;;  %v9698_v39 = vpop.f32.mrb[135].mxu1 }
 0x3f1   :  { %27342 = vst [vmem:[#allocation4_spill] sm:$0xff] %v24347_v56  ;;  %v11412_v24 = vmax.f32 %v9704_v33, 0.0  ;;  %v10834_v27 = vmax.f32 %v7392_v45, 0.0  ;;  %v7395_v26 = vadd.f32 %v23688_v38, %v7394_v4  ;;  %v9699_v15 = vadd.f32 %v23688_v38, %v9698_v39 }
 0x3f2   :  { %v24380_v58 = vmax.f32 %v10818_v2, %v10836_v0  ;;  %v11410_v28 = vmax.f32 %v9696_v25, 0.0  ;;  %v10837_v37 = vmax.f32 %v7403_v36, 0.0  ;;  %v27345_v55 = vmax.f32 %v24149_v23, 0.0 }
 0x3f3   :  { %16717 = vmatmul.mubr.msk.bf16.gmra.mrb[240].mxu0 %vm4069_vm2, %v17877_v62  ;;  %v24384_v42 = vmax.f32 %v11394_v11, %v11412_v24  ;;  %v11413_v48 = vmax.f32 %v9707_v47, 0.0  ;;  %v10835_v33 = vmax.f32 %v7395_v26, 0.0  ;;  %v9651_v2 = vadd.f32 %v23688_v38, %v24166_v63  ;;  %v16614_v63 = vpop.f32.mrb[136].mxu0  ;;  %v17882_v24 = vld [vmem:[%s26754_s0 + $0x10d8] sm:$0xff]  }
 0x3f4   :  { %27343 = vst [vmem:[#allocation2_spill] sm:$0xff] %v24380_v58  ;;  %v24388_v32 = vmax.f32 %v27345_v55, %v10834_v27  ;;  %17293 = vmatmul.mubr.msk.bf16.gmra.mrb[240].mxu1 %vm4069_vm2, %v17878_v52  ;;  %16720 = vmatprep.mubr.msk.bf16.mxu0 %vm4069_vm2, %v17879_v61  ;;  %v27347_v45 = vmax.f32 %v24159_v17, 0.0  ;;  %v24398_v62 = vmax.f32 %v10819_v9, %v10837_v37  ;;  %v11411_v11 = vmax.f32 %v9699_v15, 0.0  ;;  %v7407_v4 = vpop.f32.mrb[137].mxu0  ;;  %v17883_v27 = vld [vmem:[%s26754_s0 + $0x7e0] sm:$0xff]  }
 0x3f5   :  { %27344 = vst [vmem:[#allocation3_spill] sm:$0xff] %v24384_v42  ;;  %17296 = vmatprep.mubr.msk.bf16.mxu1 %vm4069_vm2, %v17880_v3  ;;  %v11396_v23 = vmax.f32 %v24260_v8, 0.0  ;;  %v9643_v21 = vadd.f32 %v23688_v38, %v24066_v1  ;;  %v24404_v52 = vmax.f32 %v11395_v31, %v11413_v48  ;;  %v27351_v61 = vmax.f32 %v24174_v29, 0.0  ;;  %v17190_v12 = vpop.f32.mrb[136].mxu1  ;;  %v17881_v1 = vld [vmem:[%s26754_s0 + $0x7d8] sm:$0xff]   ;;  %v17884_v37 = vld [vmem:[%s26754_s0 + $0x10e0] sm:$0xff]  }
 0x3f6   :  { %27346 = vst [vmem:[#allocation10_spill] sm:$0xff] %v24388_v32  ;;  %v24396_v5 = vmax.f32 %v27347_v45, %v11410_v28  ;;  %27349 = vst [vmem:[#allocation17_spill] sm:$0xff] %v24398_v62  ;;  %v10821_v17 = vmax.f32 %v24326_v16, 0.0  ;;  %v10822_v9 = vmax.f32 %v24355_v10, 0.0  ;;  %v27353_v25 = vmax.f32 %v24182_v50, 0.0  ;;  %v9711_v3 = vpop.f32.mrb[137].mxu1 }
 0x3f7   :  { %27350 = vst [vmem:[#allocation26_spill] sm:$0xff] %v24404_v52  ;;  %v24408_v0 = vmax.f32 %v27351_v61, %v10835_v33  ;;  %v7416_v8 = vadd.f32 %v23688_v38, %v16614_v63  ;;  %v11398_v29 = vmax.f32 %v24359_v46, 0.0  ;;  %v10823_v31 = vmax.f32 %v24371_v13, 0.0  ;;  %v16615_v50 = vpop.f32.mrb[138].mxu0  ;;  %v17191_v39 = vpop.f32.mrb[138].mxu1  ;;  %v17900_v62 = vld [vmem:[%s26754_s0 + $0x1120] sm:$0xff]  }
 0x3f8   :  { %27348 = vst [vmem:[#allocation24_spill] sm:$0xff] %v24396_v5  ;;  %v24414_v36 = vmax.f32 %v27353_v25, %v11411_v11  ;;  %v9720_v16 = vadd.f32 %v23688_v38, %v17190_v12  ;;  %v7408_v10 = vadd.f32 %v23688_v38, %v7407_v4  ;;  %v11399_v47 = vmax.f32 %v9651_v2, 0.0  ;;  %v7410_v28 = vpop.f32.mrb[139].mxu0  ;;  %v9714_v45 = vpop.f32.mrb[139].mxu1  ;;  %v17901_v32 = vld [vmem:[%s26754_s0 + $0x828] sm:$0xff]  }
 0x3f9   :  { %27352 = vst [vmem:[#allocation15_spill] sm:$0xff] %v24408_v0  ;;  %v10840_v26 = vmax.f32 %v7416_v8, 0.0  ;;  %v9712_v46 = vadd.f32 %v23688_v38, %v9711_v3  ;;  %v7419_v13 = vadd.f32 %v23688_v38, %v16615_v50  ;;  %v9723_v48 = vadd.f32 %v23688_v38, %v17191_v39 }
 0x3fa   :  { %27354 = vst [vmem:[#allocation16_spill] sm:$0xff] %v24414_v36  ;;  %v11416_v15 = vmax.f32 %v9720_v16, 0.0  ;;  %v10838_v55 = vmax.f32 %v7408_v10, 0.0  ;;  %v7411_v33 = vadd.f32 %v23688_v38, %v7410_v28  ;;  %v9715_v63 = vadd.f32 %v23688_v38, %v9714_v45  ;;  %v17899_v36 = vld [vmem:[%s26754_s0 + $0x820] sm:$0xff]  }
 0x3fb   :  { %v24437_v11 = vmax.f32 %v10822_v9, %v10840_v26  ;;  %v11414_v2 = vmax.f32 %v9712_v46, 0.0  ;;  %v10841_v61 = vmax.f32 %v7419_v13, 0.0  ;;  %16721 = vmatmul.mubr.msk.bf16.gmra.mrb[244].mxu0 %vm4069_vm2, %v17881_v1  ;;  %v11417_v12 = vmax.f32 %v9723_v48, 0.0  ;;  %v17888_v26 = vld [vmem:[%s26754_s0 + $0x10f0] sm:$0xff]   ;;  %v17890_v48 = vld [vmem:[%s26754_s0 + $0x10f8] sm:$0xff]  }
 0x3fc   :  { %v24441_v25 = vmax.f32 %v11398_v29, %v11416_v15  ;;  %v24445_v8 = vmax.f32 %v10820_v14, %v10838_v55  ;;  %v10839_v4 = vmax.f32 %v7411_v33, 0.0  ;;  %17297 = vmatmul.mubr.msk.bf16.gmra.mrb[244].mxu1 %vm4069_vm2, %v17882_v24  ;;  %16724 = vmatprep.mubr.msk.bf16.mxu0 %vm4069_vm2, %v17883_v27  ;;  %v11397_v9 = vmax.f32 %v9643_v21, 0.0  ;;  %v17885_v21 = vld [vmem:[%s26754_s0 + $0x7e8] sm:$0xff]   ;;  %v17891_v33 = vld [vmem:[%s26754_s0 + $0x800] sm:$0xff]  }
 0x3fd   :  { %27355 = vst [vmem:[#allocation13_spill] sm:$0xff] %v24437_v11  ;;  %v24449_v16 = vmax.f32 %v11396_v23, %v11414_v2  ;;  %v24451_v10 = vmax.f32 %v10823_v31, %v10841_v61  ;;  %v11415_v38 = vmax.f32 %v9715_v63, 0.0  ;;  %17300 = vmatprep.mubr.msk.bf16.mxu1 %vm4069_vm2, %v17884_v37  ;;  %v24454_v1 = vmax.f32 %v11399_v47, %v11417_v12  ;;  %v16618_v43 = vpop.f32.mrb[140].mxu0  ;;  %v17194_v3 = vpop.f32.mrb[140].mxu1  ;;  %v17886_v31 = vld [vmem:[%s26754_s0 + $0x10e8] sm:$0xff]   ;;  %v17889_v37 = vld [vmem:[%s26754_s0 + $0x7f8] sm:$0xff]  }
 0x3fe   :  { %27356 = vst [vmem:[#allocation18_spill] sm:$0xff] %v24441_v25  ;;  %27357 = vst [vmem:[#allocation22_spill] sm:$0xff] %v24445_v8  ;;  %v24456_v29 = vmax.f32 %v10821_v17, %v10839_v4  ;;  %v7423_v50 = vpop.f32.mrb[141].mxu0  ;;  %v9727_v23 = vpop.f32.mrb[141].mxu1  ;;  %v17887_v17 = vld [vmem:[%s26754_s0 + $0x7f0] sm:$0xff]   ;;  %v17892_v61 = vld [vmem:[%s26754_s0 + $0x1100] sm:$0xff]  }
 0x3ff   :  { %27358 = vst [vmem:[#allocation14_spill] sm:$0xff] %v24449_v16  ;;  %27359 = vst [vmem:[#allocation19_spill] sm:$0xff] %v24451_v10  ;;  %v24458_v14 = vmax.f32 %v11397_v9, %v11415_v38  ;;  %v16619_v24 = vpop.f32.mrb[142].mxu0  ;;  %v17195_v27 = vpop.f32.mrb[142].mxu1  ;;  %v17893_v38 = vld [vmem:[%s26754_s0 + $0x808] sm:$0xff]   ;;  %v17896_v10 = vld [vmem:[%s26754_s0 + $0x1110] sm:$0xff]  }
 0x400   :  { %27360 = vst [vmem:[#allocation7_spill] sm:$0xff] %v24454_v1  ;;  %27361 = vst [vmem:[#allocation27_spill] sm:$0xff] %v24456_v29  ;;  %v7426_v47 = vpop.f32.mrb[143].mxu0  ;;  %v9730_v46 = vpop.f32.mrb[143].mxu1 }
 0x401   :  { %27362 = vst [vmem:[#allocation20_spill] sm:$0xff] %v24458_v14 }
 0x403   :  { %16725 = vmatmul.mubr.msk.bf16.gmra.mrb[248].mxu0 %vm4069_vm2, %v17885_v21  ;;  %v24498_v21 = vld [vmem:[%s26755_s2] ss:$0 sm:$0xff] }
 0x404   :  { %17301 = vmatmul.mubr.msk.bf16.gmra.mrb[248].mxu1 %vm4069_vm2, %v17886_v31  ;;  %16728 = vmatprep.mubr.msk.bf16.mxu0 %vm4069_vm2, %v17887_v17  ;;  %v24501_v31 = vadd.f32 %v24498_v21, %v16618_v43  ;;  %v24516_v14 = vadd.f32 %v24498_v21, %v9727_v23  ;;  %v24519_v43 = vadd.f32 %v24498_v21, %v16619_v24 }
 0x405   :  { %17304 = vmatprep.mubr.msk.bf16.mxu1 %vm4069_vm2, %v17888_v26  ;;  %v16622_v13 = vpop.f32.mrb[144].mxu0  ;;  %v24525_v16 = vadd.f32 %v24498_v21, %v17195_v27  ;;  %v17898_v27 = vld [vmem:[%s26754_s0 + $0x1118] sm:$0xff]  }
 0x406   :  { %v17198_v39 = vpop.f32.mrb[144].mxu1  ;;  %v7439_v28 = vpop.f32.mrb[145].mxu0  ;;  %v24534_v23 = vadd.f32 %v24498_v21, %v16622_v13 }
 0x407   :  { %v9743_v15 = vpop.f32.mrb[145].mxu1  ;;  %v16623_v55 = vpop.f32.mrb[146].mxu0  ;;  %v24537_v8 = vadd.f32 %v24498_v21, %v17198_v39  ;;  %v24540_v25 = vadd.f32 %v24498_v21, %v7439_v28 }
 0x408   :  { %v17199_v45 = vpop.f32.mrb[146].mxu1  ;;  %v7442_v2 = vpop.f32.mrb[147].mxu0  ;;  %v24561_v13 = vadd.f32 %v24498_v21, %v16623_v55 }
 0x409   :  { %v9746_v63 = vpop.f32.mrb[147].mxu1  ;;  %v24564_v28 = vadd.f32 %v24498_v21, %v17199_v45 }
 0x40b   :  { %16729 = vmatmul.mubr.msk.bf16.gmra.mrb[252].mxu0 %vm4069_vm2, %v17889_v37  ;;  %v17894_v37 = vld [vmem:[%s26754_s0 + $0x1108] sm:$0xff]   ;;  %27363 = vst [vmem:[#allocation8_spill] sm:$0xff] %v24564_v28 }
 0x40c   :  { %17305 = vmatmul.mubr.msk.bf16.gmra.mrb[252].mxu1 %vm4069_vm2, %v17890_v48  ;;  %16732 = vmatprep.mubr.msk.bf16.mxu0 %vm4069_vm2, %v17891_v33  ;;  %v17895_v48 = vld [vmem:[%s26754_s0 + $0x810] sm:$0xff]   ;;  %v24510_v33 = vadd.f32 %v24498_v21, %v17194_v3  ;;  %v24528_v3 = vadd.f32 %v24498_v21, %v7426_v47  ;;  %v24545_v47 = vadd.f32 %v24498_v21, %v9743_v15 }
 0x40d   :  { %17308 = vmatprep.mubr.msk.bf16.mxu1 %vm4069_vm2, %v17892_v61  ;;  %v16626_v12 = vpop.f32.mrb[148].mxu0  ;;  %v24513_v61 = vadd.f32 %v24498_v21, %v7423_v50  ;;  %v24531_v50 = vadd.f32 %v24498_v21, %v9730_v46 }
 0x40e   :  { %v17202_v4 = vpop.f32.mrb[148].mxu1  ;;  %v7455_v9 = vpop.f32.mrb[149].mxu0  ;;  %v24577_v55 = vadd.f32 %v24498_v21, %v16626_v12 }
 0x40f   :  { %v9759_v17 = vpop.f32.mrb[149].mxu1  ;;  %v16627_v26 = vpop.f32.mrb[150].mxu0  ;;  %v24586_v15 = vadd.f32 %v24498_v21, %v17202_v4 }
 0x410   :  { %v17203_v29 = vpop.f32.mrb[150].mxu1  ;;  %v7458_v1 = vpop.f32.mrb[151].mxu0  ;;  %27364 = vst [vmem:[#allocation9_spill] sm:$0xff] %v24577_v55  ;;  %v24595_v12 = vadd.f32 %v24498_v21, %v16627_v26 }
 0x411   :  { %v9762_v24 = vpop.f32.mrb[151].mxu1  ;;  %27365 = vst [vmem:[#allocation28_spill] sm:$0xff] %v24586_v15  ;;  %v24601_v5 = vadd.f32 %v24498_v21, %v17203_v29  ;;  %v24604_v4 = vadd.f32 %v24498_v21, %v7458_v1  ;;  %v17903_v1 = vld [vmem:[%s26754_s0 + $0x830] sm:$0xff]  }
 0x412   :  { %27366 = vst [vmem:[#allocation5_spill] sm:$0xff] %v24595_v12 }
 0x413   :  { %16733 = vmatmul.mubr.msk.bf16.gmra.mrb[0].mxu0 %vm4069_vm2, %v17893_v38  ;;  %v17897_v38 = vld [vmem:[%s26754_s0 + $0x818] sm:$0xff]   ;;  %27367 = vst [vmem:[#allocation11_spill] sm:$0xff] %v24601_v5  ;;  %v17904_v5 = vld [vmem:[%s26754_s0 + $0x1130] sm:$0xff]  }
 0x414   :  { %17309 = vmatmul.mubr.msk.bf16.gmra.mrb[0].mxu1 %vm4069_vm2, %v17894_v37  ;;  %16736 = vmatprep.mubr.msk.bf16.mxu0 %vm4069_vm2, %v17895_v48  ;;  %v24571_v37 = vadd.f32 %v24498_v21, %v7442_v2  ;;  %v24574_v48 = vadd.f32 %v24498_v21, %v9746_v63  ;;  %v24589_v2 = vadd.f32 %v24498_v21, %v7455_v9 }
 0x415   :  { %17312 = vmatprep.mubr.msk.bf16.mxu1 %vm4069_vm2, %v17896_v10  ;;  %v16630_v11 = vpop.f32.mrb[152].mxu0  ;;  %v24592_v63 = vadd.f32 %v24498_v21, %v9759_v17  ;;  %v24607_v9 = vadd.f32 %v24498_v21, %v9762_v24 }
 0x416   :  { %v17206_v10 = vpop.f32.mrb[152].mxu1  ;;  %v7471_v39 = vpop.f32.mrb[153].mxu0  ;;  %v24610_v17 = vadd.f32 %v24498_v21, %v16630_v11 }
 0x417   :  { %v9775_v46 = vpop.f32.mrb[153].mxu1  ;;  %v16631_v45 = vpop.f32.mrb[154].mxu0  ;;  %v24615_v58 = vadd.f32 %v24498_v21, %v17206_v10  ;;  %v24618_v29 = vadd.f32 %v24498_v21, %v7471_v39 }
 0x418   :  { %v17207_v0 = vpop.f32.mrb[154].mxu1  ;;  %v7474_v52 = vpop.f32.mrb[155].mxu0  ;;  %27368 = vst [vmem:[#allocation23_spill] sm:$0xff] %v24610_v17  ;;  %v24625_v56 = vadd.f32 %v24498_v21, %v9775_v46  ;;  %v24641_v39 = vadd.f32 %v24498_v21, %v16631_v45 }
 0x419   :  { %v9778_v26 = vpop.f32.mrb[155].mxu1  ;;  %27369 = vst [vmem:[#allocation12_spill] sm:$0xff] %v24615_v58  ;;  %27370 = vst [vmem:[#allocation25_spill] sm:$0xff] %v24618_v29 }
 0x41a   :  { %27371 = vst [vmem:[#allocation6_spill] sm:$0xff] %v24625_v56  ;;  %v24662_v46 = vadd.f32 %v24498_v21, %v9778_v26 }
 0x41b   :  { %16737 = vmatmul.mubr.msk.bf16.gmra.mrb[4].mxu0 %vm4069_vm2, %v17897_v38 }
 0x41c   :  { %17313 = vmatmul.mubr.msk.bf16.gmra.mrb[4].mxu1 %vm4069_vm2, %v17898_v27  ;;  %16740 = vmatprep.mubr.msk.bf16.mxu0 %vm4069_vm2, %v17899_v36  ;;  %v24649_v27 = vadd.f32 %v24498_v21, %v17207_v0  ;;  %v24652_v36 = vadd.f32 %v24498_v21, %v7474_v52 }
 0x41d   :  { %17316 = vmatprep.mubr.msk.bf16.mxu1 %vm4069_vm2, %v17900_v62  ;;  %v16634_v24 = vpop.f32.mrb[156].mxu0 }
 0x41e   :  { %v7496_v38 = vadd.f32 %v24498_v21, %v16634_v24  ;;  %v17210_v42 = vpop.f32.mrb[156].mxu1  ;;  %v7487_v62 = vpop.f32.mrb[157].mxu0  ;;  %v17902_v24 = vld [vmem:[%s26754_s0 + $0x1128] sm:$0xff]  }
 0x41f   :  { %v9800_v10 = vadd.f32 %v24498_v21, %v17210_v42  ;;  %v9791_v45 = vpop.f32.mrb[157].mxu1  ;;  %v16635_v11 = vpop.f32.mrb[158].mxu0  ;;  %v24665_v58 = vadd.f32 %v24498_v21, %v7487_v62 }
 0x420   :  { %v10860_v0 = vmax.f32 %v7496_v38, 0.0  ;;  %v7499_v52 = vadd.f32 %v24498_v21, %v16635_v11  ;;  %v17211_v42 = vpop.f32.mrb[158].mxu1  ;;  %v7490_v17 = vpop.f32.mrb[159].mxu0  ;;  %v24672_v15 = vadd.f32 %v24498_v21, %v9791_v45  ;;  %v27372_v11 = vmax.f32 %v24513_v61, 0.0 }
 0x421   :  { %v11436_v12 = vmax.f32 %v9800_v10, 0.0  ;;  %v9803_v55 = vadd.f32 %v24498_v21, %v17211_v42  ;;  %v24676_v26 = vadd.f32 %v24498_v21, %v7490_v17  ;;  %v9794_v38 = vpop.f32.mrb[159].mxu1  ;;  %v10855_v45 = vmax.f32 %v24652_v36, 0.0  ;;  %v17908_v10 = vld [vmem:[%s26754_s0 + $0x1140] sm:$0xff]   ;;  %v17920_v36 = vld [vmem:[%s26754_s0 + $0x1170] sm:$0xff]  }
 0x422   :  { %v11976_v56 = vmax.f32 %v27372_v11, %v10860_v0  ;;  %v10861_v29 = vmax.f32 %v7499_v52, 0.0  ;;  %v24682_v34 = vadd.f32 %v24498_v21, %v9794_v38  ;;  %v27373_v42 = vmax.f32 %v24516_v14, 0.0 }
 0x423   :  { %16741 = vmatmul.mubr.msk.bf16.gmra.mrb[8].mxu0 %vm4069_vm2, %v17901_v32  ;;  %v11437_v28 = vmax.f32 %v9803_v55, 0.0  ;;  %v11431_v61 = vmax.f32 %v24662_v46, 0.0  ;;  %v27374_v32 = vmax.f32 %v24528_v3, 0.0  ;;  %v27375_v55 = vmax.f32 %v24531_v50, 0.0  ;;  %v27410_v46 = vld [vmem:[#allocation26_spill] sm:$0xff] }
 0x424   :  { %v12120_v17 = vmax.f32 %v27373_v42, %v11436_v12  ;;  %17317 = vmatmul.mubr.msk.bf16.gmra.mrb[8].mxu1 %vm4069_vm2, %v17902_v24  ;;  %16744 = vmatprep.mubr.msk.bf16.mxu0 %vm4069_vm2, %v17903_v1  ;;  %v12264_v0 = vmax.f32 %v24176_v30, %v11976_v56 }
 0x425   :  { %v11977_v38 = vmax.f32 %v27374_v32, %v10861_v29  ;;  %17320 = vmatprep.mubr.msk.bf16.mxu1 %vm4069_vm2, %v17904_v5  ;;  %v12121_v12 = vmax.f32 %v27375_v55, %v11437_v28  ;;  %v16638_v24 = vpop.f32.mrb[160].mxu0 }
 0x426   :  { %v12408_v11 = vmax.f32 %v24184_v59, %v12120_v17  ;;  %v15440_v42 = vpack.c.bf16 %v12264_v0, %v12264_v0  ;;  %v7512_v3 = vadd.f32 %v24498_v21, %v16638_v24  ;;  %v17214_v29 = vpop.f32.mrb[160].mxu1  ;;  %v7503_v32 = vpop.f32.mrb[161].mxu0  ;;  %v17905_v59 = vld [vmem:[%s26754_s0 + $0x838] sm:$0xff]  }
 0x427   :  { %v12265_v30 = vmax.f32 %v24191_v22, %v11977_v38  ;;  %v12409_v50 = vmax.f32 %v24197_v6, %v12121_v12  ;;  %v9816_v28 = vadd.f32 %v24498_v21, %v17214_v29  ;;  %v7504_v17 = vadd.f32 %v24498_v21, %v7503_v32  ;;  %v9807_v0 = vpop.f32.mrb[161].mxu1  ;;  %v16639_v55 = vpop.f32.mrb[162].mxu0  ;;  %v17906_v22 = vld [vmem:[%s26754_s0 + $0x1138] sm:$0xff]   ;;  %v17907_v38 = vld [vmem:[%s26754_s0 + $0x840] sm:$0xff]  }
 0x428   :  { %v15584_v5 = vpack.c.bf16 %v12408_v11, %v12408_v11  ;;  %13705 = vst.msk [vmem:[%s26756_s3 + $0x168] sm:$0xf] %vm13614_vm3, %v15440_v42  ;;  %v10864_v11 = vmax.f32 %v7512_v3, 0.0  ;;  %v9808_v12 = vadd.f32 %v24498_v21, %v9807_v0  ;;  %v7515_v24 = vadd.f32 %v24498_v21, %v16639_v55  ;;  %v17215_v29 = vpop.f32.mrb[162].mxu1  ;;  %v7506_v32 = vpop.f32.mrb[163].mxu0 }
 0x429   :  { %v15441_v6 = vpack.c.bf16 %v12265_v30, %v12265_v30  ;;  %v15585_v62 = vpack.c.bf16 %v12409_v50, %v12409_v50  ;;  %v11440_v56 = vmax.f32 %v9816_v28, 0.0  ;;  %v10862_v42 = vmax.f32 %v7504_v17, 0.0  ;;  %v9810_v3 = vpop.f32.mrb[163].mxu1 }
 0x42a   :  { %13849 = vst.msk [vmem:[%s26756_s3 + $0x3a8] sm:$0xf] %vm13614_vm3, %v15584_v5  ;;  %v9819_v30 = vadd.f32 %v24498_v21, %v17215_v29  ;;  %v27376_v0 = vmax.f32 %v24540_v25, 0.0  ;;  %v11438_v1 = vmax.f32 %v9808_v12, 0.0  ;;  %v10865_v14 = vmax.f32 %v7515_v24, 0.0 }
 0x42b   :  { %13706 = vst.msk [vmem:[%s26756_s3 + $0x16c] sm:$0xf] %vm13614_vm3, %v15441_v6  ;;  %v7507_v52 = vadd.f32 %v24498_v21, %v7506_v32  ;;  %16745 = vmatmul.mubr.msk.bf16.gmra.mrb[12].mxu0 %vm4069_vm2, %v17905_v59  ;;  %13850 = vst.msk [vmem:[%s26756_s3 + $0x3ac] sm:$0xf] %vm13614_vm3, %v15585_v62  ;;  %v27377_v5 = vmax.f32 %v24545_v47, 0.0  ;;  %v27378_v28 = vmax.f32 %v24501_v31, 0.0  ;;  %v9811_v25 = vadd.f32 %v24498_v21, %v9810_v3 }
 0x42c   :  { %v11980_v55 = vmax.f32 %v27376_v0, %v10864_v11  ;;  %v11441_v6 = vmax.f32 %v9819_v30, 0.0  ;;  %17321 = vmatmul.mubr.msk.bf16.gmra.mrb[12].mxu1 %vm4069_vm2, %v17906_v22  ;;  %16748 = vmatprep.mubr.msk.bf16.mxu0 %vm4069_vm2, %v17907_v38  ;;  %v27379_v11 = vmax.f32 %v24510_v33, 0.0  ;;  %v27380_v62 = vmax.f32 %v24571_v37, 0.0 }
 0x42d   :  { %v12124_v50 = vmax.f32 %v27377_v5, %v11440_v56  ;;  %v11978_v17 = vmax.f32 %v27378_v28, %v10862_v42  ;;  %v10863_v47 = vmax.f32 %v7507_v52, 0.0  ;;  %17324 = vmatprep.mubr.msk.bf16.mxu1 %vm4069_vm2, %v17908_v10  ;;  %v27381_v29 = vmax.f32 %v24574_v48, 0.0  ;;  %v16642_v38 = vpop.f32.mrb[164].mxu0 }
 0x42e   :  { %v12268_v59 = vmax.f32 %v24235_v44, %v11980_v55  ;;  %v12122_v12 = vmax.f32 %v27379_v11, %v11438_v1  ;;  %v11981_v24 = vmax.f32 %v27380_v62, %v10865_v14  ;;  %v11439_v32 = vmax.f32 %v9811_v25, 0.0  ;;  %v17218_v52 = vpop.f32.mrb[164].mxu1  ;;  %v7519_v1 = vpop.f32.mrb[165].mxu0 }
 0x42f   :  { %v12412_v31 = vmax.f32 %v24241_v57, %v12124_v50  ;;  %v12266_v56 = vmax.f32 %v24245_v40, %v11978_v17  ;;  %v12125_v22 = vmax.f32 %v27381_v29, %v11441_v6  ;;  %v27382_v37 = vmax.f32 %v24519_v43, 0.0  ;;  %v17909_v57 = vld [vmem:[%s26754_s0 + $0x848] sm:$0xff]   ;;  %v9823_v0 = vpop.f32.mrb[165].mxu1  ;;  %v17911_v43 = vld [vmem:[%s26754_s0 + $0x850] sm:$0xff]  }
 0x430   :  { %v15444_v42 = vpack.c.bf16 %v12268_v59, %v12268_v59  ;;  %v12410_v44 = vmax.f32 %v24252_v49, %v12122_v12  ;;  %v12269_v33 = vmax.f32 %v24254_v60, %v11981_v24  ;;  %v27383_v30 = vmax.f32 %v24525_v16, 0.0  ;;  %v16643_v49 = vpop.f32.mrb[166].mxu0  ;;  %v17910_v60 = vld [vmem:[%s26754_s0 + $0x1148] sm:$0xff]   ;;  %v17219_v50 = vpop.f32.mrb[166].mxu1  ;;  %v17912_v17 = vld [vmem:[%s26754_s0 + $0x1150] sm:$0xff]  }
 0x431   :  { %v11979_v14 = vmax.f32 %v27382_v37, %v10863_v47  ;;  %v15588_v40 = vpack.c.bf16 %v12412_v31, %v12412_v31  ;;  %v15442_v10 = vpack.c.bf16 %v12266_v56, %v12266_v56  ;;  %v12413_v48 = vmax.f32 %v24262_v51, %v12125_v22  ;;  %v7522_v28 = vpop.f32.mrb[167].mxu0  ;;  %v9826_v11 = vpop.f32.mrb[167].mxu1 }
 0x432   :  { %v12123_v3 = vmax.f32 %v27383_v30, %v11439_v32  ;;  %13709 = vst.msk [vmem:[%s26756_s3 + $0x178] sm:$0xf] %vm13614_vm3, %v15444_v42  ;;  %v15586_v55 = vpack.c.bf16 %v12410_v44, %v12410_v44  ;;  %v15445_v51 = vpack.c.bf16 %v12269_v33, %v12269_v33  ;;  %v7528_v5 = vadd.f32 %v24498_v21, %v16642_v38 }
 0x433   :  { %v12267_v16 = vmax.f32 %v24266_v19, %v11979_v14  ;;  %13853 = vst.msk [vmem:[%s26756_s3 + $0x3b8] sm:$0xf] %vm13614_vm3, %v15588_v40  ;;  %13707 = vst.msk [vmem:[%s26756_s3 + $0x170] sm:$0xf] %vm13614_vm3, %v15442_v10  ;;  %v15589_v6 = vpack.c.bf16 %v12413_v48, %v12413_v48  ;;  %v9832_v25 = vadd.f32 %v24498_v21, %v17218_v52  ;;  %16749 = vmatmul.mubr.msk.bf16.gmra.mrb[16].mxu0 %vm4069_vm2, %v17909_v57 }
 0x434   :  { %v12411_v19 = vmax.f32 %v24275_v53, %v12123_v3  ;;  %v7520_v59 = vadd.f32 %v24498_v21, %v7519_v1  ;;  %13851 = vst.msk [vmem:[%s26756_s3 + $0x3b0] sm:$0xf] %vm13614_vm3, %v15586_v55  ;;  %13710 = vst.msk [vmem:[%s26756_s3 + $0x17c] sm:$0xf] %vm13614_vm3, %v15445_v51  ;;  %v10868_v62 = vmax.f32 %v7528_v5, 0.0  ;;  %v9824_v24 = vadd.f32 %v24498_v21, %v9823_v0 }
 0x435   :  { %v15443_v12 = vpack.c.bf16 %v12267_v16, %v12267_v16  ;;  %v7531_v53 = vadd.f32 %v24498_v21, %v16643_v49  ;;  %13854 = vst.msk [vmem:[%s26756_s3 + $0x3bc] sm:$0xf] %vm13614_vm3, %v15589_v6  ;;  %v11444_v31 = vmax.f32 %v9832_v25, 0.0  ;;  %v9835_v29 = vadd.f32 %v24498_v21, %v17219_v50  ;;  %17325 = vmatmul.mubr.msk.bf16.gmra.mrb[16].mxu1 %vm4069_vm2, %v17910_v60  ;;  %v16646_v57 = vpop.f32.mrb[168].mxu0 }
 0x436   :  { %v15587_v47 = vpack.c.bf16 %v12411_v19, %v12411_v19  ;;  %v10866_v56 = vmax.f32 %v7520_v59, 0.0  ;;  %16752 = vmatprep.mubr.msk.bf16.mxu0 %vm4069_vm2, %v17911_v43  ;;  %v27384_v22 = vmax.f32 %v24589_v2, 0.0  ;;  %v11442_v38 = vmax.f32 %v9824_v24, 0.0  ;;  %17328 = vmatprep.mubr.msk.bf16.mxu1 %vm4069_vm2, %v17912_v17  ;;  %v17222_v49 = vpop.f32.mrb[168].mxu1  ;;  %v7535_v60 = vpop.f32.mrb[169].mxu0  ;;  %v17916_v19 = vld [vmem:[%s26754_s0 + $0x1160] sm:$0xff]  }
 0x437   :  { %13708 = vst.msk [vmem:[%s26756_s3 + $0x174] sm:$0xf] %vm13614_vm3, %v15443_v12  ;;  %v10869_v42 = vmax.f32 %v7531_v53, 0.0  ;;  %v7523_v44 = vadd.f32 %v24498_v21, %v7522_v28  ;;  %v27385_v33 = vmax.f32 %v24592_v63, 0.0  ;;  %v27386_v14 = vmax.f32 %v24534_v23, 0.0  ;;  %v17913_v23 = vld [vmem:[%s26754_s0 + $0x858] sm:$0xff]  }
 0x438   :  { %v11984_v32 = vmax.f32 %v27384_v22, %v10868_v62  ;;  %13852 = vst.msk [vmem:[%s26756_s3 + $0x3b4] sm:$0xf] %vm13614_vm3, %v15587_v47  ;;  %v11445_v1 = vmax.f32 %v9835_v29, 0.0  ;;  %v9827_v2 = vadd.f32 %v24498_v21, %v9826_v11  ;;  %v27387_v10 = vmax.f32 %v24537_v8, 0.0  ;;  %v9839_v8 = vpop.f32.mrb[169].mxu1  ;;  %v16647_v16 = vpop.f32.mrb[170].mxu0 }
 0x439   :  { %v12128_v37 = vmax.f32 %v27385_v33, %v11444_v31  ;;  %v11982_v52 = vmax.f32 %v27386_v14, %v10866_v56  ;;  %v27388_v30 = vmax.f32 %v24604_v4, 0.0  ;;  %v10867_v0 = vmax.f32 %v7523_v44, 0.0  ;;  %v17914_v4 = vld [vmem:[%s26754_s0 + $0x1158] sm:$0xff]   ;;  %v17223_v6 = vpop.f32.mrb[170].mxu1  ;;  %v27394_v56 = vld [vmem:[#allocation4_spill] sm:$0xff] }
 0x43a   :  { %v12272_v40 = vmax.f32 %v24310_v41, %v11984_v32  ;;  %v12126_v48 = vmax.f32 %v27387_v10, %v11442_v38  ;;  %v27389_v55 = vmax.f32 %v24607_v9, 0.0  ;;  %v11443_v51 = vmax.f32 %v9827_v2, 0.0  ;;  %v17915_v9 = vld [vmem:[%s26754_s0 + $0x860] sm:$0xff]   ;;  %v9842_v62 = vpop.f32.mrb[171].mxu1  ;;  %v27393_v53 = vld [vmem:[#allocation21_spill] sm:$0xff] }
 0x43b   :  { %v11985_v3 = vmax.f32 %v27388_v30, %v10869_v42  ;;  %v12416_v63 = vmax.f32 %v24316_v18, %v12128_v37  ;;  %v12270_v43 = vmax.f32 %v24320_v54, %v11982_v52  ;;  %v27390_v17 = vmax.f32 %v24561_v13, 0.0  ;;  %v7538_v54 = vpop.f32.mrb[171].mxu0  ;;  %16753 = vmatmul.mubr.msk.bf16.gmra.mrb[20].mxu0 %vm4069_vm2, %v17913_v23  ;;  %v27397_v23 = vld [vmem:[#allocation6_spill] sm:$0xff] }
 0x43c   :  { %v12129_v41 = vmax.f32 %v27389_v55, %v11445_v1  ;;  %v15448_v5 = vpack.c.bf16 %v12272_v40, %v12272_v40  ;;  %v12414_v50 = vmax.f32 %v24330_v20, %v12126_v48  ;;  %v27391_v20 = vld [vmem:[#allocation8_spill] sm:$0xff]  ;;  %v7544_v31 = vadd.f32 %v24498_v21, %v16646_v57  ;;  %16756 = vmatprep.mubr.msk.bf16.mxu0 %vm4069_vm2, %v17915_v9  ;;  %v27395_v57 = vld [vmem:[#allocation25_spill] sm:$0xff] }
 0x43d   :  { %v12273_v28 = vmax.f32 %v24332_v7, %v11985_v3  ;;  %v11983_v18 = vmax.f32 %v27390_v17, %v10867_v0  ;;  %v15592_v25 = vpack.c.bf16 %v12416_v63, %v12416_v63  ;;  %v15446_v59 = vpack.c.bf16 %v12270_v43, %v12270_v43  ;;  %17329 = vmatmul.mubr.msk.bf16.gmra.mrb[20].mxu1 %vm4069_vm2, %v17914_v4  ;;  %v16650_v2 = vpop.f32.mrb[172].mxu0  ;;  %v27399_v55 = vld [vmem:[#allocation9_spill] sm:$0xff] }
 0x43e   :  { %v12417_v11 = vmax.f32 %v24337_v35, %v12129_v41  ;;  %v27392_v12 = vmax.f32 %v27391_v20, 0.0  ;;  %13713 = vst.msk [vmem:[%s26756_s3 + $0x188] sm:$0xf] %vm13614_vm3, %v15448_v5  ;;  %v15590_v13 = vpack.c.bf16 %v12414_v50, %v12414_v50  ;;  %v9848_v22 = vadd.f32 %v24498_v21, %v17222_v49  ;;  %17332 = vmatprep.mubr.msk.bf16.mxu1 %vm4069_vm2, %v17916_v19  ;;  %v17226_v0 = vpop.f32.mrb[172].mxu1  ;;  %v7551_v49 = vpop.f32.mrb[173].mxu0  ;;  %v17918_v50 = vld [vmem:[%s26754_s0 + $0x1168] sm:$0xff]  }
 0x43f   :  { %v15449_v24 = vpack.c.bf16 %v12273_v28, %v12273_v28  ;;  %v12271_v47 = vmax.f32 %v27393_v53, %v11983_v18  ;;  %13857 = vst.msk [vmem:[%s26756_s3 + $0x3c8] sm:$0xf] %vm13614_vm3, %v15592_v25  ;;  %13711 = vst.msk [vmem:[%s26756_s3 + $0x180] sm:$0xf] %vm13614_vm3, %v15446_v59  ;;  %v7536_v32 = vadd.f32 %v24498_v21, %v7535_v60  ;;  %v10872_v42 = vmax.f32 %v7544_v31, 0.0  ;;  %v17917_v60 = vld [vmem:[%s26754_s0 + $0x868] sm:$0xff]  }
 0x440   :  { %v12127_v7 = vmax.f32 %v27392_v12, %v11443_v51  ;;  %v15593_v35 = vpack.c.bf16 %v12417_v11, %v12417_v11  ;;  %13855 = vst.msk [vmem:[%s26756_s3 + $0x3c0] sm:$0xf] %vm13614_vm3, %v15590_v13  ;;  %v9840_v44 = vadd.f32 %v24498_v21, %v9839_v8  ;;  %v7547_v33 = vadd.f32 %v24498_v21, %v16647_v16  ;;  %v9855_v4 = vpop.f32.mrb[173].mxu1  ;;  %v16651_v5 = vpop.f32.mrb[174].mxu0  ;;  %v27401_v28 = vld [vmem:[#allocation2_spill] sm:$0xff]  ;;  %v27402_v18 = vld [vmem:[#allocation28_spill] sm:$0xff] }
 0x441   :  { %13714 = vst.msk [vmem:[%s26756_s3 + $0x18c] sm:$0xf] %vm13614_vm3, %v15449_v24  ;;  %v15447_v38 = vpack.c.bf16 %v12271_v47, %v12271_v47  ;;  %v11448_v14 = vmax.f32 %v9848_v22, 0.0  ;;  %v10870_v52 = vmax.f32 %v7536_v32, 0.0  ;;  %v9851_v1 = vadd.f32 %v24498_v21, %v17223_v6  ;;  %v17227_v25 = vpop.f32.mrb[174].mxu1  ;;  %v7554_v59 = vpop.f32.mrb[175].mxu0 }
 0x442   :  { %v12415_v29 = vmax.f32 %v27394_v56, %v12127_v7  ;;  %13858 = vst.msk [vmem:[%s26756_s3 + $0x3cc] sm:$0xf] %vm13614_vm3, %v15593_v35  ;;  %v27396_v40 = vmax.f32 %v27395_v57, 0.0  ;;  %v11446_v48 = vmax.f32 %v9840_v44, 0.0  ;;  %v10873_v30 = vmax.f32 %v7547_v33, 0.0  ;;  %v17919_v11 = vld [vmem:[%s26754_s0 + $0x870] sm:$0xff]  }
 0x443   :  { %13712 = vst.msk [vmem:[%s26756_s3 + $0x184] sm:$0xf] %vm13614_vm3, %v15447_v38  ;;  %v7539_v3 = vadd.f32 %v24498_v21, %v7538_v54  ;;  %v27398_v63 = vmax.f32 %v27397_v23, 0.0  ;;  %v27400_v41 = vmax.f32 %v27399_v55, 0.0  ;;  %v11449_v8 = vmax.f32 %v9851_v1, 0.0  ;;  %v27404_v20 = vld [vmem:[#allocation3_spill] sm:$0xff]  ;;  %16757 = vmatmul.mubr.msk.bf16.gmra.mrb[24].mxu0 %vm4069_vm2, %v17917_v60 }
 0x444   :  { %v15591_v37 = vpack.c.bf16 %v12415_v29, %v12415_v29  ;;  %v11988_v10 = vmax.f32 %v27396_v40, %v10872_v42  ;;  %v9843_v16 = vadd.f32 %v24498_v21, %v9842_v62  ;;  %v27403_v6 = vmax.f32 %v27402_v18, 0.0  ;;  %v27405_v7 = vld [vmem:[#allocation10_spill] sm:$0xff]  ;;  %v9858_v53 = vpop.f32.mrb[175].mxu1  ;;  %v27406_v47 = vld [vmem:[#allocation24_spill] sm:$0xff]  ;;  %v27407_v35 = vld [vmem:[#allocation17_spill] sm:$0xff]  ;;  %16760 = vmatprep.mubr.msk.bf16.mxu0 %vm4069_vm2, %v17919_v11 }
 0x445   :  { %v12132_v43 = vmax.f32 %v27398_v63, %v11448_v14  ;;  %v11986_v51 = vmax.f32 %v27400_v41, %v10870_v52  ;;  %v11989_v9 = vmax.f32 %v10855_v45, %v10873_v30  ;;  %v10871_v19 = vmax.f32 %v7539_v3, 0.0  ;;  %v27408_v29 = vld [vmem:[#allocation5_spill] sm:$0xff]  ;;  %v27411_v44 = vld [vmem:[#allocation11_spill] sm:$0xff]  ;;  %17333 = vmatmul.mubr.msk.bf16.gmra.mrb[24].mxu1 %vm4069_vm2, %v17918_v50 }
 0x446   :  { %13856 = vst.msk [vmem:[%s26756_s3 + $0x3c4] sm:$0xf] %vm13614_vm3, %v15591_v37  ;;  %v12276_v17 = vmax.f32 %v27401_v28, %v11988_v10  ;;  %v12130_v54 = vmax.f32 %v27403_v6, %v11446_v48  ;;  %v12133_v13 = vmax.f32 %v11431_v61, %v11449_v8  ;;  %v11447_v24 = vmax.f32 %v9843_v16, 0.0  ;;  %v27413_v1 = vld [vmem:[#allocation15_spill] sm:$0xff]  ;;  %v27414_v48 = vld [vmem:[#allocation16_spill] sm:$0xff]  ;;  %17336 = vmatprep.mubr.msk.bf16.mxu1 %vm4069_vm2, %v17920_v36  ;;  %v17921_v41 = vld [vmem:[%s26754_s0 + $0x878] sm:$0xff]  }
 0x447   :  { %v12420_v12 = vmax.f32 %v27404_v20, %v12132_v43  ;;  %v12274_v62 = vmax.f32 %v27405_v7, %v11986_v51  ;;  %v12277_v56 = vmax.f32 %v27407_v35, %v11989_v9  ;;  %v27409_v22 = vmax.f32 %v27408_v29, 0.0  ;;  %v24972_v43 = vpop.f32.mrb[176].mxu1  ;;  %v17922_v28 = vld [vmem:[%s26754_s0 + $0x1178] sm:$0xff]   ;;  %v17924_v20 = vld [vmem:[%s26754_s0 + $0x1180] sm:$0xff]   ;;  %v27417_v7 = vld [vmem:[#allocation23_spill] sm:$0xff] }
 0x448   :  { %v15452_v45 = vpack.c.bf16 %v12276_v17, %v12276_v17  ;;  %v12418_v31 = vmax.f32 %v27406_v47, %v12130_v54  ;;  %v12421_v61 = vmax.f32 %v27410_v46, %v12133_v13  ;;  %v27412_v33 = vmax.f32 %v27411_v44, 0.0  ;;  %v24984_v50 = vpop.f32.mrb[177].mxu1  ;;  %v17923_v17 = vld [vmem:[%s26754_s0 + $0x880] sm:$0xff]  }
 0x449   :  { %v11987_v32 = vmax.f32 %v27409_v22, %v10871_v19  ;;  %v15596_v38 = vpack.c.bf16 %v12420_v12, %v12420_v12  ;;  %v15450_v42 = vpack.c.bf16 %v12274_v62, %v12274_v62  ;;  %v15453_v52 = vpack.c.bf16 %v12277_v56, %v12277_v56 }
 0x44a   :  { %v12131_v37 = vmax.f32 %v27412_v33, %v11447_v24  ;;  %13717 = vst.msk [vmem:[%s26756_s3 + $0x198] sm:$0xf] %vm13614_vm3, %v15452_v45  ;;  %v15594_v14 = vpack.c.bf16 %v12418_v31, %v12418_v31  ;;  %v7560_v40 = vadd.f32 %v24498_v21, %v16650_v2  ;;  %v15597_v10 = vpack.c.bf16 %v12421_v61, %v12421_v61  ;;  %v24959_v2 = vpop.f32.mrb[176].mxu0  ;;  %v27419_v45 = vld [vmem:[#allocation13_spill] sm:$0xff]  ;;  %v27420_v31 = vld [vmem:[#allocation12_spill] sm:$0xff] }
 0x44b   :  { %v12275_v57 = vmax.f32 %v27413_v1, %v11987_v32  ;;  %13861 = vst.msk [vmem:[%s26756_s3 + $0x3d8] sm:$0xf] %vm13614_vm3, %v15596_v38  ;;  %13715 = vst.msk [vmem:[%s26756_s3 + $0x190] sm:$0xf] %vm13614_vm3, %v15450_v42  ;;  %v9864_v3 = vadd.f32 %v24498_v21, %v17226_v0  ;;  %v7552_v60 = vadd.f32 %v24498_v21, %v7551_v49  ;;  %v24974_v55 = vpop.f32.mrb[177].mxu0  ;;  %v27415_v18 = vmax.f32 %v24665_v58, 0.0 }
 0x44c   :  { %v12419_v30 = vmax.f32 %v27414_v48, %v12131_v37  ;;  %13859 = vst.msk [vmem:[%s26756_s3 + $0x3d0] sm:$0xf] %vm13614_vm3, %v15594_v14  ;;  %13718 = vst.msk [vmem:[%s26756_s3 + $0x19c] sm:$0xf] %vm13614_vm3, %v15453_v52  ;;  %v10876_v63 = vmax.f32 %v7560_v40, 0.0  ;;  %v9856_v0 = vadd.f32 %v24498_v21, %v9855_v4  ;;  %v7563_v49 = vadd.f32 %v24498_v21, %v16651_v5  ;;  %v24986_v5 = vpop.f32.mrb[178].mxu0 }
 0x44d   :  { %v15451_v23 = vpack.c.bf16 %v12275_v57, %v12275_v57  ;;  %13862 = vst.msk [vmem:[%s26756_s3 + $0x3dc] sm:$0xf] %vm13614_vm3, %v15597_v10  ;;  %v11452_v8 = vmax.f32 %v9864_v3, 0.0  ;;  %v10874_v16 = vmax.f32 %v7552_v60, 0.0  ;;  %v9867_v4 = vadd.f32 %v24498_v21, %v17227_v25  ;;  %v25001_v25 = vpop.f32.mrb[178].mxu1  ;;  %v25003_v11 = vpop.f32.mrb[179].mxu0  ;;  %16761 = vmatmul.mubr.msk.bf16.gmra.mrb[28].mxu0 %vm4069_vm2, %v17921_v41  ;;  %17337 = vmatmul.mubr.msk.bf16.gmra.mrb[28].mxu1 %vm4069_vm2, %v17922_v28 }
 0x44e   :  { %v15595_v51 = vpack.c.bf16 %v12419_v30, %v12419_v30  ;;  %v11992_v6 = vmax.f32 %v27415_v18, %v10876_v63  ;;  %v11450_v54 = vmax.f32 %v9856_v0, 0.0  ;;  %v10877_v9 = vmax.f32 %v7563_v49, 0.0  ;;  %v25017_v36 = vpop.f32.mrb[179].mxu1  ;;  %v27424_v42 = vld [vmem:[#allocation22_spill] sm:$0xff]  ;;  %16764 = vmatprep.mubr.msk.bf16.mxu0 %vm4069_vm2, %v17923_v17  ;;  %17340 = vmatprep.mubr.msk.bf16.mxu1 %vm4069_vm2, %v17924_v20  ;;  %v27429_v48 = vld [vmem:[#allocation7_spill] sm:$0xff]  ;;  %v25039_v60 = vpop.f32.mrb[180].mxu0 }
 0x44f   :  { %13716 = vst.msk [vmem:[%s26756_s3 + $0x194] sm:$0xf] %vm13614_vm3, %v15451_v23  ;;  %v7555_v19 = vadd.f32 %v24498_v21, %v7554_v59  ;;  %v27416_v58 = vmax.f32 %v24672_v15, 0.0  ;;  %v27418_v62 = vmax.f32 %v27417_v7, 0.0  ;;  %v11453_v59 = vmax.f32 %v9867_v4, 0.0  ;;  %v27423_v15 = vld [vmem:[#allocation18_spill] sm:$0xff] }
 0x450   :  { %13860 = vst.msk [vmem:[%s26756_s3 + $0x3d4] sm:$0xf] %vm13614_vm3, %v15595_v51  ;;  %v9859_v24 = vadd.f32 %v24498_v21, %v9858_v53  ;;  %v12280_v47 = vmax.f32 %v27419_v45, %v11992_v6  ;;  %v27421_v35 = vmax.f32 %v27420_v31, 0.0  ;;  %v27422_v29 = vmax.f32 %v24676_v26, 0.0  ;;  %v27426_v37 = vld [vmem:[#allocation14_spill] sm:$0xff]  ;;  %v27427_v26 = vld [vmem:[#allocation19_spill] sm:$0xff] }
 0x451   :  { %v12136_v12 = vmax.f32 %v27416_v58, %v11452_v8  ;;  %v11990_v13 = vmax.f32 %v27418_v62, %v10874_v16  ;;  %v10875_v32 = vmax.f32 %v7555_v19, 0.0  ;;  %v27425_v61 = vmax.f32 %v24682_v34, 0.0  ;;  %v25046_v49 = vpop.f32.mrb[180].mxu1  ;;  %v25048_v41 = vpop.f32.mrb[181].mxu0  ;;  %v27432_v8 = vld [vmem:[#allocation20_spill] sm:$0xff]  ;;  %v17926_v17 = vld [vmem:[%s26754_s0 + $0x1188] sm:$0xff]  }
 0x452   :  { %v12134_v56 = vmax.f32 %v27421_v35, %v11450_v54  ;;  %v11993_v22 = vmax.f32 %v27422_v29, %v10877_v9  ;;  %v11451_v44 = vmax.f32 %v9859_v24, 0.0  ;;  %v15456_v33 = vpack.c.bf16 %v12280_v47, %v12280_v47  ;;  %v9887_v4 = vpop.f32.mrb[181].mxu1  ;;  %v25062_v28 = vpop.f32.mrb[182].mxu0  ;;  %v17927_v18 = vld [vmem:[%s26754_s0 + $0x890] sm:$0xff]   ;;  %v17930_v45 = vld [vmem:[%s26754_s0 + $0x1198] sm:$0xff]   ;;  %v17931_v47 = vld [vmem:[%s26754_s0 + $0x8a0] sm:$0xff]  }
 0x453   :  { %v12424_v38 = vmax.f32 %v27423_v15, %v12136_v12  ;;  %v12278_v46 = vmax.f32 %v27424_v42, %v11990_v13  ;;  %v12137_v53 = vmax.f32 %v27425_v61, %v11453_v59  ;;  %v27428_v1 = vmax.f32 %v24641_v39, 0.0  ;;  %v27431_v39 = vld [vmem:[#allocation27_spill] sm:$0xff]  ;;  %v25078_v54 = vpop.f32.mrb[182].mxu1  ;;  %v25080_v9 = vpop.f32.mrb[183].mxu0  ;;  %v17928_v19 = vld [vmem:[%s26754_s0 + $0x1190] sm:$0xff]   ;;  %v17929_v13 = vld [vmem:[%s26754_s0 + $0x898] sm:$0xff]  }
 0x454   :  { %v12422_v14 = vmax.f32 %v27426_v37, %v12134_v56  ;;  %v12281_v52 = vmax.f32 %v27427_v26, %v11993_v22  ;;  %v27430_v30 = vmax.f32 %v24649_v27, 0.0  ;;  %13721 = vst.msk [vmem:[%s26756_s3 + $0x1a8] sm:$0xf] %vm13614_vm3, %v15456_v33  ;;  %v17925_v27 = vld [vmem:[%s26754_s0 + $0x888] sm:$0xff]   ;;  %v25089_v58 = vpop.f32.mrb[183].mxu1  ;;  %v17932_v56 = vld [vmem:[%s26754_s0 + $0x11a0] sm:$0xff]   ;;  %v25146_v42 = vadd.f32 %v24498_v21, %v24959_v2 }
 0x455   :  { %v11991_v57 = vmax.f32 %v27428_v1, %v10875_v32  ;;  %v15600_v40 = vpack.c.bf16 %v12424_v38, %v12424_v38  ;;  %v15454_v10 = vpack.c.bf16 %v12278_v46, %v12278_v46  ;;  %v12425_v34 = vmax.f32 %v27429_v48, %v12137_v53  ;;  %16765 = vmatmul.mubr.msk.bf16.gmra.mrb[32].mxu0 %vm4069_vm2, %v17925_v27  ;;  %v25103_v12 = vpop.f32.mrb[184].mxu0  ;;  %v17933_v38 = vld [vmem:[%s26754_s0 + $0x8a8] sm:$0xff]  }
 0x456   :  { %v12135_v3 = vmax.f32 %v27430_v30, %v11451_v44  ;;  %v15598_v23 = vpack.c.bf16 %v12422_v14, %v12422_v14  ;;  %v15457_v63 = vpack.c.bf16 %v12281_v52, %v12281_v52  ;;  %17341 = vmatmul.mubr.msk.bf16.gmra.mrb[32].mxu1 %vm4069_vm2, %v17926_v17  ;;  %16768 = vmatprep.mubr.msk.bf16.mxu0 %vm4069_vm2, %v17927_v18  ;;  %v25105_v7 = vpop.f32.mrb[184].mxu1  ;;  %v25107_v62 = vpop.f32.mrb[185].mxu0  ;;  %v17934_v53 = vld [vmem:[%s26754_s0 + $0x11a8] sm:$0xff]   ;;  %v17935_v44 = vld [vmem:[%s26754_s0 + $0x8b0] sm:$0xff]  }
 0x457   :  { %v12279_v0 = vmax.f32 %v27431_v39, %v11991_v57  ;;  %13865 = vst.msk [vmem:[%s26756_s3 + $0x3e8] sm:$0xf] %vm13614_vm3, %v15600_v40  ;;  %13719 = vst.msk [vmem:[%s26756_s3 + $0x1a0] sm:$0xf] %vm13614_vm3, %v15454_v10  ;;  %v15601_v51 = vpack.c.bf16 %v12425_v34, %v12425_v34  ;;  %17344 = vmatprep.mubr.msk.bf16.mxu1 %vm4069_vm2, %v17928_v19  ;;  %v25112_v59 = vpop.f32.mrb[185].mxu1  ;;  %v25114_v24 = vpop.f32.mrb[186].mxu0  ;;  %v25160_v33 = vadd.f32 %v24498_v21, %v24972_v43 }
 0x458   :  { %v12423_v16 = vmax.f32 %v27432_v8, %v12135_v3  ;;  %13863 = vst.msk [vmem:[%s26756_s3 + $0x3e0] sm:$0xf] %vm13614_vm3, %v15598_v23  ;;  %13722 = vst.msk [vmem:[%s26756_s3 + $0x1ac] sm:$0xf] %vm13614_vm3, %v15457_v63  ;;  %v25122_v31 = vpop.f32.mrb[186].mxu1  ;;  %v25124_v35 = vpop.f32.mrb[187].mxu0  ;;  %v7568_v2 = vadd.f32 %v24498_v21, %v24974_v55  ;;  %v25166_v37 = vadd.f32 %v24498_v21, %v24984_v50 }
 0x459   :  { %v15455_v6 = vpack.c.bf16 %v12279_v0, %v12279_v0  ;;  %13866 = vst.msk [vmem:[%s26756_s3 + $0x3ec] sm:$0xf] %vm13614_vm3, %v15601_v51  ;;  %v25129_v29 = vpop.f32.mrb[187].mxu1  ;;  %v25170_v14 = vadd.f32 %v24498_v21, %v24986_v5  ;;  %v17936_v43 = vld [vmem:[%s26754_s0 + $0x11b0] sm:$0xff]   ;;  %v25181_v1 = vadd.f32 %v24498_v21, %v25001_v25  ;;  %v25185_v55 = vadd.f32 %v24498_v21, %v25003_v11 }
 0x45a   :  { %v15599_v20 = vpack.c.bf16 %v12423_v16, %v12423_v16  ;;  %v25189_v50 = vadd.f32 %v24498_v21, %v25017_v36  ;;  %v25195_v57 = vadd.f32 %v24498_v21, %v25039_v60  ;;  %v25199_v40 = vadd.f32 %v24498_v21, %v25046_v49  ;;  %v17937_v16 = vld [vmem:[%s26754_s0 + $0x8b8] sm:$0xff]  }
 0x45b   :  { %13720 = vst.msk [vmem:[%s26756_s3 + $0x1a4] sm:$0xf] %vm13614_vm3, %v15455_v6  ;;  %v25203_v25 = vadd.f32 %v24498_v21, %v25048_v41  ;;  %v10880_v11 = vmax.f32 %v25146_v42, 0.0  ;;  %v25208_v36 = vadd.f32 %v24498_v21, %v9887_v4  ;;  %v11456_v10 = vmax.f32 %v25160_v33, 0.0 }
 0x45c   :  { %13864 = vst.msk [vmem:[%s26756_s3 + $0x3e4] sm:$0xf] %vm13614_vm3, %v15599_v20  ;;  %v10878_v48 = vmax.f32 %v7568_v2, 0.0  ;;  %v11454_v34 = vmax.f32 %v25166_v37, 0.0  ;;  %v10881_v30 = vmax.f32 %v25170_v14, 0.0  ;;  %v11457_v3 = vmax.f32 %v25181_v1, 0.0 }
 0x45d   :  { %16769 = vmatmul.mubr.msk.bf16.gmra.mrb[36].mxu0 %vm4069_vm2, %v17929_v13  ;;  %v25135_v22 = vpop.f32.mrb[188].mxu0  ;;  %v10879_v60 = vmax.f32 %v25185_v55, 0.0  ;;  %v11455_v23 = vmax.f32 %v25189_v50, 0.0  ;;  %v25221_v63 = vadd.f32 %v24498_v21, %v25062_v28  ;;  %v10882_v41 = vmax.f32 %v25203_v25, 0.0  ;;  %v17938_v20 = vld [vmem:[%s26754_s0 + $0x11b8] sm:$0xff]   ;;  %v17939_v13 = vld [vmem:[%s26754_s0 + $0x8c0] sm:$0xff]  }
 0x45e   :  { %17345 = vmatmul.mubr.msk.bf16.gmra.mrb[36].mxu1 %vm4069_vm2, %v17930_v45  ;;  %16772 = vmatprep.mubr.msk.bf16.mxu0 %vm4069_vm2, %v17931_v47  ;;  %v25137_v32 = vpop.f32.mrb[188].mxu1  ;;  %v25139_v15 = vpop.f32.mrb[189].mxu0  ;;  %v11458_v4 = vmax.f32 %v25208_v36, 0.0  ;;  %v25235_v28 = vadd.f32 %v24498_v21, %v25078_v54  ;;  %v25239_v17 = vadd.f32 %v24498_v21, %v25080_v9  ;;  %v25252_v54 = vadd.f32 %v24498_v21, %v25089_v58  ;;  %v17945_v14 = vld [vmem:[%s26754_s0 + $0x8d8] sm:$0xff]  }
 0x45f   :  { %17348 = vmatprep.mubr.msk.bf16.mxu1 %vm4069_vm2, %v17932_v56  ;;  %v25148_v46 = vpop.f32.mrb[189].mxu1  ;;  %v25150_v61 = vpop.f32.mrb[190].mxu0  ;;  %v25256_v9 = vadd.f32 %v24498_v21, %v25103_v12  ;;  %v25270_v58 = vadd.f32 %v24498_v21, %v25107_v62  ;;  %v25281_v55 = vadd.f32 %v24498_v21, %v25114_v24 }
 0x460   :  { %v25172_v26 = vpop.f32.mrb[190].mxu1  ;;  %v25174_v52 = vpop.f32.mrb[191].mxu0 }
 0x461   :  { %v25191_v5 = vpop.f32.mrb[191].mxu1 }
 0x465   :  { %16773 = vmatmul.mubr.msk.bf16.gmra.mrb[40].mxu0 %vm4069_vm2, %v17933_v38  ;;  %v16670_v39 = vpop.f32.mrb[192].mxu0 }
 0x466   :  { %17349 = vmatmul.mubr.msk.bf16.gmra.mrb[40].mxu1 %vm4069_vm2, %v17934_v53  ;;  %16776 = vmatprep.mubr.msk.bf16.mxu0 %vm4069_vm2, %v17935_v44  ;;  %v7640_v27 = vadd.f32 %v24498_v21, %v16670_v39  ;;  %v17246_v51 = vpop.f32.mrb[192].mxu1  ;;  %v25227_v8 = vpop.f32.mrb[193].mxu0  ;;  %v17940_v53 = vld [vmem:[%s26754_s0 + $0x11c0] sm:$0xff]   ;;  %v25266_v44 = vadd.f32 %v24498_v21, %v25105_v7 }
 0x467   :  { %17352 = vmatprep.mubr.msk.bf16.mxu1 %vm4069_vm2, %v17936_v43  ;;  %v9944_v18 = vadd.f32 %v24498_v21, %v17246_v51  ;;  %v25242_v6 = vpop.f32.mrb[193].mxu1  ;;  %v16671_v19 = vpop.f32.mrb[194].mxu0  ;;  %v25277_v43 = vadd.f32 %v24498_v21, %v25112_v59  ;;  %v25290_v39 = vld [vmem:[%s26755_s2] ss:$0 sm:$0xff]  ;;  %v11459_v51 = vmax.f32 %v25252_v54, 0.0 }
 0x468   :  { %v10896_v45 = vmax.f32 %v7640_v27, 0.0  ;;  %v7643_v47 = vadd.f32 %v24498_v21, %v16671_v19  ;;  %v17247_v56 = vpop.f32.mrb[194].mxu1  ;;  %v25259_v38 = vpop.f32.mrb[195].mxu0  ;;  %v25294_v59 = vadd.f32 %v25290_v39, %v25122_v31  ;;  %v17944_v31 = vld [vmem:[%s26754_s0 + $0x11d0] sm:$0xff]  }
 0x469   :  { %v11472_v12 = vmax.f32 %v9944_v18, 0.0  ;;  %v9947_v2 = vadd.f32 %v24498_v21, %v17247_v56  ;;  %v25273_v37 = vpop.f32.mrb[195].mxu1  ;;  %v17941_v56 = vld [vmem:[%s26754_s0 + $0x8c8] sm:$0xff]  }
 0x46a   :  { %v25283_v50 = vmax.f32 %v10878_v48, %v10896_v45  ;;  %v10897_v7 = vmax.f32 %v7643_v47, 0.0  ;;  %v10883_v48 = vmax.f32 %v25239_v17, 0.0  ;;  %v25315_v17 = vadd.f32 %v25290_v39, %v25124_v35 }
 0x46b   :  { %v25296_v27 = vmax.f32 %v11454_v34, %v11472_v12  ;;  %v11473_v21 = vmax.f32 %v9947_v2, 0.0 }
 0x46c   :  { %v10887_v25 = vmax.f32 %v25315_v17, 0.0  ;;  %v17947_v17 = vld [vmem:[%s26754_s0 + $0x8e0] sm:$0xff]  }
 0x46d   :  { %16777 = vmatmul.mubr.msk.bf16.gmra.mrb[44].mxu0 %vm4069_vm2, %v17937_v16  ;;  %v25303_v16 = vmax.f32 %v10879_v60, %v10897_v7  ;;  %v25309_v19 = vmax.f32 %v11455_v23, %v11473_v21  ;;  %v17942_v21 = vld [vmem:[%s26754_s0 + $0x11c8] sm:$0xff]   ;;  %v25336_v23 = vadd.f32 %v25290_v39, %v25135_v22 }
 0x46e   :  { %17353 = vmatmul.mubr.msk.bf16.gmra.mrb[44].mxu1 %vm4069_vm2, %v17938_v20  ;;  %16780 = vmatprep.mubr.msk.bf16.mxu0 %vm4069_vm2, %v17939_v13  ;;  %v16674_v20 = vpop.f32.mrb[196].mxu0  ;;  %v17250_v54 = vpop.f32.mrb[196].mxu1 }
 0x46f   :  { %17356 = vmatprep.mubr.msk.bf16.mxu1 %vm4069_vm2, %v17940_v53  ;;  %v7656_v60 = vadd.f32 %v25290_v39, %v16674_v20  ;;  %v7647_v47 = vpop.f32.mrb[197].mxu0  ;;  %v25324_v53 = vadd.f32 %v25290_v39, %v25129_v29  ;;  %v9960_v12 = vadd.f32 %v25290_v39, %v17250_v54  ;;  %v9951_v35 = vpop.f32.mrb[197].mxu1  ;;  %v17943_v20 = vld [vmem:[%s26754_s0 + $0x8d0] sm:$0xff]  }
 0x470   :  { %v7648_v2 = vadd.f32 %v25290_v39, %v7647_v47  ;;  %v16675_v7 = vpop.f32.mrb[198].mxu0  ;;  %v9952_v45 = vadd.f32 %v25290_v39, %v9951_v35  ;;  %v17251_v47 = vpop.f32.mrb[198].mxu1 }
 0x471   :  { %v10900_v29 = vmax.f32 %v7656_v60, 0.0  ;;  %v7659_v54 = vadd.f32 %v25290_v39, %v16675_v7  ;;  %v7650_v34 = vpop.f32.mrb[199].mxu0  ;;  %v11476_v24 = vmax.f32 %v9960_v12, 0.0  ;;  %v9963_v49 = vadd.f32 %v25290_v39, %v17251_v47  ;;  %v9954_v13 = vpop.f32.mrb[199].mxu1 }
 0x472   :  { %v10898_v62 = vmax.f32 %v7648_v2, 0.0  ;;  %v7651_v0 = vadd.f32 %v25290_v39, %v7650_v34  ;;  %v11474_v60 = vmax.f32 %v9952_v45, 0.0  ;;  %v9955_v7 = vadd.f32 %v25290_v39, %v9954_v13  ;;  %v17946_v45 = vld [vmem:[%s26754_s0 + $0x11d8] sm:$0xff]  }
 0x473   :  { %v25347_v22 = vmax.f32 %v10882_v41, %v10900_v29  ;;  %v10901_v35 = vmax.f32 %v7659_v54, 0.0  ;;  %v25353_v18 = vmax.f32 %v11458_v4, %v11476_v24  ;;  %v11477_v34 = vmax.f32 %v9963_v49, 0.0  ;;  %v17948_v29 = vld [vmem:[%s26754_s0 + $0x11e0] sm:$0xff]  }
 0x474   :  { %v25357_v12 = vmax.f32 %v10880_v11, %v10898_v62  ;;  %v10899_v2 = vmax.f32 %v7651_v0, 0.0  ;;  %v25364_v41 = vmax.f32 %v11456_v10, %v11474_v60  ;;  %v11475_v36 = vmax.f32 %v9955_v7, 0.0 }
 0x475   :  { %16781 = vmatmul.mubr.msk.bf16.gmra.mrb[48].mxu0 %vm4069_vm2, %v17941_v56  ;;  %v25366_v13 = vmax.f32 %v10883_v48, %v10901_v35  ;;  %v11463_v42 = vmax.f32 %v25324_v53, 0.0  ;;  %v25372_v11 = vadd.f32 %v25290_v39, %v25137_v32  ;;  %v25374_v0 = vmax.f32 %v11459_v51, %v11477_v34  ;;  %v16678_v33 = vpop.f32.mrb[200].mxu0 }
 0x476   :  { %17357 = vmatmul.mubr.msk.bf16.gmra.mrb[48].mxu1 %vm4069_vm2, %v17942_v21  ;;  %16784 = vmatprep.mubr.msk.bf16.mxu0 %vm4069_vm2, %v17943_v20  ;;  %v25378_v49 = vmax.f32 %v10881_v30, %v10899_v2  ;;  %v10892_v10 = vmax.f32 %v25336_v23, 0.0  ;;  %v25383_v4 = vadd.f32 %v25290_v39, %v25139_v15  ;;  %v25387_v62 = vmax.f32 %v11457_v3, %v11475_v36  ;;  %v17254_v24 = vpop.f32.mrb[200].mxu1  ;;  %v7663_v48 = vpop.f32.mrb[201].mxu0 }
 0x477   :  { %17360 = vmatprep.mubr.msk.bf16.mxu1 %vm4069_vm2, %v17944_v31  ;;  %v7672_v32 = vadd.f32 %v25290_v39, %v16678_v33  ;;  %v25395_v30 = vadd.f32 %v25290_v39, %v25148_v46  ;;  %v25399_v15 = vadd.f32 %v25290_v39, %v25174_v52  ;;  %v9976_v1 = vadd.f32 %v25290_v39, %v17254_v24  ;;  %v9967_v51 = vpop.f32.mrb[201].mxu1  ;;  %v16679_v31 = vpop.f32.mrb[202].mxu0 }
 0x478   :  { %v7664_v3 = vadd.f32 %v25290_v39, %v7663_v48  ;;  %v25411_v46 = vadd.f32 %v25290_v39, %v25191_v5  ;;  %v9968_v56 = vadd.f32 %v25290_v39, %v9967_v51  ;;  %v7675_v53 = vadd.f32 %v25290_v39, %v16679_v31  ;;  %v17255_v21 = vpop.f32.mrb[202].mxu1  ;;  %v7666_v20 = vpop.f32.mrb[203].mxu0 }
 0x479   :  { %v10904_v52 = vmax.f32 %v7672_v32, 0.0  ;;  %v11480_v54 = vmax.f32 %v9976_v1, 0.0  ;;  %v9979_v60 = vadd.f32 %v25290_v39, %v17255_v21  ;;  %v7667_v35 = vadd.f32 %v25290_v39, %v7666_v20  ;;  %v9970_v7 = vpop.f32.mrb[203].mxu1 }
 0x47a   :  { %v10902_v47 = vmax.f32 %v7664_v3, 0.0  ;;  %v27433_v5 = vmax.f32 %v25270_v58, 0.0  ;;  %v11478_v2 = vmax.f32 %v9968_v56, 0.0  ;;  %v10905_v36 = vmax.f32 %v7675_v53, 0.0 }
 0x47b   :  { %v9971_v33 = vadd.f32 %v25290_v39, %v9970_v7  ;;  %v27434_v32 = vmax.f32 %v25277_v43, 0.0  ;;  %v27435_v48 = vmax.f32 %v25195_v57, 0.0  ;;  %v11481_v3 = vmax.f32 %v9979_v60, 0.0  ;;  %v17950_v60 = vld [vmem:[%s26754_s0 + $0x11e8] sm:$0xff]  }
 0x47c   :  { %v25422_v34 = vmax.f32 %v27433_v5, %v10904_v52  ;;  %v10903_v51 = vmax.f32 %v7667_v35, 0.0  ;;  %v25438_v58 = vadd.f32 %v25290_v39, %v25150_v61  ;;  %v25444_v43 = vmax.f32 %v10887_v25, %v10905_v36  ;;  %v17951_v35 = vld [vmem:[%s26754_s0 + $0x8f0] sm:$0xff]  }
 0x47d   :  { %16785 = vmatmul.mubr.msk.bf16.gmra.mrb[52].mxu0 %vm4069_vm2, %v17945_v14  ;;  %v25428_v24 = vmax.f32 %v27434_v32, %v11480_v54  ;;  %v25432_v1 = vmax.f32 %v27435_v48, %v10902_v47  ;;  %v27436_v14 = vmax.f32 %v25199_v40, 0.0  ;;  %v11479_v52 = vmax.f32 %v9971_v33, 0.0  ;;  %v16682_v61 = vpop.f32.mrb[204].mxu0  ;;  %v17952_v33 = vld [vmem:[%s26754_s0 + $0x11f0] sm:$0xff]  }
 0x47e   :  { %17361 = vmatmul.mubr.msk.bf16.gmra.mrb[52].mxu1 %vm4069_vm2, %v17946_v45  ;;  %16788 = vmatprep.mubr.msk.bf16.mxu0 %vm4069_vm2, %v17947_v17  ;;  %v10890_v57 = vmax.f32 %v25383_v4, 0.0  ;;  %v11466_v56 = vmax.f32 %v25395_v30, 0.0  ;;  %v25449_v45 = vmax.f32 %v11463_v42, %v11481_v3  ;;  %v27437_v17 = vmax.f32 %v25221_v63, 0.0  ;;  %v17258_v4 = vpop.f32.mrb[204].mxu1  ;;  %v7679_v54 = vpop.f32.mrb[205].mxu0  ;;  %v17949_v42 = vld [vmem:[%s26754_s0 + $0x8e8] sm:$0xff]  }
 0x47f   :  { %v25442_v31 = vmax.f32 %v27436_v14, %v11478_v2  ;;  %17364 = vmatprep.mubr.msk.bf16.mxu1 %vm4069_vm2, %v17948_v29  ;;  %v10891_v40 = vmax.f32 %v25399_v15, 0.0  ;;  %v11467_v21 = vmax.f32 %v25411_v46, 0.0  ;;  %v27438_v25 = vmax.f32 %v25235_v28, 0.0  ;;  %v9983_v46 = vpop.f32.mrb[205].mxu1  ;;  %v16683_v47 = vpop.f32.mrb[206].mxu0 }
 0x480   :  { %v25453_v53 = vmax.f32 %v27437_v17, %v10903_v51  ;;  %v7688_v29 = vadd.f32 %v25290_v39, %v16682_v61  ;;  %v25467_v63 = vadd.f32 %v25290_v39, %v25227_v8  ;;  %v25471_v30 = vadd.f32 %v25290_v39, %v25242_v6  ;;  %v17259_v2 = vpop.f32.mrb[206].mxu1  ;;  %v7682_v36 = vpop.f32.mrb[207].mxu0 }
 0x481   :  { %v25459_v20 = vmax.f32 %v27438_v25, %v11479_v52  ;;  %v9992_v28 = vadd.f32 %v25290_v39, %v17258_v4  ;;  %v7680_v15 = vadd.f32 %v25290_v39, %v7679_v54  ;;  %v25483_v8 = vadd.f32 %v25290_v39, %v25259_v38  ;;  %v9986_v14 = vpop.f32.mrb[207].mxu1 }
 0x482   :  { %v10908_v6 = vmax.f32 %v7688_v29, 0.0  ;;  %v9984_v7 = vadd.f32 %v25290_v39, %v9983_v46  ;;  %v7691_v5 = vadd.f32 %v25290_v39, %v16683_v47  ;;  %v9995_v3 = vadd.f32 %v25290_v39, %v17259_v2 }
 0x483   :  { %27439 = vst [vmem:[#allocation8_spill] sm:$0xff] %v25459_v20  ;;  %v11484_v32 = vmax.f32 %v9992_v28, 0.0  ;;  %v10906_v48 = vmax.f32 %v7680_v15, 0.0  ;;  %v7683_v51 = vadd.f32 %v25290_v39, %v7682_v36  ;;  %v9987_v61 = vadd.f32 %v25290_v39, %v9986_v14 }
 0x484   :  { %v25492_v38 = vmax.f32 %v10890_v57, %v10908_v6  ;;  %v11482_v52 = vmax.f32 %v9984_v7, 0.0  ;;  %v10909_v17 = vmax.f32 %v7691_v5, 0.0  ;;  %v27442_v29 = vmax.f32 %v25256_v9, 0.0 }
 0x485   :  { %16789 = vmatmul.mubr.msk.bf16.gmra.mrb[56].mxu0 %vm4069_vm2, %v17949_v42  ;;  %v25496_v25 = vmax.f32 %v11466_v56, %v11484_v32  ;;  %v11485_v54 = vmax.f32 %v9995_v3, 0.0  ;;  %v10907_v28 = vmax.f32 %v7683_v51, 0.0  ;;  %v9939_v57 = vadd.f32 %v25290_v39, %v25273_v37  ;;  %v16686_v37 = vpop.f32.mrb[208].mxu0  ;;  %v17954_v32 = vld [vmem:[%s26754_s0 + $0x11f8] sm:$0xff]  }
 0x486   :  { %27440 = vst [vmem:[#allocation21_spill] sm:$0xff] %v25492_v38  ;;  %v25500_v4 = vmax.f32 %v27442_v29, %v10906_v48  ;;  %17365 = vmatmul.mubr.msk.bf16.gmra.mrb[56].mxu1 %vm4069_vm2, %v17950_v60  ;;  %16792 = vmatprep.mubr.msk.bf16.mxu0 %vm4069_vm2, %v17951_v35  ;;  %v27444_v15 = vmax.f32 %v25266_v44, 0.0  ;;  %v25510_v42 = vmax.f32 %v10891_v40, %v10909_v17  ;;  %v11483_v56 = vmax.f32 %v9987_v61, 0.0  ;;  %v17262_v2 = vpop.f32.mrb[208].mxu1  ;;  %v7695_v36 = vpop.f32.mrb[209].mxu0 }
 0x487   :  { %27441 = vst [vmem:[#allocation4_spill] sm:$0xff] %v25496_v25  ;;  %17368 = vmatprep.mubr.msk.bf16.mxu1 %vm4069_vm2, %v17952_v33  ;;  %v11468_v9 = vmax.f32 %v25372_v11, 0.0  ;;  %v9931_v47 = vadd.f32 %v25290_v39, %v25172_v26  ;;  %v25516_v60 = vmax.f32 %v11467_v21, %v11485_v54  ;;  %v27448_v35 = vmax.f32 %v25281_v55, 0.0  ;;  %v17953_v26 = vld [vmem:[%s26754_s0 + $0x8f8] sm:$0xff]   ;;  %v9999_v33 = vpop.f32.mrb[209].mxu1 }
 0x488   :  { %27443 = vst [vmem:[#allocation25_spill] sm:$0xff] %v25500_v4  ;;  %v25508_v46 = vmax.f32 %v27444_v15, %v11482_v52  ;;  %27446 = vst [vmem:[#allocation9_spill] sm:$0xff] %v25510_v42  ;;  %v10893_v44 = vmax.f32 %v25438_v58, 0.0  ;;  %v10894_v40 = vmax.f32 %v25467_v63, 0.0  ;;  %v27450_v7 = vmax.f32 %v25294_v59, 0.0  ;;  %v16687_v59 = vpop.f32.mrb[210].mxu0 }
 0x489   :  { %27447 = vst [vmem:[#allocation2_spill] sm:$0xff] %v25516_v60  ;;  %v25520_v6 = vmax.f32 %v27448_v35, %v10907_v28  ;;  %v7704_v11 = vadd.f32 %v25290_v39, %v16686_v37  ;;  %v11470_v55 = vmax.f32 %v25471_v30, 0.0  ;;  %v10895_v21 = vmax.f32 %v25483_v8, 0.0  ;;  %v17263_v52 = vpop.f32.mrb[210].mxu1  ;;  %v7698_v30 = vpop.f32.mrb[211].mxu0 }
 0x48a   :  { %27445 = vst [vmem:[#allocation6_spill] sm:$0xff] %v25508_v46  ;;  %v25526_v5 = vmax.f32 %v27450_v7, %v11483_v56  ;;  %v10008_v58 = vadd.f32 %v25290_v39, %v17262_v2  ;;  %v7696_v63 = vadd.f32 %v25290_v39, %v7695_v36  ;;  %v11471_v48 = vmax.f32 %v9939_v57, 0.0  ;;  %v10002_v54 = vpop.f32.mrb[211].mxu1 }
 0x48b   :  { %27449 = vst [vmem:[#allocation28_spill] sm:$0xff] %v25520_v6  ;;  %v10912_v3 = vmax.f32 %v7704_v11, 0.0  ;;  %v10000_v51 = vadd.f32 %v25290_v39, %v9999_v33  ;;  %v7707_v14 = vadd.f32 %v25290_v39, %v16687_v59  ;;  %v10011_v61 = vadd.f32 %v25290_v39, %v17263_v52 }
 0x48c   :  { %27451 = vst [vmem:[#allocation3_spill] sm:$0xff] %v25526_v5  ;;  %v11488_v17 = vmax.f32 %v10008_v58, 0.0  ;;  %v10910_v8 = vmax.f32 %v7696_v63, 0.0  ;;  %v7699_v29 = vadd.f32 %v25290_v39, %v7698_v30  ;;  %v10003_v57 = vadd.f32 %v25290_v39, %v10002_v54 }
 0x48d   :  { %v25543_v28 = vmax.f32 %v10894_v40, %v10912_v3  ;;  %v11486_v15 = vmax.f32 %v10000_v51, 0.0  ;;  %v10913_v56 = vmax.f32 %v7707_v14, 0.0  ;;  %16793 = vmatmul.mubr.msk.bf16.gmra.mrb[60].mxu0 %vm4069_vm2, %v17953_v26  ;;  %v11489_v7 = vmax.f32 %v10011_v61, 0.0 }
 0x48e   :  { %v25547_v35 = vmax.f32 %v11470_v55, %v11488_v17  ;;  %v25551_v37 = vmax.f32 %v10892_v10, %v10910_v8  ;;  %v10911_v11 = vmax.f32 %v7699_v29, 0.0  ;;  %17369 = vmatmul.mubr.msk.bf16.gmra.mrb[60].mxu1 %vm4069_vm2, %v17954_v32  ;;  %v11469_v2 = vmax.f32 %v9931_v47, 0.0  ;;  %v16690_v26 = vpop.f32.mrb[212].mxu0  ;;  %v17266_v23 = vpop.f32.mrb[212].mxu1 }
 0x48f   :  { %27452 = vst [vmem:[#allocation10_spill] sm:$0xff] %v25543_v28  ;;  %v25554_v36 = vmax.f32 %v11468_v9, %v11486_v15  ;;  %v25556_v40 = vmax.f32 %v10895_v21, %v10913_v56  ;;  %v11487_v58 = vmax.f32 %v10003_v57, 0.0  ;;  %v25558_v63 = vmax.f32 %v11471_v48, %v11489_v7  ;;  %v7711_v10 = vpop.f32.mrb[213].mxu0  ;;  %v10015_v59 = vpop.f32.mrb[213].mxu1 }
 0x490   :  { %27453 = vst [vmem:[#allocation24_spill] sm:$0xff] %v25547_v35  ;;  %27454 = vst [vmem:[#allocation17_spill] sm:$0xff] %v25551_v37  ;;  %v25560_v33 = vmax.f32 %v10893_v44, %v10911_v11  ;;  %v16691_v3 = vpop.f32.mrb[214].mxu0  ;;  %v17267_v51 = vpop.f32.mrb[214].mxu1  ;;  %v25565_v54 = vadd.f32 %v25290_v39, %v16690_v26  ;;  %v25568_v57 = vadd.f32 %v25290_v39, %v17266_v23 }
 0x491   :  { %27455 = vst [vmem:[#allocation5_spill] sm:$0xff] %v25554_v36  ;;  %27456 = vst [vmem:[#allocation26_spill] sm:$0xff] %v25556_v40  ;;  %v25562_v55 = vmax.f32 %v11469_v2, %v11487_v58  ;;  %v7714_v14 = vpop.f32.mrb[215].mxu0  ;;  %v10018_v32 = vpop.f32.mrb[215].mxu1  ;;  %v25571_v7 = vadd.f32 %v25290_v39, %v7711_v10  ;;  %v25574_v11 = vadd.f32 %v25290_v39, %v10015_v59 }
 0x492   :  { %27457 = vst [vmem:[#allocation11_spill] sm:$0xff] %v25558_v63  ;;  %27458 = vst [vmem:[#allocation15_spill] sm:$0xff] %v25560_v33  ;;  %v25577_v2 = vadd.f32 %v25290_v39, %v16691_v3  ;;  %v25580_v33 = vadd.f32 %v25290_v39, %v17267_v51  ;;  %v25583_v26 = vadd.f32 %v25290_v39, %v7714_v14 }
 0x493   :  { %27459 = vst [vmem:[#allocation16_spill] sm:$0xff] %v25562_v55  ;;  %v25586_v23 = vadd.f32 %v25290_v39, %v10018_v32 }
 0x496   :  { %v16694_v47 = vpop.f32.mrb[216].mxu0 }
 0x497   :  { %v17270_v9 = vpop.f32.mrb[216].mxu1  ;;  %v7727_v52 = vpop.f32.mrb[217].mxu0  ;;  %v25589_v10 = vadd.f32 %v25290_v39, %v16694_v47 }
 0x498   :  { %v10031_v21 = vpop.f32.mrb[217].mxu1  ;;  %v16695_v30 = vpop.f32.mrb[218].mxu0  ;;  %v25592_v59 = vadd.f32 %v25290_v39, %v17270_v9  ;;  %v25595_v3 = vadd.f32 %v25290_v39, %v7727_v52 }
 0x499   :  { %v17271_v17 = vpop.f32.mrb[218].mxu1  ;;  %v7730_v48 = vpop.f32.mrb[219].mxu0  ;;  %v25599_v51 = vadd.f32 %v25290_v39, %v10031_v21  ;;  %v25612_v14 = vadd.f32 %v25290_v39, %v16695_v30 }
 0x49a   :  { %v10034_v8 = vpop.f32.mrb[219].mxu1  ;;  %v25615_v36 = vadd.f32 %v25290_v39, %v17271_v17  ;;  %v25619_v9 = vadd.f32 %v25290_v39, %v7730_v48 }
 0x49b   :  { %v25622_v35 = vadd.f32 %v25290_v39, %v10034_v8 }
 0x49e   :  { %v16698_v44 = vpop.f32.mrb[220].mxu0 }
 0x49f   :  { %v17274_v61 = vpop.f32.mrb[220].mxu1  ;;  %v7743_v29 = vpop.f32.mrb[221].mxu0  ;;  %v25625_v21 = vadd.f32 %v25290_v39, %v16698_v44 }
 0x4a0   :  { %v10047_v15 = vpop.f32.mrb[221].mxu1  ;;  %v16699_v56 = vpop.f32.mrb[222].mxu0  ;;  %v25628_v30 = vadd.f32 %v25290_v39, %v17274_v61  ;;  %v25631_v17 = vadd.f32 %v25290_v39, %v7743_v29 }
 0x4a1   :  { %v17275_v58 = vpop.f32.mrb[222].mxu1  ;;  %v7746_v55 = vpop.f32.mrb[223].mxu0  ;;  %27460 = vst [vmem:[#allocation23_spill] sm:$0xff] %v25625_v21  ;;  %v25634_v5 = vadd.f32 %v25290_v39, %v10047_v15  ;;  %v25637_v48 = vadd.f32 %v25290_v39, %v16699_v56 }
 0x4a2   :  { %v10050_v63 = vpop.f32.mrb[223].mxu1  ;;  %27461 = vst [vmem:[#allocation13_spill] sm:$0xff] %v25628_v30  ;;  %v25640_v6 = vadd.f32 %v25290_v39, %v17275_v58  ;;  %v25643_v44 = vadd.f32 %v25290_v39, %v7746_v55 }
 0x4a3   :  { %27462 = vst [vmem:[#allocation12_spill] sm:$0xff] %v25637_v48  ;;  %v25646_v61 = vadd.f32 %v25290_v39, %v10050_v63 }
 0x4a4   :  { %27463 = vst [vmem:[#allocation18_spill] sm:$0xff] %v25640_v6 }
 0x4a6   :  { %v16702_v40 = vpop.f32.mrb[224].mxu0 }
 0x4a7   :  { %v17278_v47 = vpop.f32.mrb[224].mxu1  ;;  %v7759_v32 = vpop.f32.mrb[225].mxu0  ;;  %v25649_v29 = vadd.f32 %v25290_v39, %v16702_v40 }
 0x4a8   :  { %v10063_v28 = vpop.f32.mrb[225].mxu1  ;;  %v16703_v52 = vpop.f32.mrb[226].mxu0  ;;  %v25654_v42 = vadd.f32 %v25290_v39, %v17278_v47  ;;  %v25657_v58 = vadd.f32 %v25290_v39, %v7759_v32 }
 0x4a9   :  { %v17279_v37 = vpop.f32.mrb[226].mxu1  ;;  %v7762_v8 = vpop.f32.mrb[227].mxu0  ;;  %27464 = vst [vmem:[#allocation22_spill] sm:$0xff] %v25649_v29  ;;  %v25663_v40 = vadd.f32 %v25290_v39, %v10063_v28  ;;  %v25676_v4 = vadd.f32 %v25290_v39, %v16703_v52 }
 0x4aa   :  { %v10066_v60 = vpop.f32.mrb[227].mxu1  ;;  %27465 = vst [vmem:[#allocation14_spill] sm:$0xff] %v25654_v42  ;;  %27466 = vst [vmem:[#allocation19_spill] sm:$0xff] %v25657_v58  ;;  %v25681_v25 = vadd.f32 %v25290_v39, %v17279_v37  ;;  %v25684_v55 = vadd.f32 %v25290_v39, %v7762_v8 }
 0x4ab   :  { %27467 = vst [vmem:[#allocation7_spill] sm:$0xff] %v25663_v40  ;;  %v25688_v38 = vadd.f32 %v25290_v39, %v10066_v60  ;;  %v27469_v40 = vmax.f32 %v25574_v11, 0.0 }
 0x4ae   :  { %v16706_v63 = vpop.f32.mrb[228].mxu0 }
 0x4af   :  { %v7784_v56 = vadd.f32 %v25290_v39, %v16706_v63  ;;  %v17282_v15 = vpop.f32.mrb[228].mxu1  ;;  %v7775_v47 = vpop.f32.mrb[229].mxu0 }
 0x4b0   :  { %v10088_v46 = vadd.f32 %v25290_v39, %v17282_v15  ;;  %v10079_v28 = vpop.f32.mrb[229].mxu1  ;;  %v16707_v42 = vpop.f32.mrb[230].mxu0  ;;  %v25691_v63 = vadd.f32 %v25290_v39, %v7775_v47 }
 0x4b1   :  { %v10932_v52 = vmax.f32 %v7784_v56, 0.0  ;;  %v7787_v29 = vadd.f32 %v25290_v39, %v16707_v42  ;;  %v17283_v32 = vpop.f32.mrb[230].mxu1  ;;  %v7778_v6 = vpop.f32.mrb[231].mxu0  ;;  %v25695_v48 = vadd.f32 %v25290_v39, %v10079_v28  ;;  %v27468_v56 = vmax.f32 %v25571_v7, 0.0 }
 0x4b2   :  { %v11508_v37 = vmax.f32 %v10088_v46, 0.0  ;;  %v10091_v8 = vadd.f32 %v25290_v39, %v17283_v32  ;;  %v25699_v15 = vadd.f32 %v25290_v39, %v7778_v6  ;;  %v10082_v30 = vpop.f32.mrb[231].mxu1  ;;  %v10927_v28 = vmax.f32 %v25684_v55, 0.0 }
 0x4b3   :  { %v11994_v47 = vmax.f32 %v27468_v56, %v10932_v52  ;;  %v10933_v21 = vmax.f32 %v7787_v29, 0.0  ;;  %v25705_v42 = vadd.f32 %v25290_v39, %v10082_v30  ;;  %v11503_v6 = vmax.f32 %v25688_v38, 0.0 }
 0x4b4   :  { %v12138_v32 = vmax.f32 %v27469_v40, %v11508_v37  ;;  %v11509_v58 = vmax.f32 %v10091_v8, 0.0  ;;  %v27470_v7 = vmax.f32 %v25583_v26, 0.0  ;;  %v11506_v52 = vmax.f32 %v25695_v48, 0.0  ;;  %v27516_v48 = vld [vmem:[#allocation17_spill] sm:$0xff] }
 0x4b5   :  { %v12282_v20 = vmax.f32 %v25283_v50, %v11994_v47  ;;  %v27471_v56 = vmax.f32 %v25586_v23, 0.0  ;;  %v10931_v11 = vmax.f32 %v25699_v15, 0.0 }
 0x4b6   :  { %v11995_v29 = vmax.f32 %v27470_v7, %v10933_v21  ;;  %v12426_v30 = vmax.f32 %v25296_v27, %v12138_v32  ;;  %v16710_v40 = vpop.f32.mrb[232].mxu0 }
 0x4b7   :  { %v12139_v46 = vmax.f32 %v27471_v56, %v11509_v58  ;;  %v15458_v37 = vpack.c.bf16 %v12282_v20, %v12282_v20  ;;  %v7800_v47 = vadd.f32 %v25290_v39, %v16710_v40  ;;  %v17286_v60 = vpop.f32.mrb[232].mxu1  ;;  %v7791_v26 = vpop.f32.mrb[233].mxu0 }
 0x4b8   :  { %v12283_v8 = vmax.f32 %v25303_v16, %v11995_v29  ;;  %v15602_v21 = vpack.c.bf16 %v12426_v30, %v12426_v30  ;;  %v10104_v32 = vadd.f32 %v25290_v39, %v17286_v60  ;;  %v7792_v23 = vadd.f32 %v25290_v39, %v7791_v26  ;;  %v10095_v58 = vpop.f32.mrb[233].mxu1  ;;  %v16711_v7 = vpop.f32.mrb[234].mxu0 }
 0x4b9   :  { %v12427_v27 = vmax.f32 %v25309_v19, %v12139_v46  ;;  %13723 = vst.msk [vmem:[%s26756_s3 + $0x1b0] sm:$0xf] %vm13614_vm3, %v15458_v37  ;;  %v10936_v20 = vmax.f32 %v7800_v47, 0.0  ;;  %v10096_v29 = vadd.f32 %v25290_v39, %v10095_v58  ;;  %v7803_v56 = vadd.f32 %v25290_v39, %v16711_v7  ;;  %v17287_v30 = vpop.f32.mrb[234].mxu1  ;;  %v7794_v40 = vpop.f32.mrb[235].mxu0 }
 0x4ba   :  { %v15459_v16 = vpack.c.bf16 %v12283_v8, %v12283_v8  ;;  %13867 = vst.msk [vmem:[%s26756_s3 + $0x3f0] sm:$0xf] %vm13614_vm3, %v15602_v21  ;;  %v11512_v60 = vmax.f32 %v10104_v32, 0.0  ;;  %v10934_v46 = vmax.f32 %v7792_v23, 0.0  ;;  %v10107_v26 = vadd.f32 %v25290_v39, %v17287_v30  ;;  %v10098_v50 = vpop.f32.mrb[235].mxu1 }
 0x4bb   :  { %v15603_v19 = vpack.c.bf16 %v12427_v27, %v12427_v27  ;;  %v27472_v37 = vmax.f32 %v25595_v3, 0.0  ;;  %v11510_v47 = vmax.f32 %v10096_v29, 0.0  ;;  %v10937_v58 = vmax.f32 %v7803_v56, 0.0 }
 0x4bc   :  { %13724 = vst.msk [vmem:[%s26756_s3 + $0x1b4] sm:$0xf] %vm13614_vm3, %v15459_v16  ;;  %v7795_v7 = vadd.f32 %v25290_v39, %v7794_v40  ;;  %v27473_v21 = vmax.f32 %v25599_v51, 0.0  ;;  %v27474_v32 = vmax.f32 %v25565_v54, 0.0  ;;  %v11513_v30 = vmax.f32 %v10107_v26, 0.0 }
 0x4bd   :  { %v11998_v8 = vmax.f32 %v27472_v37, %v10936_v20  ;;  %13868 = vst.msk [vmem:[%s26756_s3 + $0x3f4] sm:$0xf] %vm13614_vm3, %v15603_v19  ;;  %v10099_v16 = vadd.f32 %v25290_v39, %v10098_v50  ;;  %v27475_v20 = vmax.f32 %v25568_v57, 0.0  ;;  %v27476_v56 = vmax.f32 %v25619_v9, 0.0 }
 0x4be   :  { %v12142_v27 = vmax.f32 %v27473_v21, %v11512_v60  ;;  %v11996_v23 = vmax.f32 %v27474_v32, %v10934_v46  ;;  %v10935_v37 = vmax.f32 %v7795_v7, 0.0  ;;  %v27477_v60 = vmax.f32 %v25622_v35, 0.0  ;;  %v16714_v26 = vpop.f32.mrb[236].mxu0 }
 0x4bf   :  { %v12286_v3 = vmax.f32 %v25347_v22, %v11998_v8  ;;  %v12140_v29 = vmax.f32 %v27475_v20, %v11510_v47  ;;  %v11999_v40 = vmax.f32 %v27476_v56, %v10937_v58  ;;  %v11511_v46 = vmax.f32 %v10099_v16, 0.0  ;;  %v17290_v9 = vpop.f32.mrb[236].mxu1  ;;  %v7807_v47 = vpop.f32.mrb[237].mxu0 }
 0x4c0   :  { %v12430_v19 = vmax.f32 %v25353_v18, %v12142_v27  ;;  %v12284_v51 = vmax.f32 %v25357_v12, %v11996_v23  ;;  %v12143_v54 = vmax.f32 %v27477_v60, %v11513_v30  ;;  %v27478_v57 = vmax.f32 %v25577_v2, 0.0  ;;  %v10111_v27 = vpop.f32.mrb[237].mxu1  ;;  %v16715_v32 = vpop.f32.mrb[238].mxu0 }
 0x4c1   :  { %v15462_v21 = vpack.c.bf16 %v12286_v3, %v12286_v3  ;;  %v12428_v50 = vmax.f32 %v25364_v41, %v12140_v29  ;;  %v12287_v22 = vmax.f32 %v25366_v13, %v11999_v40  ;;  %v27479_v12 = vmax.f32 %v25580_v33, 0.0  ;;  %v17291_v30 = vpop.f32.mrb[238].mxu1  ;;  %v7810_v16 = vpop.f32.mrb[239].mxu0 }
 0x4c2   :  { %v11997_v8 = vmax.f32 %v27478_v57, %v10935_v37  ;;  %v15606_v58 = vpack.c.bf16 %v12430_v19, %v12430_v19  ;;  %v15460_v7 = vpack.c.bf16 %v12284_v51, %v12284_v51  ;;  %v12431_v18 = vmax.f32 %v25374_v0, %v12143_v54  ;;  %v10114_v20 = vpop.f32.mrb[239].mxu1 }
 0x4c3   :  { %v12141_v35 = vmax.f32 %v27479_v12, %v11511_v46  ;;  %13727 = vst.msk [vmem:[%s26756_s3 + $0x1c0] sm:$0xf] %vm13614_vm3, %v15462_v21  ;;  %v15604_v41 = vpack.c.bf16 %v12428_v50, %v12428_v50  ;;  %v15463_v13 = vpack.c.bf16 %v12287_v22, %v12287_v22  ;;  %v7816_v23 = vadd.f32 %v25290_v39, %v16714_v26 }
 0x4c4   :  { %v12285_v2 = vmax.f32 %v25378_v49, %v11997_v8  ;;  %13871 = vst.msk [vmem:[%s26756_s3 + $0x400] sm:$0xf] %vm13614_vm3, %v15606_v58  ;;  %13725 = vst.msk [vmem:[%s26756_s3 + $0x1b8] sm:$0xf] %vm13614_vm3, %v15460_v7  ;;  %v15607_v0 = vpack.c.bf16 %v12431_v18, %v12431_v18  ;;  %v10120_v3 = vadd.f32 %v25290_v39, %v17290_v9  ;;  %v27480_v54 = vmax.f32 %v25631_v17, 0.0 }
 0x4c5   :  { %v12429_v33 = vmax.f32 %v25387_v62, %v12141_v35  ;;  %v7808_v49 = vadd.f32 %v25290_v39, %v7807_v47  ;;  %13869 = vst.msk [vmem:[%s26756_s3 + $0x3f8] sm:$0xf] %vm13614_vm3, %v15604_v41  ;;  %13728 = vst.msk [vmem:[%s26756_s3 + $0x1c4] sm:$0xf] %vm13614_vm3, %v15463_v13  ;;  %v10940_v56 = vmax.f32 %v7816_v23, 0.0  ;;  %v10112_v40 = vadd.f32 %v25290_v39, %v10111_v27 }
 0x4c6   :  { %v15461_v29 = vpack.c.bf16 %v12285_v2, %v12285_v2  ;;  %v7819_v62 = vadd.f32 %v25290_v39, %v16715_v32  ;;  %13872 = vst.msk [vmem:[%s26756_s3 + $0x404] sm:$0xf] %vm13614_vm3, %v15607_v0  ;;  %v11516_v19 = vmax.f32 %v10120_v3, 0.0  ;;  %v10123_v60 = vadd.f32 %v25290_v39, %v17291_v30  ;;  %v16718_v17 = vpop.f32.mrb[240].mxu0 }
 0x4c7   :  { %v15605_v37 = vpack.c.bf16 %v12429_v33, %v12429_v33  ;;  %v10938_v51 = vmax.f32 %v7808_v49, 0.0  ;;  %v12002_v46 = vmax.f32 %v27480_v54, %v10940_v56  ;;  %v11514_v26 = vmax.f32 %v10112_v40, 0.0  ;;  %v17294_v41 = vpop.f32.mrb[240].mxu1  ;;  %v7823_v13 = vpop.f32.mrb[241].mxu0 }
 0x4c8   :  { %13726 = vst.msk [vmem:[%s26756_s3 + $0x1bc] sm:$0xf] %vm13614_vm3, %v15461_v29  ;;  %v10941_v21 = vmax.f32 %v7819_v62, 0.0  ;;  %v7811_v50 = vadd.f32 %v25290_v39, %v7810_v16  ;;  %v27481_v22 = vmax.f32 %v25634_v5, 0.0  ;;  %v27482_v8 = vmax.f32 %v25589_v10, 0.0  ;;  %v10127_v16 = vpop.f32.mrb[241].mxu1 }
 0x4c9   :  { %13870 = vst.msk [vmem:[%s26756_s3 + $0x3fc] sm:$0xf] %vm13614_vm3, %v15605_v37  ;;  %v11517_v47 = vmax.f32 %v10123_v60, 0.0  ;;  %v10115_v58 = vadd.f32 %v25290_v39, %v10114_v20  ;;  %v12290_v7 = vmax.f32 %v25422_v34, %v12002_v46  ;;  %v27483_v18 = vmax.f32 %v25592_v59, 0.0  ;;  %v16719_v0 = vpop.f32.mrb[242].mxu0  ;;  %v17295_v49 = vpop.f32.mrb[242].mxu1 }
 0x4ca   :  { %v12146_v57 = vmax.f32 %v27481_v22, %v11516_v19  ;;  %v12000_v9 = vmax.f32 %v27482_v8, %v10938_v51  ;;  %v27484_v35 = vmax.f32 %v25643_v44, 0.0  ;;  %v10939_v32 = vmax.f32 %v7811_v50, 0.0  ;;  %v7826_v20 = vpop.f32.mrb[243].mxu0  ;;  %v10130_v40 = vpop.f32.mrb[243].mxu1  ;;  %v27489_v8 = vld [vmem:[#allocation19_spill] sm:$0xff] }
 0x4cb   :  { %v12144_v12 = vmax.f32 %v27483_v18, %v11514_v26  ;;  %v27485_v2 = vmax.f32 %v25646_v61, 0.0  ;;  %v11515_v30 = vmax.f32 %v10115_v58, 0.0  ;;  %v15466_v34 = vpack.c.bf16 %v12290_v7, %v12290_v7 }
 0x4cc   :  { %v12003_v27 = vmax.f32 %v27484_v35, %v10941_v21  ;;  %v12434_v5 = vmax.f32 %v25428_v24, %v12146_v57  ;;  %v12288_v10 = vmax.f32 %v25432_v1, %v12000_v9  ;;  %v27486_v44 = vmax.f32 %v25612_v14, 0.0  ;;  %v27491_v35 = vld [vmem:[#allocation7_spill] sm:$0xff] }
 0x4cd   :  { %v12147_v23 = vmax.f32 %v27485_v2, %v11517_v47  ;;  %v12432_v59 = vmax.f32 %v25442_v31, %v12144_v12  ;;  %v27487_v61 = vmax.f32 %v25615_v36, 0.0  ;;  %13731 = vst.msk [vmem:[%s26756_s3 + $0x1d0] sm:$0xf] %vm13614_vm3, %v15466_v34  ;;  %v7832_v62 = vadd.f32 %v25290_v39, %v16718_v17  ;;  %v27488_v36 = vld [vmem:[#allocation8_spill] sm:$0xff]  ;;  %v27496_v34 = vld [vmem:[#allocation13_spill] sm:$0xff] }
 0x4ce   :  { %v12291_v33 = vmax.f32 %v25444_v43, %v12003_v27  ;;  %v12001_v3 = vmax.f32 %v27486_v44, %v10939_v32  ;;  %v15610_v29 = vpack.c.bf16 %v12434_v5, %v12434_v5  ;;  %v15464_v24 = vpack.c.bf16 %v12288_v10, %v12288_v10  ;;  %v16722_v57 = vpop.f32.mrb[244].mxu0 }
 0x4cf   :  { %v12435_v1 = vmax.f32 %v25449_v45, %v12147_v23  ;;  %v12145_v56 = vmax.f32 %v27487_v61, %v11515_v30  ;;  %v15608_v31 = vpack.c.bf16 %v12432_v59, %v12432_v59  ;;  %v10136_v19 = vadd.f32 %v25290_v39, %v17294_v41  ;;  %v17298_v18 = vpop.f32.mrb[244].mxu1  ;;  %v7839_v12 = vpop.f32.mrb[245].mxu0  ;;  %v27493_v41 = vld [vmem:[#allocation23_spill] sm:$0xff] }
 0x4d0   :  { %v15467_v43 = vpack.c.bf16 %v12291_v33, %v12291_v33  ;;  %v12289_v14 = vmax.f32 %v25453_v53, %v12001_v3  ;;  %13875 = vst.msk [vmem:[%s26756_s3 + $0x410] sm:$0xf] %vm13614_vm3, %v15610_v29  ;;  %13729 = vst.msk [vmem:[%s26756_s3 + $0x1c8] sm:$0xf] %vm13614_vm3, %v15464_v24  ;;  %v7824_v51 = vadd.f32 %v25290_v39, %v7823_v13  ;;  %v10944_v60 = vmax.f32 %v7832_v62, 0.0  ;;  %v10143_v23 = vpop.f32.mrb[245].mxu1 }
 0x4d1   :  { %v15611_v45 = vpack.c.bf16 %v12435_v1, %v12435_v1  ;;  %v12433_v37 = vmax.f32 %v27488_v36, %v12145_v56  ;;  %13873 = vst.msk [vmem:[%s26756_s3 + $0x408] sm:$0xf] %vm13614_vm3, %v15608_v31  ;;  %v10128_v54 = vadd.f32 %v25290_v39, %v10127_v16  ;;  %v7835_v46 = vadd.f32 %v25290_v39, %v16719_v0  ;;  %v16723_v30 = vpop.f32.mrb[246].mxu0  ;;  %v27495_v16 = vld [vmem:[#allocation21_spill] sm:$0xff]  ;;  %v27498_v29 = vld [vmem:[#allocation4_spill] sm:$0xff] }
 0x4d2   :  { %13732 = vst.msk [vmem:[%s26756_s3 + $0x1d4] sm:$0xf] %vm13614_vm3, %v15467_v43  ;;  %v15465_v53 = vpack.c.bf16 %v12289_v14, %v12289_v14  ;;  %v11520_v21 = vmax.f32 %v10136_v19, 0.0  ;;  %v10942_v50 = vmax.f32 %v7824_v51, 0.0  ;;  %v10139_v22 = vadd.f32 %v25290_v39, %v17295_v49  ;;  %v17299_v49 = vpop.f32.mrb[246].mxu1  ;;  %v27499_v1 = vld [vmem:[#allocation25_spill] sm:$0xff] }
 0x4d3   :  { %13876 = vst.msk [vmem:[%s26756_s3 + $0x414] sm:$0xf] %vm13614_vm3, %v15611_v45  ;;  %v15609_v26 = vpack.c.bf16 %v12433_v37, %v12433_v37  ;;  %v27490_v9 = vmax.f32 %v27489_v8, 0.0  ;;  %v11518_v58 = vmax.f32 %v10128_v54, 0.0  ;;  %v10945_v17 = vmax.f32 %v7835_v46, 0.0  ;;  %v10146_v31 = vpop.f32.mrb[247].mxu1 }
 0x4d4   :  { %13730 = vst.msk [vmem:[%s26756_s3 + $0x1cc] sm:$0xf] %vm13614_vm3, %v15465_v53  ;;  %v7827_v7 = vadd.f32 %v25290_v39, %v7826_v20  ;;  %v27492_v27 = vmax.f32 %v27491_v35, 0.0  ;;  %v27494_v13 = vmax.f32 %v27493_v41, 0.0  ;;  %v11521_v10 = vmax.f32 %v10139_v22, 0.0  ;;  %v7842_v20 = vpop.f32.mrb[247].mxu0 }
 0x4d5   :  { %v12006_v47 = vmax.f32 %v27490_v9, %v10944_v60  ;;  %13874 = vst.msk [vmem:[%s26756_s3 + $0x40c] sm:$0xf] %vm13614_vm3, %v15609_v26  ;;  %v10131_v2 = vadd.f32 %v25290_v39, %v10130_v40  ;;  %v27497_v59 = vmax.f32 %v27496_v34, 0.0  ;;  %v12007_v44 = vmax.f32 %v10927_v28, %v10945_v17  ;;  %v27500_v14 = vld [vmem:[#allocation6_spill] sm:$0xff]  ;;  %v27501_v45 = vld [vmem:[#allocation9_spill] sm:$0xff]  ;;  %v27502_v37 = vld [vmem:[#allocation12_spill] sm:$0xff] }
 0x4d6   :  { %v12150_v32 = vmax.f32 %v27492_v27, %v11520_v21  ;;  %v12004_v5 = vmax.f32 %v27494_v13, %v10942_v50  ;;  %v10943_v3 = vmax.f32 %v7827_v7, 0.0  ;;  %v12151_v56 = vmax.f32 %v11503_v6, %v11521_v10  ;;  %v27504_v53 = vld [vmem:[#allocation2_spill] sm:$0xff]  ;;  %v27507_v21 = vld [vmem:[#allocation28_spill] sm:$0xff]  ;;  %v27508_v9 = vld [vmem:[#allocation3_spill] sm:$0xff]  ;;  %v25915_v7 = vpop.f32.mrb[248].mxu0 }
 0x4d7   :  { %v12294_v0 = vmax.f32 %v27495_v16, %v12006_v47  ;;  %v12148_v33 = vmax.f32 %v27497_v59, %v11518_v58  ;;  %v11519_v40 = vmax.f32 %v10131_v2, 0.0  ;;  %v12295_v36 = vmax.f32 %v27501_v45, %v12007_v44  ;;  %v27505_v54 = vld [vmem:[#allocation18_spill] sm:$0xff]  ;;  %v25932_v27 = vpop.f32.mrb[248].mxu1 }
 0x4d8   :  { %v12438_v24 = vmax.f32 %v27498_v29, %v12150_v32  ;;  %v12292_v61 = vmax.f32 %v27499_v1, %v12004_v5  ;;  %v27503_v55 = vmax.f32 %v27502_v37, 0.0  ;;  %v12439_v60 = vmax.f32 %v27504_v53, %v12151_v56  ;;  %v25934_v32 = vpop.f32.mrb[249].mxu0  ;;  %v25941_v2 = vpop.f32.mrb[249].mxu1 }
 0x4d9   :  { %v15470_v43 = vpack.c.bf16 %v12294_v0, %v12294_v0  ;;  %v12436_v62 = vmax.f32 %v27500_v14, %v12148_v33  ;;  %v27506_v46 = vmax.f32 %v27505_v54, 0.0  ;;  %v15471_v6 = vpack.c.bf16 %v12295_v36, %v12295_v36  ;;  %v25943_v16 = vpop.f32.mrb[250].mxu0  ;;  %v25952_v33 = vpop.f32.mrb[250].mxu1  ;;  %v27515_v36 = vld [vmem:[#allocation24_spill] sm:$0xff] }
 0x4da   :  { %v12005_v28 = vmax.f32 %v27503_v55, %v10943_v3  ;;  %v15614_v19 = vpack.c.bf16 %v12438_v24, %v12438_v24  ;;  %v15468_v51 = vpack.c.bf16 %v12292_v61, %v12292_v61  ;;  %v7848_v22 = vadd.f32 %v25290_v39, %v16722_v57  ;;  %v25954_v44 = vpop.f32.mrb[251].mxu0  ;;  %v10162_v61 = vpop.f32.mrb[251].mxu1 }
 0x4db   :  { %v12149_v26 = vmax.f32 %v27506_v46, %v11519_v40  ;;  %13735 = vst.msk [vmem:[%s26756_s3 + $0x1e0] sm:$0xf] %vm13614_vm3, %v15470_v43  ;;  %v15612_v38 = vpack.c.bf16 %v12436_v62, %v12436_v62  ;;  %v15615_v8 = vpack.c.bf16 %v12439_v60, %v12439_v60  ;;  %v10152_v58 = vadd.f32 %v25290_v39, %v17298_v18  ;;  %v25928_v18 = vld [vmem:[%s26755_s2] ss:$0 sm:$0xff] }
 0x4dc   :  { %v12293_v50 = vmax.f32 %v27507_v21, %v12005_v28  ;;  %13879 = vst.msk [vmem:[%s26756_s3 + $0x420] sm:$0xf] %vm13614_vm3, %v15614_v19  ;;  %13733 = vst.msk [vmem:[%s26756_s3 + $0x1d8] sm:$0xf] %vm13614_vm3, %v15468_v51  ;;  %v7840_v17 = vadd.f32 %v25290_v39, %v7839_v12  ;;  %v10948_v35 = vmax.f32 %v7848_v22, 0.0  ;;  %v10144_v39 = vadd.f32 %v25928_v18, %v10143_v23  ;;  %v27513_v40 = vld [vmem:[#allocation14_spill] sm:$0xff] }
 0x4dd   :  { %v12437_v47 = vmax.f32 %v27508_v9, %v12149_v26  ;;  %13877 = vst.msk [vmem:[%s26756_s3 + $0x418] sm:$0xf] %vm13614_vm3, %v15612_v38  ;;  %13736 = vst.msk [vmem:[%s26756_s3 + $0x1e4] sm:$0xf] %vm13614_vm3, %v15471_v6  ;;  %v7851_v12 = vadd.f32 %v25928_v18, %v16723_v30  ;;  %v11524_v13 = vmax.f32 %v10152_v58, 0.0  ;;  %v10155_v10 = vadd.f32 %v25928_v18, %v17299_v49  ;;  %v27510_v49 = vld [vmem:[#allocation22_spill] sm:$0xff] }
 0x4de   :  { %v15469_v57 = vpack.c.bf16 %v12293_v50, %v12293_v50  ;;  %13880 = vst.msk [vmem:[%s26756_s3 + $0x424] sm:$0xf] %vm13614_vm3, %v15615_v8  ;;  %v10946_v5 = vmax.f32 %v7840_v17, 0.0  ;;  %v27509_v23 = vmax.f32 %v25691_v63, 0.0  ;;  %v11522_v0 = vmax.f32 %v10144_v39, 0.0  ;;  %v27519_v60 = vld [vmem:[#allocation26_spill] sm:$0xff] }
 0x4df   :  { %v15613_v41 = vpack.c.bf16 %v12437_v47, %v12437_v47  ;;  %v10949_v34 = vmax.f32 %v7851_v12, 0.0  ;;  %v7843_v59 = vadd.f32 %v25928_v18, %v7842_v20  ;;  %v12154_v3 = vmax.f32 %v11506_v52, %v11524_v13  ;;  %v27512_v20 = vld [vmem:[#allocation10_spill] sm:$0xff]  ;;  %v16730_v22 = vpop.f32.mrb[252].mxu0  ;;  %v27523_v9 = vld [vmem:[#allocation15_spill] sm:$0xff]  ;;  %v17306_v58 = vpop.f32.mrb[252].mxu1  ;;  %v27524_v17 = vld [vmem:[#allocation16_spill] sm:$0xff] }
 0x4e0   :  { %13734 = vst.msk [vmem:[%s26756_s3 + $0x1dc] sm:$0xf] %vm13614_vm3, %v15469_v57  ;;  %v12010_v30 = vmax.f32 %v27509_v23, %v10948_v35  ;;  %v27511_v29 = vmax.f32 %v27510_v49, 0.0  ;;  %v11525_v24 = vmax.f32 %v10155_v10, 0.0  ;;  %v10147_v1 = vadd.f32 %v25928_v18, %v10146_v31  ;;  %v27518_v31 = vld [vmem:[#allocation5_spill] sm:$0xff]  ;;  %v10175_v35 = vpop.f32.mrb[253].mxu1 }
 0x4e1   :  { %13878 = vst.msk [vmem:[%s26756_s3 + $0x41c] sm:$0xf] %vm13614_vm3, %v15613_v41  ;;  %v27514_v43 = vmax.f32 %v27513_v40, 0.0  ;;  %v12011_v62 = vmax.f32 %v10931_v11, %v10949_v34  ;;  %v10947_v45 = vmax.f32 %v7843_v59, 0.0  ;;  %v12442_v37 = vmax.f32 %v27515_v36, %v12154_v3  ;;  %v27521_v11 = vld [vmem:[#allocation11_spill] sm:$0xff]  ;;  %v17307_v41 = vpop.f32.mrb[254].mxu1 }
 0x4e2   :  { %v12008_v63 = vmax.f32 %v27511_v29, %v10946_v5  ;;  %v12298_v56 = vmax.f32 %v27512_v20, %v12010_v30  ;;  %v27517_v55 = vmax.f32 %v25705_v42, 0.0  ;;  %v11523_v19 = vmax.f32 %v10147_v1, 0.0  ;;  %v10178_v10 = vpop.f32.mrb[255].mxu1 }
 0x4e3   :  { %v12152_v14 = vmax.f32 %v27514_v43, %v11522_v0  ;;  %v12299_v54 = vmax.f32 %v27519_v60, %v12011_v62  ;;  %v27520_v46 = vmax.f32 %v25676_v4, 0.0  ;;  %v15618_v38 = vpack.c.bf16 %v12442_v37, %v12442_v37  ;;  %v7871_v4 = vpop.f32.mrb[253].mxu0 }
 0x4e4   :  { %v12296_v52 = vmax.f32 %v27516_v48, %v12008_v63  ;;  %v12155_v28 = vmax.f32 %v27517_v55, %v11525_v24  ;;  %v15474_v51 = vpack.c.bf16 %v12298_v56, %v12298_v56  ;;  %v27522_v21 = vmax.f32 %v25681_v25, 0.0  ;;  %v16731_v39 = vpop.f32.mrb[254].mxu0 }
 0x4e5   :  { %v12440_v53 = vmax.f32 %v27518_v31, %v12152_v14  ;;  %v12009_v26 = vmax.f32 %v27520_v46, %v10947_v45  ;;  %v15475_v8 = vpack.c.bf16 %v12299_v54, %v12299_v54  ;;  %13883 = vst.msk [vmem:[%s26756_s3 + $0x430] sm:$0xf] %vm13614_vm3, %v15618_v38  ;;  %v7874_v13 = vpop.f32.mrb[255].mxu0  ;;  %v26027_v20 = vadd.f32 %v25928_v18, %v25915_v7 }
 0x4e6   :  { %v15472_v15 = vpack.c.bf16 %v12296_v52, %v12296_v52  ;;  %v12443_v6 = vmax.f32 %v27521_v11, %v12155_v28  ;;  %v12153_v50 = vmax.f32 %v27522_v21, %v11523_v19  ;;  %13739 = vst.msk [vmem:[%s26756_s3 + $0x1f0] sm:$0xf] %vm13614_vm3, %v15474_v51  ;;  %v16734_v23 = vpop.f32.mrb[0].mxu0  ;;  %v26035_v43 = vadd.f32 %v25928_v18, %v25932_v27 }
 0x4e7   :  { %v15616_v42 = vpack.c.bf16 %v12440_v53, %v12440_v53  ;;  %v12297_v47 = vmax.f32 %v27523_v9, %v12009_v26  ;;  %13740 = vst.msk [vmem:[%s26756_s3 + $0x1f4] sm:$0xf] %vm13614_vm3, %v15475_v8  ;;  %v17310_v30 = vpop.f32.mrb[0].mxu1  ;;  %v7887_v0 = vpop.f32.mrb[1].mxu0  ;;  %v7856_v14 = vadd.f32 %v25928_v18, %v25934_v32  ;;  %v10160_v62 = vadd.f32 %v25928_v18, %v25941_v2 }
 0x4e8   :  { %13737 = vst.msk [vmem:[%s26756_s3 + $0x1e8] sm:$0xf] %vm13614_vm3, %v15472_v15  ;;  %v15619_v25 = vpack.c.bf16 %v12443_v6, %v12443_v6  ;;  %v12441_v57 = vmax.f32 %v27524_v17, %v12153_v50  ;;  %v10191_v34 = vpop.f32.mrb[1].mxu1  ;;  %v16735_v59 = vpop.f32.mrb[2].mxu0  ;;  %v26043_v45 = vadd.f32 %v25928_v18, %v25943_v16  ;;  %v26051_v37 = vadd.f32 %v25928_v18, %v25952_v33 }
 0x4e9   :  { %13881 = vst.msk [vmem:[%s26756_s3 + $0x428] sm:$0xf] %vm13614_vm3, %v15616_v42  ;;  %v15473_v12 = vpack.c.bf16 %v12297_v47, %v12297_v47  ;;  %v17311_v3 = vpop.f32.mrb[2].mxu1  ;;  %v26015_v49 = vpop.f32.mrb[3].mxu0  ;;  %v7859_v27 = vadd.f32 %v25928_v18, %v25954_v44  ;;  %v10163_v32 = vadd.f32 %v25928_v18, %v10162_v61  ;;  %v26059_v2 = vadd.f32 %v25928_v18, %v16730_v22 }
 0x4ea   :  { %13884 = vst.msk [vmem:[%s26756_s3 + $0x434] sm:$0xf] %vm13614_vm3, %v15619_v25  ;;  %v15617_v5 = vpack.c.bf16 %v12441_v57, %v12441_v57  ;;  %v26017_v29 = vpop.f32.mrb[3].mxu1  ;;  %v26062_v16 = vadd.f32 %v25928_v18, %v17306_v58  ;;  %v26065_v52 = vadd.f32 %v25928_v18, %v7871_v4  ;;  %v10952_v55 = vmax.f32 %v26027_v20, 0.0 }
 0x4eb   :  { %13738 = vst.msk [vmem:[%s26756_s3 + $0x1ec] sm:$0xf] %vm13614_vm3, %v15473_v12  ;;  %v26069_v33 = vadd.f32 %v25928_v18, %v10175_v35  ;;  %v11528_v44 = vmax.f32 %v26035_v43, 0.0  ;;  %v10950_v28 = vmax.f32 %v7856_v14, 0.0  ;;  %v11526_v61 = vmax.f32 %v10160_v62, 0.0 }
 0x4ec   :  { %13882 = vst.msk [vmem:[%s26756_s3 + $0x42c] sm:$0xf] %vm13614_vm3, %v15617_v5  ;;  %v10953_v19 = vmax.f32 %v26043_v45, 0.0  ;;  %v11529_v51 = vmax.f32 %v26051_v37, 0.0  ;;  %v10951_v31 = vmax.f32 %v7859_v27, 0.0  ;;  %v11527_v53 = vmax.f32 %v10163_v32, 0.0 }
 0x4ed   :  { %v26075_v60 = vadd.f32 %v25928_v18, %v16731_v39  ;;  %v10956_v46 = vmax.f32 %v26059_v2, 0.0  ;;  %v11532_v26 = vmax.f32 %v26062_v16, 0.0  ;;  %v10954_v38 = vmax.f32 %v26065_v52, 0.0 }
 0x4ee   :  { %v26019_v63 = vpop.f32.mrb[4].mxu0  ;;  %v11530_v21 = vmax.f32 %v26069_v33, 0.0  ;;  %v26085_v50 = vadd.f32 %v25928_v18, %v17307_v41  ;;  %v26088_v22 = vadd.f32 %v25928_v18, %v7874_v13  ;;  %v26094_v47 = vadd.f32 %v25928_v18, %v10178_v10 }
 0x4ef   :  { %v26021_v24 = vpop.f32.mrb[4].mxu1  ;;  %v26023_v1 = vpop.f32.mrb[5].mxu0  ;;  %v26097_v58 = vadd.f32 %v25928_v18, %v16734_v23  ;;  %v26103_v35 = vadd.f32 %v25928_v18, %v17310_v30  ;;  %v26106_v39 = vadd.f32 %v25928_v18, %v7887_v0  ;;  %v26112_v5 = vadd.f32 %v25928_v18, %v10191_v34 }
 0x4f0   :  { %v26029_v56 = vpop.f32.mrb[5].mxu1  ;;  %v26031_v40 = vpop.f32.mrb[6].mxu0  ;;  %v26115_v10 = vadd.f32 %v25928_v18, %v16735_v59  ;;  %v26121_v62 = vadd.f32 %v25928_v18, %v17311_v3  ;;  %v10955_v52 = vmax.f32 %v26088_v22, 0.0  ;;  %v11531_v34 = vmax.f32 %v26094_v47, 0.0 }
 0x4f1   :  { %v26045_v7 = vpop.f32.mrb[6].mxu1  ;;  %v26047_v36 = vpop.f32.mrb[7].mxu0  ;;  %v26139_v22 = vadd.f32 %v25928_v18, %v26015_v49  ;;  %v26151_v49 = vadd.f32 %v25928_v18, %v26019_v63  ;;  %v10208_v45 = vadd.f32 %v25928_v18, %v26029_v56  ;;  %v27525_v2 = vmax.f32 %v26075_v60, 0.0 }
 0x4f2   :  { %v26056_v48 = vpop.f32.mrb[7].mxu1  ;;  %v27526_v16 = vmax.f32 %v26085_v50, 0.0 }
 0x4f3   :  { %v10964_v43 = vmax.f32 %v26151_v49, 0.0  ;;  %v26204_v37 = vadd.f32 %v25928_v18, %v26056_v48 }
 0x4f6   :  { %v16742_v54 = vpop.f32.mrb[8].mxu0 }
 0x4f7   :  { %v7928_v15 = vadd.f32 %v25928_v18, %v16742_v54  ;;  %v17318_v11 = vpop.f32.mrb[8].mxu1  ;;  %v26081_v6 = vpop.f32.mrb[9].mxu0  ;;  %v10958_v54 = vmax.f32 %v26106_v39, 0.0 }
 0x4f8   :  { %v10232_v42 = vadd.f32 %v25928_v18, %v17318_v11  ;;  %v26091_v8 = vpop.f32.mrb[9].mxu1  ;;  %v16743_v9 = vpop.f32.mrb[10].mxu0 }
 0x4f9   :  { %v10968_v4 = vmax.f32 %v7928_v15, 0.0  ;;  %v7931_v25 = vadd.f32 %v25928_v18, %v16743_v9  ;;  %v17319_v17 = vpop.f32.mrb[10].mxu1  ;;  %v26100_v57 = vpop.f32.mrb[11].mxu0  ;;  %v10224_v60 = vadd.f32 %v25928_v18, %v26091_v8 }
 0x4fa   :  { %v11544_v12 = vmax.f32 %v10232_v42, 0.0  ;;  %v10235_v41 = vadd.f32 %v25928_v18, %v17319_v17  ;;  %v26109_v13 = vpop.f32.mrb[11].mxu1  ;;  %v7923_v50 = vadd.f32 %v25928_v18, %v26100_v57 }
 0x4fb   :  { %v26117_v23 = vmax.f32 %v10950_v28, %v10968_v4  ;;  %v10969_v14 = vmax.f32 %v7931_v25, 0.0  ;;  %v26145_v4 = vadd.f32 %v25928_v18, %v26017_v29 }
 0x4fc   :  { %v26123_v0 = vmax.f32 %v11526_v61, %v11544_v12  ;;  %v11545_v27 = vmax.f32 %v10235_v41, 0.0  ;;  %v11534_v61 = vmax.f32 %v26112_v5, 0.0 }
 0x4fd   :  { %v26128_v33 = vmax.f32 %v10951_v31, %v10969_v14 }
 0x4fe   :  { %v26133_v15 = vmax.f32 %v11527_v53, %v11545_v27  ;;  %v16746_v3 = vpop.f32.mrb[12].mxu0 }
 0x4ff   :  { %v7944_v31 = vadd.f32 %v25928_v18, %v16746_v3  ;;  %v17322_v42 = vpop.f32.mrb[12].mxu1  ;;  %v7935_v9 = vpop.f32.mrb[13].mxu0 }
 0x500   :  { %v10248_v53 = vadd.f32 %v25928_v18, %v17322_v42  ;;  %v7936_v25 = vadd.f32 %v25928_v18, %v7935_v9  ;;  %v10239_v17 = vpop.f32.mrb[13].mxu1  ;;  %v16747_v12 = vpop.f32.mrb[14].mxu0 }
 0x501   :  { %v10972_v41 = vmax.f32 %v7944_v31, 0.0  ;;  %v10240_v14 = vadd.f32 %v25928_v18, %v10239_v17  ;;  %v7947_v27 = vadd.f32 %v25928_v18, %v16747_v12  ;;  %v17323_v3 = vpop.f32.mrb[14].mxu1  ;;  %v7938_v47 = vpop.f32.mrb[15].mxu0 }
 0x502   :  { %v11548_v11 = vmax.f32 %v10248_v53, 0.0  ;;  %v10970_v29 = vmax.f32 %v7936_v25, 0.0  ;;  %v10251_v28 = vadd.f32 %v25928_v18, %v17323_v3  ;;  %v7939_v42 = vadd.f32 %v25928_v18, %v7938_v47  ;;  %v10242_v9 = vpop.f32.mrb[15].mxu1 }
 0x503   :  { %v26157_v59 = vmax.f32 %v10954_v38, %v10972_v41  ;;  %v11546_v32 = vmax.f32 %v10240_v14, 0.0  ;;  %v10973_v30 = vmax.f32 %v7947_v27, 0.0  ;;  %v10243_v63 = vadd.f32 %v25928_v18, %v10242_v9 }
 0x504   :  { %v26160_v31 = vmax.f32 %v11530_v21, %v11548_v11  ;;  %v26164_v17 = vmax.f32 %v10952_v55, %v10970_v29  ;;  %v11549_v12 = vmax.f32 %v10251_v28, 0.0  ;;  %v10971_v53 = vmax.f32 %v7939_v42, 0.0 }
 0x505   :  { %v10959_v25 = vmax.f32 %v26139_v22, 0.0  ;;  %v26169_v47 = vmax.f32 %v11528_v44, %v11546_v32  ;;  %v26171_v38 = vmax.f32 %v10955_v52, %v10973_v30  ;;  %v11547_v41 = vmax.f32 %v10243_v63, 0.0 }
 0x506   :  { %v11535_v14 = vmax.f32 %v26145_v4, 0.0  ;;  %v26176_v21 = vadd.f32 %v25928_v18, %v26021_v24  ;;  %v26178_v20 = vmax.f32 %v11531_v34, %v11549_v12  ;;  %v26182_v55 = vmax.f32 %v10953_v19, %v10971_v53  ;;  %v16750_v28 = vpop.f32.mrb[16].mxu0 }
 0x507   :  { %v26187_v44 = vadd.f32 %v25928_v18, %v26023_v1  ;;  %v26191_v30 = vmax.f32 %v11529_v51, %v11547_v41  ;;  %v7960_v24 = vadd.f32 %v25928_v18, %v16750_v28  ;;  %v7951_v52 = vpop.f32.mrb[17].mxu0  ;;  %v26198_v19 = vadd.f32 %v25928_v18, %v26047_v36 }
 0x508   :  { %v17326_v32 = vpop.f32.mrb[16].mxu1  ;;  %v7952_v1 = vadd.f32 %v25928_v18, %v7951_v52  ;;  %v16751_v22 = vpop.f32.mrb[18].mxu0 }
 0x509   :  { %v10264_v34 = vadd.f32 %v25928_v18, %v17326_v32  ;;  %v10255_v11 = vpop.f32.mrb[17].mxu1  ;;  %v10976_v51 = vmax.f32 %v7960_v24, 0.0  ;;  %v7963_v27 = vadd.f32 %v25928_v18, %v16751_v22  ;;  %v7954_v3 = vpop.f32.mrb[19].mxu0  ;;  %v10962_v5 = vmax.f32 %v26187_v44, 0.0 }
 0x50a   :  { %v10256_v4 = vadd.f32 %v25928_v18, %v10255_v11  ;;  %v17327_v56 = vpop.f32.mrb[18].mxu1  ;;  %v10974_v36 = vmax.f32 %v7952_v1, 0.0  ;;  %v7955_v9 = vadd.f32 %v25928_v18, %v7954_v3 }
 0x50b   :  { %v11552_v29 = vmax.f32 %v10264_v34, 0.0  ;;  %v10267_v42 = vadd.f32 %v25928_v18, %v17327_v56  ;;  %v10258_v63 = vpop.f32.mrb[19].mxu1  ;;  %v26212_v12 = vmax.f32 %v10958_v54, %v10976_v51  ;;  %v10977_v53 = vmax.f32 %v7963_v27, 0.0 }
 0x50c   :  { %v11550_v48 = vmax.f32 %v10256_v4, 0.0  ;;  %v10259_v41 = vadd.f32 %v25928_v18, %v10258_v63  ;;  %v26221_v24 = vmax.f32 %v10956_v46, %v10974_v36  ;;  %v10975_v52 = vmax.f32 %v7955_v9, 0.0 }
 0x50d   :  { %v26217_v28 = vmax.f32 %v11534_v61, %v11552_v29  ;;  %v11553_v32 = vmax.f32 %v10267_v42, 0.0  ;;  %v26225_v34 = vadd.f32 %v25928_v18, %v26031_v40  ;;  %v26231_v54 = vmax.f32 %v10959_v25, %v10977_v53 }
 0x50e   :  { %v26229_v39 = vmax.f32 %v11532_v26, %v11550_v48  ;;  %v11551_v1 = vmax.f32 %v10259_v41, 0.0  ;;  %v11538_v61 = vmax.f32 %v10208_v45, 0.0  ;;  %v26238_v46 = vmax.f32 %v27525_v2, %v10975_v52  ;;  %v16754_v22 = vpop.f32.mrb[20].mxu0 }
 0x50f   :  { %v26234_v11 = vmax.f32 %v11535_v14, %v11553_v32  ;;  %v10963_v40 = vmax.f32 %v26198_v19, 0.0  ;;  %v11539_v51 = vmax.f32 %v26204_v37, 0.0  ;;  %v7976_v25 = vadd.f32 %v25928_v18, %v16754_v22  ;;  %v7967_v44 = vpop.f32.mrb[21].mxu0 }
 0x510   :  { %v26244_v26 = vmax.f32 %v27526_v16, %v11551_v1  ;;  %v17330_v4 = vpop.f32.mrb[20].mxu1  ;;  %v7920_v14 = vadd.f32 %v25928_v18, %v26081_v6  ;;  %v7968_v19 = vadd.f32 %v25928_v18, %v7967_v44  ;;  %v16755_v37 = vpop.f32.mrb[22].mxu0  ;;  %v27530_v1 = vmax.f32 %v26097_v58, 0.0 }
 0x511   :  { %v10280_v45 = vadd.f32 %v25928_v18, %v17330_v4  ;;  %v10271_v27 = vpop.f32.mrb[21].mxu1  ;;  %v10980_v56 = vmax.f32 %v7976_v25, 0.0  ;;  %v7979_v29 = vadd.f32 %v25928_v18, %v16755_v37  ;;  %v7970_v42 = vpop.f32.mrb[23].mxu0  ;;  %v10227_v25 = vadd.f32 %v25928_v18, %v26109_v13 }
 0x512   :  { %27527 = vst [vmem:[#allocation27_spill] sm:$0xff] %v26244_v26  ;;  %v10272_v3 = vadd.f32 %v25928_v18, %v10271_v27  ;;  %v17331_v36 = vpop.f32.mrb[22].mxu1  ;;  %v10978_v9 = vmax.f32 %v7968_v19, 0.0  ;;  %v7971_v63 = vadd.f32 %v25928_v18, %v7970_v42  ;;  %v27532_v4 = vmax.f32 %v26103_v35, 0.0 }
 0x513   :  { %v11556_v6 = vmax.f32 %v10280_v45, 0.0  ;;  %v10283_v8 = vadd.f32 %v25928_v18, %v17331_v36  ;;  %v10274_v48 = vpop.f32.mrb[23].mxu1  ;;  %v26259_v53 = vmax.f32 %v10962_v5, %v10980_v56  ;;  %v10981_v32 = vmax.f32 %v7979_v29, 0.0 }
 0x514   :  { %v11554_v41 = vmax.f32 %v10272_v3, 0.0  ;;  %v10275_v57 = vadd.f32 %v25928_v18, %v10274_v48  ;;  %v26266_v2 = vmax.f32 %v27530_v1, %v10978_v9  ;;  %v10979_v16 = vmax.f32 %v7971_v63, 0.0 }
 0x515   :  { %27528 = vst [vmem:[#allocation20_spill] sm:$0xff] %v26259_v53  ;;  %v26262_v52 = vmax.f32 %v11538_v61, %v11556_v6  ;;  %v11557_v22 = vmax.f32 %v10283_v8, 0.0  ;;  %v26274_v5 = vmax.f32 %v10963_v40, %v10981_v32  ;;  %v11540_v19 = vmax.f32 %v26176_v21, 0.0 }
 0x516   :  { %27531 = vst [vmem:[#allocation19_spill] sm:$0xff] %v26266_v2  ;;  %v26272_v44 = vmax.f32 %v27532_v4, %v11554_v41  ;;  %v11555_v45 = vmax.f32 %v10275_v57, 0.0  ;;  %v10219_v61 = vadd.f32 %v25928_v18, %v26045_v7  ;;  %v27536_v27 = vmax.f32 %v26115_v10, 0.0  ;;  %v16758_v56 = vpop.f32.mrb[24].mxu0 }
 0x517   :  { %27529 = vst [vmem:[#allocation8_spill] sm:$0xff] %v26262_v52  ;;  %27534 = vst [vmem:[#allocation23_spill] sm:$0xff] %v26274_v5  ;;  %v26279_v58 = vmax.f32 %v11539_v51, %v11557_v22  ;;  %v10965_v13 = vmax.f32 %v26225_v34, 0.0  ;;  %v10966_v35 = vmax.f32 %v7920_v14, 0.0  ;;  %v27538_v3 = vmax.f32 %v26121_v62, 0.0  ;;  %v7983_v36 = vpop.f32.mrb[25].mxu0 }
 0x518   :  { %27533 = vst [vmem:[#allocation7_spill] sm:$0xff] %v26272_v44  ;;  %v26283_v37 = vmax.f32 %v27536_v27, %v10979_v16  ;;  %v7992_v29 = vadd.f32 %v25928_v18, %v16758_v56  ;;  %v17334_v21 = vpop.f32.mrb[24].mxu1  ;;  %v11542_v42 = vmax.f32 %v10224_v60, 0.0  ;;  %v10967_v7 = vmax.f32 %v7923_v50, 0.0  ;;  %v16759_v9 = vpop.f32.mrb[26].mxu0 }
 0x519   :  { %27535 = vst [vmem:[#allocation21_spill] sm:$0xff] %v26279_v58  ;;  %v26288_v40 = vmax.f32 %v27538_v3, %v11555_v45  ;;  %v10296_v51 = vadd.f32 %v25928_v18, %v17334_v21  ;;  %v7984_v10 = vadd.f32 %v25928_v18, %v7983_v36  ;;  %v10287_v6 = vpop.f32.mrb[25].mxu1  ;;  %v11543_v8 = vmax.f32 %v10227_v25, 0.0  ;;  %v7986_v48 = vpop.f32.mrb[27].mxu0 }
 0x51a   :  { %27537 = vst [vmem:[#allocation13_spill] sm:$0xff] %v26283_v37  ;;  %v10984_v63 = vmax.f32 %v7992_v29, 0.0  ;;  %v10288_v34 = vadd.f32 %v25928_v18, %v10287_v6  ;;  %v7995_v62 = vadd.f32 %v25928_v18, %v16759_v9  ;;  %v17335_v14 = vpop.f32.mrb[26].mxu1  ;;  %v7987_v60 = vadd.f32 %v25928_v18, %v7986_v48 }
 0x51b   :  { %27539 = vst [vmem:[#allocation4_spill] sm:$0xff] %v26288_v40  ;;  %v11560_v41 = vmax.f32 %v10296_v51, 0.0  ;;  %v10982_v32 = vmax.f32 %v7984_v10, 0.0  ;;  %v10299_v57 = vadd.f32 %v25928_v18, %v17335_v14  ;;  %v10290_v50 = vpop.f32.mrb[27].mxu1  ;;  %v11541_v3 = vmax.f32 %v10219_v61, 0.0 }
 0x51c   :  { %v26297_v1 = vmax.f32 %v10966_v35, %v10984_v63  ;;  %v11558_v22 = vmax.f32 %v10288_v34, 0.0  ;;  %v10985_v16 = vmax.f32 %v7995_v62, 0.0  ;;  %v10291_v25 = vadd.f32 %v25928_v18, %v10290_v50 }
 0x51d   :  { %v26300_v4 = vmax.f32 %v11542_v42, %v11560_v41  ;;  %v26304_v45 = vmax.f32 %v10964_v43, %v10982_v32  ;;  %v11561_v27 = vmax.f32 %v10299_v57, 0.0  ;;  %v10983_v56 = vmax.f32 %v7987_v60, 0.0 }
 0x51e   :  { %27540 = vst [vmem:[#allocation25_spill] sm:$0xff] %v26297_v1  ;;  %v26306_v29 = vmax.f32 %v11540_v19, %v11558_v22  ;;  %v26308_v21 = vmax.f32 %v10967_v7, %v10985_v16  ;;  %v11559_v36 = vmax.f32 %v10291_v25, 0.0 }
 0x51f   :  { %27541 = vst [vmem:[#allocation6_spill] sm:$0xff] %v26300_v4  ;;  %27542 = vst [vmem:[#allocation9_spill] sm:$0xff] %v26304_v45  ;;  %v26310_v35 = vmax.f32 %v11543_v8, %v11561_v27  ;;  %v26312_v51 = vmax.f32 %v10965_v13, %v10983_v56 }
 0x520   :  { %27543 = vst [vmem:[#allocation12_spill] sm:$0xff] %v26306_v29  ;;  %27544 = vst [vmem:[#allocation2_spill] sm:$0xff] %v26308_v21  ;;  %v16762_v10 = vpop.f32.mrb[28].mxu0  ;;  %v26314_v6 = vmax.f32 %v11541_v3, %v11559_v36  ;;  %v17338_v42 = vpop.f32.mrb[28].mxu1 }
 0x521   :  { %27545 = vst [vmem:[#allocation18_spill] sm:$0xff] %v26310_v35  ;;  %27546 = vst [vmem:[#allocation28_spill] sm:$0xff] %v26312_v51  ;;  %v7999_v9 = vpop.f32.mrb[29].mxu0  ;;  %v10303_v49 = vpop.f32.mrb[29].mxu1  ;;  %v26317_v50 = vadd.f32 %v25928_v18, %v16762_v10  ;;  %v26320_v25 = vadd.f32 %v25928_v18, %v17338_v42 }
 0x522   :  { %27547 = vst [vmem:[#allocation3_spill] sm:$0xff] %v26314_v6  ;;  %v16763_v43 = vpop.f32.mrb[30].mxu0  ;;  %v17339_v63 = vpop.f32.mrb[30].mxu1  ;;  %v26323_v27 = vadd.f32 %v25928_v18, %v7999_v9  ;;  %v26326_v56 = vadd.f32 %v25928_v18, %v10303_v49 }
 0x523   :  { %v8002_v34 = vpop.f32.mrb[31].mxu0  ;;  %v10306_v62 = vpop.f32.mrb[31].mxu1  ;;  %v26329_v3 = vadd.f32 %v25928_v18, %v16763_v43  ;;  %v26332_v51 = vadd.f32 %v25928_v18, %v17339_v63 }
 0x524   :  { %v26335_v10 = vadd.f32 %v25928_v18, %v8002_v34  ;;  %v26338_v42 = vadd.f32 %v25928_v18, %v10306_v62 }
 0x528   :  { %v16766_v61 = vpop.f32.mrb[32].mxu0 }
 0x529   :  { %v17342_v19 = vpop.f32.mrb[32].mxu1  ;;  %v8015_v14 = vpop.f32.mrb[33].mxu0  ;;  %v26341_v9 = vadd.f32 %v25928_v18, %v16766_v61 }
 0x52a   :  { %v10319_v7 = vpop.f32.mrb[33].mxu1  ;;  %v16767_v48 = vpop.f32.mrb[34].mxu0  ;;  %v26344_v49 = vadd.f32 %v25928_v18, %v17342_v19  ;;  %v26347_v43 = vadd.f32 %v25928_v18, %v8015_v14 }
 0x52b   :  { %v17343_v41 = vpop.f32.mrb[34].mxu1  ;;  %v8018_v8 = vpop.f32.mrb[35].mxu0  ;;  %v26351_v63 = vadd.f32 %v25928_v18, %v10319_v7  ;;  %v26364_v34 = vadd.f32 %v25928_v18, %v16767_v48 }
 0x52c   :  { %v10322_v32 = vpop.f32.mrb[35].mxu1  ;;  %v26367_v29 = vadd.f32 %v25928_v18, %v17343_v41  ;;  %v26371_v19 = vadd.f32 %v25928_v18, %v8018_v8 }
 0x52d   :  { %v26374_v4 = vadd.f32 %v25928_v18, %v10322_v32 }
 0x530   :  { %v16770_v13 = vpop.f32.mrb[36].mxu0 }
 0x531   :  { %v17346_v57 = vpop.f32.mrb[36].mxu1  ;;  %v8031_v60 = vpop.f32.mrb[37].mxu0  ;;  %v26377_v7 = vadd.f32 %v25928_v18, %v16770_v13 }
 0x532   :  { %v10335_v22 = vpop.f32.mrb[37].mxu1  ;;  %v16771_v16 = vpop.f32.mrb[38].mxu0  ;;  %v26380_v48 = vadd.f32 %v25928_v18, %v17346_v57  ;;  %v26383_v41 = vadd.f32 %v25928_v18, %v8031_v60 }
 0x533   :  { %v17347_v36 = vpop.f32.mrb[38].mxu1  ;;  %v8034_v6 = vpop.f32.mrb[39].mxu0  ;;  %27548 = vst [vmem:[#allocation22_spill] sm:$0xff] %v26377_v7  ;;  %v26386_v40 = vadd.f32 %v25928_v18, %v10335_v22  ;;  %v26389_v8 = vadd.f32 %v25928_v18, %v16771_v16 }
 0x534   :  { %v10338_v35 = vpop.f32.mrb[39].mxu1  ;;  %27549 = vst [vmem:[#allocation10_spill] sm:$0xff] %v26380_v48  ;;  %v26392_v37 = vadd.f32 %v25928_v18, %v17347_v36  ;;  %v26395_v13 = vadd.f32 %v25928_v18, %v8034_v6 }
 0x535   :  { %27550 = vst [vmem:[#allocation14_spill] sm:$0xff] %v26389_v8  ;;  %v26398_v57 = vadd.f32 %v25928_v18, %v10338_v35 }
 0x536   :  { %27551 = vst [vmem:[#allocation24_spill] sm:$0xff] %v26392_v37 }
 0x538   :  { %v16774_v21 = vpop.f32.mrb[40].mxu0 }
 0x539   :  { %v17350_v61 = vpop.f32.mrb[40].mxu1  ;;  %v8047_v62 = vpop.f32.mrb[41].mxu0  ;;  %v26401_v60 = vadd.f32 %v25928_v18, %v16774_v21 }
 0x53a   :  { %v10351_v1 = vpop.f32.mrb[41].mxu1  ;;  %v16775_v14 = vpop.f32.mrb[42].mxu0  ;;  %v26406_v5 = vadd.f32 %v25928_v18, %v17350_v61  ;;  %v26409_v36 = vadd.f32 %v25928_v18, %v8047_v62 }
 0x53b   :  { %v17351_v45 = vpop.f32.mrb[42].mxu1  ;;  %v8050_v32 = vpop.f32.mrb[43].mxu0  ;;  %27552 = vst [vmem:[#allocation17_spill] sm:$0xff] %v26401_v60  ;;  %v26415_v21 = vadd.f32 %v25928_v18, %v10351_v1  ;;  %v26428_v2 = vadd.f32 %v25928_v18, %v16775_v14 }
 0x53c   :  { %v10354_v58 = vpop.f32.mrb[43].mxu1  ;;  %27553 = vst [vmem:[#allocation5_spill] sm:$0xff] %v26406_v5  ;;  %27554 = vst [vmem:[#allocation26_spill] sm:$0xff] %v26409_v36  ;;  %v26433_v52 = vadd.f32 %v25928_v18, %v17351_v45  ;;  %v26436_v6 = vadd.f32 %v25928_v18, %v8050_v32 }
 0x53d   :  { %27555 = vst [vmem:[#allocation11_spill] sm:$0xff] %v26415_v21  ;;  %v26440_v53 = vadd.f32 %v25928_v18, %v10354_v58  ;;  %v27557_v21 = vmax.f32 %v26326_v56, 0.0 }
 0x540   :  { %v16778_v35 = vpop.f32.mrb[44].mxu0 }
 0x541   :  { %v8072_v16 = vadd.f32 %v25928_v18, %v16778_v35  ;;  %v17354_v22 = vpop.f32.mrb[44].mxu1  ;;  %v8063_v61 = vpop.f32.mrb[45].mxu0 }
 0x542   :  { %v10376_v44 = vadd.f32 %v25928_v18, %v17354_v22  ;;  %v10367_v1 = vpop.f32.mrb[45].mxu1  ;;  %v16779_v5 = vpop.f32.mrb[46].mxu0  ;;  %v26443_v35 = vadd.f32 %v25928_v18, %v8063_v61 }
 0x543   :  { %v11004_v14 = vmax.f32 %v8072_v16, 0.0  ;;  %v8075_v60 = vadd.f32 %v25928_v18, %v16779_v5  ;;  %v17355_v62 = vpop.f32.mrb[46].mxu1  ;;  %v8066_v37 = vpop.f32.mrb[47].mxu0  ;;  %v26447_v8 = vadd.f32 %v25928_v18, %v10367_v1  ;;  %v27556_v16 = vmax.f32 %v26323_v27, 0.0 }
 0x544   :  { %v11580_v45 = vmax.f32 %v10376_v44, 0.0  ;;  %v10379_v32 = vadd.f32 %v25928_v18, %v17355_v62  ;;  %v26451_v22 = vadd.f32 %v25928_v18, %v8066_v37  ;;  %v10370_v48 = vpop.f32.mrb[47].mxu1  ;;  %v10999_v1 = vmax.f32 %v26436_v6, 0.0 }
 0x545   :  { %v12012_v61 = vmax.f32 %v27556_v16, %v11004_v14  ;;  %v11005_v7 = vmax.f32 %v8075_v60, 0.0  ;;  %v26457_v5 = vadd.f32 %v25928_v18, %v10370_v48  ;;  %v11575_v37 = vmax.f32 %v26440_v53, 0.0 }
 0x546   :  { %v12156_v62 = vmax.f32 %v27557_v21, %v11580_v45  ;;  %v11581_v36 = vmax.f32 %v10379_v32, 0.0  ;;  %v27558_v27 = vmax.f32 %v26335_v10, 0.0  ;;  %v11578_v14 = vmax.f32 %v26447_v8, 0.0 }
 0x547   :  { %v12300_v26 = vmax.f32 %v26117_v23, %v12012_v61  ;;  %v27559_v16 = vmax.f32 %v26338_v42, 0.0  ;;  %v11003_v56 = vmax.f32 %v26451_v22, 0.0 }
 0x548   :  { %v12013_v60 = vmax.f32 %v27558_v27, %v11005_v7  ;;  %v12444_v48 = vmax.f32 %v26123_v0, %v12156_v62  ;;  %v16782_v21 = vpop.f32.mrb[48].mxu0 }
 0x549   :  { %v12157_v44 = vmax.f32 %v27559_v16, %v11581_v36  ;;  %v15476_v45 = vpack.c.bf16 %v12300_v26, %v12300_v26  ;;  %v8088_v61 = vadd.f32 %v25928_v18, %v16782_v21  ;;  %v17358_v58 = vpop.f32.mrb[48].mxu1  ;;  %v8079_v10 = vpop.f32.mrb[49].mxu0 }
 0x54a   :  { %v12301_v32 = vmax.f32 %v26128_v33, %v12013_v60  ;;  %v15620_v7 = vpack.c.bf16 %v12444_v48, %v12444_v48  ;;  %v10392_v62 = vadd.f32 %v25928_v18, %v17358_v58  ;;  %v8080_v42 = vadd.f32 %v25928_v18, %v8079_v10  ;;  %v10383_v36 = vpop.f32.mrb[49].mxu1  ;;  %v16783_v27 = vpop.f32.mrb[50].mxu0 }
 0x54b   :  { %v12445_v0 = vmax.f32 %v26133_v15, %v12157_v44  ;;  %13741 = vst.msk [vmem:[%s26756_s3 + $0x1f8] sm:$0xf] %vm13614_vm3, %v15476_v45  ;;  %v11008_v26 = vmax.f32 %v8088_v61, 0.0  ;;  %v10384_v60 = vadd.f32 %v25928_v18, %v10383_v36  ;;  %v8091_v16 = vadd.f32 %v25928_v18, %v16783_v27  ;;  %v17359_v48 = vpop.f32.mrb[50].mxu1  ;;  %v8082_v21 = vpop.f32.mrb[51].mxu0 }
 0x54c   :  { %v15477_v33 = vpack.c.bf16 %v12301_v32, %v12301_v32  ;;  %13885 = vst.msk [vmem:[%s26756_s3 + $0x438] sm:$0xf] %vm13614_vm3, %v15620_v7  ;;  %v11584_v58 = vmax.f32 %v10392_v62, 0.0  ;;  %v11006_v44 = vmax.f32 %v8080_v42, 0.0  ;;  %v10395_v10 = vadd.f32 %v25928_v18, %v17359_v48  ;;  %v10386_v23 = vpop.f32.mrb[51].mxu1 }
 0x54d   :  { %v15621_v15 = vpack.c.bf16 %v12445_v0, %v12445_v0  ;;  %v27560_v45 = vmax.f32 %v26347_v43, 0.0  ;;  %v11582_v61 = vmax.f32 %v10384_v60, 0.0  ;;  %v11009_v36 = vmax.f32 %v8091_v16, 0.0 }
 0x54e   :  { %13742 = vst.msk [vmem:[%s26756_s3 + $0x1fc] sm:$0xf] %vm13614_vm3, %v15477_v33  ;;  %v8083_v27 = vadd.f32 %v25928_v18, %v8082_v21  ;;  %v27561_v7 = vmax.f32 %v26351_v63, 0.0  ;;  %v27562_v62 = vmax.f32 %v26317_v50, 0.0  ;;  %v11585_v48 = vmax.f32 %v10395_v10, 0.0 }
 0x54f   :  { %v12016_v32 = vmax.f32 %v27560_v45, %v11008_v26  ;;  %13886 = vst.msk [vmem:[%s26756_s3 + $0x43c] sm:$0xf] %vm13614_vm3, %v15621_v15  ;;  %v10387_v33 = vadd.f32 %v25928_v18, %v10386_v23  ;;  %v27563_v26 = vmax.f32 %v26320_v25, 0.0  ;;  %v27564_v16 = vmax.f32 %v26371_v19, 0.0 }
 0x550   :  { %v12160_v0 = vmax.f32 %v27561_v7, %v11584_v58  ;;  %v12014_v42 = vmax.f32 %v27562_v62, %v11006_v44  ;;  %v11007_v45 = vmax.f32 %v8083_v27, 0.0  ;;  %v27565_v58 = vmax.f32 %v26374_v4, 0.0  ;;  %v16786_v10 = vpop.f32.mrb[52].mxu0 }
 0x551   :  { %v12304_v43 = vmax.f32 %v26157_v59, %v12016_v32  ;;  %v12158_v60 = vmax.f32 %v27563_v26, %v11582_v61  ;;  %v12017_v21 = vmax.f32 %v27564_v16, %v11009_v36  ;;  %v11583_v44 = vmax.f32 %v10387_v33, 0.0  ;;  %v17362_v19 = vpop.f32.mrb[52].mxu1  ;;  %v8095_v61 = vpop.f32.mrb[53].mxu0 }
 0x552   :  { %v12448_v15 = vmax.f32 %v26160_v31, %v12160_v0  ;;  %v12302_v63 = vmax.f32 %v26164_v17, %v12014_v42  ;;  %v12161_v50 = vmax.f32 %v27565_v58, %v11585_v48  ;;  %v27566_v25 = vmax.f32 %v26329_v3, 0.0  ;;  %v10399_v0 = vpop.f32.mrb[53].mxu1  ;;  %v16787_v62 = vpop.f32.mrb[54].mxu0 }
 0x553   :  { %v15480_v7 = vpack.c.bf16 %v12304_v43, %v12304_v43  ;;  %v12446_v23 = vmax.f32 %v26169_v47, %v12158_v60  ;;  %v12305_v59 = vmax.f32 %v26171_v38, %v12017_v21  ;;  %v27567_v17 = vmax.f32 %v26332_v51, 0.0  ;;  %v17363_v48 = vpop.f32.mrb[54].mxu1  ;;  %v8098_v33 = vpop.f32.mrb[55].mxu0 }
 0x554   :  { %v12015_v32 = vmax.f32 %v27566_v25, %v11007_v45  ;;  %v15624_v36 = vpack.c.bf16 %v12448_v15, %v12448_v15  ;;  %v15478_v27 = vpack.c.bf16 %v12302_v63, %v12302_v63  ;;  %v12449_v31 = vmax.f32 %v26178_v20, %v12161_v50  ;;  %v10402_v26 = vpop.f32.mrb[55].mxu1 }
 0x555   :  { %v12159_v4 = vmax.f32 %v27567_v17, %v11583_v44  ;;  %13745 = vst.msk [vmem:[%s26756_s3 + $0x208] sm:$0xf] %vm13614_vm3, %v15480_v7  ;;  %v15622_v47 = vpack.c.bf16 %v12446_v23, %v12446_v23  ;;  %v15481_v38 = vpack.c.bf16 %v12305_v59, %v12305_v59  ;;  %v8104_v42 = vadd.f32 %v25928_v18, %v16786_v10 }
 0x556   :  { %v12303_v3 = vmax.f32 %v26182_v55, %v12015_v32  ;;  %13889 = vst.msk [vmem:[%s26756_s3 + $0x448] sm:$0xf] %vm13614_vm3, %v15624_v36  ;;  %13743 = vst.msk [vmem:[%s26756_s3 + $0x200] sm:$0xf] %vm13614_vm3, %v15478_v27  ;;  %v15625_v20 = vpack.c.bf16 %v12449_v31, %v12449_v31  ;;  %v10408_v43 = vadd.f32 %v25928_v18, %v17362_v19  ;;  %v27568_v50 = vmax.f32 %v26383_v41, 0.0 }
 0x557   :  { %v12447_v51 = vmax.f32 %v26191_v30, %v12159_v4  ;;  %v8096_v55 = vadd.f32 %v25928_v18, %v8095_v61  ;;  %13887 = vst.msk [vmem:[%s26756_s3 + $0x440] sm:$0xf] %vm13614_vm3, %v15622_v47  ;;  %13746 = vst.msk [vmem:[%s26756_s3 + $0x20c] sm:$0xf] %vm13614_vm3, %v15481_v38  ;;  %v11012_v16 = vmax.f32 %v8104_v42, 0.0  ;;  %v10400_v21 = vadd.f32 %v25928_v18, %v10399_v0 }
 0x558   :  { %v15479_v60 = vpack.c.bf16 %v12303_v3, %v12303_v3  ;;  %v8107_v30 = vadd.f32 %v25928_v18, %v16787_v62  ;;  %13890 = vst.msk [vmem:[%s26756_s3 + $0x44c] sm:$0xf] %vm13614_vm3, %v15625_v20  ;;  %v11588_v15 = vmax.f32 %v10408_v43, 0.0  ;;  %v10411_v58 = vadd.f32 %v25928_v18, %v17363_v48  ;;  %v26572_v41 = vld [vmem:[%s26755_s2] ss:$0 sm:$0xff] }
 0x559   :  { %v15623_v45 = vpack.c.bf16 %v12447_v51, %v12447_v51  ;;  %v11010_v63 = vmax.f32 %v8096_v55, 0.0  ;;  %v12020_v44 = vmax.f32 %v27568_v50, %v11012_v16  ;;  %v11586_v10 = vmax.f32 %v10400_v21, 0.0 }
 0x55a   :  { %13744 = vst.msk [vmem:[%s26756_s3 + $0x204] sm:$0xf] %vm13614_vm3, %v15479_v60  ;;  %v11013_v7 = vmax.f32 %v8107_v30, 0.0  ;;  %v8099_v23 = vadd.f32 %v25928_v18, %v8098_v33  ;;  %v27569_v59 = vmax.f32 %v26386_v40, 0.0  ;;  %v27570_v32 = vmax.f32 %v26341_v9, 0.0  ;;  %v16790_v18 = vpop.f32.mrb[56].mxu0 }
 0x55b   :  { %13888 = vst.msk [vmem:[%s26756_s3 + $0x444] sm:$0xf] %vm13614_vm3, %v15623_v45  ;;  %v11589_v61 = vmax.f32 %v10411_v58, 0.0  ;;  %v10403_v36 = vadd.f32 %v26572_v41, %v10402_v26  ;;  %v12308_v27 = vmax.f32 %v26212_v12, %v12020_v44  ;;  %v27571_v31 = vmax.f32 %v26344_v49, 0.0  ;;  %v17366_v9 = vpop.f32.mrb[56].mxu1  ;;  %v8111_v62 = vpop.f32.mrb[57].mxu0 }
 0x55c   :  { %v12164_v25 = vmax.f32 %v27569_v59, %v11588_v15  ;;  %v12018_v19 = vmax.f32 %v27570_v32, %v11010_v63  ;;  %v27572_v40 = vmax.f32 %v26395_v13, 0.0  ;;  %v11011_v0 = vmax.f32 %v8099_v23, 0.0  ;;  %v10415_v33 = vpop.f32.mrb[57].mxu1  ;;  %v16791_v20 = vpop.f32.mrb[58].mxu0  ;;  %v27577_v32 = vld [vmem:[#allocation26_spill] sm:$0xff] }
 0x55d   :  { %v12162_v17 = vmax.f32 %v27571_v31, %v11586_v10  ;;  %v27573_v3 = vmax.f32 %v26398_v57, 0.0  ;;  %v11587_v48 = vmax.f32 %v10403_v36, 0.0  ;;  %v15484_v12 = vpack.c.bf16 %v12308_v27, %v12308_v27  ;;  %v17367_v55 = vpop.f32.mrb[58].mxu1  ;;  %v8114_v26 = vpop.f32.mrb[59].mxu0 }
 0x55e   :  { %v12021_v4 = vmax.f32 %v27572_v40, %v11013_v7  ;;  %v12452_v47 = vmax.f32 %v26217_v28, %v12164_v25  ;;  %v12306_v38 = vmax.f32 %v26221_v24, %v12018_v19  ;;  %v27574_v13 = vmax.f32 %v26364_v34, 0.0  ;;  %v10418_v21 = vpop.f32.mrb[59].mxu1  ;;  %v27579_v40 = vld [vmem:[#allocation11_spill] sm:$0xff] }
 0x55f   :  { %v12165_v42 = vmax.f32 %v27573_v3, %v11589_v61  ;;  %v12450_v49 = vmax.f32 %v26229_v39, %v12162_v17  ;;  %v27575_v57 = vmax.f32 %v26367_v29, 0.0  ;;  %13749 = vst.msk [vmem:[%s26756_s3 + $0x218] sm:$0xf] %vm13614_vm3, %v15484_v12  ;;  %v8120_v30 = vadd.f32 %v26572_v41, %v16790_v18  ;;  %v27576_v29 = vld [vmem:[#allocation27_spill] sm:$0xff]  ;;  %v27584_v12 = vld [vmem:[#allocation10_spill] sm:$0xff] }
 0x560   :  { %v12309_v51 = vmax.f32 %v26231_v54, %v12021_v4  ;;  %v12019_v43 = vmax.f32 %v27574_v13, %v11011_v0  ;;  %v15628_v60 = vpack.c.bf16 %v12452_v47, %v12452_v47  ;;  %v15482_v28 = vpack.c.bf16 %v12306_v38, %v12306_v38  ;;  %v16794_v25 = vpop.f32.mrb[60].mxu0 }
 0x561   :  { %v12453_v24 = vmax.f32 %v26234_v11, %v12165_v42  ;;  %v12163_v16 = vmax.f32 %v27575_v57, %v11587_v48  ;;  %v15626_v39 = vpack.c.bf16 %v12450_v49, %v12450_v49  ;;  %v10424_v15 = vadd.f32 %v26572_v41, %v17366_v9  ;;  %v17370_v31 = vpop.f32.mrb[60].mxu1  ;;  %v8127_v17 = vpop.f32.mrb[61].mxu0  ;;  %v27581_v9 = vld [vmem:[#allocation22_spill] sm:$0xff] }
 0x562   :  { %v15485_v54 = vpack.c.bf16 %v12309_v51, %v12309_v51  ;;  %v12307_v34 = vmax.f32 %v26238_v46, %v12019_v43  ;;  %13893 = vst.msk [vmem:[%s26756_s3 + $0x458] sm:$0xf] %vm13614_vm3, %v15628_v60  ;;  %13747 = vst.msk [vmem:[%s26756_s3 + $0x210] sm:$0xf] %vm13614_vm3, %v15482_v28  ;;  %v8112_v63 = vadd.f32 %v26572_v41, %v8111_v62  ;;  %v11016_v58 = vmax.f32 %v8120_v30, 0.0  ;;  %v10431_v42 = vpop.f32.mrb[61].mxu1 }
 0x563   :  { %v15629_v11 = vpack.c.bf16 %v12453_v24, %v12453_v24  ;;  %v12451_v45 = vmax.f32 %v27576_v29, %v12163_v16  ;;  %13891 = vst.msk [vmem:[%s26756_s3 + $0x450] sm:$0xf] %vm13614_vm3, %v15626_v39  ;;  %v10416_v50 = vadd.f32 %v26572_v41, %v10415_v33  ;;  %v8123_v44 = vadd.f32 %v26572_v41, %v16791_v20  ;;  %v16795_v48 = vpop.f32.mrb[62].mxu0  ;;  %v27583_v33 = vld [vmem:[#allocation20_spill] sm:$0xff]  ;;  %v27587_v24 = vld [vmem:[#allocation19_spill] sm:$0xff] }
 0x564   :  { %13750 = vst.msk [vmem:[%s26756_s3 + $0x21c] sm:$0xf] %vm13614_vm3, %v15485_v54  ;;  %v15483_v46 = vpack.c.bf16 %v12307_v34, %v12307_v34  ;;  %v11592_v7 = vmax.f32 %v10424_v15, 0.0  ;;  %v11014_v23 = vmax.f32 %v8112_v63, 0.0  ;;  %v10427_v59 = vadd.f32 %v26572_v41, %v17367_v55  ;;  %v17371_v55 = vpop.f32.mrb[62].mxu1  ;;  %v27586_v60 = vld [vmem:[#allocation8_spill] sm:$0xff] }
 0x565   :  { %13894 = vst.msk [vmem:[%s26756_s3 + $0x45c] sm:$0xf] %vm13614_vm3, %v15629_v11  ;;  %v15627_v10 = vpack.c.bf16 %v12451_v45, %v12451_v45  ;;  %v27578_v19 = vmax.f32 %v27577_v32, 0.0  ;;  %v11590_v36 = vmax.f32 %v10416_v50, 0.0  ;;  %v11017_v18 = vmax.f32 %v8123_v44, 0.0  ;;  %v10434_v39 = vpop.f32.mrb[63].mxu1 }
 0x566   :  { %13748 = vst.msk [vmem:[%s26756_s3 + $0x214] sm:$0xf] %vm13614_vm3, %v15483_v46  ;;  %v8115_v27 = vadd.f32 %v26572_v41, %v8114_v26  ;;  %v27580_v4 = vmax.f32 %v27579_v40, 0.0  ;;  %v27582_v62 = vmax.f32 %v27581_v9, 0.0  ;;  %v11593_v38 = vmax.f32 %v10427_v59, 0.0  ;;  %v8130_v26 = vpop.f32.mrb[63].mxu0 }
 0x567   :  { %v12024_v61 = vmax.f32 %v27578_v19, %v11016_v58  ;;  %13892 = vst.msk [vmem:[%s26756_s3 + $0x454] sm:$0xf] %vm13614_vm3, %v15627_v10  ;;  %v10419_v3 = vadd.f32 %v26572_v41, %v10418_v21  ;;  %v27585_v49 = vmax.f32 %v27584_v12, 0.0  ;;  %v12025_v13 = vmax.f32 %v10999_v1, %v11017_v18  ;;  %v27588_v34 = vld [vmem:[#allocation7_spill] sm:$0xff]  ;;  %v27590_v45 = vld [vmem:[#allocation14_spill] sm:$0xff]  ;;  %v27592_v46 = vld [vmem:[#allocation21_spill] sm:$0xff] }
 0x568   :  { %v12168_v0 = vmax.f32 %v27580_v4, %v11592_v7  ;;  %v12022_v47 = vmax.f32 %v27582_v62, %v11014_v23  ;;  %v11015_v43 = vmax.f32 %v8115_v27, 0.0  ;;  %v12169_v16 = vmax.f32 %v11575_v37, %v11593_v38  ;;  %v27589_v11 = vld [vmem:[#allocation23_spill] sm:$0xff]  ;;  %v27593_v50 = vld [vmem:[#allocation24_spill] sm:$0xff]  ;;  %v27595_v7 = vld [vmem:[#allocation13_spill] sm:$0xff] }
 0x569   :  { %v12312_v20 = vmax.f32 %v27583_v33, %v12024_v61  ;;  %v12166_v51 = vmax.f32 %v27585_v49, %v11590_v36  ;;  %v11591_v21 = vmax.f32 %v10419_v3, 0.0  ;;  %v12313_v29 = vmax.f32 %v27589_v11, %v12025_v13  ;;  %v27596_v19 = vld [vmem:[#allocation4_spill] sm:$0xff]  ;;  %v27598_v33 = vld [vmem:[#allocation17_spill] sm:$0xff] }
 0x56a   :  { %v12456_v28 = vmax.f32 %v27586_v60, %v12168_v0  ;;  %v12310_v57 = vmax.f32 %v27587_v24, %v12022_v47  ;;  %v27591_v6 = vmax.f32 %v27590_v45, 0.0  ;;  %v12457_v58 = vmax.f32 %v27592_v46, %v12169_v16  ;;  %v27603_v24 = vld [vmem:[#allocation6_spill] sm:$0xff]  ;;  %v27604_v16 = vld [vmem:[#allocation9_spill] sm:$0xff] }
 0x56b   :  { %v15488_v54 = vpack.c.bf16 %v12312_v20, %v12312_v20  ;;  %v12454_v30 = vmax.f32 %v27588_v34, %v12166_v51  ;;  %v27594_v44 = vmax.f32 %v27593_v50, 0.0  ;;  %v15489_v37 = vpack.c.bf16 %v12313_v29, %v12313_v29 }
 0x56c   :  { %v12023_v1 = vmax.f32 %v27591_v6, %v11015_v43  ;;  %v15632_v15 = vpack.c.bf16 %v12456_v28, %v12456_v28  ;;  %v15486_v63 = vpack.c.bf16 %v12310_v57, %v12310_v57  ;;  %v8136_v59 = vadd.f32 %v26572_v41, %v16794_v25  ;;  %v27601_v43 = vld [vmem:[#allocation5_spill] sm:$0xff] }
 0x56d   :  { %v12167_v10 = vmax.f32 %v27594_v44, %v11591_v21  ;;  %13753 = vst.msk [vmem:[%s26756_s3 + $0x228] sm:$0xf] %vm13614_vm3, %v15488_v54  ;;  %v15630_v53 = vpack.c.bf16 %v12454_v30, %v12454_v30  ;;  %v15633_v32 = vpack.c.bf16 %v12457_v58, %v12457_v58  ;;  %v10440_v36 = vadd.f32 %v26572_v41, %v17370_v31  ;;  %v27606_v30 = vld [vmem:[#allocation12_spill] sm:$0xff] }
 0x56e   :  { %v12311_v23 = vmax.f32 %v27595_v7, %v12023_v1  ;;  %13897 = vst.msk [vmem:[%s26756_s3 + $0x468] sm:$0xf] %vm13614_vm3, %v15632_v15  ;;  %13751 = vst.msk [vmem:[%s26756_s3 + $0x220] sm:$0xf] %vm13614_vm3, %v15486_v63  ;;  %v8128_v18 = vadd.f32 %v26572_v41, %v8127_v17  ;;  %v11020_v27 = vmax.f32 %v8136_v59, 0.0  ;;  %v10432_v40 = vadd.f32 %v26572_v41, %v10431_v42  ;;  %v27611_v58 = vld [vmem:[#allocation28_spill] sm:$0xff] }
 0x56f   :  { %v12455_v61 = vmax.f32 %v27596_v19, %v12167_v10  ;;  %13895 = vst.msk [vmem:[%s26756_s3 + $0x460] sm:$0xf] %vm13614_vm3, %v15630_v53  ;;  %13754 = vst.msk [vmem:[%s26756_s3 + $0x22c] sm:$0xf] %vm13614_vm3, %v15489_v37  ;;  %v8139_v4 = vadd.f32 %v26572_v41, %v16795_v48  ;;  %v11596_v17 = vmax.f32 %v10440_v36, 0.0  ;;  %v10443_v9 = vadd.f32 %v26572_v41, %v17371_v55 }
 0x570   :  { %v15487_v25 = vpack.c.bf16 %v12311_v23, %v12311_v23  ;;  %13898 = vst.msk [vmem:[%s26756_s3 + $0x46c] sm:$0xf] %vm13614_vm3, %v15633_v32  ;;  %v11018_v0 = vmax.f32 %v8128_v18, 0.0  ;;  %v27597_v62 = vmax.f32 %v26443_v35, 0.0  ;;  %v11594_v38 = vmax.f32 %v10432_v40, 0.0  ;;  %v27600_v35 = vld [vmem:[#allocation25_spill] sm:$0xff] }
 0x571   :  { %v15631_v31 = vpack.c.bf16 %v12455_v61, %v12455_v61  ;;  %v11021_v3 = vmax.f32 %v8139_v4, 0.0  ;;  %v8131_v42 = vadd.f32 %v26572_v41, %v8130_v26  ;;  %v12172_v48 = vmax.f32 %v11578_v14, %v11596_v17 }
 0x572   :  { %13752 = vst.msk [vmem:[%s26756_s3 + $0x224] sm:$0xf] %vm13614_vm3, %v15487_v25  ;;  %v12028_v47 = vmax.f32 %v27597_v62, %v11020_v27  ;;  %v27599_v20 = vmax.f32 %v27598_v33, 0.0  ;;  %v11597_v49 = vmax.f32 %v10443_v9, 0.0  ;;  %v10435_v51 = vadd.f32 %v26572_v41, %v10434_v39  ;;  %v27607_v39 = vld [vmem:[#allocation2_spill] sm:$0xff] }
 0x573   :  { %13896 = vst.msk [vmem:[%s26756_s3 + $0x464] sm:$0xf] %vm13614_vm3, %v15631_v31  ;;  %v27602_v55 = vmax.f32 %v27601_v43, 0.0  ;;  %v12029_v26 = vmax.f32 %v11003_v56, %v11021_v3  ;;  %v11019_v28 = vmax.f32 %v8131_v42, 0.0  ;;  %v12460_v57 = vmax.f32 %v27603_v24, %v12172_v48  ;;  %v27609_v56 = vld [vmem:[#allocation18_spill] sm:$0xff] }
 0x574   :  { %v12026_v12 = vmax.f32 %v27599_v20, %v11018_v0  ;;  %v12316_v13 = vmax.f32 %v27600_v35, %v12028_v47  ;;  %v27605_v14 = vmax.f32 %v26457_v5, 0.0  ;;  %v11595_v54 = vmax.f32 %v10435_v51, 0.0 }
 0x575   :  { %v12170_v60 = vmax.f32 %v27602_v55, %v11594_v38  ;;  %v12317_v11 = vmax.f32 %v27607_v39, %v12029_v26  ;;  %v27608_v29 = vmax.f32 %v26428_v2, 0.0  ;;  %v15636_v6 = vpack.c.bf16 %v12460_v57, %v12460_v57  ;;  %v27612_v2 = vld [vmem:[#allocation3_spill] sm:$0xff] }
 0x576   :  { %v12314_v8 = vmax.f32 %v27604_v16, %v12026_v12  ;;  %v12173_v21 = vmax.f32 %v27605_v14, %v11597_v49  ;;  %v15492_v34 = vpack.c.bf16 %v12316_v13, %v12316_v13  ;;  %v27610_v15 = vmax.f32 %v26433_v52, 0.0 }
 0x577   :  { %v12458_v41 = vmax.f32 %v27606_v30, %v12170_v60  ;;  %v12027_v45 = vmax.f32 %v27608_v29, %v11019_v28  ;;  %v15493_v46 = vpack.c.bf16 %v12317_v11, %v12317_v11  ;;  %13901 = vst.msk [vmem:[%s26756_s3 + $0x478] sm:$0xf] %vm13614_vm3, %v15636_v6 }
 0x578   :  { %v15490_v22 = vpack.c.bf16 %v12314_v8, %v12314_v8  ;;  %v12461_v1 = vmax.f32 %v27609_v56, %v12173_v21  ;;  %v12171_v63 = vmax.f32 %v27610_v15, %v11595_v54  ;;  %13757 = vst.msk [vmem:[%s26756_s3 + $0x238] sm:$0xf] %vm13614_vm3, %v15492_v34 }
 0x579   :  { %v15634_v5 = vpack.c.bf16 %v12458_v41, %v12458_v41  ;;  %v12315_v50 = vmax.f32 %v27611_v58, %v12027_v45  ;;  %13758 = vst.msk [vmem:[%s26756_s3 + $0x23c] sm:$0xf] %vm13614_vm3, %v15493_v46 }
 0x57a   :  { %13755 = vst.msk [vmem:[%s26756_s3 + $0x230] sm:$0xf] %vm13614_vm3, %v15490_v22  ;;  %v15637_v52 = vpack.c.bf16 %v12461_v1, %v12461_v1  ;;  %v12459_v44 = vmax.f32 %v27612_v2, %v12171_v63 }
 0x57b   :  { %13899 = vst.msk [vmem:[%s26756_s3 + $0x470] sm:$0xf] %vm13614_vm3, %v15634_v5  ;;  %v15491_v10 = vpack.c.bf16 %v12315_v50, %v12315_v50 }
 0x57c   :  { %13902 = vst.msk [vmem:[%s26756_s3 + $0x47c] sm:$0xf] %vm13614_vm3, %v15637_v52  ;;  %v15635_v53 = vpack.c.bf16 %v12459_v44, %v12459_v44 }
 0x57d   :  { %13756 = vst.msk [vmem:[%s26756_s3 + $0x234] sm:$0xf] %vm13614_vm3, %v15491_v10 }
 0x57e   :  { %13900 = vst.msk [vmem:[%s26756_s3 + $0x474] sm:$0xf] %vm13614_vm3, %v15635_v53 }

// kernel: infix_classifier_forward.3
= control target key start
LH: loop header
LB: loop body
LE: loop exit
PB: predicated region body
PF: predicated region fallthrough
CT: control target
= control target key end

     0   :  { %vm3299_vm0 = vcmask 261120   ;;  %vm3393_vm1 = vcmask 15360   ;;  %s5533_s1 = inlined_call_operand.vmem [shape: bf16[4608,32], index: 1, kind: input, shape index: {}]   ;;  %s5534_s0 = inlined_call_operand.vmem [shape: bf16[16,4608], index: 0, kind: input, shape index: {}]   ;;  %s5535_s2 = inlined_call_operand.vmem [shape: f32[1,32], index: 2, kind: input, shape index: {}]   ;;  %s5536_s3 = inlined_call_operand.vmem [shape: f32[32,2], index: 3, kind: input, shape index: {}]   ;;  %s5537_s4 = inlined_call_operand.vmem [shape: f32[1,2], index: 4, kind: input, shape index: {}]   ;;  %s5538_s5 = inlined_call_operand.vmem [shape: f32[16,2], index: 5, kind: output, shape index: {}]  }
   0x1   :  { %v4151_v0 = vld [vmem:[%s5533_s1 + $0x40] sm:$0xff]   ;;  %v4155_v4 = vld [vmem:[%s5533_s1 + $0x48] sm:$0xff]   ;;  %v4159_v8 = vld [vmem:[%s5533_s1 + $0x50] sm:$0xff]  }
   0x2   :  { %v4152_v1 = vld [vmem:[%s5533_s1 + $0xc0] sm:$0xff]   ;;  %3730 = vmatprep.subr.bf16.mxu0 %v4151_v0  ;;  %v4156_v5 = vld [vmem:[%s5533_s1 + $0xc8] sm:$0xff]   ;;  %v4160_v9 = vld [vmem:[%s5533_s1 + $0xd0] sm:$0xff]  }
   0x3   :  { %v4153_v2 = vld [vmem:[%s5533_s1] sm:$0xff]   ;;  %3752 = vmatprep.subr.bf16.mxu1 %v4152_v1  ;;  %v4157_v6 = vld [vmem:[%s5533_s1 + $0x8] sm:$0xff]   ;;  %v4161_v10 = vld [vmem:[%s5533_s1 + $0x10] sm:$0xff]  }
   0x4   :  { %v4154_v3 = vld [vmem:[%s5533_s1 + $0x80] sm:$0xff]   ;;  %3731 = vmatpush3.bf16.msra.mxu0 %v4153_v2  ;;  %v4158_v7 = vld [vmem:[%s5533_s1 + $0x88] sm:$0xff]   ;;  %v4162_v11 = vld [vmem:[%s5533_s1 + $0x90] sm:$0xff]  }
   0x5   :  { %3753 = vmatpush3.bf16.msra.mxu1 %v4154_v3  ;;  %3732 = vmatprep.subr.bf16.mxu0 %v4155_v4  ;;  %v4163_v12 = vld [vmem:[%s5533_s1 + $0x58] sm:$0xff]   ;;  %v4167_v16 = vld [vmem:[%s5533_s1 + $0x60] sm:$0xff]   ;;  %v4171_v20 = vld [vmem:[%s5533_s1 + $0x68] sm:$0xff]  }
   0x6   :  { %3754 = vmatprep.subr.bf16.mxu1 %v4156_v5  ;;  %v4164_v13 = vld [vmem:[%s5533_s1 + $0xd8] sm:$0xff]   ;;  %v4168_v17 = vld [vmem:[%s5533_s1 + $0xe0] sm:$0xff]   ;;  %v4172_v21 = vld [vmem:[%s5533_s1 + $0xe8] sm:$0xff]  }
   0x7   :  { %v4165_v14 = vld [vmem:[%s5533_s1 + $0x18] sm:$0xff]   ;;  %v4169_v18 = vld [vmem:[%s5533_s1 + $0x20] sm:$0xff]   ;;  %v4173_v22 = vld [vmem:[%s5533_s1 + $0x28] sm:$0xff]  }
   0x8   :  { %3733 = vmatpush3.bf16.msra.mxu0 %v4157_v6  ;;  %v4166_v15 = vld [vmem:[%s5533_s1 + $0x98] sm:$0xff]   ;;  %v4170_v19 = vld [vmem:[%s5533_s1 + $0xa0] sm:$0xff]   ;;  %v4174_v23 = vld [vmem:[%s5533_s1 + $0xa8] sm:$0xff]  }
   0x9   :  { %3755 = vmatpush3.bf16.msra.mxu1 %v4158_v7  ;;  %3734 = vmatprep.subr.bf16.mxu0 %v4159_v8  ;;  %v4175_v24 = vld [vmem:[%s5533_s1 + $0x70] sm:$0xff]   ;;  %v4179_v28 = vld [vmem:[%s5533_s1 + $0x78] sm:$0xff]   ;;  %v4189_v36 = vld [vmem:[%s5533_s1 + $0x140] sm:$0xff]  }
   0xa   :  { %3756 = vmatprep.subr.bf16.mxu1 %v4160_v9  ;;  %v4176_v25 = vld [vmem:[%s5533_s1 + $0xf0] sm:$0xff]   ;;  %v4180_v29 = vld [vmem:[%s5533_s1 + $0xf8] sm:$0xff]   ;;  %v4190_v37 = vld [vmem:[%s5533_s1 + $0x1c0] sm:$0xff]  }
   0xb   :  { %v4177_v26 = vld [vmem:[%s5533_s1 + $0x30] sm:$0xff]   ;;  %v4181_v30 = vld [vmem:[%s5533_s1 + $0x38] sm:$0xff]   ;;  %v4191_v38 = vld [vmem:[%s5533_s1 + $0x100] sm:$0xff]  }
   0xc   :  { %3735 = vmatpush3.bf16.msra.mxu0 %v4161_v10  ;;  %v4178_v27 = vld [vmem:[%s5533_s1 + $0xb0] sm:$0xff]   ;;  %v4182_v31 = vld [vmem:[%s5533_s1 + $0xb8] sm:$0xff]   ;;  %v4192_v39 = vld [vmem:[%s5533_s1 + $0x180] sm:$0xff]  }
   0xd   :  { %3757 = vmatpush3.bf16.msra.mxu1 %v4162_v11  ;;  %3736 = vmatprep.subr.bf16.mxu0 %v4163_v12  ;;  %v4183_v32 = vld [vmem:[%s5534_s0] ss:$144 sps:$4 sm:$0xff]   ;;  %v4185_v33 = vld [vmem:[%s5534_s0 + $0x4] ss:$144 sps:$4 sm:$0xff]   ;;  %v4186_v34 = vld [vmem:[%s5534_s0 + $0x8] ss:$144 sps:$4 sm:$0xff]  }
   0xe   :  { %3758 = vmatprep.subr.bf16.mxu1 %v4164_v13  ;;  %v4188_v35 = vld [vmem:[%s5534_s0 + $0xc] ss:$144 sps:$4 sm:$0xff]   ;;  %2580 = vmatprep.mubr.bf16.mxu0 %v4185_v33  ;;  %v4197_v44 = vld [vmem:[%s5533_s1 + $0x150] sm:$0xff]   ;;  %v4205_v52 = vld [vmem:[%s5533_s1 + $0x160] sm:$0xff]  }
   0xf   :  { %2621 = vmatprep.mubr.bf16.mxu1 %v4188_v35  ;;  %v4193_v40 = vld [vmem:[%s5533_s1 + $0x148] sm:$0xff]   ;;  %v4198_v45 = vld [vmem:[%s5533_s1 + $0x1d0] sm:$0xff]   ;;  %v4201_v48 = vld [vmem:[%s5533_s1 + $0x158] sm:$0xff]  }
  0x10   :  { %3737 = vmatpush3.bf16.msra.mxu0 %v4165_v14  ;;  %v4194_v41 = vld [vmem:[%s5533_s1 + $0x1c8] sm:$0xff]   ;;  %v4199_v46 = vld [vmem:[%s5533_s1 + $0x110] sm:$0xff]   ;;  %v4202_v49 = vld [vmem:[%s5533_s1 + $0x1d8] sm:$0xff]  }
  0x11   :  { %3759 = vmatpush3.bf16.msra.mxu1 %v4166_v15  ;;  %3738 = vmatprep.subr.bf16.mxu0 %v4167_v16  ;;  %v4195_v42 = vld [vmem:[%s5533_s1 + $0x108] sm:$0xff]   ;;  %v4200_v47 = vld [vmem:[%s5533_s1 + $0x190] sm:$0xff]   ;;  %v4203_v50 = vld [vmem:[%s5533_s1 + $0x118] sm:$0xff]  }
  0x12   :  { %3760 = vmatprep.subr.bf16.mxu1 %v4168_v17  ;;  %v4196_v43 = vld [vmem:[%s5533_s1 + $0x188] sm:$0xff]   ;;  %v4204_v51 = vld [vmem:[%s5533_s1 + $0x198] sm:$0xff]   ;;  %v4206_v53 = vld [vmem:[%s5533_s1 + $0x1e0] sm:$0xff]  }
  0x13   :  { %v4207_v54 = vld [vmem:[%s5533_s1 + $0x120] sm:$0xff]   ;;  %v4209_v56 = vld [vmem:[%s5533_s1 + $0x168] sm:$0xff]   ;;  %v4213_v60 = vld [vmem:[%s5533_s1 + $0x170] sm:$0xff]  }
  0x14   :  { %3739 = vmatpush3.bf16.msra.mxu0 %v4169_v18  ;;  %v4208_v55 = vld [vmem:[%s5533_s1 + $0x1a0] sm:$0xff]   ;;  %v4210_v57 = vld [vmem:[%s5533_s1 + $0x1e8] sm:$0xff]   ;;  %v4214_v61 = vld [vmem:[%s5533_s1 + $0x1f0] sm:$0xff]  }
  0x15   :  { %3761 = vmatpush3.bf16.msra.mxu1 %v4170_v19  ;;  %3740 = vmatprep.subr.bf16.mxu0 %v4171_v20  ;;  %v4211_v58 = vld [vmem:[%s5533_s1 + $0x128] sm:$0xff]   ;;  %v4215_v62 = vld [vmem:[%s5533_s1 + $0x130] sm:$0xff]   ;;  %v4217_v0 = vld [vmem:[%s5533_s1 + $0x178] sm:$0xff]  }
  0x16   :  { %3762 = vmatprep.subr.bf16.mxu1 %v4172_v21  ;;  %v4212_v59 = vld [vmem:[%s5533_s1 + $0x1a8] sm:$0xff]   ;;  %v4216_v63 = vld [vmem:[%s5533_s1 + $0x1b0] sm:$0xff]   ;;  %v4218_v1 = vld [vmem:[%s5533_s1 + $0x1f8] sm:$0xff]  }
  0x17   :  { %v4219_v2 = vld [vmem:[%s5533_s1 + $0x138] sm:$0xff]   ;;  %v4221_v4 = vld [vmem:[%s5534_s0 + $0x10] ss:$144 sps:$4 sm:$0xff]   ;;  %v4223_v5 = vld [vmem:[%s5534_s0 + $0x14] ss:$144 sps:$4 sm:$0xff]  }
  0x18   :  { %3741 = vmatpush3.bf16.msra.mxu0 %v4173_v22  ;;  %v4220_v3 = vld [vmem:[%s5533_s1 + $0x1b8] sm:$0xff]   ;;  %v4227_v8 = vld [vmem:[%s5533_s1 + $0x240] sm:$0xff]   ;;  %v4231_v12 = vld [vmem:[%s5533_s1 + $0x248] sm:$0xff]  }
  0x19   :  { %3763 = vmatpush3.bf16.msra.mxu1 %v4174_v23  ;;  %3742 = vmatprep.subr.bf16.mxu0 %v4175_v24  ;;  %v4224_v6 = vld [vmem:[%s5534_s0 + $0x18] ss:$144 sps:$4 sm:$0xff]   ;;  %v4226_v7 = vld [vmem:[%s5534_s0 + $0x1c] ss:$144 sps:$4 sm:$0xff]   ;;  %v4228_v9 = vld [vmem:[%s5533_s1 + $0x2c0] sm:$0xff]  }
  0x1a   :  { %3764 = vmatprep.subr.bf16.mxu1 %v4176_v25  ;;  %v4229_v10 = vld [vmem:[%s5533_s1 + $0x200] sm:$0xff]   ;;  %v4232_v13 = vld [vmem:[%s5533_s1 + $0x2c8] sm:$0xff]   ;;  %v4235_v16 = vld [vmem:[%s5533_s1 + $0x250] sm:$0xff]  }
  0x1b   :  { %v4230_v11 = vld [vmem:[%s5533_s1 + $0x280] sm:$0xff]   ;;  %v4233_v14 = vld [vmem:[%s5533_s1 + $0x208] sm:$0xff]   ;;  %v4236_v17 = vld [vmem:[%s5533_s1 + $0x2d0] sm:$0xff]  }
  0x1c   :  { %3743 = vmatpush3.bf16.msra.mxu0 %v4177_v26  ;;  %v4234_v15 = vld [vmem:[%s5533_s1 + $0x288] sm:$0xff]   ;;  %v4237_v18 = vld [vmem:[%s5533_s1 + $0x210] sm:$0xff]   ;;  %v4239_v20 = vld [vmem:[%s5533_s1 + $0x258] sm:$0xff]  }
  0x1d   :  { %3765 = vmatpush3.bf16.msra.mxu1 %v4178_v27  ;;  %3744 = vmatprep.subr.bf16.mxu0 %v4179_v28  ;;  %v4238_v19 = vld [vmem:[%s5533_s1 + $0x290] sm:$0xff]   ;;  %v4240_v21 = vld [vmem:[%s5533_s1 + $0x2d8] sm:$0xff]   ;;  %v4243_v24 = vld [vmem:[%s5533_s1 + $0x260] sm:$0xff]  }
  0x1e   :  { %3766 = vmatprep.subr.bf16.mxu1 %v4180_v29  ;;  %v4241_v22 = vld [vmem:[%s5533_s1 + $0x218] sm:$0xff]   ;;  %v4244_v25 = vld [vmem:[%s5533_s1 + $0x2e0] sm:$0xff]   ;;  %v4247_v28 = vld [vmem:[%s5533_s1 + $0x268] sm:$0xff]  }
  0x1f   :  { %v4242_v23 = vld [vmem:[%s5533_s1 + $0x298] sm:$0xff]   ;;  %v4245_v26 = vld [vmem:[%s5533_s1 + $0x220] sm:$0xff]   ;;  %v4248_v29 = vld [vmem:[%s5533_s1 + $0x2e8] sm:$0xff]  }
  0x20   :  { %3745 = vmatpush3.bf16.msra.mxu0 %v4181_v30  ;;  %v4246_v27 = vld [vmem:[%s5533_s1 + $0x2a0] sm:$0xff]   ;;  %v4249_v30 = vld [vmem:[%s5533_s1 + $0x228] sm:$0xff]   ;;  %v4252_v33 = vld [vmem:[%s5533_s1 + $0x2f0] sm:$0xff]  }
  0x21   :  { %3767 = vmatpush3.bf16.msra.mxu1 %v4182_v31  ;;  %3774 = vmatprep.subr.bf16.mxu0 %v4189_v36  ;;  %v4250_v31 = vld [vmem:[%s5533_s1 + $0x2a8] sm:$0xff]   ;;  %v4254_v35 = vld [vmem:[%s5533_s1 + $0x2b0] sm:$0xff]   ;;  %v4255_v36 = vld [vmem:[%s5533_s1 + $0x278] sm:$0xff]  }
  0x22   :  { %3796 = vmatprep.subr.bf16.mxu1 %v4190_v37  ;;  %v4256_v37 = vld [vmem:[%s5533_s1 + $0x2f8] sm:$0xff]  }
  0x23   :  { %2581 = vmatmul.mubr.bf16.vlgmr.msra.gmra.mrb[0].mxu0 %v4183_v32  ;;  %v4251_v32 = vld [vmem:[%s5533_s1 + $0x270] sm:$0xff]  }
  0x24   :  { %2622 = vmatmul.mubr.bf16.vlgmr.msra.gmra.mrb[0].mxu1 %v4186_v34  ;;  %3775 = vmatpush3.bf16.msra.mxu0 %v4191_v38  ;;  %v4253_v34 = vld [vmem:[%s5533_s1 + $0x230] sm:$0xff]   ;;  %v4257_v38 = vld [vmem:[%s5533_s1 + $0x238] sm:$0xff]  }
  0x25   :  { %3797 = vmatpush3.bf16.msra.mxu1 %v4192_v39  ;;  %3776 = vmatprep.subr.bf16.mxu0 %v4193_v40  ;;  %v4258_v39 = vld [vmem:[%s5533_s1 + $0x2b8] sm:$0xff]   ;;  %v4259_v40 = vld [vmem:[%s5534_s0 + $0x20] ss:$144 sps:$4 sm:$0xff]  }
  0x26   :  { %3798 = vmatprep.subr.bf16.mxu1 %v4194_v41  ;;  %2662 = vmatprep.mubr.bf16.mxu0 %v4223_v5  ;;  %v4261_v41 = vld [vmem:[%s5534_s0 + $0x24] ss:$144 sps:$4 sm:$0xff]  }
  0x27   :  { %2703 = vmatprep.mubr.bf16.mxu1 %v4226_v7  ;;  %v4290_v5 = vld [vmem:[%s5533_s1 + $0x3f0] sm:$0xff]  }
  0x28   :  { %3777 = vmatpush3.bf16.msra.mxu0 %v4195_v42  ;;  %v4262_v42 = vld [vmem:[%s5534_s0 + $0x28] ss:$144 sps:$4 sm:$0xff]   ;;  %v4292_v7 = vld [vmem:[%s5533_s1 + $0x3b0] sm:$0xff]  }
  0x29   :  { %3799 = vmatpush3.bf16.msra.mxu1 %v4196_v43  ;;  %3778 = vmatprep.subr.bf16.mxu0 %v4197_v44  ;;  %v4264_v43 = vld [vmem:[%s5534_s0 + $0x2c] ss:$144 sps:$4 sm:$0xff]   ;;  %v4265_v44 = vld [vmem:[%s5533_s1 + $0x340] sm:$0xff]  }
  0x2a   :  { %3800 = vmatprep.subr.bf16.mxu1 %v4198_v45  ;;  %v4266_v45 = vld [vmem:[%s5533_s1 + $0x3c0] sm:$0xff]  }
  0x2c   :  { %3779 = vmatpush3.bf16.msra.mxu0 %v4199_v46  ;;  %v4267_v46 = vld [vmem:[%s5533_s1 + $0x300] sm:$0xff]  }
  0x2d   :  { %3801 = vmatpush3.bf16.msra.mxu1 %v4200_v47  ;;  %3780 = vmatprep.subr.bf16.mxu0 %v4201_v48  ;;  %v4268_v47 = vld [vmem:[%s5533_s1 + $0x380] sm:$0xff]   ;;  %v4269_v48 = vld [vmem:[%s5533_s1 + $0x348] sm:$0xff]  }
  0x2e   :  { %3802 = vmatprep.subr.bf16.mxu1 %v4202_v49  ;;  %v4270_v49 = vld [vmem:[%s5533_s1 + $0x3c8] sm:$0xff]  }
  0x30   :  { %3781 = vmatpush3.bf16.msra.mxu0 %v4203_v50  ;;  %v4271_v50 = vld [vmem:[%s5533_s1 + $0x308] sm:$0xff]  }
  0x31   :  { %3803 = vmatpush3.bf16.msra.mxu1 %v4204_v51  ;;  %3782 = vmatprep.subr.bf16.mxu0 %v4205_v52  ;;  %v4272_v51 = vld [vmem:[%s5533_s1 + $0x388] sm:$0xff]   ;;  %v4273_v52 = vld [vmem:[%s5533_s1 + $0x350] sm:$0xff]  }
  0x32   :  { %3804 = vmatprep.subr.bf16.mxu1 %v4206_v53  ;;  %v4274_v53 = vld [vmem:[%s5533_s1 + $0x3d0] sm:$0xff]  }
  0x34   :  { %3783 = vmatpush3.bf16.msra.mxu0 %v4207_v54  ;;  %v4275_v54 = vld [vmem:[%s5533_s1 + $0x310] sm:$0xff]  }
  0x35   :  { %3805 = vmatpush3.bf16.msra.mxu1 %v4208_v55  ;;  %3784 = vmatprep.subr.bf16.mxu0 %v4209_v56  ;;  %v4276_v55 = vld [vmem:[%s5533_s1 + $0x390] sm:$0xff]   ;;  %v4277_v56 = vld [vmem:[%s5533_s1 + $0x358] sm:$0xff]  }
  0x36   :  { %3806 = vmatprep.subr.bf16.mxu1 %v4210_v57  ;;  %v4278_v57 = vld [vmem:[%s5533_s1 + $0x3d8] sm:$0xff]  }
  0x38   :  { %3785 = vmatpush3.bf16.msra.mxu0 %v4211_v58  ;;  %v4279_v58 = vld [vmem:[%s5533_s1 + $0x318] sm:$0xff]  }
  0x39   :  { %3807 = vmatpush3.bf16.msra.mxu1 %v4212_v59  ;;  %3786 = vmatprep.subr.bf16.mxu0 %v4213_v60  ;;  %v4280_v59 = vld [vmem:[%s5533_s1 + $0x398] sm:$0xff]   ;;  %v4281_v60 = vld [vmem:[%s5533_s1 + $0x360] sm:$0xff]  }
  0x3a   :  { %3808 = vmatprep.subr.bf16.mxu1 %v4214_v61  ;;  %v4282_v61 = vld [vmem:[%s5533_s1 + $0x3e0] sm:$0xff]  }
  0x3c   :  { %3787 = vmatpush3.bf16.msra.mxu0 %v4215_v62  ;;  %v4283_v62 = vld [vmem:[%s5533_s1 + $0x320] sm:$0xff]  }
  0x3d   :  { %3809 = vmatpush3.bf16.msra.mxu1 %v4216_v63  ;;  %3788 = vmatprep.subr.bf16.mxu0 %v4217_v0  ;;  %v4284_v63 = vld [vmem:[%s5533_s1 + $0x3a0] sm:$0xff]   ;;  %v4285_v0 = vld [vmem:[%s5533_s1 + $0x368] sm:$0xff]  }
  0x3e   :  { %3810 = vmatprep.subr.bf16.mxu1 %v4218_v1  ;;  %v4286_v1 = vld [vmem:[%s5533_s1 + $0x3e8] sm:$0xff]  }
  0x40   :  { %3789 = vmatpush3.bf16.msra.mxu0 %v4219_v2  ;;  %v4287_v2 = vld [vmem:[%s5533_s1 + $0x328] sm:$0xff]  }
  0x41   :  { %3811 = vmatpush3.bf16.msra.mxu1 %v4220_v3  ;;  %3818 = vmatprep.subr.bf16.mxu0 %v4227_v8  ;;  %v4288_v3 = vld [vmem:[%s5533_s1 + $0x3a8] sm:$0xff]   ;;  %v4293_v8 = vld [vmem:[%s5533_s1 + $0x378] sm:$0xff]  }
  0x42   :  { %3840 = vmatprep.subr.bf16.mxu1 %v4228_v9  ;;  %v4294_v9 = vld [vmem:[%s5533_s1 + $0x3f8] sm:$0xff]  }
  0x43   :  { %2663 = vmatmul.mubr.bf16.vlgmr.msra.gmra.mrb[4].mxu0 %v4221_v4  ;;  %v4289_v4 = vld [vmem:[%s5533_s1 + $0x370] sm:$0xff]  }
  0x44   :  { %2704 = vmatmul.mubr.bf16.vlgmr.msra.gmra.mrb[4].mxu1 %v4224_v6  ;;  %3819 = vmatpush3.bf16.msra.mxu0 %v4229_v10  ;;  %v4291_v6 = vld [vmem:[%s5533_s1 + $0x330] sm:$0xff]   ;;  %v4295_v10 = vld [vmem:[%s5533_s1 + $0x338] sm:$0xff]  }
  0x45   :  { %3841 = vmatpush3.bf16.msra.mxu1 %v4230_v11  ;;  %3820 = vmatprep.subr.bf16.mxu0 %v4231_v12  ;;  %v4296_v11 = vld [vmem:[%s5533_s1 + $0x3b8] sm:$0xff]   ;;  %v4297_v12 = vld [vmem:[%s5534_s0 + $0x30] ss:$144 sps:$4 sm:$0xff]  }
  0x46   :  { %3842 = vmatprep.subr.bf16.mxu1 %v4232_v13  ;;  %2744 = vmatprep.mubr.bf16.mxu0 %v4261_v41  ;;  %v4299_v13 = vld [vmem:[%s5534_s0 + $0x34] ss:$144 sps:$4 sm:$0xff]  }
  0x47   :  { %2785 = vmatprep.mubr.bf16.mxu1 %v4264_v43  ;;  %v4328_v41 = vld [vmem:[%s5533_s1 + $0x4f0] sm:$0xff]  }
  0x48   :  { %3821 = vmatpush3.bf16.msra.mxu0 %v4233_v14  ;;  %v4300_v14 = vld [vmem:[%s5534_s0 + $0x38] ss:$144 sps:$4 sm:$0xff]   ;;  %v4330_v43 = vld [vmem:[%s5533_s1 + $0x4b0] sm:$0xff]  }
  0x49   :  { %3843 = vmatpush3.bf16.msra.mxu1 %v4234_v15  ;;  %3822 = vmatprep.subr.bf16.mxu0 %v4235_v16  ;;  %v4302_v15 = vld [vmem:[%s5534_s0 + $0x3c] ss:$144 sps:$4 sm:$0xff]   ;;  %v4303_v16 = vld [vmem:[%s5533_s1 + $0x440] sm:$0xff]  }
  0x4a   :  { %3844 = vmatprep.subr.bf16.mxu1 %v4236_v17  ;;  %v4304_v17 = vld [vmem:[%s5533_s1 + $0x4c0] sm:$0xff]  }
  0x4c   :  { %3823 = vmatpush3.bf16.msra.mxu0 %v4237_v18  ;;  %v4305_v18 = vld [vmem:[%s5533_s1 + $0x400] sm:$0xff]  }
  0x4d   :  { %3845 = vmatpush3.bf16.msra.mxu1 %v4238_v19  ;;  %3824 = vmatprep.subr.bf16.mxu0 %v4239_v20  ;;  %v4306_v19 = vld [vmem:[%s5533_s1 + $0x480] sm:$0xff]   ;;  %v4307_v20 = vld [vmem:[%s5533_s1 + $0x448] sm:$0xff]  }
  0x4e   :  { %3846 = vmatprep.subr.bf16.mxu1 %v4240_v21  ;;  %v4308_v21 = vld [vmem:[%s5533_s1 + $0x4c8] sm:$0xff]  }
  0x50   :  { %3825 = vmatpush3.bf16.msra.mxu0 %v4241_v22  ;;  %v4309_v22 = vld [vmem:[%s5533_s1 + $0x408] sm:$0xff]  }
  0x51   :  { %3847 = vmatpush3.bf16.msra.mxu1 %v4242_v23  ;;  %3826 = vmatprep.subr.bf16.mxu0 %v4243_v24  ;;  %v4310_v23 = vld [vmem:[%s5533_s1 + $0x488] sm:$0xff]   ;;  %v4311_v24 = vld [vmem:[%s5533_s1 + $0x450] sm:$0xff]  }
  0x52   :  { %3848 = vmatprep.subr.bf16.mxu1 %v4244_v25  ;;  %v4312_v25 = vld [vmem:[%s5533_s1 + $0x4d0] sm:$0xff]  }
  0x54   :  { %3827 = vmatpush3.bf16.msra.mxu0 %v4245_v26  ;;  %v4313_v26 = vld [vmem:[%s5533_s1 + $0x410] sm:$0xff]  }
  0x55   :  { %3849 = vmatpush3.bf16.msra.mxu1 %v4246_v27  ;;  %3828 = vmatprep.subr.bf16.mxu0 %v4247_v28  ;;  %v4314_v27 = vld [vmem:[%s5533_s1 + $0x490] sm:$0xff]   ;;  %v4315_v28 = vld [vmem:[%s5533_s1 + $0x458] sm:$0xff]  }
  0x56   :  { %3850 = vmatprep.subr.bf16.mxu1 %v4248_v29  ;;  %v4316_v29 = vld [vmem:[%s5533_s1 + $0x4d8] sm:$0xff]  }
  0x58   :  { %3829 = vmatpush3.bf16.msra.mxu0 %v4249_v30  ;;  %v4317_v30 = vld [vmem:[%s5533_s1 + $0x418] sm:$0xff]  }
  0x59   :  { %3851 = vmatpush3.bf16.msra.mxu1 %v4250_v31  ;;  %3830 = vmatprep.subr.bf16.mxu0 %v4251_v32  ;;  %v4318_v31 = vld [vmem:[%s5533_s1 + $0x498] sm:$0xff]   ;;  %v4319_v32 = vld [vmem:[%s5533_s1 + $0x460] sm:$0xff]  }
  0x5a   :  { %3852 = vmatprep.subr.bf16.mxu1 %v4252_v33  ;;  %v4320_v33 = vld [vmem:[%s5533_s1 + $0x4e0] sm:$0xff]  }
  0x5c   :  { %3831 = vmatpush3.bf16.msra.mxu0 %v4253_v34  ;;  %v4321_v34 = vld [vmem:[%s5533_s1 + $0x420] sm:$0xff]  }
  0x5d   :  { %3853 = vmatpush3.bf16.msra.mxu1 %v4254_v35  ;;  %3832 = vmatprep.subr.bf16.mxu0 %v4255_v36  ;;  %v4322_v35 = vld [vmem:[%s5533_s1 + $0x4a0] sm:$0xff]   ;;  %v4323_v36 = vld [vmem:[%s5533_s1 + $0x468] sm:$0xff]  }
  0x5e   :  { %3854 = vmatprep.subr.bf16.mxu1 %v4256_v37  ;;  %v4324_v37 = vld [vmem:[%s5533_s1 + $0x4e8] sm:$0xff]  }
  0x60   :  { %3833 = vmatpush3.bf16.msra.mxu0 %v4257_v38  ;;  %v4325_v38 = vld [vmem:[%s5533_s1 + $0x428] sm:$0xff]  }
  0x61   :  { %3855 = vmatpush3.bf16.msra.mxu1 %v4258_v39  ;;  %3862 = vmatprep.subr.bf16.mxu0 %v4265_v44  ;;  %v4326_v39 = vld [vmem:[%s5533_s1 + $0x4a8] sm:$0xff]   ;;  %v4331_v44 = vld [vmem:[%s5533_s1 + $0x478] sm:$0xff]  }
  0x62   :  { %3884 = vmatprep.subr.bf16.mxu1 %v4266_v45  ;;  %v4332_v45 = vld [vmem:[%s5533_s1 + $0x4f8] sm:$0xff]  }
  0x63   :  { %2745 = vmatmul.mubr.bf16.vlgmr.msra.gmra.mrb[8].mxu0 %v4259_v40  ;;  %v4327_v40 = vld [vmem:[%s5533_s1 + $0x470] sm:$0xff]  }
  0x64   :  { %2786 = vmatmul.mubr.bf16.vlgmr.msra.gmra.mrb[8].mxu1 %v4262_v42  ;;  %3863 = vmatpush3.bf16.msra.mxu0 %v4267_v46  ;;  %v4329_v42 = vld [vmem:[%s5533_s1 + $0x430] sm:$0xff]   ;;  %v4333_v46 = vld [vmem:[%s5533_s1 + $0x438] sm:$0xff]  }
  0x65   :  { %3885 = vmatpush3.bf16.msra.mxu1 %v4268_v47  ;;  %3864 = vmatprep.subr.bf16.mxu0 %v4269_v48  ;;  %v4334_v47 = vld [vmem:[%s5533_s1 + $0x4b8] sm:$0xff]   ;;  %v4335_v48 = vld [vmem:[%s5534_s0 + $0x40] ss:$144 sps:$4 sm:$0xff]  }
  0x66   :  { %3886 = vmatprep.subr.bf16.mxu1 %v4270_v49  ;;  %2826 = vmatprep.mubr.bf16.mxu0 %v4299_v13  ;;  %v4337_v49 = vld [vmem:[%s5534_s0 + $0x44] ss:$144 sps:$4 sm:$0xff]  }
  0x67   :  { %2867 = vmatprep.mubr.bf16.mxu1 %v4302_v15  ;;  %v4366_v13 = vld [vmem:[%s5533_s1 + $0x5f0] sm:$0xff]  }
  0x68   :  { %3865 = vmatpush3.bf16.msra.mxu0 %v4271_v50  ;;  %v4338_v50 = vld [vmem:[%s5534_s0 + $0x48] ss:$144 sps:$4 sm:$0xff]   ;;  %v4368_v15 = vld [vmem:[%s5533_s1 + $0x5b0] sm:$0xff]  }
  0x69   :  { %3887 = vmatpush3.bf16.msra.mxu1 %v4272_v51  ;;  %3866 = vmatprep.subr.bf16.mxu0 %v4273_v52  ;;  %v4340_v51 = vld [vmem:[%s5534_s0 + $0x4c] ss:$144 sps:$4 sm:$0xff]   ;;  %v4341_v52 = vld [vmem:[%s5533_s1 + $0x540] sm:$0xff]  }
  0x6a   :  { %3888 = vmatprep.subr.bf16.mxu1 %v4274_v53  ;;  %v4342_v53 = vld [vmem:[%s5533_s1 + $0x5c0] sm:$0xff]  }
  0x6c   :  { %3867 = vmatpush3.bf16.msra.mxu0 %v4275_v54  ;;  %v4343_v54 = vld [vmem:[%s5533_s1 + $0x500] sm:$0xff]  }
  0x6d   :  { %3889 = vmatpush3.bf16.msra.mxu1 %v4276_v55  ;;  %3868 = vmatprep.subr.bf16.mxu0 %v4277_v56  ;;  %v4344_v55 = vld [vmem:[%s5533_s1 + $0x580] sm:$0xff]   ;;  %v4345_v56 = vld [vmem:[%s5533_s1 + $0x548] sm:$0xff]  }
  0x6e   :  { %3890 = vmatprep.subr.bf16.mxu1 %v4278_v57  ;;  %v4346_v57 = vld [vmem:[%s5533_s1 + $0x5c8] sm:$0xff]  }
  0x70   :  { %3869 = vmatpush3.bf16.msra.mxu0 %v4279_v58  ;;  %v4347_v58 = vld [vmem:[%s5533_s1 + $0x508] sm:$0xff]  }
  0x71   :  { %3891 = vmatpush3.bf16.msra.mxu1 %v4280_v59  ;;  %3870 = vmatprep.subr.bf16.mxu0 %v4281_v60  ;;  %v4348_v59 = vld [vmem:[%s5533_s1 + $0x588] sm:$0xff]   ;;  %v4349_v60 = vld [vmem:[%s5533_s1 + $0x550] sm:$0xff]  }
  0x72   :  { %3892 = vmatprep.subr.bf16.mxu1 %v4282_v61  ;;  %v4350_v61 = vld [vmem:[%s5533_s1 + $0x5d0] sm:$0xff]  }
  0x74   :  { %3871 = vmatpush3.bf16.msra.mxu0 %v4283_v62  ;;  %v4351_v62 = vld [vmem:[%s5533_s1 + $0x510] sm:$0xff]  }
  0x75   :  { %3893 = vmatpush3.bf16.msra.mxu1 %v4284_v63  ;;  %3872 = vmatprep.subr.bf16.mxu0 %v4285_v0  ;;  %v4352_v63 = vld [vmem:[%s5533_s1 + $0x590] sm:$0xff]   ;;  %v4353_v0 = vld [vmem:[%s5533_s1 + $0x558] sm:$0xff]  }
  0x76   :  { %3894 = vmatprep.subr.bf16.mxu1 %v4286_v1  ;;  %v4354_v1 = vld [vmem:[%s5533_s1 + $0x5d8] sm:$0xff]  }
  0x78   :  { %3873 = vmatpush3.bf16.msra.mxu0 %v4287_v2  ;;  %v4355_v2 = vld [vmem:[%s5533_s1 + $0x518] sm:$0xff]  }
  0x79   :  { %3895 = vmatpush3.bf16.msra.mxu1 %v4288_v3  ;;  %3874 = vmatprep.subr.bf16.mxu0 %v4289_v4  ;;  %v4356_v3 = vld [vmem:[%s5533_s1 + $0x598] sm:$0xff]   ;;  %v4357_v4 = vld [vmem:[%s5533_s1 + $0x560] sm:$0xff]  }
  0x7a   :  { %3896 = vmatprep.subr.bf16.mxu1 %v4290_v5  ;;  %v4358_v5 = vld [vmem:[%s5533_s1 + $0x5e0] sm:$0xff]  }
  0x7c   :  { %3875 = vmatpush3.bf16.msra.mxu0 %v4291_v6  ;;  %v4359_v6 = vld [vmem:[%s5533_s1 + $0x520] sm:$0xff]  }
  0x7d   :  { %3897 = vmatpush3.bf16.msra.mxu1 %v4292_v7  ;;  %3876 = vmatprep.subr.bf16.mxu0 %v4293_v8  ;;  %v4360_v7 = vld [vmem:[%s5533_s1 + $0x5a0] sm:$0xff]   ;;  %v4361_v8 = vld [vmem:[%s5533_s1 + $0x568] sm:$0xff]  }
  0x7e   :  { %3898 = vmatprep.subr.bf16.mxu1 %v4294_v9  ;;  %v4362_v9 = vld [vmem:[%s5533_s1 + $0x5e8] sm:$0xff]  }
  0x80   :  { %3877 = vmatpush3.bf16.msra.mxu0 %v4295_v10  ;;  %v4363_v10 = vld [vmem:[%s5533_s1 + $0x528] sm:$0xff]  }
  0x81   :  { %3899 = vmatpush3.bf16.msra.mxu1 %v4296_v11  ;;  %3906 = vmatprep.subr.bf16.mxu0 %v4303_v16  ;;  %v4364_v11 = vld [vmem:[%s5533_s1 + $0x5a8] sm:$0xff]   ;;  %v4369_v16 = vld [vmem:[%s5533_s1 + $0x578] sm:$0xff]  }
  0x82   :  { %3928 = vmatprep.subr.bf16.mxu1 %v4304_v17  ;;  %v4370_v17 = vld [vmem:[%s5533_s1 + $0x5f8] sm:$0xff]  }
  0x83   :  { %2827 = vmatmul.mubr.bf16.vlgmr.msra.gmra.mrb[12].mxu0 %v4297_v12  ;;  %v4365_v12 = vld [vmem:[%s5533_s1 + $0x570] sm:$0xff]  }
  0x84   :  { %2868 = vmatmul.mubr.bf16.vlgmr.msra.gmra.mrb[12].mxu1 %v4300_v14  ;;  %3907 = vmatpush3.bf16.msra.mxu0 %v4305_v18  ;;  %v4367_v14 = vld [vmem:[%s5533_s1 + $0x530] sm:$0xff]   ;;  %v4371_v18 = vld [vmem:[%s5533_s1 + $0x538] sm:$0xff]  }
  0x85   :  { %3929 = vmatpush3.bf16.msra.mxu1 %v4306_v19  ;;  %3908 = vmatprep.subr.bf16.mxu0 %v4307_v20  ;;  %v4372_v19 = vld [vmem:[%s5533_s1 + $0x5b8] sm:$0xff]   ;;  %v4373_v20 = vld [vmem:[%s5534_s0 + $0x50] ss:$144 sps:$4 sm:$0xff]  }
  0x86   :  { %3930 = vmatprep.subr.bf16.mxu1 %v4308_v21  ;;  %2908 = vmatprep.mubr.bf16.mxu0 %v4337_v49  ;;  %v4375_v21 = vld [vmem:[%s5534_s0 + $0x54] ss:$144 sps:$4 sm:$0xff]  }
  0x87   :  { %2949 = vmatprep.mubr.bf16.mxu1 %v4340_v51  ;;  %v4404_v49 = vld [vmem:[%s5533_s1 + $0x6f0] sm:$0xff]  }
  0x88   :  { %3909 = vmatpush3.bf16.msra.mxu0 %v4309_v22  ;;  %v4376_v22 = vld [vmem:[%s5534_s0 + $0x58] ss:$144 sps:$4 sm:$0xff]   ;;  %v4406_v51 = vld [vmem:[%s5533_s1 + $0x6b0] sm:$0xff]  }
  0x89   :  { %3931 = vmatpush3.bf16.msra.mxu1 %v4310_v23  ;;  %3910 = vmatprep.subr.bf16.mxu0 %v4311_v24  ;;  %v4378_v23 = vld [vmem:[%s5534_s0 + $0x5c] ss:$144 sps:$4 sm:$0xff]   ;;  %v4379_v24 = vld [vmem:[%s5533_s1 + $0x640] sm:$0xff]  }
  0x8a   :  { %3932 = vmatprep.subr.bf16.mxu1 %v4312_v25  ;;  %v4380_v25 = vld [vmem:[%s5533_s1 + $0x6c0] sm:$0xff]  }
  0x8c   :  { %3911 = vmatpush3.bf16.msra.mxu0 %v4313_v26  ;;  %v4381_v26 = vld [vmem:[%s5533_s1 + $0x600] sm:$0xff]  }
  0x8d   :  { %3933 = vmatpush3.bf16.msra.mxu1 %v4314_v27  ;;  %3912 = vmatprep.subr.bf16.mxu0 %v4315_v28  ;;  %v4382_v27 = vld [vmem:[%s5533_s1 + $0x680] sm:$0xff]   ;;  %v4383_v28 = vld [vmem:[%s5533_s1 + $0x648] sm:$0xff]  }
  0x8e   :  { %3934 = vmatprep.subr.bf16.mxu1 %v4316_v29  ;;  %v4384_v29 = vld [vmem:[%s5533_s1 + $0x6c8] sm:$0xff]  }
  0x90   :  { %3913 = vmatpush3.bf16.msra.mxu0 %v4317_v30  ;;  %v4385_v30 = vld [vmem:[%s5533_s1 + $0x608] sm:$0xff]  }
  0x91   :  { %3935 = vmatpush3.bf16.msra.mxu1 %v4318_v31  ;;  %3914 = vmatprep.subr.bf16.mxu0 %v4319_v32  ;;  %v4386_v31 = vld [vmem:[%s5533_s1 + $0x688] sm:$0xff]   ;;  %v4387_v32 = vld [vmem:[%s5533_s1 + $0x650] sm:$0xff]  }
  0x92   :  { %3936 = vmatprep.subr.bf16.mxu1 %v4320_v33  ;;  %v4388_v33 = vld [vmem:[%s5533_s1 + $0x6d0] sm:$0xff]  }
  0x94   :  { %3915 = vmatpush3.bf16.msra.mxu0 %v4321_v34  ;;  %v4389_v34 = vld [vmem:[%s5533_s1 + $0x610] sm:$0xff]  }
  0x95   :  { %3937 = vmatpush3.bf16.msra.mxu1 %v4322_v35  ;;  %3916 = vmatprep.subr.bf16.mxu0 %v4323_v36  ;;  %v4390_v35 = vld [vmem:[%s5533_s1 + $0x690] sm:$0xff]   ;;  %v4391_v36 = vld [vmem:[%s5533_s1 + $0x658] sm:$0xff]  }
  0x96   :  { %3938 = vmatprep.subr.bf16.mxu1 %v4324_v37  ;;  %v4392_v37 = vld [vmem:[%s5533_s1 + $0x6d8] sm:$0xff]  }
  0x98   :  { %3917 = vmatpush3.bf16.msra.mxu0 %v4325_v38  ;;  %v4393_v38 = vld [vmem:[%s5533_s1 + $0x618] sm:$0xff]  }
  0x99   :  { %3939 = vmatpush3.bf16.msra.mxu1 %v4326_v39  ;;  %3918 = vmatprep.subr.bf16.mxu0 %v4327_v40  ;;  %v4394_v39 = vld [vmem:[%s5533_s1 + $0x698] sm:$0xff]   ;;  %v4395_v40 = vld [vmem:[%s5533_s1 + $0x660] sm:$0xff]  }
  0x9a   :  { %3940 = vmatprep.subr.bf16.mxu1 %v4328_v41  ;;  %v4396_v41 = vld [vmem:[%s5533_s1 + $0x6e0] sm:$0xff]  }
  0x9c   :  { %3919 = vmatpush3.bf16.msra.mxu0 %v4329_v42  ;;  %v4397_v42 = vld [vmem:[%s5533_s1 + $0x620] sm:$0xff]  }
  0x9d   :  { %3941 = vmatpush3.bf16.msra.mxu1 %v4330_v43  ;;  %3920 = vmatprep.subr.bf16.mxu0 %v4331_v44  ;;  %v4398_v43 = vld [vmem:[%s5533_s1 + $0x6a0] sm:$0xff]   ;;  %v4399_v44 = vld [vmem:[%s5533_s1 + $0x668] sm:$0xff]  }
  0x9e   :  { %3942 = vmatprep.subr.bf16.mxu1 %v4332_v45  ;;  %v4400_v45 = vld [vmem:[%s5533_s1 + $0x6e8] sm:$0xff]  }
  0xa0   :  { %3921 = vmatpush3.bf16.msra.mxu0 %v4333_v46  ;;  %v4401_v46 = vld [vmem:[%s5533_s1 + $0x628] sm:$0xff]  }
  0xa1   :  { %3943 = vmatpush3.bf16.msra.mxu1 %v4334_v47  ;;  %3950 = vmatprep.subr.bf16.mxu0 %v4341_v52  ;;  %v4402_v47 = vld [vmem:[%s5533_s1 + $0x6a8] sm:$0xff]   ;;  %v4407_v52 = vld [vmem:[%s5533_s1 + $0x678] sm:$0xff]  }
  0xa2   :  { %3972 = vmatprep.subr.bf16.mxu1 %v4342_v53  ;;  %v4408_v53 = vld [vmem:[%s5533_s1 + $0x6f8] sm:$0xff]  }
  0xa3   :  { %2909 = vmatmul.mubr.bf16.vlgmr.msra.gmra.mrb[16].mxu0 %v4335_v48  ;;  %v4403_v48 = vld [vmem:[%s5533_s1 + $0x670] sm:$0xff]  }
  0xa4   :  { %2950 = vmatmul.mubr.bf16.vlgmr.msra.gmra.mrb[16].mxu1 %v4338_v50  ;;  %3951 = vmatpush3.bf16.msra.mxu0 %v4343_v54  ;;  %v4405_v50 = vld [vmem:[%s5533_s1 + $0x630] sm:$0xff]   ;;  %v4409_v54 = vld [vmem:[%s5533_s1 + $0x638] sm:$0xff]  }
  0xa5   :  { %3973 = vmatpush3.bf16.msra.mxu1 %v4344_v55  ;;  %3952 = vmatprep.subr.bf16.mxu0 %v4345_v56  ;;  %v4410_v55 = vld [vmem:[%s5533_s1 + $0x6b8] sm:$0xff]   ;;  %v4411_v56 = vld [vmem:[%s5534_s0 + $0x60] ss:$144 sps:$4 sm:$0xff]  }
  0xa6   :  { %3974 = vmatprep.subr.bf16.mxu1 %v4346_v57  ;;  %2990 = vmatprep.mubr.bf16.mxu0 %v4375_v21  ;;  %v4413_v57 = vld [vmem:[%s5534_s0 + $0x64] ss:$144 sps:$4 sm:$0xff]   ;;  %v4430_v21 = vld [vmem:[%s5533_s1 + $0x7d8] sm:$0xff]  }
  0xa7   :  { %3031 = vmatprep.mubr.bf16.mxu1 %v4378_v23  ;;  %v4432_v23 = vld [vmem:[%s5533_s1 + $0x798] sm:$0xff]  }
  0xa8   :  { %3953 = vmatpush3.bf16.msra.mxu0 %v4347_v58  ;;  %v4414_v58 = vld [vmem:[%s5534_s0 + $0x68] ss:$144 sps:$4 sm:$0xff]  }
  0xa9   :  { %3975 = vmatpush3.bf16.msra.mxu1 %v4348_v59  ;;  %3954 = vmatprep.subr.bf16.mxu0 %v4349_v60  ;;  %v4416_v59 = vld [vmem:[%s5534_s0 + $0x6c] ss:$144 sps:$4 sm:$0xff]   ;;  %v4417_v60 = vld [vmem:[%s5533_s1 + $0x740] sm:$0xff]  }
  0xaa   :  { %3976 = vmatprep.subr.bf16.mxu1 %v4350_v61  ;;  %v4418_v61 = vld [vmem:[%s5533_s1 + $0x7c0] sm:$0xff]  }
  0xac   :  { %3955 = vmatpush3.bf16.msra.mxu0 %v4351_v62  ;;  %v4419_v62 = vld [vmem:[%s5533_s1 + $0x700] sm:$0xff]  }
  0xad   :  { %3977 = vmatpush3.bf16.msra.mxu1 %v4352_v63  ;;  %3956 = vmatprep.subr.bf16.mxu0 %v4353_v0  ;;  %v4420_v63 = vld [vmem:[%s5533_s1 + $0x780] sm:$0xff]   ;;  %v4421_v0 = vld [vmem:[%s5533_s1 + $0x748] sm:$0xff]  }
  0xae   :  { %3978 = vmatprep.subr.bf16.mxu1 %v4354_v1 }
  0xb0   :  { %3957 = vmatpush3.bf16.msra.mxu0 %v4355_v2  ;;  %v4422_v2 = vld [vmem:[%s5533_s1 + $0x7c8] sm:$0xff]  }
  0xb1   :  { %3979 = vmatpush3.bf16.msra.mxu1 %v4356_v3  ;;  %3958 = vmatprep.subr.bf16.mxu0 %v4357_v4  ;;  %v4423_v4 = vld [vmem:[%s5533_s1 + $0x708] sm:$0xff]  }
  0xb2   :  { %3980 = vmatprep.subr.bf16.mxu1 %v4358_v5 }
  0xb4   :  { %3959 = vmatpush3.bf16.msra.mxu0 %v4359_v6  ;;  %v4424_v6 = vld [vmem:[%s5533_s1 + $0x788] sm:$0xff]  }
  0xb5   :  { %3981 = vmatpush3.bf16.msra.mxu1 %v4360_v7  ;;  %3960 = vmatprep.subr.bf16.mxu0 %v4361_v8 }
  0xb6   :  { %3982 = vmatprep.subr.bf16.mxu1 %v4362_v9  ;;  %v4425_v9 = vld [vmem:[%s5533_s1 + $0x750] sm:$0xff]  }
  0xb8   :  { %3961 = vmatpush3.bf16.msra.mxu0 %v4363_v10 }
  0xb9   :  { %3983 = vmatpush3.bf16.msra.mxu1 %v4364_v11  ;;  %3962 = vmatprep.subr.bf16.mxu0 %v4365_v12  ;;  %v4426_v12 = vld [vmem:[%s5533_s1 + $0x7d0] sm:$0xff]  }
  0xba   :  { %3984 = vmatprep.subr.bf16.mxu1 %v4366_v13 }
  0xbc   :  { %3963 = vmatpush3.bf16.msra.mxu0 %v4367_v14  ;;  %v4427_v14 = vld [vmem:[%s5533_s1 + $0x710] sm:$0xff]  }
  0xbd   :  { %3985 = vmatpush3.bf16.msra.mxu1 %v4368_v15  ;;  %3964 = vmatprep.subr.bf16.mxu0 %v4369_v16  ;;  %v4428_v16 = vld [vmem:[%s5533_s1 + $0x790] sm:$0xff]  }
  0xbe   :  { %3986 = vmatprep.subr.bf16.mxu1 %v4370_v17 }
  0xc0   :  { %3965 = vmatpush3.bf16.msra.mxu0 %v4371_v18 }
  0xc1   :  { %3987 = vmatpush3.bf16.msra.mxu1 %v4372_v19  ;;  %3994 = vmatprep.subr.bf16.mxu0 %v4379_v24  ;;  %v4429_v19 = vld [vmem:[%s5533_s1 + $0x758] sm:$0xff]   ;;  %v4433_v24 = vld [vmem:[%s5533_s1 + $0x760] sm:$0xff]  }
  0xc2   :  { %4016 = vmatprep.subr.bf16.mxu1 %v4380_v25  ;;  %v4434_v25 = vld [vmem:[%s5533_s1 + $0x7e0] sm:$0xff]  }
  0xc3   :  { %2991 = vmatmul.mubr.bf16.vlgmr.msra.gmra.mrb[20].mxu0 %v4373_v20 }
  0xc4   :  { %3032 = vmatmul.mubr.bf16.vlgmr.msra.gmra.mrb[20].mxu1 %v4376_v22  ;;  %3995 = vmatpush3.bf16.msra.mxu0 %v4381_v26  ;;  %v4431_v22 = vld [vmem:[%s5533_s1 + $0x718] sm:$0xff]   ;;  %v4435_v26 = vld [vmem:[%s5533_s1 + $0x720] sm:$0xff]  }
  0xc5   :  { %4017 = vmatpush3.bf16.msra.mxu1 %v4382_v27  ;;  %3996 = vmatprep.subr.bf16.mxu0 %v4383_v28  ;;  %v4436_v27 = vld [vmem:[%s5533_s1 + $0x7a0] sm:$0xff]  }
  0xc6   :  { %4018 = vmatprep.subr.bf16.mxu1 %v4384_v29  ;;  %3072 = vmatprep.mubr.bf16.mxu0 %v4413_v57  ;;  %v3400_v28 = vld [vmem:[%s5535_s2] ss:$0 sm:$0xff] }
  0xc7   :  { %3113 = vmatprep.mubr.bf16.mxu1 %v4416_v59  ;;  %v4461_v59 = vld [vmem:[%s5533_s1 + $0x808] sm:$0xff]  }
  0xc8   :  { %3997 = vmatpush3.bf16.msra.mxu0 %v4385_v30  ;;  %v4437_v30 = vld [vmem:[%s5533_s1 + $0x768] sm:$0xff]  }
  0xc9   :  { %4019 = vmatpush3.bf16.msra.mxu1 %v4386_v31  ;;  %3998 = vmatprep.subr.bf16.mxu0 %v4387_v32  ;;  %v4438_v32 = vld [vmem:[%s5533_s1 + $0x7e8] sm:$0xff]  }
  0xca   :  { %4020 = vmatprep.subr.bf16.mxu1 %v4388_v33 }
  0xcc   :  { %3999 = vmatpush3.bf16.msra.mxu0 %v4389_v34  ;;  %v4439_v34 = vld [vmem:[%s5533_s1 + $0x728] sm:$0xff]  }
  0xcd   :  { %4021 = vmatpush3.bf16.msra.mxu1 %v4390_v35  ;;  %4000 = vmatprep.subr.bf16.mxu0 %v4391_v36  ;;  %v4440_v36 = vld [vmem:[%s5533_s1 + $0x7a8] sm:$0xff]  }
  0xce   :  { %4022 = vmatprep.subr.bf16.mxu1 %v4392_v37  ;;  %v4441_v37 = vld [vmem:[%s5533_s1 + $0x770] sm:$0xff]  }
  0xd0   :  { %4001 = vmatpush3.bf16.msra.mxu0 %v4393_v38  ;;  %v4442_v38 = vld [vmem:[%s5533_s1 + $0x7f0] sm:$0xff]  }
  0xd1   :  { %4023 = vmatpush3.bf16.msra.mxu1 %v4394_v39  ;;  %4002 = vmatprep.subr.bf16.mxu0 %v4395_v40  ;;  %v4443_v39 = vld [vmem:[%s5533_s1 + $0x730] sm:$0xff]  }
  0xd2   :  { %4024 = vmatprep.subr.bf16.mxu1 %v4396_v41  ;;  %v4444_v40 = vld [vmem:[%s5533_s1 + $0x7b0] sm:$0xff]   ;;  %v4445_v41 = vld [vmem:[%s5533_s1 + $0x778] sm:$0xff]  }
  0xd4   :  { %4003 = vmatpush3.bf16.msra.mxu0 %v4397_v42  ;;  %v4446_v42 = vld [vmem:[%s5533_s1 + $0x7f8] sm:$0xff]  }
  0xd5   :  { %4025 = vmatpush3.bf16.msra.mxu1 %v4398_v43  ;;  %4004 = vmatprep.subr.bf16.mxu0 %v4399_v44  ;;  %v4447_v43 = vld [vmem:[%s5533_s1 + $0x738] sm:$0xff]  }
  0xd6   :  { %4026 = vmatprep.subr.bf16.mxu1 %v4400_v45  ;;  %v4448_v44 = vld [vmem:[%s5533_s1 + $0x7b8] sm:$0xff]   ;;  %v4449_v45 = vld [vmem:[%s5534_s0 + $0x70] ss:$144 sps:$4 sm:$0xff]  }
  0xd8   :  { %4005 = vmatpush3.bf16.msra.mxu0 %v4401_v46  ;;  %v4451_v46 = vld [vmem:[%s5534_s0 + $0x74] ss:$144 sps:$4 sm:$0xff]  }
  0xd9   :  { %4027 = vmatpush3.bf16.msra.mxu1 %v4402_v47  ;;  %4006 = vmatprep.subr.bf16.mxu0 %v4403_v48  ;;  %v4452_v47 = vld [vmem:[%s5534_s0 + $0x78] ss:$144 sps:$4 sm:$0xff]   ;;  %v4454_v48 = vld [vmem:[%s5534_s0 + $0x7c] ss:$144 sps:$4 sm:$0xff]  }
  0xda   :  { %4028 = vmatprep.subr.bf16.mxu1 %v4404_v49  ;;  %v4455_v49 = vld [vmem:[%s5533_s1 + $0x840] sm:$0xff]  }
  0xdc   :  { %4007 = vmatpush3.bf16.msra.mxu0 %v4405_v50  ;;  %v4456_v50 = vld [vmem:[%s5533_s1 + $0x8c0] sm:$0xff]  }
  0xdd   :  { %4029 = vmatpush3.bf16.msra.mxu1 %v4406_v51  ;;  %4008 = vmatprep.subr.bf16.mxu0 %v4407_v52  ;;  %v4457_v51 = vld [vmem:[%s5533_s1 + $0x800] sm:$0xff]  }
  0xde   :  { %4030 = vmatprep.subr.bf16.mxu1 %v4408_v53  ;;  %v4458_v52 = vld [vmem:[%s5533_s1 + $0x880] sm:$0xff]  }
  0xe0   :  { %4009 = vmatpush3.bf16.msra.mxu0 %v4409_v54  ;;  %v4459_v54 = vld [vmem:[%s5533_s1 + $0x848] sm:$0xff]  }
  0xe1   :  { %4031 = vmatpush3.bf16.msra.mxu1 %v4410_v55  ;;  %4038 = vmatprep.subr.bf16.mxu0 %v4417_v60 }
  0xe2   :  { %4060 = vmatprep.subr.bf16.mxu1 %v4418_v61  ;;  %v4462_v61 = vld [vmem:[%s5533_s1 + $0x888] sm:$0xff]  }
  0xe3   :  { %3073 = vmatmul.mubr.bf16.vlgmr.msra.gmra.mrb[24].mxu0 %v4411_v56  ;;  %v4460_v56 = vld [vmem:[%s5533_s1 + $0x8c8] sm:$0xff]  }
  0xe4   :  { %3114 = vmatmul.mubr.bf16.vlgmr.msra.gmra.mrb[24].mxu1 %v4414_v58  ;;  %4039 = vmatpush3.bf16.msra.mxu0 %v4419_v62 }
  0xe5   :  { %4061 = vmatpush3.bf16.msra.mxu1 %v4420_v63  ;;  %4040 = vmatprep.subr.bf16.mxu0 %v4421_v0 }
  0xe6   :  { %4062 = vmatprep.subr.bf16.mxu1 %v4422_v2  ;;  %3154 = vmatprep.mubr.bf16.mxu0 %v4451_v46 }
  0xe7   :  { %3195 = vmatprep.mubr.bf16.mxu1 %v4454_v48 }
  0xe8   :  { %4041 = vmatpush3.bf16.msra.mxu0 %v4423_v4 }
  0xe9   :  { %4063 = vmatpush3.bf16.msra.mxu1 %v4424_v6  ;;  %4042 = vmatprep.subr.bf16.mxu0 %v4425_v9  ;;  %v4465_v6 = vld [vmem:[%s5533_s1 + $0x810] sm:$0xff]  }
  0xea   :  { %4064 = vmatprep.subr.bf16.mxu1 %v4426_v12  ;;  %v4466_v9 = vld [vmem:[%s5533_s1 + $0x890] sm:$0xff]  }
  0xec   :  { %4043 = vmatpush3.bf16.msra.mxu0 %v4427_v14  ;;  %v4469_v14 = vld [vmem:[%s5533_s1 + $0x818] sm:$0xff]  }
  0xed   :  { %4065 = vmatpush3.bf16.msra.mxu1 %v4428_v16  ;;  %4044 = vmatprep.subr.bf16.mxu0 %v4429_v19  ;;  %v4470_v16 = vld [vmem:[%s5533_s1 + $0x898] sm:$0xff]   ;;  %v4473_v19 = vld [vmem:[%s5533_s1 + $0x820] sm:$0xff]  }
  0xee   :  { %4066 = vmatprep.subr.bf16.mxu1 %v4430_v21  ;;  %v4475_v21 = vld [vmem:[%s5533_s1 + $0x868] sm:$0xff]  }
  0xf0   :  { %4045 = vmatpush3.bf16.msra.mxu0 %v4431_v22  ;;  %v4476_v22 = vld [vmem:[%s5533_s1 + $0x8e8] sm:$0xff]  }
  0xf1   :  { %4067 = vmatpush3.bf16.msra.mxu1 %v4432_v23  ;;  %4046 = vmatprep.subr.bf16.mxu0 %v4433_v24  ;;  %v4477_v23 = vld [vmem:[%s5533_s1 + $0x828] sm:$0xff]  }
  0xf2   :  { %4068 = vmatprep.subr.bf16.mxu1 %v4434_v25  ;;  %v4478_v24 = vld [vmem:[%s5533_s1 + $0x8a8] sm:$0xff]   ;;  %v4479_v25 = vld [vmem:[%s5533_s1 + $0x870] sm:$0xff]  }
  0xf4   :  { %4047 = vmatpush3.bf16.msra.mxu0 %v4435_v26  ;;  %v4480_v26 = vld [vmem:[%s5533_s1 + $0x8f0] sm:$0xff]  }
  0xf5   :  { %4069 = vmatpush3.bf16.msra.mxu1 %v4436_v27  ;;  %4048 = vmatprep.subr.bf16.mxu0 %v4437_v30  ;;  %v4481_v27 = vld [vmem:[%s5533_s1 + $0x830] sm:$0xff]   ;;  %v4484_v30 = vld [vmem:[%s5533_s1 + $0x8f8] sm:$0xff]  }
  0xf6   :  { %v3746_v1 = vpop.f32.mrb[0].mxu0  ;;  %4070 = vmatprep.subr.bf16.mxu1 %v4438_v32  ;;  %v4486_v32 = vld [vmem:[%s5533_s1 + $0x8b8] sm:$0xff]  }
  0xf7   :  { %v3768_v3 = vpop.f32.mrb[0].mxu1  ;;  %v3747_v5 = vpop.f32.mrb[1].mxu0 }
  0xf8   :  { %v3748_v7 = vadd.f32 %v3747_v5, %v3746_v1  ;;  %v3769_v8 = vpop.f32.mrb[1].mxu1  ;;  %v3749_v11 = vpop.f32.mrb[2].mxu0  ;;  %4049 = vmatpush3.bf16.msra.mxu0 %v4439_v34  ;;  %v4463_v1 = vld [vmem:[%s5533_s1 + $0x850] sm:$0xff]  }
  0xf9   :  { %v3770_v10 = vadd.f32 %v3769_v8, %v3768_v3  ;;  %v3771_v13 = vpop.f32.mrb[2].mxu1  ;;  %v3750_v15 = vpop.f32.mrb[3].mxu0  ;;  %4071 = vmatpush3.bf16.msra.mxu1 %v4440_v36  ;;  %4050 = vmatprep.subr.bf16.mxu0 %v4441_v37  ;;  %v4464_v3 = vld [vmem:[%s5533_s1 + $0x8d0] sm:$0xff]   ;;  %v4492_v36 = vld [vmem:[%s5534_s0 + $0x8c] ss:$144 sps:$4 sm:$0xff]  }
  0xfa   :  { %v3751_v17 = vadd.f32 %v3750_v15, %v3749_v11  ;;  %v3772_v18 = vpop.f32.mrb[3].mxu1  ;;  %v2583_v29 = vadd.f32 %v3748_v7, %v3400_v28  ;;  %4072 = vmatprep.subr.bf16.mxu1 %v4442_v38  ;;  %v4467_v11 = vld [vmem:[%s5533_s1 + $0x858] sm:$0xff]   ;;  %v4489_v34 = vld [vmem:[%s5534_s0 + $0x84] ss:$144 sps:$4 sm:$0xff]  }
  0xfb   :  { %v3773_v20 = vadd.f32 %v3772_v18, %v3771_v13  ;;  %v4468_v13 = vld [vmem:[%s5533_s1 + $0x8d8] sm:$0xff]   ;;  %v4472_v18 = vld [vmem:[%s5533_s1 + $0x8e0] sm:$0xff]  }
  0xfc   :  { %v2586_v31 = vadd.f32 %v3751_v17, %v3400_v28  ;;  %v2624_v33 = vadd.f32 %v3770_v10, %v2583_v29  ;;  %4051 = vmatpush3.bf16.msra.mxu0 %v4443_v39  ;;  %v4471_v17 = vld [vmem:[%s5533_s1 + $0x860] sm:$0xff]   ;;  %v4482_v28 = vld [vmem:[%s5533_s1 + $0x8b0] sm:$0xff]   ;;  %v4483_v29 = vld [vmem:[%s5533_s1 + $0x878] sm:$0xff]  }
  0xfd   :  { %4073 = vmatpush3.bf16.msra.mxu1 %v4444_v40  ;;  %4052 = vmatprep.subr.bf16.mxu0 %v4445_v41 }
  0xfe   :  { %v5359_v35 = vadd.f32 %v3773_v20, %v2586_v31  ;;  %4074 = vmatprep.subr.bf16.mxu1 %v4446_v42  ;;  %v4474_v20 = vld [vmem:[%s5533_s1 + $0x8a0] sm:$0xff]   ;;  %v4485_v31 = vld [vmem:[%s5533_s1 + $0x838] sm:$0xff]  }
 0x100   :  { %4053 = vmatpush3.bf16.msra.mxu0 %v4447_v43 }
 0x101   :  { %4075 = vmatpush3.bf16.msra.mxu1 %v4448_v44  ;;  %4082 = vmatprep.subr.bf16.mxu0 %v4455_v49 }
 0x102   :  { %4104 = vmatprep.subr.bf16.mxu1 %v4456_v50 }
 0x103   :  { %3155 = vmatmul.mubr.bf16.vlgmr.msra.gmra.mrb[28].mxu0 %v4449_v45 }
 0x104   :  { %3196 = vmatmul.mubr.bf16.vlgmr.msra.gmra.mrb[28].mxu1 %v4452_v47  ;;  %4083 = vmatpush3.bf16.msra.mxu0 %v4457_v51 }
 0x105   :  { %4105 = vmatpush3.bf16.msra.mxu1 %v4458_v52  ;;  %4084 = vmatprep.subr.bf16.mxu0 %v4459_v54 }
 0x106   :  { %4106 = vmatprep.subr.bf16.mxu1 %v4460_v56  ;;  %3236 = vmatprep.mubr.bf16.mxu0 %v4489_v34 }
 0x107   :  { %3277 = vmatprep.mubr.bf16.mxu1 %v4492_v36 }
 0x108   :  { %4085 = vmatpush3.bf16.msra.mxu0 %v4461_v59 }
 0x109   :  { %4107 = vmatpush3.bf16.msra.mxu1 %v4462_v61  ;;  %4086 = vmatprep.subr.bf16.mxu0 %v4463_v1 }
 0x10a   :  { %4108 = vmatprep.subr.bf16.mxu1 %v4464_v3 }
 0x10c   :  { %4087 = vmatpush3.bf16.msra.mxu0 %v4465_v6 }
 0x10d   :  { %4109 = vmatpush3.bf16.msra.mxu1 %v4466_v9  ;;  %4088 = vmatprep.subr.bf16.mxu0 %v4467_v11 }
 0x10e   :  { %4110 = vmatprep.subr.bf16.mxu1 %v4468_v13 }
 0x110   :  { %4089 = vmatpush3.bf16.msra.mxu0 %v4469_v14 }
 0x111   :  { %4111 = vmatpush3.bf16.msra.mxu1 %v4470_v16  ;;  %4090 = vmatprep.subr.bf16.mxu0 %v4471_v17 }
 0x112   :  { %4112 = vmatprep.subr.bf16.mxu1 %v4472_v18 }
 0x114   :  { %4091 = vmatpush3.bf16.msra.mxu0 %v4473_v19 }
 0x115   :  { %4113 = vmatpush3.bf16.msra.mxu1 %v4474_v20  ;;  %4092 = vmatprep.subr.bf16.mxu0 %v4475_v21  ;;  %v3288_v21 = vld [vmem:[%s5536_s3] sm:$0xff] }
 0x116   :  { %v3790_v53 = vpop.f32.mrb[4].mxu0  ;;  %4114 = vmatprep.subr.bf16.mxu1 %v4476_v22  ;;  %v3289_v22 = vld [vmem:[%s5536_s3 + $0x8] sm:$0xff] }
 0x117   :  { %v3791_v55 = vpop.f32.mrb[5].mxu0  ;;  %v3812_v57 = vpop.f32.mrb[4].mxu1 }
 0x118   :  { %v3792_v58 = vadd.f32 %v3791_v55, %v3790_v53  ;;  %v3813_v60 = vpop.f32.mrb[5].mxu1  ;;  %v3793_v0 = vpop.f32.mrb[6].mxu0  ;;  %4093 = vmatpush3.bf16.msra.mxu0 %v4477_v23  ;;  %v4143_v23 = vpack.c.bf16 %v3289_v22, %v3288_v21 }
 0x119   :  { %v3814_v63 = vadd.f32 %v3813_v60, %v3812_v57  ;;  %v3815_v2 = vpop.f32.mrb[6].mxu1  ;;  %v3794_v5 = vpop.f32.mrb[7].mxu0  ;;  %4115 = vmatpush3.bf16.msra.mxu1 %v4478_v24  ;;  %4094 = vmatprep.subr.bf16.mxu0 %v4479_v25  ;;  %v3290_v24 = vld [vmem:[%s5536_s3 + $0x10] sm:$0xff]  ;;  %v3291_v25 = vld [vmem:[%s5536_s3 + $0x18] sm:$0xff] }
 0x11a   :  { %v2665_v62 = vadd.f32 %v3792_v58, %v2624_v33  ;;  %v3795_v7 = vadd.f32 %v3794_v5, %v3793_v0  ;;  %v3816_v8 = vpop.f32.mrb[7].mxu1  ;;  %4116 = vmatprep.subr.bf16.mxu1 %v4480_v26  ;;  %v4487_v33 = vld [vmem:[%s5534_s0 + $0x80] ss:$144 sps:$4 sm:$0xff]   ;;  %v4147_v26 = vpack.c.bf16 %v3291_v25, %v3290_v24 }
 0x11b   :  { %v3817_v10 = vadd.f32 %v3816_v8, %v3815_v2 }
 0x11c   :  { %v5430_v4 = vadd.f32 %v3814_v63, %v2665_v62  ;;  %v2668_v12 = vadd.f32 %v3795_v7, %v5359_v35  ;;  %4095 = vmatpush3.bf16.msra.mxu0 %v4481_v27  ;;  %v4490_v35 = vld [vmem:[%s5534_s0 + $0x88] ss:$144 sps:$4 sm:$0xff]  }
 0x11d   :  { %4117 = vmatpush3.bf16.msra.mxu1 %v4482_v28  ;;  %4096 = vmatprep.subr.bf16.mxu0 %v4483_v29 }
 0x11e   :  { %v2709_v15 = vadd.f32 %v3817_v10, %v2668_v12  ;;  %4118 = vmatprep.subr.bf16.mxu1 %v4484_v30 }
 0x120   :  { %4097 = vmatpush3.bf16.msra.mxu0 %v4485_v31 }
 0x121   :  { %4119 = vmatpush3.bf16.msra.mxu1 %v4486_v32  ;;  %4144 = vmatprep.subr.bf16.mxu0 %v4143_v23 }
 0x123   :  { %3237 = vmatmul.mubr.bf16.vlgmr.msra.gmra.mrb[32].mxu0 %v4487_v33 }
 0x124   :  { %3278 = vmatmul.mubr.bf16.vlgmr.msra.gmra.mrb[32].mxu1 %v4490_v35  ;;  %4146 = vmatpush3.bf16.msra.mxu0 %v4143_v23 }
 0x125   :  { %4148 = vmatprep.subr.bf16.mxu0 %v4147_v26 }
 0x128   :  { %4150 = vmatpush3.bf16.msra.mxu0 %v4147_v26 }
 0x136   :  { %v3834_v37 = vpop.f32.mrb[8].mxu0 }
 0x137   :  { %v3856_v38 = vpop.f32.mrb[8].mxu1  ;;  %v3835_v39 = vpop.f32.mrb[9].mxu0 }
 0x138   :  { %v3836_v40 = vadd.f32 %v3835_v39, %v3834_v37  ;;  %v3857_v41 = vpop.f32.mrb[9].mxu1  ;;  %v3837_v42 = vpop.f32.mrb[10].mxu0 }
 0x139   :  { %v3858_v43 = vadd.f32 %v3857_v41, %v3856_v38  ;;  %v3859_v44 = vpop.f32.mrb[10].mxu1  ;;  %v3838_v45 = vpop.f32.mrb[11].mxu0 }
 0x13a   :  { %v2747_v46 = vadd.f32 %v3836_v40, %v5430_v4  ;;  %v3839_v47 = vadd.f32 %v3838_v45, %v3837_v42  ;;  %v3860_v48 = vpop.f32.mrb[11].mxu1 }
 0x13b   :  { %v3861_v49 = vadd.f32 %v3860_v48, %v3859_v44 }
 0x13c   :  { %v2788_v50 = vadd.f32 %v3858_v43, %v2747_v46  ;;  %v2750_v51 = vadd.f32 %v3839_v47, %v2709_v15 }
 0x13e   :  { %v2791_v52 = vadd.f32 %v3861_v49, %v2750_v51 }
 0x156   :  { %v3878_v53 = vpop.f32.mrb[12].mxu0 }
 0x157   :  { %v3900_v54 = vpop.f32.mrb[12].mxu1  ;;  %v3879_v55 = vpop.f32.mrb[13].mxu0 }
 0x158   :  { %v3880_v56 = vadd.f32 %v3879_v55, %v3878_v53  ;;  %v3901_v57 = vpop.f32.mrb[13].mxu1  ;;  %v3881_v58 = vpop.f32.mrb[14].mxu0 }
 0x159   :  { %v3902_v59 = vadd.f32 %v3901_v57, %v3900_v54  ;;  %v3903_v60 = vpop.f32.mrb[14].mxu1  ;;  %v3882_v61 = vpop.f32.mrb[15].mxu0 }
 0x15a   :  { %v2829_v62 = vadd.f32 %v3880_v56, %v2788_v50  ;;  %v3883_v63 = vadd.f32 %v3882_v61, %v3881_v58  ;;  %v3904_v0 = vpop.f32.mrb[15].mxu1 }
 0x15b   :  { %v3905_v1 = vadd.f32 %v3904_v0, %v3903_v60 }
 0x15c   :  { %v2870_v2 = vadd.f32 %v3902_v59, %v2829_v62  ;;  %v2832_v3 = vadd.f32 %v3883_v63, %v2791_v52 }
 0x15e   :  { %v2873_v4 = vadd.f32 %v3905_v1, %v2832_v3 }
 0x176   :  { %v3922_v5 = vpop.f32.mrb[16].mxu0 }
 0x177   :  { %v3923_v6 = vpop.f32.mrb[17].mxu0  ;;  %v3944_v7 = vpop.f32.mrb[16].mxu1 }
 0x178   :  { %v3924_v8 = vadd.f32 %v3923_v6, %v3922_v5  ;;  %v3925_v9 = vpop.f32.mrb[18].mxu0  ;;  %v3945_v10 = vpop.f32.mrb[17].mxu1 }
 0x179   :  { %v3926_v11 = vpop.f32.mrb[19].mxu0  ;;  %v3946_v13 = vadd.f32 %v3945_v10, %v3944_v7  ;;  %v3947_v14 = vpop.f32.mrb[18].mxu1 }
 0x17a   :  { %v2911_v12 = vadd.f32 %v3924_v8, %v2870_v2  ;;  %v3927_v15 = vadd.f32 %v3926_v11, %v3925_v9  ;;  %v3948_v16 = vpop.f32.mrb[19].mxu1 }
 0x17b   :  { %v3949_v19 = vadd.f32 %v3948_v16, %v3947_v14 }
 0x17c   :  { %v2952_v17 = vadd.f32 %v3946_v13, %v2911_v12  ;;  %v2914_v18 = vadd.f32 %v3927_v15, %v2873_v4 }
 0x17e   :  { %v2955_v20 = vadd.f32 %v3949_v19, %v2914_v18 }
 0x196   :  { %v3966_v27 = vpop.f32.mrb[20].mxu0 }
 0x197   :  { %v3988_v28 = vpop.f32.mrb[20].mxu1  ;;  %v3967_v29 = vpop.f32.mrb[21].mxu0 }
 0x198   :  { %v3968_v30 = vadd.f32 %v3967_v29, %v3966_v27  ;;  %v3989_v31 = vpop.f32.mrb[21].mxu1  ;;  %v3969_v32 = vpop.f32.mrb[22].mxu0  ;;  %v3725_v29 = vld [vmem:[%s5537_s4] ss:$0 sm:$0xff] }
 0x199   :  { %v3990_v33 = vadd.f32 %v3989_v31, %v3988_v28  ;;  %v3991_v34 = vpop.f32.mrb[22].mxu1  ;;  %v3970_v35 = vpop.f32.mrb[23].mxu0 }
 0x19a   :  { %v2993_v36 = vadd.f32 %v3968_v30, %v2952_v17  ;;  %v3971_v37 = vadd.f32 %v3970_v35, %v3969_v32  ;;  %v3992_v38 = vpop.f32.mrb[23].mxu1 }
 0x19b   :  { %v3993_v39 = vadd.f32 %v3992_v38, %v3991_v34 }
 0x19c   :  { %v3034_v40 = vadd.f32 %v3990_v33, %v2993_v36  ;;  %v2996_v41 = vadd.f32 %v3971_v37, %v2955_v20 }
 0x19e   :  { %v3037_v42 = vadd.f32 %v3993_v39, %v2996_v41 }
 0x1b6   :  { %v4010_v43 = vpop.f32.mrb[24].mxu0 }
 0x1b7   :  { %v4032_v44 = vpop.f32.mrb[24].mxu1  ;;  %v4011_v45 = vpop.f32.mrb[25].mxu0 }
 0x1b8   :  { %v4012_v46 = vadd.f32 %v4011_v45, %v4010_v43  ;;  %v4033_v47 = vpop.f32.mrb[25].mxu1  ;;  %v4013_v48 = vpop.f32.mrb[26].mxu0 }
 0x1b9   :  { %v4034_v49 = vadd.f32 %v4033_v47, %v4032_v44  ;;  %v4035_v50 = vpop.f32.mrb[26].mxu1  ;;  %v4014_v51 = vpop.f32.mrb[27].mxu0 }
 0x1ba   :  { %v3075_v52 = vadd.f32 %v4012_v46, %v3034_v40  ;;  %v4015_v53 = vadd.f32 %v4014_v51, %v4013_v48  ;;  %v4036_v54 = vpop.f32.mrb[27].mxu1 }
 0x1bb   :  { %v4037_v55 = vadd.f32 %v4036_v54, %v4035_v50 }
 0x1bc   :  { %v3116_v56 = vadd.f32 %v4034_v49, %v3075_v52  ;;  %v3078_v57 = vadd.f32 %v4015_v53, %v3037_v42 }
 0x1be   :  { %v3119_v58 = vadd.f32 %v4037_v55, %v3078_v57 }
 0x1d6   :  { %v4054_v59 = vpop.f32.mrb[28].mxu0 }
 0x1d7   :  { %v4076_v60 = vpop.f32.mrb[28].mxu1  ;;  %v4055_v61 = vpop.f32.mrb[29].mxu0 }
 0x1d8   :  { %v4056_v62 = vadd.f32 %v4055_v61, %v4054_v59  ;;  %v4077_v63 = vpop.f32.mrb[29].mxu1  ;;  %v4057_v0 = vpop.f32.mrb[30].mxu0 }
 0x1d9   :  { %v4078_v1 = vadd.f32 %v4077_v63, %v4076_v60  ;;  %v4079_v2 = vpop.f32.mrb[30].mxu1  ;;  %v4058_v3 = vpop.f32.mrb[31].mxu0 }
 0x1da   :  { %v3157_v4 = vadd.f32 %v4056_v62, %v3116_v56  ;;  %v4059_v5 = vadd.f32 %v4058_v3, %v4057_v0  ;;  %v4080_v6 = vpop.f32.mrb[31].mxu1 }
 0x1db   :  { %v4081_v7 = vadd.f32 %v4080_v6, %v4079_v2 }
 0x1dc   :  { %v3198_v8 = vadd.f32 %v4078_v1, %v3157_v4  ;;  %v3160_v9 = vadd.f32 %v4059_v5, %v3119_v58 }
 0x1de   :  { %v3201_v10 = vadd.f32 %v4081_v7, %v3160_v9 }
 0x1f6   :  { %v4098_v11 = vpop.f32.mrb[32].mxu0 }
 0x1f7   :  { %v4099_v12 = vpop.f32.mrb[33].mxu0  ;;  %v4120_v13 = vpop.f32.mrb[32].mxu1 }
 0x1f8   :  { %v4100_v14 = vadd.f32 %v4099_v12, %v4098_v11  ;;  %v4101_v15 = vpop.f32.mrb[34].mxu0  ;;  %v4121_v16 = vpop.f32.mrb[33].mxu1 }
 0x1f9   :  { %v4102_v17 = vpop.f32.mrb[35].mxu0  ;;  %v4122_v19 = vadd.f32 %v4121_v16, %v4120_v13  ;;  %v4123_v20 = vpop.f32.mrb[34].mxu1 }
 0x1fa   :  { %v3239_v18 = vadd.f32 %v4100_v14, %v3198_v8  ;;  %v4103_v21 = vadd.f32 %v4102_v17, %v4101_v15  ;;  %v4124_v22 = vpop.f32.mrb[35].mxu1 }
 0x1fb   :  { %v4125_v25 = vadd.f32 %v4124_v22, %v4123_v20 }
 0x1fc   :  { %v3280_v23 = vadd.f32 %v4122_v19, %v3239_v18  ;;  %v3242_v24 = vadd.f32 %v4103_v21, %v3201_v10 }
 0x1fe   :  { %v3286_v26 = vmax.f32 %v3280_v23, 0.0  ;;  %v3283_v27 = vadd.f32 %v4125_v25, %v3242_v24 }
 0x200   :  { %v3287_v28 = vmax.f32 %v3283_v27, 0.0  ;;  %4140 = vmatprep.mubr.msk.f32.mxu0 %vm3299_vm0, %v3286_v26 }
 0x202   :  { %4141 = vmatmul.mubr.msk.f32.vlgmr.msra.gmra.mrb[36].mxu0 %vm3299_vm0, %v3287_v28 }
 0x2d5   :  { %v4142_v30 = vpop.f32.mrb[36].mxu0 }
 0x2d6   :  { %v3378_v31 = vadd.f32 %v4142_v30, %v3725_v29  ;;  %v3372_v32 = vpop.f32.mrb[37].mxu0 }
 0x2d7   :  { %v3373_v33 = vadd.f32 %v3725_v29, %v3372_v32 }
 0x2d8   :  { %v3729_v34 = vmul.f32 -1.442695, %v3378_v31 }
 0x2d9   :  { %v3728_v35 = vmul.f32 -1.442695, %v3373_v33 }
 0x2da   :  { %4493 = vpow2.f32 %v3729_v34 }
 0x2db   :  { %4495 = vpow2.f32 %v3728_v35 }
 0x2e4   :  { %v4494_v36 = vpop.eup %4493 }
 0x2e5   :  { %v4496_v37 = vpop.eup %4495  ;;  %v3388_v38 = vadd.f32 1.0, %v4494_v36 }
 0x2e6   :  { %v3387_v39 = vadd.f32 1.0, %v4496_v37 }
 0x2e7   :  { %4497 = vrcp.f32 %v3388_v38 }
 0x2e8   :  { %4499 = vrcp.f32 %v3387_v39 }
 0x2f1   :  { %v4498_v40 = vpop.eup %4497 }
 0x2f2   :  { %v4500_v41 = vpop.eup %4499  ;;  %3395 = vst.msk [vmem:[%s5538_s5 + $0x8] sm:$0xff] %vm3393_vm1, %v4498_v40 }
 0x2f3   :  { %3394 = vst.msk [vmem:[%s5538_s5] sm:$0xff] %vm3393_vm1, %v4500_v41 }

</bundles_post_ra>
